<compile_context>
chip_gen: v7x
topology: tpu7x:2x2x1
jax: 0.10.0
libtpu: 0.0.40
codegen_flags: <defaults>
</compile_context>

<pallas_src>
import functools

import jax
import jax.numpy as jnp
from jax import lax
from jax.experimental import pallas as pl
from jax.experimental.pallas import tpu as pltpu


# ----------------------------------------------------------------------------
# Pallas kernel: one output tile = dot(A, B) + bias [+ residual] [+ ReLU]
# ----------------------------------------------------------------------------
def _mm_kernel(*refs, relu, has_res):
    if has_res:
        a_ref, b_ref, bias_ref, res_ref, o_ref = refs
    else:
        a_ref, b_ref, bias_ref, o_ref = refs
        res_ref = None

    # bf16 operands on the MXU, f32 accumulation; epilogue stays f32 (v5e VPU).
    acc = jnp.dot(a_ref[...], b_ref[...], preferred_element_type=jnp.float32)
    out = acc + bias_ref[...]                       # (1, tn) f32 broadcast
    if has_res:
        out = out + res_ref[...].astype(jnp.float32)
    if relu:
        out = jnp.maximum(out, 0.0)
    o_ref[...] = out.astype(o_ref.dtype)


# ----------------------------------------------------------------------------
# Pallas wrapper
# ----------------------------------------------------------------------------
def _round_up(x, m):
    return (x + m - 1) // m * m


def _pick_tiles(M, N):
    """Right-size (tm, tn) for the problem; keep >= 2 'parallel' grid blocks so
    both of v7x's TensorCores get work (everything fits VMEM trivially)."""
    tm = min(512, _round_up(M, 8))
    tn = min(256, N)
    while (-(-M // tm)) * (N // tn) < 2:
        if tm > 8:
            tm = _round_up(tm // 2, 8)
        elif tn > 128:
            tn //= 2
        else:
            break
    return tm, tn


def pallas_matmul_bias(a, b, bias, residual=None, relu=False):
    """out = [relu](a @ b + bias [+ residual]).

    a (M,K) bf16 patch matrix, b (K,N) bf16 pre-padded weight with N % 128 == 0,
    bias (1,N) f32, residual (M,N) bf16.  Full-K single block: no K grid axis,
    no scratch, accumulate + epilogue + store in one step per output tile.
    """
    M, K = a.shape
    K2, N = b.shape
    assert K == K2 and N % 128 == 0
    tm, tn = _pick_tiles(M, N)
    assert N % tn == 0

    Mp = _round_up(M, tm)
    if Mp != M:
        a = jnp.pad(a, ((0, Mp - M), (0, 0)))
        if residual is not None:
            residual = jnp.pad(residual, ((0, Mp - M), (0, 0)))

    has_res = residual is not None
    inputs = [a, b, bias]
    in_specs = [
        pl.BlockSpec((tm, K), lambda i, j: (i, 0)),
        pl.BlockSpec((K, tn), lambda i, j: (0, j)),
        pl.BlockSpec((1, tn), lambda i, j: (0, j)),
    ]
    if has_res:
        inputs.append(residual)
        in_specs.append(pl.BlockSpec((tm, tn), lambda i, j: (i, j)))

    kernel = functools.partial(_mm_kernel, relu=relu, has_res=has_res)
    out = pl.pallas_call(
        kernel,
        out_shape=jax.ShapeDtypeStruct((Mp, N), jnp.bfloat16),
        grid_spec=pltpu.PrefetchScalarGridSpec(
            num_scalar_prefetch=0,
            grid=(Mp // tm, N // tn),
            in_specs=in_specs,
            out_specs=pl.BlockSpec((tm, tn), lambda i, j: (i, j)),
        ),
        compiler_params=pltpu.CompilerParams(
            dimension_semantics=("parallel", "parallel")),
    )(*inputs)
    return out if Mp == M else out[:M]


# ----------------------------------------------------------------------------
# Conv / pool glue (XLA) around the Pallas matmul
# ----------------------------------------------------------------------------
def im2col(x, kh, kw, stride, pad):
    """x: NHWC bf16 -> (N*OH*OW, kh*kw*C) patch matrix (XLA glue).

    # TODO(synk): fuse the kh*kw tap extraction into the matmul kernel (per-tap
    # index_maps over the padded NHWC activation) to avoid materializing the
    # patch matrix in HBM entirely.
    """
    N, H, W, C = x.shape
    if kh == 1 and kw == 1 and pad == 0:            # 1x1 convs: no patch expansion
        patch = x[:, ::stride, ::stride, :]
        n, oh, ow, c = patch.shape
        return patch.reshape(n * oh * ow, c), (n, oh, ow)

    xp = jnp.pad(x, ((0, 0), (pad, pad), (pad, pad), (0, 0)))
    OH = (H + 2 * pad - kh) // stride + 1
    OW = (W + 2 * pad - kw) // stride + 1
    cols = []
    for dh in range(kh):
        for dw in range(kw):
            patch = lax.slice(
                xp,
                (0, dh, dw, 0),
                (N, dh + (OH - 1) * stride + 1, dw + (OW - 1) * stride + 1, C),
                (1, stride, stride, 1))
            cols.append(patch)                      # (N, OH, OW, C)
    patches = jnp.stack(cols, axis=3)               # (N, OH, OW, kh*kw, C)
    return patches.reshape(N * OH * OW, kh * kw * C), (N, OH, OW)


def conv_bn_act(x, p, kh, kw, stride, pad, relu, residual=None):
    """Folded conv+BN (+residual, +ReLU).  x NHWC bf16, p['w'] (kh*kw*ICp, OCp) bf16."""
    w, b = p['w'], p['b']
    ocp = w.shape[1]
    assert w.shape[0] == kh * kw * x.shape[-1]
    a, (N, OH, OW) = im2col(x, kh, kw, stride, pad)
    res_mat = residual.reshape(N * OH * OW, ocp) if residual is not None else None
    out = pallas_matmul_bias(a, w, b, residual=res_mat, relu=relu)
    return out.reshape(N, OH, OW, ocp)


def maxpool_3x3_s2_p1(x):
    """3x3/s2/p1 maxpool as a fused XLA maximum tree over the 9 window taps.

    Reviewer-recommended form: avoids stacking 9 taps through HBM plus an extra
    pallas_call; XLA fuses the strided slices into the max reduction.
    """
    N, H, W, C = x.shape
    OH = (H + 2 - 3) // 2 + 1
    OW = (W + 2 - 3) // 2 + 1
    neg = jnp.finfo(x.dtype).min
    xp = jnp.pad(x, ((0, 0), (1, 1), (1, 1), (0, 0)), constant_values=neg)
    out = None
    for dh in range(3):
        for dw in range(3):
            tap = lax.slice(
                xp,
                (0, dh, dw, 0),
                (N, dh + (OH - 1) * 2 + 1, dw + (OW - 1) * 2 + 1, C),
                (1, 2, 2, 1))
            out = tap if out is None else jnp.maximum(out, tap)
    return out


# ----------------------------------------------------------------------------
# ResNet18 structure (conv1/bn1/relu/maxpool + layer1..3), eval-mode BN folded.
# Weights are pre-reshaped/pre-padded ONCE here (no per-forward pad ops).
# ----------------------------------------------------------------------------
_BN_EPS = 1e-5
_LANE = 128   # keep the channel (lane) dim >= 128 everywhere after conv1


def make_conv_bn(key, kh, kw, ic, oc, icp=None, ocp=None):
    icp = ic if icp is None else icp
    ocp = oc if ocp is None else ocp
    k1, k2, k3, k4, k5 = jax.random.split(key, 5)
    fan_in = kh * kw * ic
    w = jax.random.normal(k1, (kh, kw, ic, oc), jnp.float32) / jnp.sqrt(fan_in)
    gamma = jax.random.uniform(k2, (oc,), jnp.float32, 0.5, 1.5)
    beta = jax.random.normal(k3, (oc,), jnp.float32) * 0.1
    mean = jax.random.normal(k4, (oc,), jnp.float32) * 0.1
    var = jax.random.uniform(k5, (oc,), jnp.float32, 0.5, 1.5)
    scale = gamma / jnp.sqrt(var + _BN_EPS)
    w_fold = w * scale                                # (kh, kw, ic, oc)
    b_fold = beta - mean * scale                      # (oc,)
    # Embed into padded channel dims (zeros), reshape to the matmul operand.
    w_pad = jnp.zeros((kh, kw, icp, ocp), jnp.float32).at[:, :, :ic, :oc].set(w_fold)
    b_pad = jnp.zeros((ocp,), jnp.float32).at[:oc].set(b_fold)
    return {'w': w_pad.reshape(kh * kw * icp, ocp).astype(jnp.bfloat16),
            'b': b_pad.reshape(1, ocp)}


def make_basic_block(key, ic, oc, downsample, icp, ocp):
    ks = jax.random.split(key, 3)
    blk = {'conv1': make_conv_bn(ks[0], 3, 3, ic, oc, icp, ocp),
           'conv2': make_conv_bn(ks[1], 3, 3, oc, oc, ocp, ocp)}
    if downsample:
        blk['down'] = make_conv_bn(ks[2], 1, 1, ic, oc, icp, ocp)
    return blk


def make_layer(key, ic, oc, stride, icp, ocp):
    k0, k1 = jax.random.split(key, 2)
    downsample = (stride != 1) or (ic != oc)
    return [make_basic_block(k0, ic, oc, downsample, icp, ocp),
            make_basic_block(k1, oc, oc, False, ocp, ocp)]


def make_pixel_encoder_params(key):
    ks = jax.random.split(key, 4)
    # TODO(synk): no pretrained torchvision resnet18 checkpoint is loaded;
    # weights are synthetic deterministic stand-ins with the same real shapes.
    return {
        'conv1': make_conv_bn(ks[0], 7, 7, 3, 64, icp=3, ocp=_LANE),
        'layer1': make_layer(ks[1], 64, 64, 1, icp=_LANE, ocp=_LANE),   # res2
        'layer2': make_layer(ks[2], 64, 128, 2, icp=_LANE, ocp=_LANE),
        'layer3': make_layer(ks[3], 128, 256, 2, icp=_LANE, ocp=256),
    }


# ----------------------------------------------------------------------------
# Forward
# ----------------------------------------------------------------------------
def basic_block_fwd(x, blk, stride):
    identity = x
    out = conv_bn_act(x, blk['conv1'], 3, 3, stride=stride, pad=1, relu=True)
    if 'down' in blk:
        identity = conv_bn_act(x, blk['down'], 1, 1, stride=stride, pad=0,
                               relu=False)
    # conv2 + BN + residual add + ReLU, all fused in the Pallas matmul epilogue.
    out = conv_bn_act(out, blk['conv2'], 3, 3, stride=1, pad=1, relu=True,
                      residual=identity)
    return out


def layer_fwd(x, layer, stride):
    x = basic_block_fwd(x, layer[0], stride)
    x = basic_block_fwd(x, layer[1], 1)
    return x


def pixel_encoder_forward(x_nchw, params):
    """x_nchw: (N, 3, H, W) f32 -> (f16, f8, f4) in NCHW f32, like the torch module."""
    # TODO(synk): further call-count reduction (fuse conv1+maxpool / whole basic
    # blocks into single pallas_calls via pltpu.emit_pipeline) left as future work.
    x = jnp.transpose(x_nchw, (0, 2, 3, 1)).astype(jnp.bfloat16)   # NHWC bf16
    x = conv_bn_act(x, params['conv1'], 7, 7, stride=2, pad=3, relu=True)
    x = maxpool_3x3_s2_p1(x)
    f4p = layer_fwd(x, params['layer1'], stride=1)     # 128 lanes, 64 real channels
    f8 = layer_fwd(f4p, params['layer2'], stride=2)
    f16 = layer_fwd(f8, params['layer3'], stride=2)
    f4 = f4p[..., :64]                                 # drop lane padding
    to_nchw = lambda t: jnp.transpose(t, (0, 3, 1, 2)).astype(jnp.float32)
    return to_nchw(f16), to_nchw(f8), to_nchw(f4)


# ----------------------------------------------------------------------------
if __name__ == "__main__":
    key = jax.random.PRNGKey(0)
    k_param, k_input = jax.random.split(key)

    params = make_pixel_encoder_params(k_param)
    x = jax.random.normal(k_input, (2, 3, 64, 64), jnp.float32)    # NCHW input

    fwd = jax.jit(pixel_encoder_forward)
    f16, f8, f4 = fwd(x, params)
    jax.block_until_ready((f16, f8, f4))

    assert f16.shape == (2, 256, 4, 4), f16.shape
    assert f8.shape == (2, 128, 8, 8), f8.shape
    assert f4.shape == (2, 64, 16, 16), f4.shape
    assert bool(jnp.isfinite(f16).all() & jnp.isfinite(f8).all()
                & jnp.isfinite(f4).all())

    print("KERNEL_OK")
</pallas_src>

<mosaic_0001>
module attributes {stable_mosaic.version = 11 : i64} {
  func.func @_mm_kernel(%arg0: i32, %arg1: i32, %arg2: memref<512x147xbf16, #tpu.memory_space<vmem>>, %arg3: memref<147x128xbf16, #tpu.memory_space<vmem>>, %arg4: memref<1x128xf32, #tpu.memory_space<vmem>>, %arg5: memref<512x128xbf16, #tpu.memory_space<vmem>>) attributes {dimension_semantics = [#tpu.dimension_semantics<parallel>, #tpu.dimension_semantics<parallel>], iteration_bounds = array<i64: 4, 1>, scalar_prefetch = 0 : i64, scratch_operands = 0 : i64, tpu.core_type = #tpu.core_type<tc>, window_params = [{transform_indices = @transform_0, window_bounds = array<i64: 512, 147>}, {transform_indices = @transform_1, window_bounds = array<i64: 147, 128>}, {transform_indices = @transform_2, window_bounds = array<i64: 1, 128>}, {transform_indices = @transform_3, window_bounds = array<i64: 512, 128>}]} {
    %c0 = arith.constant 0 : index
    %c0_0 = arith.constant 0 : index
    %0 = vector.load %arg2[%c0, %c0_0] : memref<512x147xbf16, #tpu.memory_space<vmem>>, vector<512x147xbf16>
    %c0_1 = arith.constant 0 : index
    %c0_2 = arith.constant 0 : index
    %1 = vector.load %arg3[%c0_1, %c0_2] : memref<147x128xbf16, #tpu.memory_space<vmem>>, vector<147x128xbf16>
    %cst = arith.constant dense<0.000000e+00> : vector<512x128xf32>
    %2 = tpu.matmul %0, %1, %cst {dimension_numbers = #tpu.dot_dimension_numbers<[1], [0], [0], [1], [0, 0, 1, 1], [], []>} : vector<512x147xbf16>, vector<147x128xbf16>, vector<512x128xf32> -> vector<512x128xf32>
    %c0_3 = arith.constant 0 : index
    %c0_4 = arith.constant 0 : index
    %3 = vector.load %arg4[%c0_3, %c0_4] : memref<1x128xf32, #tpu.memory_space<vmem>>, vector<1x128xf32>
    %4 = vector.broadcast %3 : vector<1x128xf32> to vector<512x128xf32>
    %5 = arith.addf %2, %4 : vector<512x128xf32>
    %cst_5 = arith.constant 0.000000e+00 : f32
    %6 = vector.broadcast %cst_5 : f32 to vector<512x128xf32>
    %7 = arith.maximumf %5, %6 : vector<512x128xf32>
    %8 = arith.truncf %7 : vector<512x128xf32> to vector<512x128xbf16>
    %c0_6 = arith.constant 0 : index
    %c0_7 = arith.constant 0 : index
    %9 = vector.load %arg5[%c0_6, %c0_7] : memref<512x128xbf16, #tpu.memory_space<vmem>>, vector<512x128xbf16>
    tpu.vector_store %arg5[%c0_6, %c0_7], %8 {strides = array<i32>} : memref<512x128xbf16, #tpu.memory_space<vmem>>, vector<512x128xbf16>,
    return
  }
  func.func @transform_0(%arg0: i32, %arg1: i32) -> (i32, i32) {
    %c0_i32 = arith.constant 0 : i32
    %c0_i32_0 = arith.constant 0 : i32
    return %arg0, %c0_i32 : i32, i32
  }
  func.func @transform_1(%arg0: i32, %arg1: i32) -> (i32, i32) {
    %c0_i32 = arith.constant 0 : i32
    %c0_i32_0 = arith.constant 0 : i32
    return %c0_i32, %arg1 : i32, i32
  }
  func.func @transform_2(%arg0: i32, %arg1: i32) -> (i32, i32) {
    %c0_i32 = arith.constant 0 : i32
    %c0_i32_0 = arith.constant 0 : i32
    return %c0_i32, %arg1 : i32, i32
  }
  func.func @transform_3(%arg0: i32, %arg1: i32) -> (i32, i32) {
    %c0_i32 = arith.constant 0 : i32
    return %arg0, %arg1 : i32, i32
  }
}

module attributes {stable_mosaic.version = 11 : i64} {
  func.func @_mm_kernel(%arg0: i32, %arg1: i32, %arg2: memref<256x1152xbf16, #tpu.memory_space<vmem>>, %arg3: memref<1152x128xbf16, #tpu.memory_space<vmem>>, %arg4: memref<1x128xf32, #tpu.memory_space<vmem>>, %arg5: memref<256x128xbf16, #tpu.memory_space<vmem>>) attributes {dimension_semantics = [#tpu.dimension_semantics<parallel>, #tpu.dimension_semantics<parallel>], iteration_bounds = array<i64: 2, 1>, scalar_prefetch = 0 : i64, scratch_operands = 0 : i64, tpu.core_type = #tpu.core_type<tc>, window_params = [{transform_indices = @transform_0, window_bounds = array<i64: 256, 1152>}, {transform_indices = @transform_1, window_bounds = array<i64: 1152, 128>}, {transform_indices = @transform_2, window_bounds = array<i64: 1, 128>}, {transform_indices = @transform_3, window_bounds = array<i64: 256, 128>}]} {
    %c0 = arith.constant 0 : index
    %c0_0 = arith.constant 0 : index
    %0 = vector.load %arg2[%c0, %c0_0] : memref<256x1152xbf16, #tpu.memory_space<vmem>>, vector<256x1152xbf16>
    %c0_1 = arith.constant 0 : index
    %c0_2 = arith.constant 0 : index
    %1 = vector.load %arg3[%c0_1, %c0_2] : memref<1152x128xbf16, #tpu.memory_space<vmem>>, vector<1152x128xbf16>
    %cst = arith.constant dense<0.000000e+00> : vector<256x128xf32>
    %2 = tpu.matmul %0, %1, %cst {dimension_numbers = #tpu.dot_dimension_numbers<[1], [0], [0], [1], [0, 0, 1, 1], [], []>} : vector<256x1152xbf16>, vector<1152x128xbf16>, vector<256x128xf32> -> vector<256x128xf32>
    %c0_3 = arith.constant 0 : index
    %c0_4 = arith.constant 0 : index
    %3 = vector.load %arg4[%c0_3, %c0_4] : memref<1x128xf32, #tpu.memory_space<vmem>>, vector<1x128xf32>
    %4 = vector.broadcast %3 : vector<1x128xf32> to vector<256x128xf32>
    %5 = arith.addf %2, %4 : vector<256x128xf32>
    %cst_5 = arith.constant 0.000000e+00 : f32
    %6 = vector.broadcast %cst_5 : f32 to vector<256x128xf32>
    %7 = arith.maximumf %5, %6 : vector<256x128xf32>
    %8 = arith.truncf %7 : vector<256x128xf32> to vector<256x128xbf16>
    %c0_6 = arith.constant 0 : index
    %c0_7 = arith.constant 0 : index
    %9 = vector.load %arg5[%c0_6, %c0_7] : memref<256x128xbf16, #tpu.memory_space<vmem>>, vector<256x128xbf16>
    tpu.vector_store %arg5[%c0_6, %c0_7], %8 {strides = array<i32>} : memref<256x128xbf16, #tpu.memory_space<vmem>>, vector<256x128xbf16>,
    return
  }
  func.func @transform_0(%arg0: i32, %arg1: i32) -> (i32, i32) {
    %c0_i32 = arith.constant 0 : i32
    %c0_i32_0 = arith.constant 0 : i32
    return %arg0, %c0_i32 : i32, i32
  }
  func.func @transform_1(%arg0: i32, %arg1: i32) -> (i32, i32) {
    %c0_i32 = arith.constant 0 : i32
    %c0_i32_0 = arith.constant 0 : i32
    return %c0_i32, %arg1 : i32, i32
  }
  func.func @transform_2(%arg0: i32, %arg1: i32) -> (i32, i32) {
    %c0_i32 = arith.constant 0 : i32
    %c0_i32_0 = arith.constant 0 : i32
    return %c0_i32, %arg1 : i32, i32
  }
  func.func @transform_3(%arg0: i32, %arg1: i32) -> (i32, i32) {
    %c0_i32 = arith.constant 0 : i32
    return %arg0, %arg1 : i32, i32
  }
}

module attributes {stable_mosaic.version = 11 : i64} {
  func.func @_mm_kernel(%arg0: i32, %arg1: i32, %arg2: memref<256x1152xbf16, #tpu.memory_space<vmem>>, %arg3: memref<1152x128xbf16, #tpu.memory_space<vmem>>, %arg4: memref<1x128xf32, #tpu.memory_space<vmem>>, %arg5: memref<256x128xbf16, #tpu.memory_space<vmem>>, %arg6: memref<256x128xbf16, #tpu.memory_space<vmem>>) attributes {dimension_semantics = [#tpu.dimension_semantics<parallel>, #tpu.dimension_semantics<parallel>], iteration_bounds = array<i64: 2, 1>, scalar_prefetch = 0 : i64, scratch_operands = 0 : i64, tpu.core_type = #tpu.core_type<tc>, window_params = [{transform_indices = @transform_0, window_bounds = array<i64: 256, 1152>}, {transform_indices = @transform_1, window_bounds = array<i64: 1152, 128>}, {transform_indices = @transform_2, window_bounds = array<i64: 1, 128>}, {transform_indices = @transform_3, window_bounds = array<i64: 256, 128>}, {transform_indices = @transform_4, window_bounds = array<i64: 256, 128>}]} {
    %c0 = arith.constant 0 : index
    %c0_0 = arith.constant 0 : index
    %0 = vector.load %arg2[%c0, %c0_0] : memref<256x1152xbf16, #tpu.memory_space<vmem>>, vector<256x1152xbf16>
    %c0_1 = arith.constant 0 : index
    %c0_2 = arith.constant 0 : index
    %1 = vector.load %arg3[%c0_1, %c0_2] : memref<1152x128xbf16, #tpu.memory_space<vmem>>, vector<1152x128xbf16>
    %cst = arith.constant dense<0.000000e+00> : vector<256x128xf32>
    %2 = tpu.matmul %0, %1, %cst {dimension_numbers = #tpu.dot_dimension_numbers<[1], [0], [0], [1], [0, 0, 1, 1], [], []>} : vector<256x1152xbf16>, vector<1152x128xbf16>, vector<256x128xf32> -> vector<256x128xf32>
    %c0_3 = arith.constant 0 : index
    %c0_4 = arith.constant 0 : index
    %3 = vector.load %arg4[%c0_3, %c0_4] : memref<1x128xf32, #tpu.memory_space<vmem>>, vector<1x128xf32>
    %4 = vector.broadcast %3 : vector<1x128xf32> to vector<256x128xf32>
    %5 = arith.addf %2, %4 : vector<256x128xf32>
    %c0_5 = arith.constant 0 : index
    %c0_6 = arith.constant 0 : index
    %6 = vector.load %arg5[%c0_5, %c0_6] : memref<256x128xbf16, #tpu.memory_space<vmem>>, vector<256x128xbf16>
    %7 = arith.extf %6 : vector<256x128xbf16> to vector<256x128xf32>
    %8 = arith.addf %5, %7 : vector<256x128xf32>
    %cst_7 = arith.constant 0.000000e+00 : f32
    %9 = vector.broadcast %cst_7 : f32 to vector<256x128xf32>
    %10 = arith.maximumf %8, %9 : vector<256x128xf32>
    %11 = arith.truncf %10 : vector<256x128xf32> to vector<256x128xbf16>
    %c0_8 = arith.constant 0 : index
    %c0_9 = arith.constant 0 : index
    %12 = vector.load %arg6[%c0_8, %c0_9] : memref<256x128xbf16, #tpu.memory_space<vmem>>, vector<256x128xbf16>
    tpu.vector_store %arg6[%c0_8, %c0_9], %11 {strides = array<i32>} : memref<256x128xbf16, #tpu.memory_space<vmem>>, vector<256x128xbf16>,
    return
  }
  func.func @transform_0(%arg0: i32, %arg1: i32) -> (i32, i32) {
    %c0_i32 = arith.constant 0 : i32
    %c0_i32_0 = arith.constant 0 : i32
    return %arg0, %c0_i32 : i32, i32
  }
  func.func @transform_1(%arg0: i32, %arg1: i32) -> (i32, i32) {
    %c0_i32 = arith.constant 0 : i32
    %c0_i32_0 = arith.constant 0 : i32
    return %c0_i32, %arg1 : i32, i32
  }
  func.func @transform_2(%arg0: i32, %arg1: i32) -> (i32, i32) {
    %c0_i32 = arith.constant 0 : i32
    %c0_i32_0 = arith.constant 0 : i32
    return %c0_i32, %arg1 : i32, i32
  }
  func.func @transform_3(%arg0: i32, %arg1: i32) -> (i32, i32) {
    %c0_i32 = arith.constant 0 : i32
    return %arg0, %arg1 : i32, i32
  }
  func.func @transform_4(%arg0: i32, %arg1: i32) -> (i32, i32) {
    %c0_i32 = arith.constant 0 : i32
    return %arg0, %arg1 : i32, i32
  }
}

module attributes {stable_mosaic.version = 11 : i64} {
  func.func @_mm_kernel(%arg0: i32, %arg1: i32, %arg2: memref<64x1152xbf16, #tpu.memory_space<vmem>>, %arg3: memref<1152x128xbf16, #tpu.memory_space<vmem>>, %arg4: memref<1x128xf32, #tpu.memory_space<vmem>>, %arg5: memref<64x128xbf16, #tpu.memory_space<vmem>>) attributes {dimension_semantics = [#tpu.dimension_semantics<parallel>, #tpu.dimension_semantics<parallel>], iteration_bounds = array<i64: 2, 1>, scalar_prefetch = 0 : i64, scratch_operands = 0 : i64, tpu.core_type = #tpu.core_type<tc>, window_params = [{transform_indices = @transform_0, window_bounds = array<i64: 64, 1152>}, {transform_indices = @transform_1, window_bounds = array<i64: 1152, 128>}, {transform_indices = @transform_2, window_bounds = array<i64: 1, 128>}, {transform_indices = @transform_3, window_bounds = array<i64: 64, 128>}]} {
    %c0 = arith.constant 0 : index
    %c0_0 = arith.constant 0 : index
    %0 = vector.load %arg2[%c0, %c0_0] : memref<64x1152xbf16, #tpu.memory_space<vmem>>, vector<64x1152xbf16>
    %c0_1 = arith.constant 0 : index
    %c0_2 = arith.constant 0 : index
    %1 = vector.load %arg3[%c0_1, %c0_2] : memref<1152x128xbf16, #tpu.memory_space<vmem>>, vector<1152x128xbf16>
    %cst = arith.constant dense<0.000000e+00> : vector<64x128xf32>
    %2 = tpu.matmul %0, %1, %cst {dimension_numbers = #tpu.dot_dimension_numbers<[1], [0], [0], [1], [0, 0, 1, 1], [], []>} : vector<64x1152xbf16>, vector<1152x128xbf16>, vector<64x128xf32> -> vector<64x128xf32>
    %c0_3 = arith.constant 0 : index
    %c0_4 = arith.constant 0 : index
    %3 = vector.load %arg4[%c0_3, %c0_4] : memref<1x128xf32, #tpu.memory_space<vmem>>, vector<1x128xf32>
    %4 = vector.broadcast %3 : vector<1x128xf32> to vector<64x128xf32>
    %5 = arith.addf %2, %4 : vector<64x128xf32>
    %cst_5 = arith.constant 0.000000e+00 : f32
    %6 = vector.broadcast %cst_5 : f32 to vector<64x128xf32>
    %7 = arith.maximumf %5, %6 : vector<64x128xf32>
    %8 = arith.truncf %7 : vector<64x128xf32> to vector<64x128xbf16>
    %c0_6 = arith.constant 0 : index
    %c0_7 = arith.constant 0 : index
    %9 = vector.load %arg5[%c0_6, %c0_7] : memref<64x128xbf16, #tpu.memory_space<vmem>>, vector<64x128xbf16>
    tpu.vector_store %arg5[%c0_6, %c0_7], %8 {strides = array<i32>} : memref<64x128xbf16, #tpu.memory_space<vmem>>, vector<64x128xbf16>,
    return
  }
  func.func @transform_0(%arg0: i32, %arg1: i32) -> (i32, i32) {
    %c0_i32 = arith.constant 0 : i32
    %c0_i32_0 = arith.constant 0 : i32
    return %arg0, %c0_i32 : i32, i32
  }
  func.func @transform_1(%arg0: i32, %arg1: i32) -> (i32, i32) {
    %c0_i32 = arith.constant 0 : i32
    %c0_i32_0 = arith.constant 0 : i32
    return %c0_i32, %arg1 : i32, i32
  }
  func.func @transform_2(%arg0: i32, %arg1: i32) -> (i32, i32) {
    %c0_i32 = arith.constant 0 : i32
    %c0_i32_0 = arith.constant 0 : i32
    return %c0_i32, %arg1 : i32, i32
  }
  func.func @transform_3(%arg0: i32, %arg1: i32) -> (i32, i32) {
    %c0_i32 = arith.constant 0 : i32
    return %arg0, %arg1 : i32, i32
  }
}

module attributes {stable_mosaic.version = 11 : i64} {
  func.func @_mm_kernel(%arg0: i32, %arg1: i32, %arg2: memref<64x1152xbf16, #tpu.memory_space<vmem>>, %arg3: memref<1152x128xbf16, #tpu.memory_space<vmem>>, %arg4: memref<1x128xf32, #tpu.memory_space<vmem>>, %arg5: memref<64x128xbf16, #tpu.memory_space<vmem>>, %arg6: memref<64x128xbf16, #tpu.memory_space<vmem>>) attributes {dimension_semantics = [#tpu.dimension_semantics<parallel>, #tpu.dimension_semantics<parallel>], iteration_bounds = array<i64: 2, 1>, scalar_prefetch = 0 : i64, scratch_operands = 0 : i64, tpu.core_type = #tpu.core_type<tc>, window_params = [{transform_indices = @transform_0, window_bounds = array<i64: 64, 1152>}, {transform_indices = @transform_1, window_bounds = array<i64: 1152, 128>}, {transform_indices = @transform_2, window_bounds = array<i64: 1, 128>}, {transform_indices = @transform_3, window_bounds = array<i64: 64, 128>}, {transform_indices = @transform_4, window_bounds = array<i64: 64, 128>}]} {
    %c0 = arith.constant 0 : index
    %c0_0 = arith.constant 0 : index
    %0 = vector.load %arg2[%c0, %c0_0] : memref<64x1152xbf16, #tpu.memory_space<vmem>>, vector<64x1152xbf16>
    %c0_1 = arith.constant 0 : index
    %c0_2 = arith.constant 0 : index
    %1 = vector.load %arg3[%c0_1, %c0_2] : memref<1152x128xbf16, #tpu.memory_space<vmem>>, vector<1152x128xbf16>
    %cst = arith.constant dense<0.000000e+00> : vector<64x128xf32>
    %2 = tpu.matmul %0, %1, %cst {dimension_numbers = #tpu.dot_dimension_numbers<[1], [0], [0], [1], [0, 0, 1, 1], [], []>} : vector<64x1152xbf16>, vector<1152x128xbf16>, vector<64x128xf32> -> vector<64x128xf32>
    %c0_3 = arith.constant 0 : index
    %c0_4 = arith.constant 0 : index
    %3 = vector.load %arg4[%c0_3, %c0_4] : memref<1x128xf32, #tpu.memory_space<vmem>>, vector<1x128xf32>
    %4 = vector.broadcast %3 : vector<1x128xf32> to vector<64x128xf32>
    %5 = arith.addf %2, %4 : vector<64x128xf32>
    %c0_5 = arith.constant 0 : index
    %c0_6 = arith.constant 0 : index
    %6 = vector.load %arg5[%c0_5, %c0_6] : memref<64x128xbf16, #tpu.memory_space<vmem>>, vector<64x128xbf16>
    %7 = arith.extf %6 : vector<64x128xbf16> to vector<64x128xf32>
    %8 = arith.addf %5, %7 : vector<64x128xf32>
    %cst_7 = arith.constant 0.000000e+00 : f32
    %9 = vector.broadcast %cst_7 : f32 to vector<64x128xf32>
    %10 = arith.maximumf %8, %9 : vector<64x128xf32>
    %11 = arith.truncf %10 : vector<64x128xf32> to vector<64x128xbf16>
    %c0_8 = arith.constant 0 : index
    %c0_9 = arith.constant 0 : index
    %12 = vector.load %arg6[%c0_8, %c0_9] : memref<64x128xbf16, #tpu.memory_space<vmem>>, vector<64x128xbf16>
    tpu.vector_store %arg6[%c0_8, %c0_9], %11 {strides = array<i32>} : memref<64x128xbf16, #tpu.memory_space<vmem>>, vector<64x128xbf16>,
    return
  }
  func.func @transform_0(%arg0: i32, %arg1: i32) -> (i32, i32) {
    %c0_i32 = arith.constant 0 : i32
    %c0_i32_0 = arith.constant 0 : i32
    return %arg0, %c0_i32 : i32, i32
  }
  func.func @transform_1(%arg0: i32, %arg1: i32) -> (i32, i32) {
    %c0_i32 = arith.constant 0 : i32
    %c0_i32_0 = arith.constant 0 : i32
    return %c0_i32, %arg1 : i32, i32
  }
  func.func @transform_2(%arg0: i32, %arg1: i32) -> (i32, i32) {
    %c0_i32 = arith.constant 0 : i32
    %c0_i32_0 = arith.constant 0 : i32
    return %c0_i32, %arg1 : i32, i32
  }
  func.func @transform_3(%arg0: i32, %arg1: i32) -> (i32, i32) {
    %c0_i32 = arith.constant 0 : i32
    return %arg0, %arg1 : i32, i32
  }
  func.func @transform_4(%arg0: i32, %arg1: i32) -> (i32, i32) {
    %c0_i32 = arith.constant 0 : i32
    return %arg0, %arg1 : i32, i32
  }
}

module attributes {stable_mosaic.version = 11 : i64} {
  func.func @_mm_kernel(%arg0: i32, %arg1: i32, %arg2: memref<64x128xbf16, #tpu.memory_space<vmem>>, %arg3: memref<128x128xbf16, #tpu.memory_space<vmem>>, %arg4: memref<1x128xf32, #tpu.memory_space<vmem>>, %arg5: memref<64x128xbf16, #tpu.memory_space<vmem>>) attributes {dimension_semantics = [#tpu.dimension_semantics<parallel>, #tpu.dimension_semantics<parallel>], iteration_bounds = array<i64: 2, 1>, scalar_prefetch = 0 : i64, scratch_operands = 0 : i64, tpu.core_type = #tpu.core_type<tc>, window_params = [{transform_indices = @transform_0, window_bounds = array<i64: 64, 128>}, {transform_indices = @transform_1, window_bounds = array<i64: 128, 128>}, {transform_indices = @transform_2, window_bounds = array<i64: 1, 128>}, {transform_indices = @transform_3, window_bounds = array<i64: 64, 128>}]} {
    %c0 = arith.constant 0 : index
    %c0_0 = arith.constant 0 : index
    %0 = vector.load %arg2[%c0, %c0_0] : memref<64x128xbf16, #tpu.memory_space<vmem>>, vector<64x128xbf16>
    %c0_1 = arith.constant 0 : index
    %c0_2 = arith.constant 0 : index
    %1 = vector.load %arg3[%c0_1, %c0_2] : memref<128x128xbf16, #tpu.memory_space<vmem>>, vector<128x128xbf16>
    %cst = arith.constant dense<0.000000e+00> : vector<64x128xf32>
    %2 = tpu.matmul %0, %1, %cst {dimension_numbers = #tpu.dot_dimension_numbers<[1], [0], [0], [1], [0, 0, 1, 1], [], []>} : vector<64x128xbf16>, vector<128x128xbf16>, vector<64x128xf32> -> vector<64x128xf32>
    %c0_3 = arith.constant 0 : index
    %c0_4 = arith.constant 0 : index
    %3 = vector.load %arg4[%c0_3, %c0_4] : memref<1x128xf32, #tpu.memory_space<vmem>>, vector<1x128xf32>
    %4 = vector.broadcast %3 : vector<1x128xf32> to vector<64x128xf32>
    %5 = arith.addf %2, %4 : vector<64x128xf32>
    %6 = arith.truncf %5 : vector<64x128xf32> to vector<64x128xbf16>
    %c0_5 = arith.constant 0 : index
    %c0_6 = arith.constant 0 : index
    %7 = vector.load %arg5[%c0_5, %c0_6] : memref<64x128xbf16, #tpu.memory_space<vmem>>, vector<64x128xbf16>
    tpu.vector_store %arg5[%c0_5, %c0_6], %6 {strides = array<i32>} : memref<64x128xbf16, #tpu.memory_space<vmem>>, vector<64x128xbf16>,
    return
  }
  func.func @transform_0(%arg0: i32, %arg1: i32) -> (i32, i32) {
    %c0_i32 = arith.constant 0 : i32
    %c0_i32_0 = arith.constant 0 : i32
    return %arg0, %c0_i32 : i32, i32
  }
  func.func @transform_1(%arg0: i32, %arg1: i32) -> (i32, i32) {
    %c0_i32 = arith.constant 0 : i32
    %c0_i32_0 = arith.constant 0 : i32
    return %c0_i32, %arg1 : i32, i32
  }
  func.func @transform_2(%arg0: i32, %arg1: i32) -> (i32, i32) {
    %c0_i32 = arith.constant 0 : i32
    %c0_i32_0 = arith.constant 0 : i32
    return %c0_i32, %arg1 : i32, i32
  }
  func.func @transform_3(%arg0: i32, %arg1: i32) -> (i32, i32) {
    %c0_i32 = arith.constant 0 : i32
    return %arg0, %arg1 : i32, i32
  }
}

module attributes {stable_mosaic.version = 11 : i64} {
  func.func @_mm_kernel(%arg0: i32, %arg1: i32, %arg2: memref<16x1152xbf16, #tpu.memory_space<vmem>>, %arg3: memref<1152x256xbf16, #tpu.memory_space<vmem>>, %arg4: memref<1x256xf32, #tpu.memory_space<vmem>>, %arg5: memref<16x256xbf16, #tpu.memory_space<vmem>>) attributes {dimension_semantics = [#tpu.dimension_semantics<parallel>, #tpu.dimension_semantics<parallel>], iteration_bounds = array<i64: 2, 1>, scalar_prefetch = 0 : i64, scratch_operands = 0 : i64, tpu.core_type = #tpu.core_type<tc>, window_params = [{transform_indices = @transform_0, window_bounds = array<i64: 16, 1152>}, {transform_indices = @transform_1, window_bounds = array<i64: 1152, 256>}, {transform_indices = @transform_2, window_bounds = array<i64: 1, 256>}, {transform_indices = @transform_3, window_bounds = array<i64: 16, 256>}]} {
    %c0 = arith.constant 0 : index
    %c0_0 = arith.constant 0 : index
    %0 = vector.load %arg2[%c0, %c0_0] : memref<16x1152xbf16, #tpu.memory_space<vmem>>, vector<16x1152xbf16>
    %c0_1 = arith.constant 0 : index
    %c0_2 = arith.constant 0 : index
    %1 = vector.load %arg3[%c0_1, %c0_2] : memref<1152x256xbf16, #tpu.memory_space<vmem>>, vector<1152x256xbf16>
    %cst = arith.constant dense<0.000000e+00> : vector<16x256xf32>
    %2 = tpu.matmul %0, %1, %cst {dimension_numbers = #tpu.dot_dimension_numbers<[1], [0], [0], [1], [0, 0, 1, 1], [], []>} : vector<16x1152xbf16>, vector<1152x256xbf16>, vector<16x256xf32> -> vector<16x256xf32>
    %c0_3 = arith.constant 0 : index
    %c0_4 = arith.constant 0 : index
    %3 = vector.load %arg4[%c0_3, %c0_4] : memref<1x256xf32, #tpu.memory_space<vmem>>, vector<1x256xf32>
    %4 = vector.broadcast %3 : vector<1x256xf32> to vector<16x256xf32>
    %5 = arith.addf %2, %4 : vector<16x256xf32>
    %cst_5 = arith.constant 0.000000e+00 : f32
    %6 = vector.broadcast %cst_5 : f32 to vector<16x256xf32>
    %7 = arith.maximumf %5, %6 : vector<16x256xf32>
    %8 = arith.truncf %7 : vector<16x256xf32> to vector<16x256xbf16>
    %c0_6 = arith.constant 0 : index
    %c0_7 = arith.constant 0 : index
    %9 = vector.load %arg5[%c0_6, %c0_7] : memref<16x256xbf16, #tpu.memory_space<vmem>>, vector<16x256xbf16>
    tpu.vector_store %arg5[%c0_6, %c0_7], %8 {strides = array<i32>} : memref<16x256xbf16, #tpu.memory_space<vmem>>, vector<16x256xbf16>,
    return
  }
  func.func @transform_0(%arg0: i32, %arg1: i32) -> (i32, i32) {
    %c0_i32 = arith.constant 0 : i32
    %c0_i32_0 = arith.constant 0 : i32
    return %arg0, %c0_i32 : i32, i32
  }
  func.func @transform_1(%arg0: i32, %arg1: i32) -> (i32, i32) {
    %c0_i32 = arith.constant 0 : i32
    %c0_i32_0 = arith.constant 0 : i32
    return %c0_i32, %arg1 : i32, i32
  }
  func.func @transform_2(%arg0: i32, %arg1: i32) -> (i32, i32) {
    %c0_i32 = arith.constant 0 : i32
    %c0_i32_0 = arith.constant 0 : i32
    return %c0_i32, %arg1 : i32, i32
  }
  func.func @transform_3(%arg0: i32, %arg1: i32) -> (i32, i32) {
    %c0_i32 = arith.constant 0 : i32
    return %arg0, %arg1 : i32, i32
  }
}

module attributes {stable_mosaic.version = 11 : i64} {
  func.func @_mm_kernel(%arg0: i32, %arg1: i32, %arg2: memref<16x128xbf16, #tpu.memory_space<vmem>>, %arg3: memref<128x256xbf16, #tpu.memory_space<vmem>>, %arg4: memref<1x256xf32, #tpu.memory_space<vmem>>, %arg5: memref<16x256xbf16, #tpu.memory_space<vmem>>) attributes {dimension_semantics = [#tpu.dimension_semantics<parallel>, #tpu.dimension_semantics<parallel>], iteration_bounds = array<i64: 2, 1>, scalar_prefetch = 0 : i64, scratch_operands = 0 : i64, tpu.core_type = #tpu.core_type<tc>, window_params = [{transform_indices = @transform_0, window_bounds = array<i64: 16, 128>}, {transform_indices = @transform_1, window_bounds = array<i64: 128, 256>}, {transform_indices = @transform_2, window_bounds = array<i64: 1, 256>}, {transform_indices = @transform_3, window_bounds = array<i64: 16, 256>}]} {
    %c0 = arith.constant 0 : index
    %c0_0 = arith.constant 0 : index
    %0 = vector.load %arg2[%c0, %c0_0] : memref<16x128xbf16, #tpu.memory_space<vmem>>, vector<16x128xbf16>
    %c0_1 = arith.constant 0 : index
    %c0_2 = arith.constant 0 : index
    %1 = vector.load %arg3[%c0_1, %c0_2] : memref<128x256xbf16, #tpu.memory_space<vmem>>, vector<128x256xbf16>
    %cst = arith.constant dense<0.000000e+00> : vector<16x256xf32>
    %2 = tpu.matmul %0, %1, %cst {dimension_numbers = #tpu.dot_dimension_numbers<[1], [0], [0], [1], [0, 0, 1, 1], [], []>} : vector<16x128xbf16>, vector<128x256xbf16>, vector<16x256xf32> -> vector<16x256xf32>
    %c0_3 = arith.constant 0 : index
    %c0_4 = arith.constant 0 : index
    %3 = vector.load %arg4[%c0_3, %c0_4] : memref<1x256xf32, #tpu.memory_space<vmem>>, vector<1x256xf32>
    %4 = vector.broadcast %3 : vector<1x256xf32> to vector<16x256xf32>
    %5 = arith.addf %2, %4 : vector<16x256xf32>
    %6 = arith.truncf %5 : vector<16x256xf32> to vector<16x256xbf16>
    %c0_5 = arith.constant 0 : index
    %c0_6 = arith.constant 0 : index
    %7 = vector.load %arg5[%c0_5, %c0_6] : memref<16x256xbf16, #tpu.memory_space<vmem>>, vector<16x256xbf16>
    tpu.vector_store %arg5[%c0_5, %c0_6], %6 {strides = array<i32>} : memref<16x256xbf16, #tpu.memory_space<vmem>>, vector<16x256xbf16>,
    return
  }
  func.func @transform_0(%arg0: i32, %arg1: i32) -> (i32, i32) {
    %c0_i32 = arith.constant 0 : i32
    %c0_i32_0 = arith.constant 0 : i32
    return %arg0, %c0_i32 : i32, i32
  }
  func.func @transform_1(%arg0: i32, %arg1: i32) -> (i32, i32) {
    %c0_i32 = arith.constant 0 : i32
    %c0_i32_0 = arith.constant 0 : i32
    return %c0_i32, %arg1 : i32, i32
  }
  func.func @transform_2(%arg0: i32, %arg1: i32) -> (i32, i32) {
    %c0_i32 = arith.constant 0 : i32
    %c0_i32_0 = arith.constant 0 : i32
    return %c0_i32, %arg1 : i32, i32
  }
  func.func @transform_3(%arg0: i32, %arg1: i32) -> (i32, i32) {
    %c0_i32 = arith.constant 0 : i32
    return %arg0, %arg1 : i32, i32
  }
}

module attributes {stable_mosaic.version = 11 : i64} {
  func.func @_mm_kernel(%arg0: i32, %arg1: i32, %arg2: memref<16x2304xbf16, #tpu.memory_space<vmem>>, %arg3: memref<2304x256xbf16, #tpu.memory_space<vmem>>, %arg4: memref<1x256xf32, #tpu.memory_space<vmem>>, %arg5: memref<16x256xbf16, #tpu.memory_space<vmem>>, %arg6: memref<16x256xbf16, #tpu.memory_space<vmem>>) attributes {dimension_semantics = [#tpu.dimension_semantics<parallel>, #tpu.dimension_semantics<parallel>], iteration_bounds = array<i64: 2, 1>, scalar_prefetch = 0 : i64, scratch_operands = 0 : i64, tpu.core_type = #tpu.core_type<tc>, window_params = [{transform_indices = @transform_0, window_bounds = array<i64: 16, 2304>}, {transform_indices = @transform_1, window_bounds = array<i64: 2304, 256>}, {transform_indices = @transform_2, window_bounds = array<i64: 1, 256>}, {transform_indices = @transform_3, window_bounds = array<i64: 16, 256>}, {transform_indices = @transform_4, window_bounds = array<i64: 16, 256>}]} {
    %c0 = arith.constant 0 : index
    %c0_0 = arith.constant 0 : index
    %0 = vector.load %arg2[%c0, %c0_0] : memref<16x2304xbf16, #tpu.memory_space<vmem>>, vector<16x2304xbf16>
    %c0_1 = arith.constant 0 : index
    %c0_2 = arith.constant 0 : index
    %1 = vector.load %arg3[%c0_1, %c0_2] : memref<2304x256xbf16, #tpu.memory_space<vmem>>, vector<2304x256xbf16>
    %cst = arith.constant dense<0.000000e+00> : vector<16x256xf32>
    %2 = tpu.matmul %0, %1, %cst {dimension_numbers = #tpu.dot_dimension_numbers<[1], [0], [0], [1], [0, 0, 1, 1], [], []>} : vector<16x2304xbf16>, vector<2304x256xbf16>, vector<16x256xf32> -> vector<16x256xf32>
    %c0_3 = arith.constant 0 : index
    %c0_4 = arith.constant 0 : index
    %3 = vector.load %arg4[%c0_3, %c0_4] : memref<1x256xf32, #tpu.memory_space<vmem>>, vector<1x256xf32>
    %4 = vector.broadcast %3 : vector<1x256xf32> to vector<16x256xf32>
    %5 = arith.addf %2, %4 : vector<16x256xf32>
    %c0_5 = arith.constant 0 : index
    %c0_6 = arith.constant 0 : index
    %6 = vector.load %arg5[%c0_5, %c0_6] : memref<16x256xbf16, #tpu.memory_space<vmem>>, vector<16x256xbf16>
    %7 = arith.extf %6 : vector<16x256xbf16> to vector<16x256xf32>
    %8 = arith.addf %5, %7 : vector<16x256xf32>
    %cst_7 = arith.constant 0.000000e+00 : f32
    %9 = vector.broadcast %cst_7 : f32 to vector<16x256xf32>
    %10 = arith.maximumf %8, %9 : vector<16x256xf32>
    %11 = arith.truncf %10 : vector<16x256xf32> to vector<16x256xbf16>
    %c0_8 = arith.constant 0 : index
    %c0_9 = arith.constant 0 : index
    %12 = vector.load %arg6[%c0_8, %c0_9] : memref<16x256xbf16, #tpu.memory_space<vmem>>, vector<16x256xbf16>
    tpu.vector_store %arg6[%c0_8, %c0_9], %11 {strides = array<i32>} : memref<16x256xbf16, #tpu.memory_space<vmem>>, vector<16x256xbf16>,
    return
  }
  func.func @transform_0(%arg0: i32, %arg1: i32) -> (i32, i32) {
    %c0_i32 = arith.constant 0 : i32
    %c0_i32_0 = arith.constant 0 : i32
    return %arg0, %c0_i32 : i32, i32
  }
  func.func @transform_1(%arg0: i32, %arg1: i32) -> (i32, i32) {
    %c0_i32 = arith.constant 0 : i32
    %c0_i32_0 = arith.constant 0 : i32
    return %c0_i32, %arg1 : i32, i32
  }
  func.func @transform_2(%arg0: i32, %arg1: i32) -> (i32, i32) {
    %c0_i32 = arith.constant 0 : i32
    %c0_i32_0 = arith.constant 0 : i32
    return %c0_i32, %arg1 : i32, i32
  }
  func.func @transform_3(%arg0: i32, %arg1: i32) -> (i32, i32) {
    %c0_i32 = arith.constant 0 : i32
    return %arg0, %arg1 : i32, i32
  }
  func.func @transform_4(%arg0: i32, %arg1: i32) -> (i32, i32) {
    %c0_i32 = arith.constant 0 : i32
    return %arg0, %arg1 : i32, i32
  }
}

module attributes {stable_mosaic.version = 11 : i64} {
  func.func @_mm_kernel(%arg0: i32, %arg1: i32, %arg2: memref<16x2304xbf16, #tpu.memory_space<vmem>>, %arg3: memref<2304x256xbf16, #tpu.memory_space<vmem>>, %arg4: memref<1x256xf32, #tpu.memory_space<vmem>>, %arg5: memref<16x256xbf16, #tpu.memory_space<vmem>>) attributes {dimension_semantics = [#tpu.dimension_semantics<parallel>, #tpu.dimension_semantics<parallel>], iteration_bounds = array<i64: 2, 1>, scalar_prefetch = 0 : i64, scratch_operands = 0 : i64, tpu.core_type = #tpu.core_type<tc>, window_params = [{transform_indices = @transform_0, window_bounds = array<i64: 16, 2304>}, {transform_indices = @transform_1, window_bounds = array<i64: 2304, 256>}, {transform_indices = @transform_2, window_bounds = array<i64: 1, 256>}, {transform_indices = @transform_3, window_bounds = array<i64: 16, 256>}]} {
    %c0 = arith.constant 0 : index
    %c0_0 = arith.constant 0 : index
    %0 = vector.load %arg2[%c0, %c0_0] : memref<16x2304xbf16, #tpu.memory_space<vmem>>, vector<16x2304xbf16>
    %c0_1 = arith.constant 0 : index
    %c0_2 = arith.constant 0 : index
    %1 = vector.load %arg3[%c0_1, %c0_2] : memref<2304x256xbf16, #tpu.memory_space<vmem>>, vector<2304x256xbf16>
    %cst = arith.constant dense<0.000000e+00> : vector<16x256xf32>
    %2 = tpu.matmul %0, %1, %cst {dimension_numbers = #tpu.dot_dimension_numbers<[1], [0], [0], [1], [0, 0, 1, 1], [], []>} : vector<16x2304xbf16>, vector<2304x256xbf16>, vector<16x256xf32> -> vector<16x256xf32>
    %c0_3 = arith.constant 0 : index
    %c0_4 = arith.constant 0 : index
    %3 = vector.load %arg4[%c0_3, %c0_4] : memref<1x256xf32, #tpu.memory_space<vmem>>, vector<1x256xf32>
    %4 = vector.broadcast %3 : vector<1x256xf32> to vector<16x256xf32>
    %5 = arith.addf %2, %4 : vector<16x256xf32>
    %cst_5 = arith.constant 0.000000e+00 : f32
    %6 = vector.broadcast %cst_5 : f32 to vector<16x256xf32>
    %7 = arith.maximumf %5, %6 : vector<16x256xf32>
    %8 = arith.truncf %7 : vector<16x256xf32> to vector<16x256xbf16>
    %c0_6 = arith.constant 0 : index
    %c0_7 = arith.constant 0 : index
    %9 = vector.load %arg5[%c0_6, %c0_7] : memref<16x256xbf16, #tpu.memory_space<vmem>>, vector<16x256xbf16>
    tpu.vector_store %arg5[%c0_6, %c0_7], %8 {strides = array<i32>} : memref<16x256xbf16, #tpu.memory_space<vmem>>, vector<16x256xbf16>,
    return
  }
  func.func @transform_0(%arg0: i32, %arg1: i32) -> (i32, i32) {
    %c0_i32 = arith.constant 0 : i32
    %c0_i32_0 = arith.constant 0 : i32
    return %arg0, %c0_i32 : i32, i32
  }
  func.func @transform_1(%arg0: i32, %arg1: i32) -> (i32, i32) {
    %c0_i32 = arith.constant 0 : i32
    %c0_i32_0 = arith.constant 0 : i32
    return %c0_i32, %arg1 : i32, i32
  }
  func.func @transform_2(%arg0: i32, %arg1: i32) -> (i32, i32) {
    %c0_i32 = arith.constant 0 : i32
    %c0_i32_0 = arith.constant 0 : i32
    return %c0_i32, %arg1 : i32, i32
  }
  func.func @transform_3(%arg0: i32, %arg1: i32) -> (i32, i32) {
    %c0_i32 = arith.constant 0 : i32
    return %arg0, %arg1 : i32, i32
  }
}

</mosaic_0001>

<bundles_post_ra>
// kernel: pixel_encoder_forward.15
= control target key start
LH: loop header
LB: loop body
LE: loop exit
PB: predicated region body
PF: predicated region fallthrough
CT: control target
= control target key end

     0   :  { %s2182_s12 = smov 0   ;;  %s2184_s13 = smov 0   ;;  %s2450_s0 = inlined_call_operand.vmem [shape: bf16[2048,147], index: 0, kind: input, shape index: {}]   ;;  %s2451_s1 = inlined_call_operand.vmem [shape: bf16[147,128], index: 1, kind: input, shape index: {}]   ;;  %s2452_s2 = inlined_call_operand.vmem [shape: f32[1,128], index: 2, kind: input, shape index: {}]   ;;  %s2453_s3 = inlined_call_operand.vmem [shape: bf16[2048,128], index: 3, kind: output, shape index: {}]  }
   0x1   :  { %s2186_s14 = smov 0  }
   0x2 LB: > { %s25_s15 = sadd.s32 1, %s2154_s13  ;;  %p1549_p0 = scmp.ge.s32.totalorder %s2158_s14, 1  ;;  %s2158_s14 = sphi %s2186_s14, %s13_s14   ;;  %s2154_s13 = sphi %s2184_s13, %s2455_s13   ;;  %s2150_s12 = sphi %s2182_s12, %s2454_s12  }
   0x3   : > { %p27_p1 = scmp.ge.s32.totalorder %s25_s15, 4  ;;  %p170_p2 = scmp.lt.s32.totalorder %s2158_s14, 5 }
   0x5   : > { %s2457_s15 = smov (%p27_p1, %s25_s15), 0  ;;  %p171_p3 = pnand %p1549_p0, %p170_p2 }
   0x6   : > { %v2030_v0 = vld [vmem:[%s2451_s1] sm:$0xff] (!%p171_p3)   ;;  %v2160_v1 = vmov (!%p171_p3), 0   ;;  %v2031_v2 = vld [vmem:[%s2451_s1 + $0x8] sm:$0xff] (!%p171_p3)   ;;  %v2032_v3 = vld [vmem:[%s2451_s1 + $0x10] sm:$0xff] (!%p171_p3)   ;;  %s1550_s22 = sshll.u32 (!%p171_p3), %s2150_s12, 6  ;;  %vm664_vm0 = vcmask (!%p171_p3), 154624  }
   0x7   : > { %174 = sbr.rel (%p171_p3) target bundleno = 388 (0x184), region = 32  ;;  %768 = vmatprep.subr.bf16.mxu0 (!%p171_p3), %v2160_v1  ;;  %1984 = vmatprep.subr.bf16.mxu1 (!%p171_p3), %v2160_v1  ;;  %p206_p4 = scmp.lt.s32.totalorder (!%p171_p3), %s1550_s22, 255  ;;  %v2033_v4 = vld [vmem:[%s2451_s1 + $0x18] sm:$0xff] (!%p171_p3)   ;;  %v2034_v5 = vld [vmem:[%s2451_s1 + $0x20] sm:$0xff] (!%p171_p3)   ;;  %v2035_v8 = vld [vmem:[%s2451_s1 + $0x28] sm:$0xff] (!%p171_p3)   ;;  %vm761_vm1 = vcmask (!%p171_p3), 1040384  }
   0x8   : > { %769 = vmatpush1.bf16.msra.mxu0 (!%p171_p3), %v2030_v0  ;;  %1994 = vmatpush1.bf16.msra.mxu1 (!%p171_p3), %v2030_v0  ;;  %v2036_v9 = vld [vmem:[%s2451_s1 + $0x30] sm:$0xff] (!%p171_p3)   ;;  %v2037_v10 = vld [vmem:[%s2451_s1 + $0x38] sm:$0xff] (!%p171_p3)   ;;  %vm762_vm2 = vcmask (!%p171_p3), 1041408   ;;  %v2161_v11 = vmov (!%p171_p3), 65535   ;;  %v2038_v13 = vld [vmem:[%s2451_s1 + $0x40] sm:$0xff] (!%p171_p3)  }
   0x9   : > { %770 = vmatprep.subr.bf16.mxu0 (!%p171_p3), %v2160_v1  ;;  %1985 = vmatprep.subr.bf16.mxu1 (!%p171_p3), %v2160_v1  ;;  %v763_v12 = vsel (!%p171_p3), %vm761_vm1, 4294967295, %v2161_v11  ;;  %v2039_v14 = vld [vmem:[%s2451_s1 + $0x48] ss:$0 sps:$4 sm:$0x33] (!%p171_p3)  }
   0xa   : > { %v764_v15 = vsel (!%p171_p3), %vm762_vm2, %v763_v12, 0 }
   0xb   : > { %v766_v16 = vand.u32 (!%p171_p3), %v2039_v14, %v764_v15  ;;  %v2337_v15 = vld [vmem:[%s2452_s2] ss:$0 sm:$0xff] (!%p171_p3) }
   0xc   : > { %771 = vmatpush1.bf16.msra.mxu0 (!%p171_p3), %v2031_v2  ;;  %1995 = vmatpush1.bf16.msra.mxu1 (!%p171_p3), %v2031_v2 }
   0xd   : > { %772 = vmatprep.subr.bf16.mxu0 (!%p171_p3), %v2160_v1  ;;  %1986 = vmatprep.subr.bf16.mxu1 (!%p171_p3), %v2160_v1 }
   0xe   : > { %s2459_s22 = smov (!%p206_p4, %s1550_s22), 255 }
   0xf   : > { %s1728_s25 = sshll.u32 %s2459_s22, 3  ;;  %s1554_s19 = sshll.u32 %s2459_s22, 2 }
  0x10   : > { %773 = vmatpush1.bf16.msra.mxu0 %v2032_v3  ;;  %1996 = vmatpush1.bf16.msra.mxu1 %v2032_v3  ;;  %s2218_s28 = scalar_lea.vmem %s2450_s0, %s1728_s25  ;;  %s2347_s23 = scalar_lea.vmem %s2453_s3, %s1554_s19 }
  0x11   : > { %774 = vmatprep.subr.bf16.mxu0 %v2160_v1  ;;  %1987 = vmatprep.subr.bf16.mxu1 %v2160_v1  ;;  %v2042_v6 = vld [vmem:[%s2218_s28 + $0x4] ss:$8 sps:$4 sm:$0xff]   ;;  %v2040_v17 = vld [vmem:[%s2218_s28] ss:$8 sps:$4 sm:$0xff]   ;;  %v2046_v19 = vld [vmem:[%s2218_s28 + $0x14] ss:$8 sps:$4 sm:$0xff]  }
  0x12   : > { %v2045_v7 = vld [vmem:[%s2218_s28 + $0x104] ss:$8 sps:$4 sm:$0xff]   ;;  %1630 = vmatprep.mubr.msk.bf16.mxu0 %vm664_vm0, %v2042_v6  ;;  %v2043_v18 = vld [vmem:[%s2218_s28 + $0x100] ss:$8 sps:$4 sm:$0xff]   ;;  %v2048_v20 = vld [vmem:[%s2218_s28 + $0x114] ss:$8 sps:$4 sm:$0xff]  }
  0x13   : > { %1646 = vmatprep.mubr.msk.bf16.mxu1 %vm664_vm0, %v2045_v7  ;;  %v2050_v21 = vld [vmem:[%s2218_s28 + $0x10] ss:$8 sps:$4 sm:$0xff]   ;;  %v2052_v23 = vld [vmem:[%s2218_s28 + $0x24] ss:$8 sps:$4 sm:$0xff]   ;;  %v2056_v25 = vld [vmem:[%s2218_s28 + $0x20] ss:$8 sps:$4 sm:$0xff]  }
  0x14   : > { %775 = vmatpush1.bf16.msra.mxu0 %v2033_v4  ;;  %1997 = vmatpush1.bf16.msra.mxu1 %v2033_v4  ;;  %v2051_v22 = vld [vmem:[%s2218_s28 + $0x110] ss:$8 sps:$4 sm:$0xff]   ;;  %v2054_v24 = vld [vmem:[%s2218_s28 + $0x124] ss:$8 sps:$4 sm:$0xff]   ;;  %v2057_v26 = vld [vmem:[%s2218_s28 + $0x120] ss:$8 sps:$4 sm:$0xff]  }
  0x15   : > { %776 = vmatprep.subr.bf16.mxu0 %v2160_v1  ;;  %1988 = vmatprep.subr.bf16.mxu1 %v2160_v1  ;;  %v2058_v27 = vld [vmem:[%s2218_s28 + $0x34] ss:$8 sps:$4 sm:$0xff]   ;;  %v2062_v29 = vld [vmem:[%s2218_s28 + $0x30] ss:$8 sps:$4 sm:$0xff]   ;;  %v2064_v31 = vld [vmem:[%s2218_s28 + $0x44] ss:$8 sps:$4 sm:$0xff]  }
  0x16   : > { %v2060_v28 = vld [vmem:[%s2218_s28 + $0x134] ss:$8 sps:$4 sm:$0xff]   ;;  %v2063_v30 = vld [vmem:[%s2218_s28 + $0x130] ss:$8 sps:$4 sm:$0xff]   ;;  %v2066_v32 = vld [vmem:[%s2218_s28 + $0x144] ss:$8 sps:$4 sm:$0xff]  }
  0x17   : > { %v2068_v33 = vld [vmem:[%s2218_s28 + $0x40] ss:$8 sps:$4 sm:$0xff]   ;;  %v2070_v35 = vld [vmem:[%s2218_s28 + $0x54] ss:$8 sps:$4 sm:$0xff]   ;;  %v2074_v37 = vld [vmem:[%s2218_s28 + $0x50] ss:$8 sps:$4 sm:$0xff]  }
  0x18   : > { %777 = vmatpush1.bf16.msra.mxu0 %v2034_v5  ;;  %1998 = vmatpush1.bf16.msra.mxu1 %v2034_v5  ;;  %v2069_v34 = vld [vmem:[%s2218_s28 + $0x140] ss:$8 sps:$4 sm:$0xff]   ;;  %v2072_v36 = vld [vmem:[%s2218_s28 + $0x154] ss:$8 sps:$4 sm:$0xff]   ;;  %v2075_v38 = vld [vmem:[%s2218_s28 + $0x150] ss:$8 sps:$4 sm:$0xff]  }
  0x19   : > { %778 = vmatprep.subr.bf16.mxu0 %v2160_v1  ;;  %1989 = vmatprep.subr.bf16.mxu1 %v2160_v1  ;;  %v2076_v39 = vld [vmem:[%s2218_s28 + $0x64] ss:$8 sps:$4 sm:$0xff]   ;;  %v2080_v41 = vld [vmem:[%s2218_s28 + $0x60] ss:$8 sps:$4 sm:$0xff]   ;;  %v2082_v43 = vld [vmem:[%s2218_s28 + $0x74] ss:$8 sps:$4 sm:$0xff]  }
  0x1a   : > { %v2078_v40 = vld [vmem:[%s2218_s28 + $0x164] ss:$8 sps:$4 sm:$0xff]   ;;  %v2081_v42 = vld [vmem:[%s2218_s28 + $0x160] ss:$8 sps:$4 sm:$0xff]   ;;  %v2084_v44 = vld [vmem:[%s2218_s28 + $0x174] ss:$8 sps:$4 sm:$0xff]  }
  0x1b   : > { %v2086_v45 = vld [vmem:[%s2218_s28 + $0x70] ss:$8 sps:$4 sm:$0xff]   ;;  %v2088_v47 = vld [vmem:[%s2218_s28 + $0x84] ss:$8 sps:$4 sm:$0xff]   ;;  %v2092_v49 = vld [vmem:[%s2218_s28 + $0x80] ss:$8 sps:$4 sm:$0xff]  }
  0x1c   : > { %779 = vmatpush1.bf16.msra.mxu0 %v2035_v8  ;;  %1999 = vmatpush1.bf16.msra.mxu1 %v2035_v8  ;;  %v2087_v46 = vld [vmem:[%s2218_s28 + $0x170] ss:$8 sps:$4 sm:$0xff]   ;;  %v2090_v48 = vld [vmem:[%s2218_s28 + $0x184] ss:$8 sps:$4 sm:$0xff]   ;;  %v2093_v50 = vld [vmem:[%s2218_s28 + $0x180] ss:$8 sps:$4 sm:$0xff]  }
  0x1d   : > { %780 = vmatprep.subr.bf16.mxu0 %v2160_v1  ;;  %1990 = vmatprep.subr.bf16.mxu1 %v2160_v1  ;;  %v2094_v51 = vld [vmem:[%s2218_s28 + $0x94] ss:$8 sps:$4 sm:$0xff]   ;;  %v2098_v53 = vld [vmem:[%s2218_s28 + $0x90] ss:$8 sps:$4 sm:$0xff]   ;;  %v2100_v55 = vld [vmem:[%s2218_s28 + $0xa4] ss:$8 sps:$4 sm:$0xff]  }
  0x1e   : > { %v2096_v52 = vld [vmem:[%s2218_s28 + $0x194] ss:$8 sps:$4 sm:$0xff]   ;;  %v2099_v54 = vld [vmem:[%s2218_s28 + $0x190] ss:$8 sps:$4 sm:$0xff]   ;;  %v2102_v56 = vld [vmem:[%s2218_s28 + $0x1a4] ss:$8 sps:$4 sm:$0xff]  }
  0x1f   : > { %v2104_v57 = vld [vmem:[%s2218_s28 + $0xa0] ss:$8 sps:$4 sm:$0xff]   ;;  %v2106_v59 = vld [vmem:[%s2218_s28 + $0xb4] ss:$8 sps:$4 sm:$0xff]   ;;  %v2110_v61 = vld [vmem:[%s2218_s28 + $0xb0] ss:$8 sps:$4 sm:$0xff]  }
  0x20   : > { %781 = vmatpush1.bf16.msra.mxu0 %v2036_v9  ;;  %2000 = vmatpush1.bf16.msra.mxu1 %v2036_v9  ;;  %v2105_v58 = vld [vmem:[%s2218_s28 + $0x1a0] ss:$8 sps:$4 sm:$0xff]   ;;  %v2108_v60 = vld [vmem:[%s2218_s28 + $0x1b4] ss:$8 sps:$4 sm:$0xff]   ;;  %v2111_v62 = vld [vmem:[%s2218_s28 + $0x1b0] ss:$8 sps:$4 sm:$0xff]  }
  0x21   : > { %782 = vmatprep.subr.bf16.mxu0 %v2160_v1  ;;  %1991 = vmatprep.subr.bf16.mxu1 %v2160_v1  ;;  %v2112_v63 = vld [vmem:[%s2218_s28 + $0xc4] ss:$8 sps:$4 sm:$0xff]   ;;  %v2117_v2 = vld [vmem:[%s2218_s28 + $0x1c0] ss:$8 sps:$4 sm:$0xff]   ;;  %v2118_v3 = vld [vmem:[%s2218_s28 + $0xd4] ss:$8 sps:$4 sm:$0xff]  }
  0x22   : > { %v2114_v0 = vld [vmem:[%s2218_s28 + $0x1c4] ss:$8 sps:$4 sm:$0xff]   ;;  %v2120_v4 = vld [vmem:[%s2218_s28 + $0x1d4] ss:$8 sps:$4 sm:$0xff]   ;;  %v2122_v5 = vld [vmem:[%s2218_s28 + $0xd0] ss:$8 sps:$4 sm:$0xff]  }
  0x23   : > { %v2123_v6 = vld [vmem:[%s2218_s28 + $0x1d0] ss:$8 sps:$4 sm:$0xff]   ;;  %v2124_v7 = vld [vmem:[%s2218_s28 + $0xe4] ss:$8 sps:$4 sm:$0xff]   ;;  %v2128_v9 = vld [vmem:[%s2218_s28 + $0xe0] ss:$8 sps:$4 sm:$0xff]  }
  0x24   : > { %783 = vmatpush1.bf16.msra.mxu0 %v2037_v10  ;;  %2001 = vmatpush1.bf16.msra.mxu1 %v2037_v10  ;;  %v2126_v8 = vld [vmem:[%s2218_s28 + $0x1e4] ss:$8 sps:$4 sm:$0xff]   ;;  %v2129_v10 = vld [vmem:[%s2218_s28 + $0x1e0] ss:$8 sps:$4 sm:$0xff]   ;;  %v2130_v11 = vld [vmem:[%s2218_s28 + $0xf4] ss:$8 sps:$4 sm:$0xff]  }
  0x25   : > { %784 = vmatprep.subr.bf16.mxu0 %v2160_v1  ;;  %1992 = vmatprep.subr.bf16.mxu1 %v2160_v1  ;;  %v2132_v12 = vld [vmem:[%s2218_s28 + $0x1f4] ss:$8 sps:$4 sm:$0xff]   ;;  %v2135_v14 = vld [vmem:[%s2218_s28 + $0x1f0] ss:$8 sps:$4 sm:$0xff]  }
  0x28   : > { %785 = vmatpush1.bf16.msra.mxu0 %v2038_v13  ;;  %2002 = vmatpush1.bf16.msra.mxu1 %v2038_v13  ;;  %v2134_v13 = vld [vmem:[%s2218_s28 + $0xf0] ss:$8 sps:$4 sm:$0xff]  }
  0x29   : > { %786 = vmatprep.subr.bf16.mxu0 %v2160_v1  ;;  %1993 = vmatprep.subr.bf16.mxu1 %v2160_v1  ;;  %v2116_v1 = vld [vmem:[%s2218_s28 + $0xc0] ss:$8 sps:$4 sm:$0xff]  }
  0x2c   : > { %787 = vmatpush1.bf16.msra.mxu0 %v766_v16  ;;  %2003 = vmatpush1.bf16.msra.mxu1 %v766_v16 }
  0x2f   : > { %801 = vmatmul.mubr.bf16.vlgmr.msra.gmra.mrb[0].mxu0 %v2040_v17  ;;  %929 = vmatmul.mubr.bf16.vlgmr.msra.gmra.mrb[0].mxu1 %v2043_v18 }
  0x30   : > { %1631 = vmatprep.mubr.msk.bf16.mxu0 %vm664_vm0, %v2046_v19  ;;  %1647 = vmatprep.mubr.msk.bf16.mxu1 %vm664_vm0, %v2048_v20 }
  0x37   : > { %809 = vmatmul.mubr.bf16.gmra.mrb[4].mxu0 %v2050_v21  ;;  %937 = vmatmul.mubr.bf16.gmra.mrb[4].mxu1 %v2051_v22 }
  0x38   : > { %1632 = vmatprep.mubr.msk.bf16.mxu0 %vm664_vm0, %v2052_v23  ;;  %1648 = vmatprep.mubr.msk.bf16.mxu1 %vm664_vm0, %v2054_v24 }
  0x3f   : > { %817 = vmatmul.mubr.bf16.gmra.mrb[8].mxu0 %v2056_v25  ;;  %945 = vmatmul.mubr.bf16.gmra.mrb[8].mxu1 %v2057_v26 }
  0x40   : > { %1633 = vmatprep.mubr.msk.bf16.mxu0 %vm664_vm0, %v2058_v27  ;;  %1649 = vmatprep.mubr.msk.bf16.mxu1 %vm664_vm0, %v2060_v28 }
  0x47   : > { %825 = vmatmul.mubr.bf16.gmra.mrb[12].mxu0 %v2062_v29  ;;  %953 = vmatmul.mubr.bf16.gmra.mrb[12].mxu1 %v2063_v30 }
  0x48   : > { %1634 = vmatprep.mubr.msk.bf16.mxu0 %vm664_vm0, %v2064_v31  ;;  %1650 = vmatprep.mubr.msk.bf16.mxu1 %vm664_vm0, %v2066_v32 }
  0x4f   : > { %833 = vmatmul.mubr.bf16.gmra.mrb[16].mxu0 %v2068_v33  ;;  %961 = vmatmul.mubr.bf16.gmra.mrb[16].mxu1 %v2069_v34 }
  0x50   : > { %1635 = vmatprep.mubr.msk.bf16.mxu0 %vm664_vm0, %v2070_v35  ;;  %1651 = vmatprep.mubr.msk.bf16.mxu1 %vm664_vm0, %v2072_v36 }
  0x57   : > { %841 = vmatmul.mubr.bf16.gmra.mrb[20].mxu0 %v2074_v37  ;;  %969 = vmatmul.mubr.bf16.gmra.mrb[20].mxu1 %v2075_v38 }
  0x58   : > { %1636 = vmatprep.mubr.msk.bf16.mxu0 %vm664_vm0, %v2076_v39  ;;  %1652 = vmatprep.mubr.msk.bf16.mxu1 %vm664_vm0, %v2078_v40 }
  0x5f   : > { %849 = vmatmul.mubr.bf16.gmra.mrb[24].mxu0 %v2080_v41  ;;  %977 = vmatmul.mubr.bf16.gmra.mrb[24].mxu1 %v2081_v42 }
  0x60   : > { %1637 = vmatprep.mubr.msk.bf16.mxu0 %vm664_vm0, %v2082_v43  ;;  %1653 = vmatprep.mubr.msk.bf16.mxu1 %vm664_vm0, %v2084_v44 }
  0x67   : > { %857 = vmatmul.mubr.bf16.gmra.mrb[28].mxu0 %v2086_v45  ;;  %985 = vmatmul.mubr.bf16.gmra.mrb[28].mxu1 %v2087_v46 }
  0x68   : > { %1638 = vmatprep.mubr.msk.bf16.mxu0 %vm664_vm0, %v2088_v47  ;;  %1654 = vmatprep.mubr.msk.bf16.mxu1 %vm664_vm0, %v2090_v48 }
  0x6f   : > { %865 = vmatmul.mubr.bf16.gmra.mrb[32].mxu0 %v2092_v49  ;;  %993 = vmatmul.mubr.bf16.gmra.mrb[32].mxu1 %v2093_v50 }
  0x70   : > { %1639 = vmatprep.mubr.msk.bf16.mxu0 %vm664_vm0, %v2094_v51  ;;  %1655 = vmatprep.mubr.msk.bf16.mxu1 %vm664_vm0, %v2096_v52 }
  0x77   : > { %873 = vmatmul.mubr.bf16.gmra.mrb[36].mxu0 %v2098_v53  ;;  %1001 = vmatmul.mubr.bf16.gmra.mrb[36].mxu1 %v2099_v54 }
  0x78   : > { %1640 = vmatprep.mubr.msk.bf16.mxu0 %vm664_vm0, %v2100_v55  ;;  %1656 = vmatprep.mubr.msk.bf16.mxu1 %vm664_vm0, %v2102_v56 }
  0x7f   : > { %881 = vmatmul.mubr.bf16.gmra.mrb[40].mxu0 %v2104_v57  ;;  %1009 = vmatmul.mubr.bf16.gmra.mrb[40].mxu1 %v2105_v58 }
  0x80   : > { %1641 = vmatprep.mubr.msk.bf16.mxu0 %vm664_vm0, %v2106_v59  ;;  %1657 = vmatprep.mubr.msk.bf16.mxu1 %vm664_vm0, %v2108_v60 }
  0x87   : > { %889 = vmatmul.mubr.bf16.gmra.mrb[44].mxu0 %v2110_v61  ;;  %1017 = vmatmul.mubr.bf16.gmra.mrb[44].mxu1 %v2111_v62 }
  0x88   : > { %1642 = vmatprep.mubr.msk.bf16.mxu0 %vm664_vm0, %v2112_v63  ;;  %1658 = vmatprep.mubr.msk.bf16.mxu1 %vm664_vm0, %v2114_v0 }
  0x8f   : > { %897 = vmatmul.mubr.bf16.gmra.mrb[48].mxu0 %v2116_v1  ;;  %1025 = vmatmul.mubr.bf16.gmra.mrb[48].mxu1 %v2117_v2 }
  0x90   : > { %1643 = vmatprep.mubr.msk.bf16.mxu0 %vm664_vm0, %v2118_v3  ;;  %1659 = vmatprep.mubr.msk.bf16.mxu1 %vm664_vm0, %v2120_v4 }
  0x97   : > { %905 = vmatmul.mubr.bf16.gmra.mrb[52].mxu0 %v2122_v5  ;;  %1033 = vmatmul.mubr.bf16.gmra.mrb[52].mxu1 %v2123_v6 }
  0x98   : > { %1644 = vmatprep.mubr.msk.bf16.mxu0 %vm664_vm0, %v2124_v7  ;;  %1660 = vmatprep.mubr.msk.bf16.mxu1 %vm664_vm0, %v2126_v8 }
  0x9f   : > { %913 = vmatmul.mubr.bf16.gmra.mrb[56].mxu0 %v2128_v9  ;;  %1041 = vmatmul.mubr.bf16.gmra.mrb[56].mxu1 %v2129_v10 }
  0xa0   : > { %1645 = vmatprep.mubr.msk.bf16.mxu0 %vm664_vm0, %v2130_v11  ;;  %1661 = vmatprep.mubr.msk.bf16.mxu1 %vm664_vm0, %v2132_v12 }
  0xa7   : > { %921 = vmatmul.mubr.bf16.gmra.mrb[60].mxu0 %v2134_v13  ;;  %1049 = vmatmul.mubr.bf16.gmra.mrb[60].mxu1 %v2135_v14 }
 0x102   : > { %v802_v16 = vpop.f32.mrb[0].mxu0  ;;  %v930_v17 = vpop.f32.mrb[0].mxu1 }
 0x103   : > { %v803_v18 = vadd.f32 %v2337_v15, %v802_v16  ;;  %v931_v19 = vadd.f32 %v2337_v15, %v930_v17  ;;  %v804_v20 = vpop.f32.mrb[1].mxu0  ;;  %v932_v21 = vpop.f32.mrb[1].mxu1 }
 0x104   : > { %v805_v22 = vpop.f32.mrb[2].mxu0  ;;  %v933_v23 = vpop.f32.mrb[2].mxu1 }
 0x105   : > { %v806_v24 = vadd.f32 %v2337_v15, %v805_v22  ;;  %v934_v25 = vadd.f32 %v2337_v15, %v933_v23  ;;  %v807_v26 = vpop.f32.mrb[3].mxu0  ;;  %v935_v27 = vpop.f32.mrb[3].mxu1  ;;  %v1057_v28 = vmax.f32 %v803_v18, 0.0  ;;  %v1089_v29 = vmax.f32 %v931_v19, 0.0 }
 0x107   : > { %v1058_v30 = vmax.f32 %v806_v24, 0.0  ;;  %v1090_v31 = vmax.f32 %v934_v25, 0.0 }
 0x109   : > { %v1796_v32 = vpack.c.bf16 %v1058_v30, %v1057_v28  ;;  %v1876_v33 = vpack.c.bf16 %v1090_v31, %v1089_v29 }
 0x10a   : > { %v810_v34 = vpop.f32.mrb[4].mxu0  ;;  %v938_v35 = vpop.f32.mrb[4].mxu1 }
 0x10b   : > { %1797 = vst [vmem:[%s2347_s23] sm:$0xff] %v1796_v32   ;;  %1968 = vst [vmem:[%s2347_s23 + $0x80] sm:$0xff] %v1876_v33   ;;  %v811_v36 = vadd.f32 %v2337_v15, %v810_v34  ;;  %v939_v37 = vadd.f32 %v2337_v15, %v938_v35  ;;  %v812_v38 = vpop.f32.mrb[5].mxu0  ;;  %v940_v39 = vpop.f32.mrb[5].mxu1 }
 0x10c   : > { %v813_v40 = vpop.f32.mrb[6].mxu0  ;;  %v941_v41 = vpop.f32.mrb[6].mxu1 }
 0x10d   : > { %v814_v42 = vadd.f32 %v2337_v15, %v813_v40  ;;  %v942_v43 = vadd.f32 %v2337_v15, %v941_v41  ;;  %v815_v44 = vpop.f32.mrb[7].mxu0  ;;  %v943_v45 = vpop.f32.mrb[7].mxu1  ;;  %v1059_v46 = vmax.f32 %v811_v36, 0.0  ;;  %v1091_v47 = vmax.f32 %v939_v37, 0.0 }
 0x10f   : > { %v1060_v48 = vmax.f32 %v814_v42, 0.0  ;;  %v1092_v49 = vmax.f32 %v942_v43, 0.0 }
 0x111   : > { %v1801_v50 = vpack.c.bf16 %v1060_v48, %v1059_v46  ;;  %v1881_v51 = vpack.c.bf16 %v1092_v49, %v1091_v47 }
 0x112   : > { %v818_v52 = vpop.f32.mrb[8].mxu0  ;;  %v946_v53 = vpop.f32.mrb[8].mxu1 }
 0x113   : > { %1953 = vst [vmem:[%s2347_s23 + $0x8] sm:$0xff] %v1801_v50   ;;  %1969 = vst [vmem:[%s2347_s23 + $0x88] sm:$0xff] %v1881_v51   ;;  %v819_v54 = vadd.f32 %v2337_v15, %v818_v52  ;;  %v947_v55 = vadd.f32 %v2337_v15, %v946_v53  ;;  %v820_v56 = vpop.f32.mrb[9].mxu0  ;;  %v948_v57 = vpop.f32.mrb[9].mxu1 }
 0x114   : > { %v821_v58 = vpop.f32.mrb[10].mxu0  ;;  %v949_v59 = vpop.f32.mrb[10].mxu1 }
 0x115   : > { %v822_v60 = vadd.f32 %v2337_v15, %v821_v58  ;;  %v950_v61 = vadd.f32 %v2337_v15, %v949_v59  ;;  %v823_v62 = vpop.f32.mrb[11].mxu0  ;;  %v951_v63 = vpop.f32.mrb[11].mxu1  ;;  %v1061_v0 = vmax.f32 %v819_v54, 0.0  ;;  %v1093_v1 = vmax.f32 %v947_v55, 0.0 }
 0x117   : > { %v1062_v2 = vmax.f32 %v822_v60, 0.0  ;;  %v1094_v3 = vmax.f32 %v950_v61, 0.0 }
 0x119   : > { %v1806_v4 = vpack.c.bf16 %v1062_v2, %v1061_v0  ;;  %v1886_v5 = vpack.c.bf16 %v1094_v3, %v1093_v1 }
 0x11a   : > { %v826_v6 = vpop.f32.mrb[12].mxu0  ;;  %v954_v7 = vpop.f32.mrb[12].mxu1 }
 0x11b   : > { %1954 = vst [vmem:[%s2347_s23 + $0x10] sm:$0xff] %v1806_v4   ;;  %1970 = vst [vmem:[%s2347_s23 + $0x90] sm:$0xff] %v1886_v5   ;;  %v827_v8 = vadd.f32 %v2337_v15, %v826_v6  ;;  %v955_v9 = vadd.f32 %v2337_v15, %v954_v7  ;;  %v828_v10 = vpop.f32.mrb[13].mxu0  ;;  %v956_v11 = vpop.f32.mrb[13].mxu1 }
 0x11c   : > { %v829_v12 = vpop.f32.mrb[14].mxu0  ;;  %v957_v13 = vpop.f32.mrb[14].mxu1 }
 0x11d   : > { %v830_v14 = vadd.f32 %v2337_v15, %v829_v12  ;;  %v958_v16 = vadd.f32 %v2337_v15, %v957_v13  ;;  %v831_v17 = vpop.f32.mrb[15].mxu0  ;;  %v959_v18 = vpop.f32.mrb[15].mxu1  ;;  %v1063_v19 = vmax.f32 %v827_v8, 0.0  ;;  %v1095_v20 = vmax.f32 %v955_v9, 0.0 }
 0x11f   : > { %v1064_v21 = vmax.f32 %v830_v14, 0.0  ;;  %v1096_v22 = vmax.f32 %v958_v16, 0.0 }
 0x121   : > { %v1811_v23 = vpack.c.bf16 %v1064_v21, %v1063_v19  ;;  %v1891_v24 = vpack.c.bf16 %v1096_v22, %v1095_v20 }
 0x122   : > { %v834_v25 = vpop.f32.mrb[16].mxu0  ;;  %v962_v26 = vpop.f32.mrb[16].mxu1 }
 0x123   : > { %1955 = vst [vmem:[%s2347_s23 + $0x18] sm:$0xff] %v1811_v23   ;;  %1971 = vst [vmem:[%s2347_s23 + $0x98] sm:$0xff] %v1891_v24   ;;  %v835_v27 = vadd.f32 %v2337_v15, %v834_v25  ;;  %v963_v28 = vadd.f32 %v2337_v15, %v962_v26  ;;  %v836_v29 = vpop.f32.mrb[17].mxu0  ;;  %v964_v30 = vpop.f32.mrb[17].mxu1 }
 0x124   : > { %v837_v31 = vpop.f32.mrb[18].mxu0  ;;  %v965_v32 = vpop.f32.mrb[18].mxu1 }
 0x125   : > { %v838_v33 = vadd.f32 %v2337_v15, %v837_v31  ;;  %v966_v34 = vadd.f32 %v2337_v15, %v965_v32  ;;  %v839_v35 = vpop.f32.mrb[19].mxu0  ;;  %v967_v36 = vpop.f32.mrb[19].mxu1  ;;  %v1065_v37 = vmax.f32 %v835_v27, 0.0  ;;  %v1097_v38 = vmax.f32 %v963_v28, 0.0 }
 0x127   : > { %v1066_v39 = vmax.f32 %v838_v33, 0.0  ;;  %v1098_v40 = vmax.f32 %v966_v34, 0.0 }
 0x129   : > { %v1816_v41 = vpack.c.bf16 %v1066_v39, %v1065_v37  ;;  %v1896_v42 = vpack.c.bf16 %v1098_v40, %v1097_v38 }
 0x12a   : > { %v842_v43 = vpop.f32.mrb[20].mxu0  ;;  %v970_v44 = vpop.f32.mrb[20].mxu1 }
 0x12b   : > { %1956 = vst [vmem:[%s2347_s23 + $0x20] sm:$0xff] %v1816_v41   ;;  %1972 = vst [vmem:[%s2347_s23 + $0xa0] sm:$0xff] %v1896_v42   ;;  %v843_v45 = vadd.f32 %v2337_v15, %v842_v43  ;;  %v971_v46 = vadd.f32 %v2337_v15, %v970_v44  ;;  %v844_v47 = vpop.f32.mrb[21].mxu0  ;;  %v972_v48 = vpop.f32.mrb[21].mxu1 }
 0x12c   : > { %v845_v49 = vpop.f32.mrb[22].mxu0  ;;  %v973_v50 = vpop.f32.mrb[22].mxu1 }
 0x12d   : > { %v846_v51 = vadd.f32 %v2337_v15, %v845_v49  ;;  %v974_v52 = vadd.f32 %v2337_v15, %v973_v50  ;;  %v847_v53 = vpop.f32.mrb[23].mxu0  ;;  %v975_v54 = vpop.f32.mrb[23].mxu1  ;;  %v1067_v55 = vmax.f32 %v843_v45, 0.0  ;;  %v1099_v56 = vmax.f32 %v971_v46, 0.0 }
 0x12f   : > { %v1068_v57 = vmax.f32 %v846_v51, 0.0  ;;  %v1100_v58 = vmax.f32 %v974_v52, 0.0 }
 0x131   : > { %v1821_v59 = vpack.c.bf16 %v1068_v57, %v1067_v55  ;;  %v1901_v60 = vpack.c.bf16 %v1100_v58, %v1099_v56 }
 0x132   : > { %v850_v61 = vpop.f32.mrb[24].mxu0  ;;  %v978_v62 = vpop.f32.mrb[24].mxu1 }
 0x133   : > { %1957 = vst [vmem:[%s2347_s23 + $0x28] sm:$0xff] %v1821_v59   ;;  %1973 = vst [vmem:[%s2347_s23 + $0xa8] sm:$0xff] %v1901_v60   ;;  %v851_v63 = vadd.f32 %v2337_v15, %v850_v61  ;;  %v979_v0 = vadd.f32 %v2337_v15, %v978_v62  ;;  %v852_v1 = vpop.f32.mrb[25].mxu0  ;;  %v980_v2 = vpop.f32.mrb[25].mxu1 }
 0x134   : > { %v853_v3 = vpop.f32.mrb[26].mxu0  ;;  %v981_v4 = vpop.f32.mrb[26].mxu1 }
 0x135   : > { %v854_v5 = vadd.f32 %v2337_v15, %v853_v3  ;;  %v982_v6 = vadd.f32 %v2337_v15, %v981_v4  ;;  %v855_v7 = vpop.f32.mrb[27].mxu0  ;;  %v983_v8 = vpop.f32.mrb[27].mxu1  ;;  %v1069_v9 = vmax.f32 %v851_v63, 0.0  ;;  %v1101_v10 = vmax.f32 %v979_v0, 0.0 }
 0x137   : > { %v1070_v11 = vmax.f32 %v854_v5, 0.0  ;;  %v1102_v12 = vmax.f32 %v982_v6, 0.0 }
 0x139   : > { %v1826_v13 = vpack.c.bf16 %v1070_v11, %v1069_v9  ;;  %v1906_v14 = vpack.c.bf16 %v1102_v12, %v1101_v10 }
 0x13a   : > { %v858_v16 = vpop.f32.mrb[28].mxu0  ;;  %v986_v17 = vpop.f32.mrb[28].mxu1 }
 0x13b   : > { %1958 = vst [vmem:[%s2347_s23 + $0x30] sm:$0xff] %v1826_v13   ;;  %1974 = vst [vmem:[%s2347_s23 + $0xb0] sm:$0xff] %v1906_v14   ;;  %v859_v18 = vadd.f32 %v2337_v15, %v858_v16  ;;  %v987_v19 = vadd.f32 %v2337_v15, %v986_v17  ;;  %v860_v20 = vpop.f32.mrb[29].mxu0  ;;  %v988_v21 = vpop.f32.mrb[29].mxu1 }
 0x13c   : > { %v861_v22 = vpop.f32.mrb[30].mxu0  ;;  %v989_v23 = vpop.f32.mrb[30].mxu1 }
 0x13d   : > { %v862_v24 = vadd.f32 %v2337_v15, %v861_v22  ;;  %v990_v25 = vadd.f32 %v2337_v15, %v989_v23  ;;  %v863_v26 = vpop.f32.mrb[31].mxu0  ;;  %v991_v27 = vpop.f32.mrb[31].mxu1  ;;  %v1071_v28 = vmax.f32 %v859_v18, 0.0  ;;  %v1103_v29 = vmax.f32 %v987_v19, 0.0 }
 0x13f   : > { %v1072_v30 = vmax.f32 %v862_v24, 0.0  ;;  %v1104_v31 = vmax.f32 %v990_v25, 0.0 }
 0x141   : > { %v1831_v32 = vpack.c.bf16 %v1072_v30, %v1071_v28  ;;  %v1911_v33 = vpack.c.bf16 %v1104_v31, %v1103_v29 }
 0x142   : > { %v866_v34 = vpop.f32.mrb[32].mxu0  ;;  %v994_v35 = vpop.f32.mrb[32].mxu1 }
 0x143   : > { %1959 = vst [vmem:[%s2347_s23 + $0x38] sm:$0xff] %v1831_v32   ;;  %1975 = vst [vmem:[%s2347_s23 + $0xb8] sm:$0xff] %v1911_v33   ;;  %v867_v36 = vadd.f32 %v2337_v15, %v866_v34  ;;  %v995_v37 = vadd.f32 %v2337_v15, %v994_v35  ;;  %v868_v38 = vpop.f32.mrb[33].mxu0  ;;  %v996_v39 = vpop.f32.mrb[33].mxu1 }
 0x144   : > { %v869_v40 = vpop.f32.mrb[34].mxu0  ;;  %v997_v41 = vpop.f32.mrb[34].mxu1 }
 0x145   : > { %v870_v42 = vadd.f32 %v2337_v15, %v869_v40  ;;  %v998_v43 = vadd.f32 %v2337_v15, %v997_v41  ;;  %v871_v44 = vpop.f32.mrb[35].mxu0  ;;  %v999_v45 = vpop.f32.mrb[35].mxu1  ;;  %v1073_v46 = vmax.f32 %v867_v36, 0.0  ;;  %v1105_v47 = vmax.f32 %v995_v37, 0.0 }
 0x147   : > { %v1074_v48 = vmax.f32 %v870_v42, 0.0  ;;  %v1106_v49 = vmax.f32 %v998_v43, 0.0 }
 0x149   : > { %v1836_v50 = vpack.c.bf16 %v1074_v48, %v1073_v46  ;;  %v1916_v51 = vpack.c.bf16 %v1106_v49, %v1105_v47 }
 0x14a   : > { %v874_v52 = vpop.f32.mrb[36].mxu0  ;;  %v1002_v53 = vpop.f32.mrb[36].mxu1 }
 0x14b   : > { %1960 = vst [vmem:[%s2347_s23 + $0x40] sm:$0xff] %v1836_v50   ;;  %1976 = vst [vmem:[%s2347_s23 + $0xc0] sm:$0xff] %v1916_v51   ;;  %v875_v54 = vadd.f32 %v2337_v15, %v874_v52  ;;  %v1003_v55 = vadd.f32 %v2337_v15, %v1002_v53  ;;  %v876_v56 = vpop.f32.mrb[37].mxu0  ;;  %v1004_v57 = vpop.f32.mrb[37].mxu1 }
 0x14c   : > { %v877_v58 = vpop.f32.mrb[38].mxu0  ;;  %v1005_v59 = vpop.f32.mrb[38].mxu1 }
 0x14d   : > { %v878_v60 = vadd.f32 %v2337_v15, %v877_v58  ;;  %v1006_v61 = vadd.f32 %v2337_v15, %v1005_v59  ;;  %v879_v62 = vpop.f32.mrb[39].mxu0  ;;  %v1007_v63 = vpop.f32.mrb[39].mxu1  ;;  %v1075_v0 = vmax.f32 %v875_v54, 0.0  ;;  %v1107_v1 = vmax.f32 %v1003_v55, 0.0 }
 0x14f   : > { %v1076_v2 = vmax.f32 %v878_v60, 0.0  ;;  %v1108_v3 = vmax.f32 %v1006_v61, 0.0 }
 0x151   : > { %v1841_v4 = vpack.c.bf16 %v1076_v2, %v1075_v0  ;;  %v1921_v5 = vpack.c.bf16 %v1108_v3, %v1107_v1 }
 0x152   : > { %v882_v6 = vpop.f32.mrb[40].mxu0  ;;  %v1010_v7 = vpop.f32.mrb[40].mxu1 }
 0x153   : > { %1961 = vst [vmem:[%s2347_s23 + $0x48] sm:$0xff] %v1841_v4   ;;  %1977 = vst [vmem:[%s2347_s23 + $0xc8] sm:$0xff] %v1921_v5   ;;  %v883_v8 = vadd.f32 %v2337_v15, %v882_v6  ;;  %v1011_v9 = vadd.f32 %v2337_v15, %v1010_v7  ;;  %v884_v10 = vpop.f32.mrb[41].mxu0  ;;  %v1012_v11 = vpop.f32.mrb[41].mxu1 }
 0x154   : > { %v885_v12 = vpop.f32.mrb[42].mxu0  ;;  %v1013_v13 = vpop.f32.mrb[42].mxu1 }
 0x155   : > { %v886_v14 = vadd.f32 %v2337_v15, %v885_v12  ;;  %v1014_v16 = vadd.f32 %v2337_v15, %v1013_v13  ;;  %v887_v17 = vpop.f32.mrb[43].mxu0  ;;  %v1015_v18 = vpop.f32.mrb[43].mxu1  ;;  %v1077_v19 = vmax.f32 %v883_v8, 0.0  ;;  %v1109_v20 = vmax.f32 %v1011_v9, 0.0 }
 0x157   : > { %v1078_v21 = vmax.f32 %v886_v14, 0.0  ;;  %v1110_v22 = vmax.f32 %v1014_v16, 0.0 }
 0x159   : > { %v1846_v23 = vpack.c.bf16 %v1078_v21, %v1077_v19  ;;  %v1926_v24 = vpack.c.bf16 %v1110_v22, %v1109_v20 }
 0x15a   : > { %v890_v25 = vpop.f32.mrb[44].mxu0  ;;  %v1018_v26 = vpop.f32.mrb[44].mxu1 }
 0x15b   : > { %1962 = vst [vmem:[%s2347_s23 + $0x50] sm:$0xff] %v1846_v23   ;;  %1978 = vst [vmem:[%s2347_s23 + $0xd0] sm:$0xff] %v1926_v24   ;;  %v891_v27 = vadd.f32 %v2337_v15, %v890_v25  ;;  %v1019_v28 = vadd.f32 %v2337_v15, %v1018_v26  ;;  %v892_v29 = vpop.f32.mrb[45].mxu0  ;;  %v1020_v30 = vpop.f32.mrb[45].mxu1 }
 0x15c   : > { %v893_v31 = vpop.f32.mrb[46].mxu0  ;;  %v1021_v32 = vpop.f32.mrb[46].mxu1 }
 0x15d   : > { %v894_v33 = vadd.f32 %v2337_v15, %v893_v31  ;;  %v1022_v34 = vadd.f32 %v2337_v15, %v1021_v32  ;;  %v895_v35 = vpop.f32.mrb[47].mxu0  ;;  %v1023_v36 = vpop.f32.mrb[47].mxu1  ;;  %v1079_v37 = vmax.f32 %v891_v27, 0.0  ;;  %v1111_v38 = vmax.f32 %v1019_v28, 0.0 }
 0x15f   : > { %v1080_v39 = vmax.f32 %v894_v33, 0.0  ;;  %v1112_v40 = vmax.f32 %v1022_v34, 0.0 }
 0x161   : > { %v1851_v41 = vpack.c.bf16 %v1080_v39, %v1079_v37  ;;  %v1931_v42 = vpack.c.bf16 %v1112_v40, %v1111_v38 }
 0x162   : > { %v898_v43 = vpop.f32.mrb[48].mxu0  ;;  %v1026_v44 = vpop.f32.mrb[48].mxu1 }
 0x163   : > { %1963 = vst [vmem:[%s2347_s23 + $0x58] sm:$0xff] %v1851_v41   ;;  %1979 = vst [vmem:[%s2347_s23 + $0xd8] sm:$0xff] %v1931_v42   ;;  %v899_v45 = vadd.f32 %v2337_v15, %v898_v43  ;;  %v1027_v46 = vadd.f32 %v2337_v15, %v1026_v44  ;;  %v900_v47 = vpop.f32.mrb[49].mxu0  ;;  %v1028_v48 = vpop.f32.mrb[49].mxu1 }
 0x164   : > { %v901_v49 = vpop.f32.mrb[50].mxu0  ;;  %v1029_v50 = vpop.f32.mrb[50].mxu1 }
 0x165   : > { %v902_v51 = vadd.f32 %v2337_v15, %v901_v49  ;;  %v1030_v52 = vadd.f32 %v2337_v15, %v1029_v50  ;;  %v903_v53 = vpop.f32.mrb[51].mxu0  ;;  %v1031_v54 = vpop.f32.mrb[51].mxu1  ;;  %v1081_v55 = vmax.f32 %v899_v45, 0.0  ;;  %v1113_v56 = vmax.f32 %v1027_v46, 0.0 }
 0x167   : > { %v1082_v57 = vmax.f32 %v902_v51, 0.0  ;;  %v1114_v58 = vmax.f32 %v1030_v52, 0.0 }
 0x169   : > { %v1856_v59 = vpack.c.bf16 %v1082_v57, %v1081_v55  ;;  %v1936_v60 = vpack.c.bf16 %v1114_v58, %v1113_v56 }
 0x16a   : > { %v906_v61 = vpop.f32.mrb[52].mxu0  ;;  %v1034_v62 = vpop.f32.mrb[52].mxu1 }
 0x16b   : > { %1964 = vst [vmem:[%s2347_s23 + $0x60] sm:$0xff] %v1856_v59   ;;  %1980 = vst [vmem:[%s2347_s23 + $0xe0] sm:$0xff] %v1936_v60   ;;  %v907_v63 = vadd.f32 %v2337_v15, %v906_v61  ;;  %v1035_v0 = vadd.f32 %v2337_v15, %v1034_v62  ;;  %v908_v1 = vpop.f32.mrb[53].mxu0  ;;  %v1036_v2 = vpop.f32.mrb[53].mxu1 }
 0x16c   : > { %v909_v3 = vpop.f32.mrb[54].mxu0  ;;  %v1037_v4 = vpop.f32.mrb[54].mxu1 }
 0x16d   : > { %v910_v5 = vadd.f32 %v2337_v15, %v909_v3  ;;  %v1038_v6 = vadd.f32 %v2337_v15, %v1037_v4  ;;  %v911_v7 = vpop.f32.mrb[55].mxu0  ;;  %v1039_v8 = vpop.f32.mrb[55].mxu1  ;;  %v1083_v9 = vmax.f32 %v907_v63, 0.0  ;;  %v1115_v10 = vmax.f32 %v1035_v0, 0.0 }
 0x16f   : > { %v1084_v11 = vmax.f32 %v910_v5, 0.0  ;;  %v1116_v12 = vmax.f32 %v1038_v6, 0.0 }
 0x171   : > { %v1861_v13 = vpack.c.bf16 %v1084_v11, %v1083_v9  ;;  %v1941_v14 = vpack.c.bf16 %v1116_v12, %v1115_v10 }
 0x172   : > { %v914_v16 = vpop.f32.mrb[56].mxu0  ;;  %v1042_v17 = vpop.f32.mrb[56].mxu1 }
 0x173   : > { %1965 = vst [vmem:[%s2347_s23 + $0x68] sm:$0xff] %v1861_v13   ;;  %1981 = vst [vmem:[%s2347_s23 + $0xe8] sm:$0xff] %v1941_v14   ;;  %v915_v18 = vadd.f32 %v2337_v15, %v914_v16  ;;  %v1043_v19 = vadd.f32 %v2337_v15, %v1042_v17  ;;  %v916_v20 = vpop.f32.mrb[57].mxu0  ;;  %v1044_v21 = vpop.f32.mrb[57].mxu1 }
 0x174   : > { %v917_v22 = vpop.f32.mrb[58].mxu0  ;;  %v1045_v23 = vpop.f32.mrb[58].mxu1 }
 0x175   : > { %v918_v24 = vadd.f32 %v2337_v15, %v917_v22  ;;  %v1046_v25 = vadd.f32 %v2337_v15, %v1045_v23  ;;  %v919_v26 = vpop.f32.mrb[59].mxu0  ;;  %v1047_v27 = vpop.f32.mrb[59].mxu1  ;;  %v1085_v28 = vmax.f32 %v915_v18, 0.0  ;;  %v1117_v29 = vmax.f32 %v1043_v19, 0.0 }
 0x177   : > { %v1086_v30 = vmax.f32 %v918_v24, 0.0  ;;  %v1118_v31 = vmax.f32 %v1046_v25, 0.0 }
 0x179   : > { %v1866_v32 = vpack.c.bf16 %v1086_v30, %v1085_v28  ;;  %v1946_v33 = vpack.c.bf16 %v1118_v31, %v1117_v29 }
 0x17a   : > { %v922_v34 = vpop.f32.mrb[60].mxu0  ;;  %v1050_v35 = vpop.f32.mrb[60].mxu1 }
 0x17b   : > { %1966 = vst [vmem:[%s2347_s23 + $0x70] sm:$0xff] %v1866_v32   ;;  %1982 = vst [vmem:[%s2347_s23 + $0xf0] sm:$0xff] %v1946_v33   ;;  %v923_v36 = vadd.f32 %v2337_v15, %v922_v34  ;;  %v1051_v37 = vadd.f32 %v2337_v15, %v1050_v35  ;;  %v924_v38 = vpop.f32.mrb[61].mxu0  ;;  %v1052_v39 = vpop.f32.mrb[61].mxu1 }
 0x17c   : > { %v925_v40 = vpop.f32.mrb[62].mxu0  ;;  %v1053_v41 = vpop.f32.mrb[62].mxu1 }
 0x17d   : > { %v926_v42 = vadd.f32 %v2337_v15, %v925_v40  ;;  %v1054_v43 = vadd.f32 %v2337_v15, %v1053_v41  ;;  %v927_v44 = vpop.f32.mrb[63].mxu0  ;;  %v1055_v45 = vpop.f32.mrb[63].mxu1  ;;  %v1087_v46 = vmax.f32 %v923_v36, 0.0  ;;  %v1119_v47 = vmax.f32 %v1051_v37, 0.0 }
 0x17f   : > { %v1088_v48 = vmax.f32 %v926_v42, 0.0  ;;  %v1120_v49 = vmax.f32 %v1054_v43, 0.0 }
 0x181   : > { %v1871_v50 = vpack.c.bf16 %v1088_v48, %v1087_v46  ;;  %v1951_v51 = vpack.c.bf16 %v1120_v49, %v1119_v47 }
 0x183   : > { %1967 = vst [vmem:[%s2347_s23 + $0x78] sm:$0xff] %v1871_v50   ;;  %1983 = vst [vmem:[%s2347_s23 + $0xf8] sm:$0xff] %v1951_v51  }
 0x184 PF: > { %s13_s14 = sadd.s32 1, %s2158_s14   ;;  %s2454_s12 = smov %s2154_s13 }
 0x185   : > { %p10_p5 = scmp.ge.s32.totalorder %s13_s14, 6   ;;  %s2455_s13 = smov %s2457_s15 }
 0x187   :  { %12 = sbr.rel (!%p10_p5) target bundleno = 2 (0x2), region = 68 }

// kernel: pixel_encoder_forward.16
= control target key start
LH: loop header
LB: loop body
LE: loop exit
PB: predicated region body
PF: predicated region fallthrough
CT: control target
= control target key end

     0   :  { %s4081_s12 = smov 0   ;;  %s4083_s13 = smov 0   ;;  %s4877_s0 = inlined_call_operand.vmem [shape: bf16[512,1152], index: 0, kind: input, shape index: {}]   ;;  %s4878_s1 = inlined_call_operand.vmem [shape: bf16[1152,128], index: 1, kind: input, shape index: {}]   ;;  %s4879_s2 = inlined_call_operand.vmem [shape: f32[1,128], index: 2, kind: input, shape index: {}]   ;;  %s4880_s3 = inlined_call_operand.vmem [shape: bf16[512,128], index: 3, kind: output, shape index: {}]  }
   0x1   :  { %s4085_s14 = smov 0  }
   0x2 LB: > { %s25_s15 = sadd.s32 1, %s4055_s13  ;;  %p2813_p0 = scmp.ge.s32.totalorder %s4059_s14, 1  ;;  %s4059_s14 = sphi %s4085_s14, %s13_s14   ;;  %s4055_s13 = sphi %s4083_s13, %s4882_s13   ;;  %s4051_s12 = sphi %s4081_s12, %s4881_s12  }
   0x3   : > { %p27_p1 = scmp.ge.s32.totalorder %s25_s15, 2  ;;  %p170_p2 = scmp.lt.s32.totalorder %s4059_s14, 3 }
   0x5   : > { %s4884_s15 = smov (%p27_p1, %s25_s15), 0  ;;  %p171_p3 = pnand %p2813_p0, %p170_p2 }
   0x6   : > { %v3757_v0 = vld [vmem:[%s4878_s1 + $0x40] sm:$0xff] (!%p171_p3)   ;;  %s2814_s18 = sshll.u32 (!%p171_p3), %s4051_s12, 5  ;;  %v3759_v2 = vld [vmem:[%s4878_s1 + $0x48] sm:$0xff] (!%p171_p3)   ;;  %v3761_v4 = vld [vmem:[%s4878_s1 + $0x50] sm:$0xff] (!%p171_p3)  }
   0x7   : > { %174 = sbr.rel (%p171_p3) target bundleno = 545 (0x221), region = 32  ;;  %v3758_v1 = vld [vmem:[%s4878_s1] sm:$0xff] (!%p171_p3)   ;;  %3196 = vmatprep.subr.bf16.mxu0 (!%p171_p3), %v3757_v0  ;;  %3716 = vmatprep.subr.bf16.mxu1 (!%p171_p3), %v3757_v0  ;;  %p206_p4 = scmp.lt.s32.totalorder (!%p171_p3), %s2814_s18, 63  ;;  %v3760_v3 = vld [vmem:[%s4878_s1 + $0x8] sm:$0xff] (!%p171_p3)   ;;  %v3762_v5 = vld [vmem:[%s4878_s1 + $0x10] sm:$0xff] (!%p171_p3)  }
   0x8   : > { %3197 = vmatpush3.bf16.msra.mxu0 (!%p171_p3), %v3758_v1  ;;  %3724 = vmatpush3.bf16.msra.mxu1 (!%p171_p3), %v3758_v1  ;;  %v3763_v6 = vld [vmem:[%s4878_s1 + $0x58] sm:$0xff] (!%p171_p3)   ;;  %v3765_v8 = vld [vmem:[%s4878_s1 + $0x60] sm:$0xff] (!%p171_p3)   ;;  %v3767_v10 = vld [vmem:[%s4878_s1 + $0x68] sm:$0xff] (!%p171_p3)  }
   0x9   : > { %3198 = vmatprep.subr.bf16.mxu0 (!%p171_p3), %v3759_v2  ;;  %3717 = vmatprep.subr.bf16.mxu1 (!%p171_p3), %v3759_v2  ;;  %v3764_v7 = vld [vmem:[%s4878_s1 + $0x18] sm:$0xff] (!%p171_p3)   ;;  %v3766_v9 = vld [vmem:[%s4878_s1 + $0x20] sm:$0xff] (!%p171_p3)   ;;  %v3768_v13 = vld [vmem:[%s4878_s1 + $0x28] sm:$0xff] (!%p171_p3)  }
   0xa   : > { %v3769_v14 = vld [vmem:[%s4878_s1 + $0x70] sm:$0xff] (!%p171_p3)   ;;  %v3771_v16 = vld [vmem:[%s4878_s1 + $0x78] sm:$0xff] (!%p171_p3)   ;;  %v3779_v18 = vld [vmem:[%s4878_s1 + $0xc0] sm:$0xff] (!%p171_p3)  }
   0xb   : > { %v3770_v15 = vld [vmem:[%s4878_s1 + $0x30] sm:$0xff] (!%p171_p3)   ;;  %v3772_v17 = vld [vmem:[%s4878_s1 + $0x38] sm:$0xff] (!%p171_p3)   ;;  %v3782_v21 = vld [vmem:[%s4878_s1 + $0x140] sm:$0xff] (!%p171_p3)  }
   0xc   : > { %3199 = vmatpush3.bf16.msra.mxu0 (!%p171_p3), %v3760_v3  ;;  %3725 = vmatpush3.bf16.msra.mxu1 (!%p171_p3), %v3760_v3  ;;  %v3780_v22 = vld [vmem:[%s4878_s1 + $0x80] sm:$0xff] (!%p171_p3)   ;;  %v3781_v23 = vld [vmem:[%s4878_s1 + $0xc8] sm:$0xff] (!%p171_p3)   ;;  %v3791_v31 = vld [vmem:[%s4878_s1 + $0xd0] sm:$0xff] (!%p171_p3)  }
   0xd   : > { %3200 = vmatprep.subr.bf16.mxu0 (!%p171_p3), %v3761_v4  ;;  %3718 = vmatprep.subr.bf16.mxu1 (!%p171_p3), %v3761_v4  ;;  %v3784_v24 = vld [vmem:[%s4878_s1 + $0x100] sm:$0xff] (!%p171_p3)   ;;  %v3783_v27 = vld [vmem:[%s4878_s1 + $0x88] sm:$0xff] (!%p171_p3)   ;;  %v3792_v32 = vld [vmem:[%s4878_s1 + $0x90] sm:$0xff] (!%p171_p3)  }
   0xe   : > { %s4886_s18 = smov (!%p206_p4, %s2814_s18), 63  ;;  %v3802_v28 = vld [vmem:[%s4878_s1 + $0x148] sm:$0xff]   ;;  %v3793_v34 = vld [vmem:[%s4878_s1 + $0xd8] sm:$0xff]   ;;  %v3801_v40 = vld [vmem:[%s4878_s1 + $0xe0] sm:$0xff]  }
   0xf   : > { %s3732_s4 = smul.u32 36, %s4886_s18  ;;  %v3804_v33 = vld [vmem:[%s4878_s1 + $0x108] sm:$0xff]   ;;  %v3794_v37 = vld [vmem:[%s4878_s1 + $0x98] sm:$0xff]   ;;  %v3803_v41 = vld [vmem:[%s4878_s1 + $0xa0] sm:$0xff]  }
  0x10   : > { %3201 = vmatpush3.bf16.msra.mxu0 %v3762_v5  ;;  %3726 = vmatpush3.bf16.msra.mxu1 %v3762_v5  ;;  %v3805_v42 = vld [vmem:[%s4878_s1 + $0xe8] sm:$0xff]   ;;  %v3816_v43 = vld [vmem:[%s4878_s1 + $0x150] sm:$0xff]   ;;  %v3815_v52 = vld [vmem:[%s4878_s1 + $0xf8] sm:$0xff]  }
  0x11   : > { %3202 = vmatprep.subr.bf16.mxu0 %v3763_v6  ;;  %3719 = vmatprep.subr.bf16.mxu1 %v3763_v6  ;;  %s4132_s11 = scalar_lea.vmem %s4877_s0, %s3732_s4  ;;  %v3818_v46 = vld [vmem:[%s4878_s1 + $0x110] sm:$0xff]   ;;  %v3806_v47 = vld [vmem:[%s4878_s1 + $0xa8] sm:$0xff]   ;;  %v3833_v55 = vld [vmem:[%s4878_s1 + $0x158] sm:$0xff]  }
  0x12   : > { %v3775_v11 = vld [vmem:[%s4132_s11 + $0x4] ss:$36 sps:$4 sm:$0xff]   ;;  %v3785_v25 = vld [vmem:[%s4132_s11 + $0x4c] ss:$36 sps:$4 sm:$0xff]   ;;  %v3795_v35 = vld [vmem:[%s4132_s11 + $0x94] ss:$36 sps:$4 sm:$0xff]  }
  0x13   : > { %v3778_v12 = vld [vmem:[%s4132_s11 + $0x364] ss:$36 sps:$4 sm:$0xff]   ;;  %1740 = vmatprep.mubr.bf16.mxu0 %v3775_v11  ;;  %v3787_v26 = vld [vmem:[%s4132_s11 + $0x3ac] ss:$36 sps:$4 sm:$0xff]   ;;  %v3797_v36 = vld [vmem:[%s4132_s11 + $0x3f4] ss:$36 sps:$4 sm:$0xff]  }
  0x14   : > { %3203 = vmatpush3.bf16.msra.mxu0 %v3764_v7  ;;  %3727 = vmatpush3.bf16.msra.mxu1 %v3764_v7  ;;  %v3773_v19 = vld [vmem:[%s4132_s11] ss:$36 sps:$4 sm:$0xff]   ;;  %v3789_v29 = vld [vmem:[%s4132_s11 + $0x48] ss:$36 sps:$4 sm:$0xff]   ;;  %v3799_v38 = vld [vmem:[%s4132_s11 + $0x90] ss:$36 sps:$4 sm:$0xff]  }
  0x15   : > { %3204 = vmatprep.subr.bf16.mxu0 %v3765_v8  ;;  %3720 = vmatprep.subr.bf16.mxu1 %v3765_v8  ;;  %v3776_v20 = vld [vmem:[%s4132_s11 + $0x360] ss:$36 sps:$4 sm:$0xff]   ;;  %v3790_v30 = vld [vmem:[%s4132_s11 + $0x3a8] ss:$36 sps:$4 sm:$0xff]   ;;  %v3800_v39 = vld [vmem:[%s4132_s11 + $0x3f0] ss:$36 sps:$4 sm:$0xff]  }
  0x16   : > { %1836 = vmatprep.mubr.bf16.mxu1 %v3778_v12  ;;  %v3807_v44 = vld [vmem:[%s4132_s11 + $0xdc] ss:$36 sps:$4 sm:$0xff]   ;;  %v3813_v48 = vld [vmem:[%s4878_s1 + $0xf0] sm:$0xff]   ;;  %v3819_v53 = vld [vmem:[%s4132_s11 + $0x124] ss:$36 sps:$4 sm:$0xff]  }
  0x17   : > { %v3809_v45 = vld [vmem:[%s4132_s11 + $0x43c] ss:$36 sps:$4 sm:$0xff]   ;;  %v3814_v51 = vld [vmem:[%s4878_s1 + $0xb0] sm:$0xff]   ;;  %v3821_v58 = vld [vmem:[%s4132_s11 + $0x8] ss:$36 sps:$4 sm:$0xff]  }
  0x18   : > { %3205 = vmatpush3.bf16.msra.mxu0 %v3766_v9  ;;  %3728 = vmatpush3.bf16.msra.mxu1 %v3766_v9  ;;  %v3811_v49 = vld [vmem:[%s4132_s11 + $0xd8] ss:$36 sps:$4 sm:$0xff]   ;;  %v3823_v54 = vld [vmem:[%s4132_s11 + $0xc] ss:$36 sps:$4 sm:$0xff]   ;;  %v3824_v59 = vld [vmem:[%s4132_s11 + $0x120] ss:$36 sps:$4 sm:$0xff]  }
  0x19   : > { %3206 = vmatprep.subr.bf16.mxu0 %v3767_v10  ;;  %3721 = vmatprep.subr.bf16.mxu1 %v3767_v10  ;;  %v3812_v50 = vld [vmem:[%s4132_s11 + $0x438] ss:$36 sps:$4 sm:$0xff]   ;;  %v3825_v60 = vld [vmem:[%s4878_s1 + $0x1c0] sm:$0xff]   ;;  %v3827_v62 = vld [vmem:[%s4132_s11 + $0x16c] ss:$36 sps:$4 sm:$0xff]  }
  0x1a   : > { %v3834_v56 = vld [vmem:[%s4878_s1 + $0x118] sm:$0xff]   ;;  %v3826_v61 = vld [vmem:[%s4878_s1 + $0x180] sm:$0xff]   ;;  %v3841_v1 = vld [vmem:[%s4878_s1 + $0x1c8] sm:$0xff]  }
  0x1b   : > { %v3817_v57 = vld [vmem:[%s4878_s1 + $0xb8] sm:$0xff]   ;;  %v3843_v0 = vld [vmem:[%s4878_s1 + $0x160] sm:$0xff]   ;;  %v3842_v3 = vld [vmem:[%s4878_s1 + $0x188] sm:$0xff]  }
  0x1c   : > { %3207 = vmatpush3.bf16.msra.mxu0 %v3768_v13  ;;  %3729 = vmatpush3.bf16.msra.mxu1 %v3768_v13  ;;  %v3829_v63 = vld [vmem:[%s4132_s11 + $0x54] ss:$36 sps:$4 sm:$0xff]   ;;  %v3844_v2 = vld [vmem:[%s4878_s1 + $0x120] sm:$0xff]   ;;  %v3831_v4 = vld [vmem:[%s4132_s11 + $0x168] ss:$36 sps:$4 sm:$0xff]  }
  0x1d   : > { %3208 = vmatprep.subr.bf16.mxu0 %v3769_v14  ;;  %3722 = vmatprep.subr.bf16.mxu1 %v3769_v14  ;;  %v3832_v5 = vld [vmem:[%s4132_s11 + $0x50] ss:$36 sps:$4 sm:$0xff]   ;;  %v3837_v7 = vld [vmem:[%s4132_s11 + $0x9c] ss:$36 sps:$4 sm:$0xff]   ;;  %v3857_v8 = vld [vmem:[%s4878_s1 + $0x168] sm:$0xff]  }
  0x1e   : > { %v3835_v6 = vld [vmem:[%s4132_s11 + $0x1b4] ss:$36 sps:$4 sm:$0xff]   ;;  %v3859_v10 = vld [vmem:[%s4878_s1 + $0x128] sm:$0xff]   ;;  %v3845_v14 = vld [vmem:[%s4132_s11 + $0x1fc] ss:$36 sps:$4 sm:$0xff]  }
  0x1f   : > { %v3858_v9 = vld [vmem:[%s4878_s1 + $0x1d0] sm:$0xff]   ;;  %v3840_v13 = vld [vmem:[%s4132_s11 + $0x98] ss:$36 sps:$4 sm:$0xff]  }
  0x20   : > { %3209 = vmatpush3.bf16.msra.mxu0 %v3770_v15  ;;  %3730 = vmatpush3.bf16.msra.mxu1 %v3770_v15  ;;  %v3860_v11 = vld [vmem:[%s4878_s1 + $0x190] sm:$0xff]  }
  0x21   : > { %3210 = vmatprep.subr.bf16.mxu0 %v3771_v16  ;;  %3723 = vmatprep.subr.bf16.mxu1 %v3771_v16  ;;  %v3839_v12 = vld [vmem:[%s4132_s11 + $0x1b0] ss:$36 sps:$4 sm:$0xff]  }
  0x22   : > { %v3867_v15 = vld [vmem:[%s4878_s1 + $0x170] sm:$0xff]  }
  0x23   : > { %v3868_v16 = vld [vmem:[%s4878_s1 + $0x130] sm:$0xff]  }
  0x24   : > { %3211 = vmatpush3.bf16.msra.mxu0 %v3772_v17  ;;  %3731 = vmatpush3.bf16.msra.mxu1 %v3772_v17  ;;  %v3847_v17 = vld [vmem:[%s4132_s11 + $0xe4] ss:$36 sps:$4 sm:$0xff]  }
  0x25   : > { %3308 = vmatprep.subr.bf16.mxu1 %v3779_v18  ;;  %3420 = vmatprep.subr.bf16.mxu0 %v3782_v21  ;;  %v3875_v18 = vld [vmem:[%s4878_s1 + $0x1d8] sm:$0xff]   ;;  %v3850_v21 = vld [vmem:[%s4132_s11 + $0xe0] ss:$36 sps:$4 sm:$0xff]  }
  0x27   : > { %1741 = vmatmul.mubr.bf16.vlgmr.msra.gmra.mrb[0].mxu0 %v3773_v19  ;;  %1837 = vmatmul.mubr.bf16.vlgmr.msra.gmra.mrb[0].mxu1 %v3776_v20  ;;  %v3876_v19 = vld [vmem:[%s4878_s1 + $0x198] sm:$0xff]  }
  0x28   : > { %3309 = vmatpush3.bf16.msra.mxu1 %v3780_v22  ;;  %3421 = vmatpush3.bf16.msra.mxu0 %v3784_v24  ;;  %v3849_v20 = vld [vmem:[%s4132_s11 + $0x1f8] ss:$36 sps:$4 sm:$0xff]   ;;  %v3851_v22 = vld [vmem:[%s4132_s11 + $0x244] ss:$36 sps:$4 sm:$0xff]  }
  0x29   : > { %3310 = vmatprep.subr.bf16.mxu1 %v3781_v23  ;;  %1748 = vmatprep.mubr.bf16.mxu0 %v3785_v25  ;;  %v3853_v23 = vld [vmem:[%s4132_s11 + $0x12c] ss:$36 sps:$4 sm:$0xff]   ;;  %v3883_v24 = vld [vmem:[%s4878_s1 + $0x178] sm:$0xff]  }
  0x2a   : > { %1844 = vmatprep.mubr.bf16.mxu1 %v3787_v26  ;;  %3422 = vmatprep.subr.bf16.mxu0 %v3802_v28  ;;  %v3884_v25 = vld [vmem:[%s4878_s1 + $0x138] sm:$0xff]   ;;  %v3891_v26 = vld [vmem:[%s4878_s1 + $0x1e0] sm:$0xff]  }
  0x2b   : > { %v3892_v28 = vld [vmem:[%s4878_s1 + $0x1a0] sm:$0xff]  }
  0x2c   : > { %3311 = vmatpush3.bf16.msra.mxu1 %v3783_v27  ;;  %3423 = vmatpush3.bf16.msra.mxu0 %v3804_v33  ;;  %v3855_v27 = vld [vmem:[%s4132_s11 + $0x240] ss:$36 sps:$4 sm:$0xff]   ;;  %v3906_v33 = vld [vmem:[%s4878_s1 + $0x1e8] sm:$0xff]  }
  0x2d   : > { %3312 = vmatprep.subr.bf16.mxu1 %v3791_v31  ;;  %3424 = vmatprep.subr.bf16.mxu0 %v3816_v43  ;;  %v3861_v31 = vld [vmem:[%s4132_s11 + $0x28c] ss:$36 sps:$4 sm:$0xff]   ;;  %v3877_v43 = vld [vmem:[%s4132_s11 + $0x31c] ss:$36 sps:$4 sm:$0xff]  }
  0x2f   : > { %1749 = vmatmul.mubr.bf16.gmra.mrb[4].mxu0 %v3789_v29  ;;  %1845 = vmatmul.mubr.bf16.gmra.mrb[4].mxu1 %v3790_v30  ;;  %v3893_v29 = vld [vmem:[%s4878_s1 + $0x200] sm:$0xff]   ;;  %v3856_v30 = vld [vmem:[%s4132_s11 + $0x128] ss:$36 sps:$4 sm:$0xff]  }
  0x30   : > { %3313 = vmatpush3.bf16.msra.mxu1 %v3792_v32  ;;  %1756 = vmatprep.mubr.bf16.mxu0 %v3795_v35  ;;  %v3863_v32 = vld [vmem:[%s4132_s11 + $0x174] ss:$36 sps:$4 sm:$0xff]   ;;  %v3907_v35 = vld [vmem:[%s4878_s1 + $0x1a8] sm:$0xff]  }
  0x31   : > { %3314 = vmatprep.subr.bf16.mxu1 %v3793_v34  ;;  %1852 = vmatprep.mubr.bf16.mxu1 %v3797_v36  ;;  %v3865_v34 = vld [vmem:[%s4132_s11 + $0x288] ss:$36 sps:$4 sm:$0xff]   ;;  %v3866_v36 = vld [vmem:[%s4132_s11 + $0x170] ss:$36 sps:$4 sm:$0xff]  }
  0x32   : > { %3425 = vmatpush3.bf16.msra.mxu0 %v3818_v46  ;;  %v3882_v46 = vld [vmem:[%s4132_s11 + $0x200] ss:$36 sps:$4 sm:$0xff]  }
  0x33   : > { %3426 = vmatprep.subr.bf16.mxu0 %v3833_v55  ;;  %v3908_v55 = vld [vmem:[%s4878_s1 + $0x208] sm:$0xff]  }
  0x34   : > { %3315 = vmatpush3.bf16.msra.mxu1 %v3794_v37  ;;  %v3869_v37 = vld [vmem:[%s4132_s11 + $0x2d4] ss:$36 sps:$4 sm:$0xff]  }
  0x35   : > { %3316 = vmatprep.subr.bf16.mxu1 %v3801_v40  ;;  %v3874_v40 = vld [vmem:[%s4132_s11 + $0x1b8] ss:$36 sps:$4 sm:$0xff]  }
  0x36   : > { %3427 = vmatpush3.bf16.msra.mxu0 %v3834_v56  ;;  %v3923_v56 = vld [vmem:[%s4878_s1 + $0x210] sm:$0xff]  }
  0x37   : > { %1757 = vmatmul.mubr.bf16.gmra.mrb[8].mxu0 %v3799_v38  ;;  %1853 = vmatmul.mubr.bf16.gmra.mrb[8].mxu1 %v3800_v39  ;;  %v3871_v38 = vld [vmem:[%s4132_s11 + $0x1bc] ss:$36 sps:$4 sm:$0xff]   ;;  %v3873_v39 = vld [vmem:[%s4132_s11 + $0x2d0] ss:$36 sps:$4 sm:$0xff]  }
  0x38   : > { %3317 = vmatpush3.bf16.msra.mxu1 %v3803_v41  ;;  %1764 = vmatprep.mubr.bf16.mxu0 %v3807_v44  ;;  %v3921_v41 = vld [vmem:[%s4878_s1 + $0x1f0] sm:$0xff]   ;;  %v3879_v44 = vld [vmem:[%s4132_s11 + $0x204] ss:$36 sps:$4 sm:$0xff]  }
  0x39   : > { %3318 = vmatprep.subr.bf16.mxu1 %v3805_v42  ;;  %1860 = vmatprep.mubr.bf16.mxu1 %v3809_v45  ;;  %v3922_v42 = vld [vmem:[%s4878_s1 + $0x1b0] sm:$0xff]   ;;  %v3881_v45 = vld [vmem:[%s4132_s11 + $0x318] ss:$36 sps:$4 sm:$0xff]  }
  0x3a   : > { %3428 = vmatprep.subr.bf16.mxu0 %v3843_v0  ;;  %v3905_v0 = vld [vmem:[%s4132_s11 + $0xa0] ss:$36 sps:$4 sm:$0xff]  }
  0x3b   : > { %3429 = vmatpush3.bf16.msra.mxu0 %v3844_v2  ;;  %v3911_v2 = vld [vmem:[%s4132_s11 + $0xec] ss:$36 sps:$4 sm:$0xff]  }
  0x3c   : > { %3319 = vmatpush3.bf16.msra.mxu1 %v3806_v47  ;;  %3430 = vmatprep.subr.bf16.mxu0 %v3857_v8  ;;  %v3936_v47 = vld [vmem:[%s4878_s1 + $0x1f8] sm:$0xff]  }
  0x3d   : > { %3320 = vmatprep.subr.bf16.mxu1 %v3813_v48  ;;  %v3937_v48 = vld [vmem:[%s4878_s1 + $0x1b8] sm:$0xff]  }
  0x3e   : > { %v3917_v8 = vld [vmem:[%s4132_s11 + $0x134] ss:$36 sps:$4 sm:$0xff]  }
  0x3f   : > { %1765 = vmatmul.mubr.bf16.gmra.mrb[12].mxu0 %v3811_v49  ;;  %1861 = vmatmul.mubr.bf16.gmra.mrb[12].mxu1 %v3812_v50  ;;  %v3885_v49 = vld [vmem:[%s4132_s11 + $0x24c] ss:$36 sps:$4 sm:$0xff]   ;;  %v3889_v50 = vld [vmem:[%s4132_s11 + $0x14] ss:$36 sps:$4 sm:$0xff]  }
  0x40   : > { %3321 = vmatpush3.bf16.msra.mxu1 %v3814_v51  ;;  %1772 = vmatprep.mubr.bf16.mxu0 %v3819_v53  ;;  %v3887_v51 = vld [vmem:[%s4132_s11 + $0x10] ss:$36 sps:$4 sm:$0xff]  }
  0x41   : > { %3322 = vmatprep.subr.bf16.mxu1 %v3815_v52  ;;  %1901 = vmatprep.mubr.bf16.mxu1 %v3823_v54  ;;  %v3890_v52 = vld [vmem:[%s4132_s11 + $0x248] ss:$36 sps:$4 sm:$0xff]   ;;  %v3894_v53 = vld [vmem:[%s4132_s11 + $0x294] ss:$36 sps:$4 sm:$0xff]   ;;  %v3896_v54 = vld [vmem:[%s4132_s11 + $0x5c] ss:$36 sps:$4 sm:$0xff]  }
  0x42   : > { %3431 = vmatpush3.bf16.msra.mxu0 %v3859_v10  ;;  %v3919_v10 = vld [vmem:[%s4132_s11 + $0x368] ss:$36 sps:$4 sm:$0xff]  }
  0x43   : > { %3432 = vmatprep.subr.bf16.mxu0 %v3867_v15  ;;  %v3929_v15 = vld [vmem:[%s4132_s11 + $0x178] ss:$36 sps:$4 sm:$0xff]  }
  0x44   : > { %3323 = vmatpush3.bf16.msra.mxu1 %v3817_v57  ;;  %v3898_v57 = vld [vmem:[%s4132_s11 + $0x290] ss:$36 sps:$4 sm:$0xff]  }
  0x45   : > { %3532 = vmatprep.subr.bf16.mxu1 %v3825_v60  ;;  %v3902_v60 = vld [vmem:[%s4132_s11 + $0xa4] ss:$36 sps:$4 sm:$0xff]  }
  0x46   : > { %3433 = vmatpush3.bf16.msra.mxu0 %v3868_v16  ;;  %v3930_v16 = vld [vmem:[%s4132_s11 + $0x3fc] ss:$36 sps:$4 sm:$0xff]  }
  0x47   : > { %1773 = vmatmul.mubr.bf16.gmra.mrb[16].mxu0 %v3824_v59  ;;  %1902 = vmatmul.mubr.bf16.vlgmr.msra.gmra.mrb[16].mxu1 %v3821_v58  ;;  %v3899_v58 = vld [vmem:[%s4132_s11 + $0x58] ss:$36 sps:$4 sm:$0xff]  }
  0x48   : > { %3533 = vmatpush3.bf16.msra.mxu1 %v3826_v61  ;;  %1780 = vmatprep.mubr.bf16.mxu0 %v3827_v62  ;;  %v3900_v59 = vld [vmem:[%s4132_s11 + $0x2dc] ss:$36 sps:$4 sm:$0xff]  }
  0x49   : > { %1909 = vmatprep.mubr.bf16.mxu1 %v3829_v63  ;;  %3534 = vmatprep.subr.bf16.mxu1 %v3841_v1  ;;  %v3938_v61 = vld [vmem:[%s4878_s1 + $0x218] sm:$0xff]   ;;  %v3951_v62 = vld [vmem:[%s4878_s1 + $0x220] sm:$0xff]  }
  0x4a   : > { %3434 = vmatprep.subr.bf16.mxu0 %v3883_v24  ;;  %v3904_v63 = vld [vmem:[%s4132_s11 + $0x2d8] ss:$36 sps:$4 sm:$0xff]   ;;  %v3909_v1 = vld [vmem:[%s4132_s11 + $0x324] ss:$36 sps:$4 sm:$0xff]  }
  0x4b   : > { %3435 = vmatpush3.bf16.msra.mxu0 %v3884_v25  ;;  %v3945_v24 = vld [vmem:[%s4132_s11 + $0x254] ss:$36 sps:$4 sm:$0xff]   ;;  %v3949_v25 = vld [vmem:[%s4132_s11 + $0x1c] ss:$36 sps:$4 sm:$0xff]  }
  0x4c   : > { %3535 = vmatpush3.bf16.msra.mxu1 %v3842_v3  ;;  %3668 = vmatprep.subr.bf16.mxu0 %v3893_v29  ;;  %v3964_v3 = vld [vmem:[%s4878_s1 + $0x228] sm:$0xff]  }
  0x4d   : > { %3536 = vmatprep.subr.bf16.mxu1 %v3858_v9  ;;  %v3990_v9 = vld [vmem:[%s4878_s1 + $0x238] sm:$0xff]  }
  0x4f   : > { %1781 = vmatmul.mubr.bf16.gmra.mrb[20].mxu0 %v3831_v4  ;;  %1910 = vmatmul.mubr.bf16.gmra.mrb[20].mxu1 %v3832_v5  ;;  %v3913_v4 = vld [vmem:[%s4132_s11 + $0x320] ss:$36 sps:$4 sm:$0xff]   ;;  %v3914_v5 = vld [vmem:[%s4132_s11 + $0xe8] ss:$36 sps:$4 sm:$0xff]  }
  0x50   : > { %1788 = vmatprep.mubr.bf16.mxu0 %v3835_v6  ;;  %1917 = vmatprep.mubr.bf16.mxu1 %v3837_v7  ;;  %v3977_v6 = vld [vmem:[%s4878_s1 + $0x230] sm:$0xff]  }
  0x51   : > { %3537 = vmatpush3.bf16.msra.mxu1 %v3860_v11  ;;  %v3915_v7 = vld [vmem:[%s4132_s11 + $0x36c] ss:$36 sps:$4 sm:$0xff]  }
  0x52   : > { %3538 = vmatprep.subr.bf16.mxu1 %v3875_v18  ;;  %v3920_v11 = vld [vmem:[%s4132_s11 + $0x130] ss:$36 sps:$4 sm:$0xff]   ;;  %v3934_v18 = vld [vmem:[%s4132_s11 + $0x3f8] ss:$36 sps:$4 sm:$0xff]  }
  0x55   : > { %3539 = vmatpush3.bf16.msra.mxu1 %v3876_v19  ;;  %v3935_v19 = vld [vmem:[%s4132_s11 + $0x1c0] ss:$36 sps:$4 sm:$0xff]  }
  0x56   : > { %3540 = vmatprep.subr.bf16.mxu1 %v3891_v26  ;;  %v3947_v26 = vld [vmem:[%s4132_s11 + $0x18] ss:$36 sps:$4 sm:$0xff]  }
  0x57   : > { %1789 = vmatmul.mubr.bf16.gmra.mrb[24].mxu0 %v3839_v12  ;;  %1918 = vmatmul.mubr.bf16.gmra.mrb[24].mxu1 %v3840_v13  ;;  %v3924_v12 = vld [vmem:[%s4132_s11 + $0x3b4] ss:$36 sps:$4 sm:$0xff]   ;;  %v3926_v13 = vld [vmem:[%s4132_s11 + $0x17c] ss:$36 sps:$4 sm:$0xff]  }
  0x58   : > { %1796 = vmatprep.mubr.bf16.mxu0 %v3845_v14  ;;  %1925 = vmatprep.mubr.bf16.mxu1 %v3847_v17  ;;  %v3928_v14 = vld [vmem:[%s4132_s11 + $0x3b0] ss:$36 sps:$4 sm:$0xff]   ;;  %v3932_v17 = vld [vmem:[%s4132_s11 + $0x1c4] ss:$36 sps:$4 sm:$0xff]  }
  0x59   : > { %3541 = vmatpush3.bf16.msra.mxu1 %v3892_v28  ;;  %v3952_v28 = vld [vmem:[%s4132_s11 + $0x29c] ss:$36 sps:$4 sm:$0xff]  }
  0x5a   : > { %3542 = vmatprep.subr.bf16.mxu1 %v3906_v33  ;;  %v3960_v33 = vld [vmem:[%s4132_s11 + $0xac] ss:$36 sps:$4 sm:$0xff]  }
  0x5d   : > { %3543 = vmatpush3.bf16.msra.mxu1 %v3907_v35  ;;  %v3963_v35 = vld [vmem:[%s4132_s11 + $0xa8] ss:$36 sps:$4 sm:$0xff]  }
  0x5e   : > { %3544 = vmatprep.subr.bf16.mxu1 %v3921_v41  ;;  %v3973_v41 = vld [vmem:[%s4132_s11 + $0x13c] ss:$36 sps:$4 sm:$0xff]  }
  0x5f   : > { %1797 = vmatmul.mubr.bf16.gmra.mrb[28].mxu0 %v3849_v20  ;;  %1926 = vmatmul.mubr.bf16.gmra.mrb[28].mxu1 %v3850_v21  ;;  %v3939_v20 = vld [vmem:[%s4132_s11 + $0x444] ss:$36 sps:$4 sm:$0xff]   ;;  %v3941_v21 = vld [vmem:[%s4132_s11 + $0x20c] ss:$36 sps:$4 sm:$0xff]  }
  0x60   : > { %1804 = vmatprep.mubr.bf16.mxu0 %v3851_v22  ;;  %1933 = vmatprep.mubr.bf16.mxu1 %v3853_v23  ;;  %v3943_v22 = vld [vmem:[%s4132_s11 + $0x440] ss:$36 sps:$4 sm:$0xff]   ;;  %v3944_v23 = vld [vmem:[%s4132_s11 + $0x208] ss:$36 sps:$4 sm:$0xff]  }
  0x61   : > { %3545 = vmatpush3.bf16.msra.mxu1 %v3922_v42  ;;  %v3975_v42 = vld [vmem:[%s4132_s11 + $0x370] ss:$36 sps:$4 sm:$0xff]  }
  0x62   : > { %3546 = vmatprep.subr.bf16.mxu1 %v3936_v47  ;;  %v3983_v47 = vld [vmem:[%s4132_s11 + $0x180] ss:$36 sps:$4 sm:$0xff]  }
  0x65   : > { %3547 = vmatpush3.bf16.msra.mxu1 %v3937_v48  ;;  %v3984_v48 = vld [vmem:[%s4132_s11 + $0x404] ss:$36 sps:$4 sm:$0xff]  }
  0x67   : > { %1805 = vmatmul.mubr.bf16.gmra.mrb[32].mxu0 %v3855_v27  ;;  %1934 = vmatmul.mubr.bf16.gmra.mrb[32].mxu1 %v3856_v30  ;;  %v3950_v27 = vld [vmem:[%s4132_s11 + $0x250] ss:$36 sps:$4 sm:$0xff]   ;;  %v3956_v30 = vld [vmem:[%s4132_s11 + $0x298] ss:$36 sps:$4 sm:$0xff]  }
  0x68   : > { %1812 = vmatprep.mubr.bf16.mxu0 %v3861_v31  ;;  %1941 = vmatprep.mubr.bf16.mxu1 %v3863_v32  ;;  %v3957_v31 = vld [vmem:[%s4132_s11 + $0x60] ss:$36 sps:$4 sm:$0xff]  }
  0x69   : > { %v3958_v32 = vld [vmem:[%s4132_s11 + $0x2e4] ss:$36 sps:$4 sm:$0xff]  }
  0x6f   : > { %1813 = vmatmul.mubr.bf16.gmra.mrb[36].mxu0 %v3865_v34  ;;  %1942 = vmatmul.mubr.bf16.gmra.mrb[36].mxu1 %v3866_v36  ;;  %v3962_v34 = vld [vmem:[%s4132_s11 + $0x2e0] ss:$36 sps:$4 sm:$0xff]   ;;  %v3965_v36 = vld [vmem:[%s4132_s11 + $0x32c] ss:$36 sps:$4 sm:$0xff]  }
  0x70   : > { %1820 = vmatprep.mubr.bf16.mxu0 %v3869_v37  ;;  %1949 = vmatprep.mubr.bf16.mxu1 %v3871_v38  ;;  %v3967_v37 = vld [vmem:[%s4132_s11 + $0xf4] ss:$36 sps:$4 sm:$0xff]   ;;  %v3969_v38 = vld [vmem:[%s4132_s11 + $0x328] ss:$36 sps:$4 sm:$0xff]  }
  0x77   : > { %1821 = vmatmul.mubr.bf16.gmra.mrb[40].mxu0 %v3873_v39  ;;  %1950 = vmatmul.mubr.bf16.gmra.mrb[40].mxu1 %v3874_v40  ;;  %v3970_v39 = vld [vmem:[%s4132_s11 + $0xf0] ss:$36 sps:$4 sm:$0xff]  }
  0x78   : > { %1828 = vmatprep.mubr.bf16.mxu0 %v3877_v43  ;;  %1957 = vmatprep.mubr.bf16.mxu1 %v3879_v44  ;;  %v3971_v40 = vld [vmem:[%s4132_s11 + $0x374] ss:$36 sps:$4 sm:$0xff]   ;;  %v3978_v44 = vld [vmem:[%s4132_s11 + $0x3bc] ss:$36 sps:$4 sm:$0xff]  }
  0x79   : > { %v3976_v43 = vld [vmem:[%s4132_s11 + $0x138] ss:$36 sps:$4 sm:$0xff]  }
  0x7f   : > { %1829 = vmatmul.mubr.bf16.gmra.mrb[44].mxu0 %v3881_v45  ;;  %1958 = vmatmul.mubr.bf16.gmra.mrb[44].mxu1 %v3882_v46  ;;  %v3980_v45 = vld [vmem:[%s4132_s11 + $0x184] ss:$36 sps:$4 sm:$0xff]   ;;  %v3982_v46 = vld [vmem:[%s4132_s11 + $0x3b8] ss:$36 sps:$4 sm:$0xff]  }
  0x80   : > { %1965 = vmatprep.mubr.bf16.mxu1 %v3885_v49  ;;  %2062 = vmatprep.mubr.bf16.mxu0 %v3889_v50  ;;  %v3986_v49 = vld [vmem:[%s4132_s11 + $0x1cc] ss:$36 sps:$4 sm:$0xff]   ;;  %v3988_v50 = vld [vmem:[%s4132_s11 + $0x400] ss:$36 sps:$4 sm:$0xff]  }
  0x87   : > { %1966 = vmatmul.mubr.bf16.gmra.mrb[48].mxu1 %v3890_v52  ;;  %2063 = vmatmul.mubr.bf16.vlgmr.msra.gmra.mrb[48].mxu0 %v3887_v51  ;;  %v3989_v51 = vld [vmem:[%s4132_s11 + $0x1c8] ss:$36 sps:$4 sm:$0xff]  }
  0x88   : > { %3669 = vmatpush3.bf16.msra.mxu0 %v3893_v29  ;;  %1973 = vmatprep.mubr.bf16.mxu1 %v3894_v53  ;;  %v3954_v29 = vld [vmem:[%s4132_s11 + $0x64] ss:$36 sps:$4 sm:$0xff]   ;;  %v3991_v52 = vld [vmem:[%s4132_s11 + $0x44c] ss:$36 sps:$4 sm:$0xff]   ;;  %v3993_v53 = vld [vmem:[%s4132_s11 + $0x214] ss:$36 sps:$4 sm:$0xff]  }
  0x89   : > { %2070 = vmatprep.mubr.bf16.mxu0 %v3896_v54  ;;  %3670 = vmatprep.subr.bf16.mxu0 %v3908_v55 }
  0x8c   : > { %3671 = vmatpush3.bf16.msra.mxu0 %v3908_v55 }
  0x8d   : > { %3672 = vmatprep.subr.bf16.mxu0 %v3923_v56 }
  0x8f   : > { %1974 = vmatmul.mubr.bf16.gmra.mrb[52].mxu1 %v3898_v57  ;;  %2071 = vmatmul.mubr.bf16.gmra.mrb[52].mxu0 %v3899_v58  ;;  %v3995_v58 = vld [vmem:[%s4132_s11 + $0x448] ss:$36 sps:$4 sm:$0xff]  }
  0x90   : > { %1981 = vmatprep.mubr.bf16.mxu1 %v3900_v59  ;;  %2078 = vmatprep.mubr.bf16.mxu0 %v3902_v60  ;;  %v3996_v59 = vld [vmem:[%s4132_s11 + $0x210] ss:$36 sps:$4 sm:$0xff]  }
  0x91   : > { %3673 = vmatpush3.bf16.msra.mxu0 %v3923_v56 }
  0x92   : > { %3674 = vmatprep.subr.bf16.mxu0 %v3938_v61 }
  0x95   : > { %3675 = vmatpush3.bf16.msra.mxu0 %v3938_v61 }
  0x96   : > { %3676 = vmatprep.subr.bf16.mxu0 %v3951_v62 }
  0x97   : > { %1982 = vmatmul.mubr.bf16.gmra.mrb[56].mxu1 %v3904_v63  ;;  %2079 = vmatmul.mubr.bf16.gmra.mrb[56].mxu0 %v3905_v0  ;;  %v3997_v0 = vld [vmem:[%s4132_s11 + $0x25c] ss:$36 sps:$4 sm:$0xff]  }
  0x98   : > { %1989 = vmatprep.mubr.bf16.mxu1 %v3909_v1  ;;  %2086 = vmatprep.mubr.bf16.mxu0 %v3911_v2  ;;  %v3999_v1 = vld [vmem:[%s4132_s11 + $0x20] ss:$36 sps:$4 sm:$0xff]  }
  0x99   : > { %3677 = vmatpush3.bf16.msra.mxu0 %v3951_v62 }
  0x9a   : > { %3678 = vmatprep.subr.bf16.mxu0 %v3964_v3 }
  0x9d   : > { %3679 = vmatpush3.bf16.msra.mxu0 %v3964_v3 }
  0x9e   : > { %3680 = vmatprep.subr.bf16.mxu0 %v3977_v6 }
  0x9f   : > { %1990 = vmatmul.mubr.bf16.gmra.mrb[60].mxu1 %v3913_v4  ;;  %2087 = vmatmul.mubr.bf16.gmra.mrb[60].mxu0 %v3914_v5 }
  0xa0   : > { %1997 = vmatprep.mubr.bf16.mxu1 %v3915_v7  ;;  %2094 = vmatprep.mubr.bf16.mxu0 %v3917_v8 }
  0xa1   : > { %3681 = vmatpush3.bf16.msra.mxu0 %v3977_v6 }
  0xa2   : > { %3682 = vmatprep.subr.bf16.mxu0 %v3990_v9 }
  0xa5   : > { %3683 = vmatpush3.bf16.msra.mxu0 %v3990_v9 }
  0xa7   : > { %1998 = vmatmul.mubr.bf16.gmra.mrb[64].mxu1 %v3919_v10  ;;  %2095 = vmatmul.mubr.bf16.gmra.mrb[64].mxu0 %v3920_v11  ;;  %v4000_v10 = vld [vmem:[%s4132_s11 + $0x258] ss:$36 sps:$4 sm:$0xff]   ;;  %v4001_v11 = vld [vmem:[%s4132_s11 + $0x68] ss:$36 sps:$4 sm:$0xff]  }
  0xa8   : > { %2005 = vmatprep.mubr.bf16.mxu1 %v3924_v12  ;;  %2102 = vmatprep.mubr.bf16.mxu0 %v3926_v13 }
  0xaf   : > { %2006 = vmatmul.mubr.bf16.gmra.mrb[68].mxu1 %v3928_v14  ;;  %2103 = vmatmul.mubr.bf16.gmra.mrb[68].mxu0 %v3929_v15 }
  0xb0   : > { %2013 = vmatprep.mubr.bf16.mxu1 %v3930_v16  ;;  %2110 = vmatprep.mubr.bf16.mxu0 %v3932_v17  ;;  %v4002_v16 = vld [vmem:[%s4132_s11 + $0x2a4] ss:$36 sps:$4 sm:$0xff]   ;;  %v4004_v17 = vld [vmem:[%s4132_s11 + $0xb0] ss:$36 sps:$4 sm:$0xff]  }
  0xb7   : > { %2014 = vmatmul.mubr.bf16.gmra.mrb[72].mxu1 %v3934_v18  ;;  %2111 = vmatmul.mubr.bf16.gmra.mrb[72].mxu0 %v3935_v19 }
  0xb8   : > { %2021 = vmatprep.mubr.bf16.mxu1 %v3939_v20  ;;  %2118 = vmatprep.mubr.bf16.mxu0 %v3941_v21 }
  0xbf   : > { %2022 = vmatmul.mubr.bf16.gmra.mrb[76].mxu1 %v3943_v22  ;;  %2119 = vmatmul.mubr.bf16.gmra.mrb[76].mxu0 %v3944_v23 }
  0xc0   : > { %2126 = vmatprep.mubr.bf16.mxu0 %v3945_v24  ;;  %2223 = vmatprep.mubr.bf16.mxu1 %v3949_v25 }
  0xc7   : > { %2127 = vmatmul.mubr.bf16.gmra.mrb[80].mxu0 %v3950_v27  ;;  %2224 = vmatmul.mubr.bf16.vlgmr.msra.gmra.mrb[80].mxu1 %v3947_v26  ;;  %v4005_v26 = vld [vmem:[%s4132_s11 + $0x2a0] ss:$36 sps:$4 sm:$0xff]   ;;  %v4006_v27 = vld [vmem:[%s4132_s11 + $0xf8] ss:$36 sps:$4 sm:$0xff]  }
  0xc8   : > { %2134 = vmatprep.mubr.bf16.mxu0 %v3952_v28  ;;  %2231 = vmatprep.mubr.bf16.mxu1 %v3954_v29 }
  0xcf   : > { %2135 = vmatmul.mubr.bf16.gmra.mrb[84].mxu0 %v3956_v30  ;;  %2232 = vmatmul.mubr.bf16.gmra.mrb[84].mxu1 %v3957_v31 }
  0xd0   : > { %2142 = vmatprep.mubr.bf16.mxu0 %v3958_v32  ;;  %2239 = vmatprep.mubr.bf16.mxu1 %v3960_v33  ;;  %v4007_v32 = vld [vmem:[%s4132_s11 + $0x2ec] ss:$36 sps:$4 sm:$0xff]   ;;  %v4009_v33 = vld [vmem:[%s4132_s11 + $0x140] ss:$36 sps:$4 sm:$0xff]  }
  0xd7   : > { %2143 = vmatmul.mubr.bf16.gmra.mrb[88].mxu0 %v3962_v34  ;;  %2240 = vmatmul.mubr.bf16.gmra.mrb[88].mxu1 %v3963_v35 }
  0xd8   : > { %2150 = vmatprep.mubr.bf16.mxu0 %v3965_v36  ;;  %2247 = vmatprep.mubr.bf16.mxu1 %v3967_v37 }
  0xdf   : > { %2151 = vmatmul.mubr.bf16.gmra.mrb[92].mxu0 %v3969_v38  ;;  %2248 = vmatmul.mubr.bf16.gmra.mrb[92].mxu1 %v3970_v39 }
  0xe0   : > { %2158 = vmatprep.mubr.bf16.mxu0 %v3971_v40  ;;  %2255 = vmatprep.mubr.bf16.mxu1 %v3973_v41 }
  0xe7   : > { %2159 = vmatmul.mubr.bf16.gmra.mrb[96].mxu0 %v3975_v42  ;;  %2256 = vmatmul.mubr.bf16.gmra.mrb[96].mxu1 %v3976_v43  ;;  %v4010_v42 = vld [vmem:[%s4132_s11 + $0x2e8] ss:$36 sps:$4 sm:$0xff]  }
  0xe8   : > { %2166 = vmatprep.mubr.bf16.mxu0 %v3978_v44  ;;  %2263 = vmatprep.mubr.bf16.mxu1 %v3980_v45  ;;  %v4011_v43 = vld [vmem:[%s4132_s11 + $0x188] ss:$36 sps:$4 sm:$0xff]  }
  0xef   : > { %2167 = vmatmul.mubr.bf16.gmra.mrb[100].mxu0 %v3982_v46  ;;  %2264 = vmatmul.mubr.bf16.gmra.mrb[100].mxu1 %v3983_v47 }
  0xf0   : > { %2174 = vmatprep.mubr.bf16.mxu0 %v3984_v48  ;;  %2271 = vmatprep.mubr.bf16.mxu1 %v3986_v49  ;;  %v4012_v48 = vld [vmem:[%s4132_s11 + $0x334] ss:$36 sps:$4 sm:$0xff]  }
  0xf1   : > { %v4014_v49 = vld [vmem:[%s4132_s11 + $0x1d0] ss:$36 sps:$4 sm:$0xff]  }
  0xf7   : > { %2175 = vmatmul.mubr.bf16.gmra.mrb[104].mxu0 %v3988_v50  ;;  %2272 = vmatmul.mubr.bf16.gmra.mrb[104].mxu1 %v3989_v51 }
  0xf8   : > { %2182 = vmatprep.mubr.bf16.mxu0 %v3991_v52  ;;  %2279 = vmatprep.mubr.bf16.mxu1 %v3993_v53 }
  0xfa   : > { %v3284_v54 = vpop.f32.mrb[0].mxu1  ;;  %v3212_v55 = vpop.f32.mrb[0].mxu0 }
  0xfb   : > { %v3285_v56 = vpop.f32.mrb[1].mxu1  ;;  %v3213_v57 = vpop.f32.mrb[1].mxu0 }
  0xfc   : > { %v4435_v60 = vadd.f32 %v3285_v56, %v3284_v54  ;;  %v3287_v61 = vpop.f32.mrb[2].mxu1  ;;  %v4437_v62 = vadd.f32 %v3213_v57, %v3212_v55  ;;  %v3215_v63 = vpop.f32.mrb[2].mxu0  ;;  %v4484_v54 = vld [vmem:[%s4879_s2] ss:$0 sm:$0xff] }
  0xfd   : > { %v3288_v2 = vpop.f32.mrb[3].mxu1  ;;  %v3216_v3 = vpop.f32.mrb[3].mxu0 }
  0xfe   : > { %v4441_v4 = vadd.f32 %v3288_v2, %v3287_v61  ;;  %v4443_v5 = vadd.f32 %v3216_v3, %v3215_v63  ;;  %v4016_v61 = vld [vmem:[%s4132_s11 + $0x218] ss:$36 sps:$4 sm:$0xff]   ;;  %v1743_v63 = vadd.f32 %v4437_v62, %v4484_v54 }
  0xff   : > { %2183 = vmatmul.mubr.bf16.gmra.mrb[108].mxu0 %v3995_v58  ;;  %2280 = vmatmul.mubr.bf16.gmra.mrb[108].mxu1 %v3996_v59  ;;  %v4015_v59 = vld [vmem:[%s4132_s11 + $0x330] ss:$36 sps:$4 sm:$0xff]  }
 0x100   : > { %2287 = vmatprep.mubr.bf16.mxu1 %v3997_v0  ;;  %3684 = vmatprep.mubr.bf16.mxu0 %v3999_v1 }
 0x102   : > { %v3290_v6 = vpop.f32.mrb[4].mxu1  ;;  %v3218_v7 = vpop.f32.mrb[4].mxu0 }
 0x103   : > { %v3291_v8 = vpop.f32.mrb[5].mxu1  ;;  %v3219_v9 = vpop.f32.mrb[5].mxu0 }
 0x104   : > { %v4447_v12 = vadd.f32 %v3291_v8, %v3290_v6  ;;  %v3293_v13 = vpop.f32.mrb[6].mxu1  ;;  %v4449_v14 = vadd.f32 %v3219_v9, %v3218_v7  ;;  %v3221_v15 = vpop.f32.mrb[6].mxu0  ;;  %v4017_v6 = vld [vmem:[%s4132_s11 + $0x37c] ss:$36 sps:$4 sm:$0xff]  }
 0x105   : > { %v3294_v18 = vpop.f32.mrb[7].mxu1  ;;  %v3222_v19 = vpop.f32.mrb[7].mxu0  ;;  %v4019_v7 = vld [vmem:[%s4132_s11 + $0x260] ss:$36 sps:$4 sm:$0xff]  }
 0x106   : > { %v4453_v20 = vadd.f32 %v3294_v18, %v3293_v13  ;;  %v4455_v21 = vadd.f32 %v3222_v19, %v3221_v15 }
 0x107   : > { %2288 = vmatmul.mubr.bf16.gmra.mrb[112].mxu1 %v4000_v10  ;;  %3685 = vmatmul.mubr.bf16.vlgmr.msra.gmra.mrb[112].mxu0 %v4001_v11  ;;  %v1746_v10 = vadd.f32 %v4443_v5, %v4484_v54  ;;  %v1751_v5 = vadd.f32 %v4449_v14, %v4484_v54 }
 0x108   : > { %2295 = vmatprep.mubr.bf16.mxu1 %v4002_v16  ;;  %3688 = vmatprep.mubr.bf16.mxu0 %v4004_v17 }
 0x10a   : > { %v3296_v22 = vpop.f32.mrb[8].mxu1  ;;  %v3224_v23 = vpop.f32.mrb[8].mxu0 }
 0x10b   : > { %v3297_v24 = vpop.f32.mrb[9].mxu1  ;;  %v3225_v25 = vpop.f32.mrb[9].mxu0 }
 0x10c   : > { %v4459_v28 = vadd.f32 %v3297_v24, %v3296_v22  ;;  %v3299_v29 = vpop.f32.mrb[10].mxu1  ;;  %v4461_v30 = vadd.f32 %v3225_v25, %v3224_v23  ;;  %v3227_v31 = vpop.f32.mrb[10].mxu0  ;;  %v4020_v22 = vld [vmem:[%s4132_s11 + $0x378] ss:$36 sps:$4 sm:$0xff]   ;;  %v4021_v23 = vld [vmem:[%s4132_s11 + $0x2a8] ss:$36 sps:$4 sm:$0xff]  }
 0x10d   : > { %v3300_v34 = vpop.f32.mrb[11].mxu1  ;;  %v3228_v35 = vpop.f32.mrb[11].mxu0 }
 0x10e   : > { %v4465_v36 = vadd.f32 %v3300_v34, %v3299_v29  ;;  %v4467_v37 = vadd.f32 %v3228_v35, %v3227_v31  ;;  %v4022_v29 = vld [vmem:[%s4132_s11 + $0x3c4] ss:$36 sps:$4 sm:$0xff]   ;;  %v4024_v31 = vld [vmem:[%s4132_s11 + $0x2f0] ss:$36 sps:$4 sm:$0xff]   ;;  %v1754_v34 = vadd.f32 %v4455_v21, %v4484_v54  ;;  %v1759_v21 = vadd.f32 %v4461_v30, %v4484_v54 }
 0x10f   : > { %2296 = vmatmul.mubr.bf16.gmra.mrb[116].mxu1 %v4005_v26  ;;  %3689 = vmatmul.mubr.bf16.gmra.mrb[116].mxu0 %v4006_v27 }
 0x110   : > { %2303 = vmatprep.mubr.bf16.mxu1 %v4007_v32  ;;  %3692 = vmatprep.mubr.bf16.mxu0 %v4009_v33 }
 0x112   : > { %v3302_v38 = vpop.f32.mrb[12].mxu1  ;;  %v3230_v39 = vpop.f32.mrb[12].mxu0 }
 0x113   : > { %v3303_v40 = vpop.f32.mrb[13].mxu1  ;;  %v3231_v41 = vpop.f32.mrb[13].mxu0 }
 0x114   : > { %v4471_v44 = vadd.f32 %v3303_v40, %v3302_v38  ;;  %v3305_v45 = vpop.f32.mrb[14].mxu1  ;;  %v4473_v46 = vadd.f32 %v3231_v41, %v3230_v39  ;;  %v3233_v47 = vpop.f32.mrb[14].mxu0 }
 0x115   : > { %v3306_v50 = vpop.f32.mrb[15].mxu1  ;;  %v3234_v51 = vpop.f32.mrb[15].mxu0 }
 0x116   : > { %v4477_v52 = vadd.f32 %v3306_v50, %v3305_v45  ;;  %v4479_v53 = vadd.f32 %v3234_v51, %v3233_v47  ;;  %v4025_v45 = vld [vmem:[%s4132_s11 + $0x3c0] ss:$36 sps:$4 sm:$0xff]   ;;  %v4026_v47 = vld [vmem:[%s4132_s11 + $0x338] ss:$36 sps:$4 sm:$0xff]  }
 0x117   : > { %2304 = vmatmul.mubr.bf16.gmra.mrb[120].mxu1 %v4010_v42  ;;  %3693 = vmatmul.mubr.bf16.gmra.mrb[120].mxu0 %v4011_v43 }
 0x118   : > { %2311 = vmatprep.mubr.bf16.mxu1 %v4012_v48  ;;  %3696 = vmatprep.mubr.bf16.mxu0 %v4014_v49 }
 0x11a   : > { %v3324_v55 = vpop.f32.mrb[16].mxu1  ;;  %v3236_v56 = vpop.f32.mrb[16].mxu0 }
 0x11b   : > { %v3325_v57 = vpop.f32.mrb[17].mxu1  ;;  %v3237_v58 = vpop.f32.mrb[17].mxu0 }
 0x11c   : > { %v3326_v0 = vadd.f32 %v3325_v57, %v3324_v55  ;;  %v3327_v1 = vpop.f32.mrb[18].mxu1  ;;  %v4490_v2 = vadd.f32 %v3237_v58, %v3236_v56  ;;  %v3239_v3 = vpop.f32.mrb[18].mxu0  ;;  %v4027_v55 = vld [vmem:[%s4132_s11 + $0x40c] ss:$36 sps:$4 sm:$0xff]   ;;  %v4029_v56 = vld [vmem:[%s4132_s11 + $0x380] ss:$36 sps:$4 sm:$0xff]  }
 0x11d   : > { %v3328_v8 = vpop.f32.mrb[19].mxu1  ;;  %v3240_v9 = vpop.f32.mrb[19].mxu0 }
 0x11e   : > { %v4496_v11 = vadd.f32 %v3326_v0, %v1743_v63  ;;  %v3329_v13 = vadd.f32 %v3328_v8, %v3327_v1  ;;  %v4498_v15 = vadd.f32 %v3240_v9, %v3239_v3  ;;  %v4030_v8 = vld [vmem:[%s4132_s11 + $0x408] ss:$36 sps:$4 sm:$0xff]  }
 0x11f   : > { %2312 = vmatmul.mubr.bf16.gmra.mrb[124].mxu1 %v4015_v59  ;;  %3697 = vmatmul.mubr.bf16.gmra.mrb[124].mxu0 %v4016_v61  ;;  %v1762_v59 = vadd.f32 %v4467_v37, %v4484_v54  ;;  %v4031_v9 = vld [vmem:[%s4132_s11 + $0x3c8] ss:$36 sps:$4 sm:$0xff]   ;;  %v1767_v37 = vadd.f32 %v4473_v46, %v4484_v54 }
 0x120   : > { %v4500_v62 = vadd.f32 %v3329_v13, %v1746_v10  ;;  %2319 = vmatprep.mubr.bf16.mxu1 %v4017_v6  ;;  %3700 = vmatprep.mubr.bf16.mxu0 %v4019_v7 }
 0x122   : > { %v3330_v16 = vpop.f32.mrb[20].mxu1  ;;  %v3242_v17 = vpop.f32.mrb[20].mxu0 }
 0x123   : > { %v3331_v18 = vpop.f32.mrb[21].mxu1  ;;  %v3243_v19 = vpop.f32.mrb[21].mxu0 }
 0x124   : > { %v3332_v24 = vadd.f32 %v3331_v18, %v3330_v16  ;;  %v3333_v25 = vpop.f32.mrb[22].mxu1  ;;  %v4506_v26 = vadd.f32 %v3243_v19, %v3242_v17  ;;  %v3245_v27 = vpop.f32.mrb[22].mxu0  ;;  %v4032_v18 = vld [vmem:[%s4132_s11 + $0x454] ss:$36 sps:$4 sm:$0xff]  }
 0x125   : > { %v3334_v32 = vpop.f32.mrb[23].mxu1  ;;  %v3246_v33 = vpop.f32.mrb[23].mxu0  ;;  %v4034_v19 = vld [vmem:[%s4132_s11 + $0x410] ss:$36 sps:$4 sm:$0xff]  }
 0x126   : > { %v4512_v35 = vadd.f32 %v3332_v24, %v1751_v5  ;;  %v3335_v38 = vadd.f32 %v3334_v32, %v3333_v25  ;;  %v4514_v39 = vadd.f32 %v3246_v33, %v3245_v27  ;;  %v1770_v5 = vadd.f32 %v4479_v53, %v4484_v54 }
 0x127   : > { %2320 = vmatmul.mubr.bf16.gmra.mrb[128].mxu1 %v4020_v22  ;;  %3701 = vmatmul.mubr.bf16.gmra.mrb[128].mxu0 %v4021_v23  ;;  %v1775_v53 = vadd.f32 %v4490_v2, %v4484_v54 }
 0x128   : > { %v4516_v14 = vadd.f32 %v3335_v38, %v1754_v34  ;;  %2327 = vmatprep.mubr.bf16.mxu1 %v4022_v29  ;;  %3704 = vmatprep.mubr.bf16.mxu0 %v4024_v31  ;;  %v4035_v34 = vld [vmem:[%s4132_s11 + $0x450] ss:$36 sps:$4 sm:$0xff]   ;;  %v4036_v38 = vld [vmem:[%s4132_s11 + $0x458] ss:$36 sps:$4 sm:$0xff]   ;;  %s2817_s11 = sshll.u32 %s4886_s18, 2 }
 0x129   : > { %s4813_s9 = scalar_lea.vmem %s4880_s3, %s2817_s11 }
 0x12a   : > { %v3336_v40 = vpop.f32.mrb[24].mxu1  ;;  %v3248_v41 = vpop.f32.mrb[24].mxu0 }
 0x12b   : > { %v3337_v42 = vpop.f32.mrb[25].mxu1  ;;  %v3249_v43 = vpop.f32.mrb[25].mxu0 }
 0x12c   : > { %v3338_v48 = vadd.f32 %v3337_v42, %v3336_v40  ;;  %v3339_v49 = vpop.f32.mrb[26].mxu1  ;;  %v4522_v50 = vadd.f32 %v3249_v43, %v3248_v41  ;;  %v3251_v51 = vpop.f32.mrb[26].mxu0 }
 0x12d   : > { %v3340_v57 = vpop.f32.mrb[27].mxu1  ;;  %v3252_v58 = vpop.f32.mrb[27].mxu0 }
 0x12e   : > { %v4528_v61 = vadd.f32 %v3338_v48, %v1759_v21  ;;  %v3341_v63 = vadd.f32 %v3340_v57, %v3339_v49  ;;  %v4530_v0 = vadd.f32 %v3252_v58, %v3251_v51  ;;  %v1778_v21 = vadd.f32 %v4498_v15, %v4484_v54 }
 0x12f   : > { %2328 = vmatmul.mubr.bf16.gmra.mrb[132].mxu1 %v4025_v45  ;;  %3705 = vmatmul.mubr.bf16.gmra.mrb[132].mxu0 %v4026_v47 }
 0x130   : > { %v4532_v30 = vadd.f32 %v3341_v63, %v1762_v59  ;;  %2335 = vmatprep.mubr.bf16.mxu1 %v4027_v55  ;;  %3708 = vmatprep.mubr.bf16.mxu0 %v4029_v56  ;;  %v1783_v59 = vadd.f32 %v4506_v26, %v4484_v54 }
 0x132   : > { %v3342_v1 = vpop.f32.mrb[28].mxu1  ;;  %v3254_v3 = vpop.f32.mrb[28].mxu0 }
 0x133   : > { %v3343_v6 = vpop.f32.mrb[29].mxu1  ;;  %v3255_v7 = vpop.f32.mrb[29].mxu0 }
 0x134   : > { %v3344_v10 = vadd.f32 %v3343_v6, %v3342_v1  ;;  %v3345_v13 = vpop.f32.mrb[30].mxu1  ;;  %v4538_v16 = vadd.f32 %v3255_v7, %v3254_v3  ;;  %v3257_v17 = vpop.f32.mrb[30].mxu0 }
 0x135   : > { %v3346_v22 = vpop.f32.mrb[31].mxu1  ;;  %v3258_v23 = vpop.f32.mrb[31].mxu0 }
 0x136   : > { %v4544_v24 = vadd.f32 %v3344_v10, %v1767_v37  ;;  %v3347_v25 = vadd.f32 %v3346_v22, %v3345_v13  ;;  %v4546_v27 = vadd.f32 %v3258_v23, %v3257_v17  ;;  %v1791_v22 = vadd.f32 %v4522_v50, %v4484_v54 }
 0x137   : > { %2336 = vmatmul.mubr.bf16.gmra.mrb[136].mxu1 %v4030_v8  ;;  %3709 = vmatmul.mubr.bf16.gmra.mrb[136].mxu0 %v4031_v9  ;;  %v1786_v8 = vadd.f32 %v4514_v39, %v4484_v54 }
 0x138   : > { %v4548_v46 = vadd.f32 %v3347_v25, %v1770_v5  ;;  %2343 = vmatprep.mubr.bf16.mxu1 %v4032_v18  ;;  %3712 = vmatprep.mubr.bf16.mxu0 %v4034_v19 }
 0x13a   : > { %v3348_v29 = vpop.f32.mrb[32].mxu1  ;;  %v3260_v31 = vpop.f32.mrb[32].mxu0 }
 0x13b   : > { %v3349_v32 = vpop.f32.mrb[33].mxu1  ;;  %v3261_v33 = vpop.f32.mrb[33].mxu0 }
 0x13c   : > { %v3350_v40 = vadd.f32 %v3349_v32, %v3348_v29  ;;  %v3351_v41 = vpop.f32.mrb[34].mxu1  ;;  %v4554_v42 = vadd.f32 %v3261_v33, %v3260_v31  ;;  %v3263_v43 = vpop.f32.mrb[34].mxu0  ;;  %v1794_v32 = vadd.f32 %v4530_v0, %v4484_v54 }
 0x13d   : > { %v3352_v45 = vpop.f32.mrb[35].mxu1  ;;  %v3264_v47 = vpop.f32.mrb[35].mxu0 }
 0x13e   : > { %v4558_v48 = vadd.f32 %v3350_v40, %v1775_v53  ;;  %v3353_v49 = vadd.f32 %v3352_v45, %v3351_v41  ;;  %v3265_v51 = vadd.f32 %v3264_v47, %v3263_v43  ;;  %v1799_v45 = vadd.f32 %v4538_v16, %v4484_v54 }
 0x13f   : > { %2344 = vmatmul.mubr.bf16.gmra.mrb[140].mxu1 %v4035_v34  ;;  %3713 = vmatmul.mubr.bf16.gmra.mrb[140].mxu0 %v4036_v38 }
 0x140   : > { %v4560_v55 = vadd.f32 %v3353_v49, %v1778_v21 }
 0x142   : > { %v3354_v56 = vpop.f32.mrb[36].mxu1  ;;  %v3266_v2 = vpop.f32.mrb[36].mxu0 }
 0x143   : > { %v3355_v57 = vpop.f32.mrb[37].mxu1  ;;  %v3267_v58 = vpop.f32.mrb[37].mxu0 }
 0x144   : > { %v3356_v63 = vadd.f32 %v3355_v57, %v3354_v56  ;;  %v3357_v1 = vpop.f32.mrb[38].mxu1  ;;  %v4564_v3 = vadd.f32 %v3267_v58, %v3266_v2  ;;  %v3269_v15 = vpop.f32.mrb[38].mxu0  ;;  %v1802_v57 = vadd.f32 %v4546_v27, %v4484_v54  ;;  %v1810_v27 = vadd.f32 %v3265_v51, %v4484_v54 }
 0x145   : > { %v3358_v6 = vpop.f32.mrb[39].mxu1  ;;  %v3270_v7 = vpop.f32.mrb[39].mxu0 }
 0x146   : > { %v4568_v9 = vadd.f32 %v3356_v63, %v1783_v59  ;;  %v3359_v37 = vadd.f32 %v3358_v6, %v3357_v1  ;;  %v3271_v10 = vadd.f32 %v3270_v7, %v3269_v15  ;;  %v1815_v51 = vadd.f32 %v4564_v3, %v4484_v54 }
 0x148   : > { %v4570_v13 = vadd.f32 %v3359_v37, %v1786_v8  ;;  %v1807_v8 = vadd.f32 %v4554_v42, %v4484_v54 }
 0x14a   : > { %v3360_v17 = vpop.f32.mrb[40].mxu1  ;;  %v3272_v18 = vpop.f32.mrb[40].mxu0 }
 0x14b   : > { %v3361_v19 = vpop.f32.mrb[41].mxu1  ;;  %v3273_v26 = vpop.f32.mrb[41].mxu0 }
 0x14c   : > { %v3362_v23 = vadd.f32 %v3361_v19, %v3360_v17  ;;  %v3363_v5 = vpop.f32.mrb[42].mxu1  ;;  %v4574_v25 = vadd.f32 %v3273_v26, %v3272_v18  ;;  %v3275_v29 = vpop.f32.mrb[42].mxu0 }
 0x14d   : > { %v3364_v31 = vpop.f32.mrb[43].mxu1  ;;  %v3276_v39 = vpop.f32.mrb[43].mxu0 }
 0x14e   : > { %v4578_v33 = vadd.f32 %v3362_v23, %v1791_v22  ;;  %v3365_v34 = vadd.f32 %v3364_v31, %v3363_v5  ;;  %v4580_v38 = vadd.f32 %v3276_v39, %v3275_v29 }
 0x150   : > { %v4582_v53 = vadd.f32 %v3365_v34, %v1794_v32 }
 0x152   : > { %v3366_v40 = vpop.f32.mrb[44].mxu1  ;;  %v3278_v41 = vpop.f32.mrb[44].mxu0 }
 0x153   : > { %v3367_v50 = vpop.f32.mrb[45].mxu1  ;;  %v3279_v43 = vpop.f32.mrb[45].mxu0 }
 0x154   : > { %v3368_v47 = vadd.f32 %v3367_v50, %v3366_v40  ;;  %v3369_v21 = vpop.f32.mrb[46].mxu1  ;;  %v4586_v49 = vadd.f32 %v3279_v43, %v3278_v41  ;;  %v3281_v56 = vpop.f32.mrb[46].mxu0 }
 0x155   : > { %v3370_v0 = vpop.f32.mrb[47].mxu1  ;;  %v3282_v2 = vpop.f32.mrb[47].mxu0 }
 0x156   : > { %v4590_v58 = vadd.f32 %v3368_v47, %v1799_v45  ;;  %v3371_v59 = vadd.f32 %v3370_v0, %v3369_v21  ;;  %v4592_v63 = vadd.f32 %v3282_v2, %v3281_v56 }
 0x158   : > { %v4594_v1 = vadd.f32 %v3371_v59, %v1802_v57 }
 0x15a   : > { %v3372_v15 = vpop.f32.mrb[48].mxu1  ;;  %v3436_v6 = vpop.f32.mrb[48].mxu0 }
 0x15b   : > { %v3373_v16 = vpop.f32.mrb[49].mxu1  ;;  %v3437_v7 = vpop.f32.mrb[49].mxu0 }
 0x15c   : > { %v3374_v37 = vadd.f32 %v3373_v16, %v3372_v15  ;;  %v3438_v17 = vadd.f32 %v3437_v7, %v3436_v6  ;;  %v3375_v18 = vpop.f32.mrb[50].mxu1  ;;  %v3439_v19 = vpop.f32.mrb[50].mxu0 }
 0x15d   : > { %v3376_v26 = vpop.f32.mrb[51].mxu1  ;;  %v3440_v22 = vpop.f32.mrb[51].mxu0 }
 0x15e   : > { %v4599_v23 = vadd.f32 %v3374_v37, %v1807_v8  ;;  %v4602_v5 = vadd.f32 %v3438_v17, %v4496_v11  ;;  %v3377_v29 = vadd.f32 %v3376_v26, %v3375_v18  ;;  %v3441_v31 = vadd.f32 %v3440_v22, %v3439_v19 }
 0x15f   : > { %v1818_v11 = vadd.f32 %v3271_v10, %v4484_v54  ;;  %v1823_v10 = vadd.f32 %v4574_v25, %v4484_v54 }
 0x160   : > { %v4604_v39 = vadd.f32 %v3377_v29, %v1810_v27  ;;  %v4607_v32 = vadd.f32 %v3441_v31, %v4500_v62 }
 0x162   : > { %v3378_v42 = vpop.f32.mrb[52].mxu1  ;;  %v3442_v34 = vpop.f32.mrb[52].mxu0 }
 0x163   : > { %v3379_v40 = vpop.f32.mrb[53].mxu1  ;;  %v3443_v41 = vpop.f32.mrb[53].mxu0 }
 0x164   : > { %v3380_v50 = vadd.f32 %v3379_v40, %v3378_v42  ;;  %v3444_v43 = vadd.f32 %v3443_v41, %v3442_v34  ;;  %v3381_v45 = vpop.f32.mrb[54].mxu1  ;;  %v3445_v47 = vpop.f32.mrb[54].mxu0 }
 0x165   : > { %v3382_v21 = vpop.f32.mrb[55].mxu1  ;;  %v3446_v56 = vpop.f32.mrb[55].mxu0 }
 0x166   : > { %v4612_v0 = vadd.f32 %v3380_v50, %v1815_v51  ;;  %v4615_v62 = vadd.f32 %v3444_v43, %v4512_v35  ;;  %v3383_v2 = vadd.f32 %v3382_v21, %v3381_v45  ;;  %v3447_v57 = vadd.f32 %v3446_v56, %v3445_v47 }
 0x167   : > { %v1826_v35 = vadd.f32 %v4580_v38, %v4484_v54  ;;  %v1831_v38 = vadd.f32 %v4586_v49, %v4484_v54 }
 0x168   : > { %v4617_v59 = vadd.f32 %v3383_v2, %v1818_v11  ;;  %v4620_v15 = vadd.f32 %v3447_v57, %v4516_v14 }
 0x16a   : > { %v3384_v3 = vpop.f32.mrb[56].mxu1  ;;  %v3448_v6 = vpop.f32.mrb[56].mxu0 }
 0x16b   : > { %v3385_v16 = vpop.f32.mrb[57].mxu1  ;;  %v3449_v7 = vpop.f32.mrb[57].mxu0 }
 0x16c   : > { %v3386_v8 = vadd.f32 %v3385_v16, %v3384_v3  ;;  %v3450_v37 = vadd.f32 %v3449_v7, %v3448_v6  ;;  %v3387_v17 = vpop.f32.mrb[58].mxu1  ;;  %v3451_v18 = vpop.f32.mrb[58].mxu0 }
 0x16d   : > { %v3388_v19 = vpop.f32.mrb[59].mxu1  ;;  %v3452_v27 = vpop.f32.mrb[59].mxu0 }
 0x16e   : > { %v4626_v26 = vadd.f32 %v3386_v8, %v1823_v10  ;;  %v4629_v14 = vadd.f32 %v3450_v37, %v4528_v61  ;;  %v3389_v22 = vadd.f32 %v3388_v19, %v3387_v17  ;;  %v3453_v29 = vadd.f32 %v3452_v27, %v3451_v18 }
 0x16f   : > { %v1834_v61 = vadd.f32 %v4592_v63, %v4484_v54  ;;  %v1839_v63 = vadd.f32 %v4435_v60, %v4484_v54 }
 0x170   : > { %v4631_v31 = vadd.f32 %v3389_v22, %v1826_v35  ;;  %v4634_v25 = vadd.f32 %v3453_v29, %v4532_v30 }
 0x172   : > { %v3390_v42 = vpop.f32.mrb[60].mxu1  ;;  %v3454_v34 = vpop.f32.mrb[60].mxu0 }
 0x173   : > { %v3391_v40 = vpop.f32.mrb[61].mxu1  ;;  %v3455_v41 = vpop.f32.mrb[61].mxu0 }
 0x174   : > { %v3392_v51 = vadd.f32 %v3391_v40, %v3390_v42  ;;  %v3456_v50 = vadd.f32 %v3455_v41, %v3454_v34  ;;  %v3393_v43 = vpop.f32.mrb[62].mxu1  ;;  %v3457_v45 = vpop.f32.mrb[62].mxu0 }
 0x175   : > { %v3394_v47 = vpop.f32.mrb[63].mxu1  ;;  %v3458_v11 = vpop.f32.mrb[63].mxu0 }
 0x176   : > { %v4640_v21 = vadd.f32 %v3392_v51, %v1831_v38  ;;  %v4643_v30 = vadd.f32 %v3456_v50, %v4544_v24  ;;  %v3395_v56 = vadd.f32 %v3394_v47, %v3393_v43  ;;  %v3459_v2 = vadd.f32 %v3458_v11, %v3457_v45 }
 0x177   : > { %v1842_v24 = vadd.f32 %v4441_v4, %v4484_v54  ;;  %v1847_v4 = vadd.f32 %v4447_v12, %v4484_v54 }
 0x178   : > { %v4645_v57 = vadd.f32 %v3395_v56, %v1834_v61  ;;  %v4648_v49 = vadd.f32 %v3459_v2, %v4548_v46 }
 0x17a   : > { %v3396_v3 = vpop.f32.mrb[64].mxu1  ;;  %v3460_v6 = vpop.f32.mrb[64].mxu0 }
 0x17b   : > { %v3397_v16 = vpop.f32.mrb[65].mxu1  ;;  %v3461_v7 = vpop.f32.mrb[65].mxu0 }
 0x17c   : > { %v3398_v10 = vadd.f32 %v3397_v16, %v3396_v3  ;;  %v3462_v8 = vadd.f32 %v3461_v7, %v3460_v6  ;;  %v3399_v37 = vpop.f32.mrb[66].mxu1  ;;  %v3463_v17 = vpop.f32.mrb[66].mxu0 }
 0x17d   : > { %v3400_v18 = vpop.f32.mrb[67].mxu1  ;;  %v3464_v35 = vpop.f32.mrb[67].mxu0 }
 0x17e   : > { %v4654_v19 = vadd.f32 %v3398_v10, %v1839_v63  ;;  %v4657_v46 = vadd.f32 %v3462_v8, %v4558_v48  ;;  %v3401_v27 = vadd.f32 %v3400_v18, %v3399_v37  ;;  %v3465_v22 = vadd.f32 %v3464_v35, %v3463_v17 }
 0x17f   : > { %v1850_v48 = vadd.f32 %v4453_v20, %v4484_v54  ;;  %v1855_v20 = vadd.f32 %v4459_v28, %v4484_v54 }
 0x180   : > { %v4659_v29 = vadd.f32 %v3401_v27, %v1842_v24  ;;  %v4662_v60 = vadd.f32 %v3465_v22, %v4560_v55 }
 0x182   : > { %v3402_v42 = vpop.f32.mrb[68].mxu1  ;;  %v3466_v34 = vpop.f32.mrb[68].mxu0 }
 0x183   : > { %v3403_v40 = vpop.f32.mrb[69].mxu1  ;;  %v3467_v41 = vpop.f32.mrb[69].mxu0 }
 0x184   : > { %v3404_v38 = vadd.f32 %v3403_v40, %v3402_v42  ;;  %v3468_v51 = vadd.f32 %v3467_v41, %v3466_v34  ;;  %v3405_v50 = vpop.f32.mrb[70].mxu1  ;;  %v3469_v43 = vpop.f32.mrb[70].mxu0 }
 0x185   : > { %v3406_v45 = vpop.f32.mrb[71].mxu1  ;;  %v3470_v61 = vpop.f32.mrb[71].mxu0 }
 0x186   : > { %v4668_v47 = vadd.f32 %v3404_v38, %v1847_v4  ;;  %v4671_v55 = vadd.f32 %v3468_v51, %v4568_v9  ;;  %v3407_v11 = vadd.f32 %v3406_v45, %v3405_v50  ;;  %v3471_v56 = vadd.f32 %v3470_v61, %v3469_v43 }
 0x187   : > { %v1858_v9 = vadd.f32 %v4465_v36, %v4484_v54  ;;  %v1863_v36 = vadd.f32 %v4471_v44, %v4484_v54 }
 0x188   : > { %v4673_v2 = vadd.f32 %v3407_v11, %v1850_v48  ;;  %v4676_v12 = vadd.f32 %v3471_v56, %v4570_v13 }
 0x18a   : > { %v3408_v3 = vpop.f32.mrb[72].mxu1  ;;  %v3472_v6 = vpop.f32.mrb[72].mxu0 }
 0x18b   : > { %v3409_v16 = vpop.f32.mrb[73].mxu1  ;;  %v3473_v7 = vpop.f32.mrb[73].mxu0 }
 0x18c   : > { %v3410_v63 = vadd.f32 %v3409_v16, %v3408_v3  ;;  %v3474_v10 = vadd.f32 %v3473_v7, %v3472_v6  ;;  %v3411_v8 = vpop.f32.mrb[74].mxu1  ;;  %v3475_v37 = vpop.f32.mrb[74].mxu0 }
 0x18d   : > { %v3412_v17 = vpop.f32.mrb[75].mxu1  ;;  %v3476_v24 = vpop.f32.mrb[75].mxu0 }
 0x18e   : > { %v4682_v18 = vadd.f32 %v3410_v63, %v1855_v20  ;;  %v4685_v13 = vadd.f32 %v3474_v10, %v4578_v33  ;;  %v3413_v35 = vadd.f32 %v3412_v17, %v3411_v8  ;;  %v3477_v27 = vadd.f32 %v3476_v24, %v3475_v37 }
 0x18f   : > { %v1866_v33 = vadd.f32 %v4477_v52, %v4484_v54 }
 0x190   : > { %v4687_v22 = vadd.f32 %v3413_v35, %v1858_v9  ;;  %v4690_v28 = vadd.f32 %v3477_v27, %v4582_v53 }
 0x192   : > { %v3414_v42 = vpop.f32.mrb[76].mxu1  ;;  %v3478_v34 = vpop.f32.mrb[76].mxu0 }
 0x193   : > { %v3415_v40 = vpop.f32.mrb[77].mxu1  ;;  %v3479_v41 = vpop.f32.mrb[77].mxu0 }
 0x194   : > { %v3416_v4 = vadd.f32 %v3415_v40, %v3414_v42  ;;  %v3480_v38 = vadd.f32 %v3479_v41, %v3478_v34  ;;  %v3417_v51 = vpop.f32.mrb[78].mxu1  ;;  %v3481_v50 = vpop.f32.mrb[78].mxu0 }
 0x195   : > { %v3418_v43 = vpop.f32.mrb[79].mxu1  ;;  %v3482_v48 = vpop.f32.mrb[79].mxu0 }
 0x196   : > { %v4696_v45 = vadd.f32 %v3416_v4, %v1863_v36  ;;  %v4699_v53 = vadd.f32 %v3480_v38, %v4590_v58  ;;  %v3419_v61 = vadd.f32 %v3418_v43, %v3417_v51  ;;  %v3483_v11 = vadd.f32 %v3482_v48, %v3481_v50 }
 0x198   : > { %v4701_v56 = vadd.f32 %v3419_v61, %v1866_v33  ;;  %v4704_v44 = vadd.f32 %v3483_v11, %v4594_v1 }
 0x19a   : > { %v3484_v3 = vpop.f32.mrb[80].mxu0  ;;  %v3548_v6 = vpop.f32.mrb[80].mxu1 }
 0x19b   : > { %v3485_v16 = vpop.f32.mrb[81].mxu0  ;;  %v3549_v7 = vpop.f32.mrb[81].mxu1 }
 0x19c   : > { %v3486_v20 = vadd.f32 %v3485_v16, %v3484_v3  ;;  %v3550_v52 = vadd.f32 %v3549_v7, %v3548_v6  ;;  %v3487_v54 = vpop.f32.mrb[82].mxu0  ;;  %v3551_v63 = vpop.f32.mrb[82].mxu1 }
 0x19d   : > { %v3488_v10 = vpop.f32.mrb[83].mxu0  ;;  %v3552_v8 = vpop.f32.mrb[83].mxu1 }
 0x19e   : > { %v4707_v58 = vadd.f32 %v3486_v20, %v4599_v23  ;;  %v3489_v37 = vadd.f32 %v3488_v10, %v3487_v54  ;;  %v3553_v9 = vadd.f32 %v3552_v8, %v3551_v63  ;;  %v4710_v17 = vadd.f32 %v3550_v52, %v4602_v5 }
 0x1a0   : > { %v4713_v1 = vadd.f32 %v3489_v37, %v4604_v39  ;;  %v4716_v24 = vadd.f32 %v3553_v9, %v4607_v32 }
 0x1a2   : > { %v3490_v35 = vpop.f32.mrb[84].mxu0  ;;  %v3554_v27 = vpop.f32.mrb[84].mxu1 }
 0x1a3   : > { %v3491_v42 = vpop.f32.mrb[85].mxu0  ;;  %v3555_v34 = vpop.f32.mrb[85].mxu1 }
 0x1a4   : > { %v3492_v40 = vadd.f32 %v3491_v42, %v3490_v35  ;;  %v3556_v41 = vadd.f32 %v3555_v34, %v3554_v27  ;;  %v3493_v36 = vpop.f32.mrb[86].mxu0  ;;  %v3557_v23 = vpop.f32.mrb[86].mxu1 }
 0x1a5   : > { %v3494_v4 = vpop.f32.mrb[87].mxu0  ;;  %v3558_v38 = vpop.f32.mrb[87].mxu1 }
 0x1a6   : > { %v4719_v51 = vadd.f32 %v3492_v40, %v4612_v0  ;;  %v3495_v5 = vadd.f32 %v3494_v4, %v3493_v36  ;;  %v3559_v50 = vadd.f32 %v3558_v38, %v3557_v23  ;;  %v4722_v39 = vadd.f32 %v3556_v41, %v4615_v62 }
 0x1a8   : > { %v4725_v32 = vadd.f32 %v3495_v5, %v4617_v59  ;;  %v4728_v33 = vadd.f32 %v3559_v50, %v4620_v15 }
 0x1aa   : > { %v3496_v43 = vpop.f32.mrb[88].mxu0  ;;  %v3560_v48 = vpop.f32.mrb[88].mxu1 }
 0x1ab   : > { %v3497_v61 = vpop.f32.mrb[89].mxu0  ;;  %v3561_v11 = vpop.f32.mrb[89].mxu1 }
 0x1ac   : > { %v3498_v3 = vadd.f32 %v3497_v61, %v3496_v43  ;;  %v3562_v6 = vadd.f32 %v3561_v11, %v3560_v48  ;;  %v3499_v16 = vpop.f32.mrb[90].mxu0  ;;  %v3563_v0 = vpop.f32.mrb[90].mxu1 }
 0x1ad   : > { %v3500_v7 = vpop.f32.mrb[91].mxu0  ;;  %v3564_v20 = vpop.f32.mrb[91].mxu1 }
 0x1ae   : > { %v4731_v52 = vadd.f32 %v3498_v3, %v4626_v26  ;;  %v3501_v62 = vadd.f32 %v3500_v7, %v3499_v16  ;;  %v3565_v54 = vadd.f32 %v3564_v20, %v3563_v0  ;;  %v4734_v59 = vadd.f32 %v3562_v6, %v4629_v14 }
 0x1b0   : > { %v4737_v15 = vadd.f32 %v3501_v62, %v4631_v31  ;;  %v4740_v63 = vadd.f32 %v3565_v54, %v4634_v25 }
 0x1b2   : > { %v3502_v10 = vpop.f32.mrb[92].mxu0  ;;  %v3566_v8 = vpop.f32.mrb[92].mxu1 }
 0x1b3   : > { %v3503_v37 = vpop.f32.mrb[93].mxu0  ;;  %v3567_v9 = vpop.f32.mrb[93].mxu1 }
 0x1b4   : > { %v3504_v35 = vadd.f32 %v3503_v37, %v3502_v10  ;;  %v3568_v27 = vadd.f32 %v3567_v9, %v3566_v8  ;;  %v3505_v42 = vpop.f32.mrb[94].mxu0  ;;  %v3569_v26 = vpop.f32.mrb[94].mxu1 }
 0x1b5   : > { %v3506_v34 = vpop.f32.mrb[95].mxu0  ;;  %v3570_v40 = vpop.f32.mrb[95].mxu1 }
 0x1b6   : > { %v4743_v41 = vadd.f32 %v3504_v35, %v4640_v21  ;;  %v3507_v14 = vadd.f32 %v3506_v34, %v3505_v42  ;;  %v3571_v36 = vadd.f32 %v3570_v40, %v3569_v26  ;;  %v4746_v31 = vadd.f32 %v3568_v27, %v4643_v30 }
 0x1b8   : > { %v4749_v25 = vadd.f32 %v3507_v14, %v4645_v57  ;;  %v4752_v23 = vadd.f32 %v3571_v36, %v4648_v49 }
 0x1ba   : > { %v3508_v4 = vpop.f32.mrb[96].mxu0  ;;  %v3572_v38 = vpop.f32.mrb[96].mxu1 }
 0x1bb   : > { %v3509_v5 = vpop.f32.mrb[97].mxu0  ;;  %v3573_v50 = vpop.f32.mrb[97].mxu1 }
 0x1bc   : > { %v3510_v43 = vadd.f32 %v3509_v5, %v3508_v4  ;;  %v3574_v48 = vadd.f32 %v3573_v50, %v3572_v38  ;;  %v3511_v61 = vpop.f32.mrb[98].mxu0  ;;  %v3575_v21 = vpop.f32.mrb[98].mxu1 }
 0x1bd   : > { %v3512_v11 = vpop.f32.mrb[99].mxu0  ;;  %v3576_v3 = vpop.f32.mrb[99].mxu1 }
 0x1be   : > { %v4755_v6 = vadd.f32 %v3510_v43, %v4654_v19  ;;  %v3513_v30 = vadd.f32 %v3512_v11, %v3511_v61  ;;  %v3577_v16 = vadd.f32 %v3576_v3, %v3575_v21  ;;  %v4758_v57 = vadd.f32 %v3574_v48, %v4657_v46 }
 0x1c0   : > { %v4761_v49 = vadd.f32 %v3513_v30, %v4659_v29  ;;  %v4764_v0 = vadd.f32 %v3577_v16, %v4662_v60 }
 0x1c2   : > { %v3514_v7 = vpop.f32.mrb[100].mxu0  ;;  %v3578_v20 = vpop.f32.mrb[100].mxu1 }
 0x1c3   : > { %v3515_v62 = vpop.f32.mrb[101].mxu0  ;;  %v3579_v54 = vpop.f32.mrb[101].mxu1 }
 0x1c4   : > { %v3516_v10 = vadd.f32 %v3515_v62, %v3514_v7  ;;  %v3580_v8 = vadd.f32 %v3579_v54, %v3578_v20  ;;  %v3517_v37 = vpop.f32.mrb[102].mxu0  ;;  %v3581_v19 = vpop.f32.mrb[102].mxu1 }
 0x1c5   : > { %v3518_v9 = vpop.f32.mrb[103].mxu0  ;;  %v3582_v35 = vpop.f32.mrb[103].mxu1 }
 0x1c6   : > { %v4767_v27 = vadd.f32 %v3516_v10, %v4668_v47  ;;  %v3519_v46 = vadd.f32 %v3518_v9, %v3517_v37  ;;  %v3583_v42 = vadd.f32 %v3582_v35, %v3581_v19  ;;  %v4770_v29 = vadd.f32 %v3580_v8, %v4671_v55 }
 0x1c8   : > { %v4773_v60 = vadd.f32 %v3519_v46, %v4673_v2  ;;  %v4776_v26 = vadd.f32 %v3583_v42, %v4676_v12 }
 0x1ca   : > { %v3520_v34 = vpop.f32.mrb[104].mxu0  ;;  %v3584_v40 = vpop.f32.mrb[104].mxu1 }
 0x1cb   : > { %v3521_v14 = vpop.f32.mrb[105].mxu0  ;;  %v3585_v36 = vpop.f32.mrb[105].mxu1 }
 0x1cc   : > { %v3522_v4 = vadd.f32 %v3521_v14, %v3520_v34  ;;  %v3586_v38 = vadd.f32 %v3585_v36, %v3584_v40  ;;  %v3523_v5 = vpop.f32.mrb[106].mxu0  ;;  %v3587_v47 = vpop.f32.mrb[106].mxu1 }
 0x1cd   : > { %v3524_v50 = vpop.f32.mrb[107].mxu0  ;;  %v3588_v43 = vpop.f32.mrb[107].mxu1 }
 0x1ce   : > { %v4779_v48 = vadd.f32 %v3522_v4, %v4682_v18  ;;  %v3525_v55 = vadd.f32 %v3524_v50, %v3523_v5  ;;  %v3589_v61 = vadd.f32 %v3588_v43, %v3587_v47  ;;  %v4782_v2 = vadd.f32 %v3586_v38, %v4685_v13 }
 0x1d0   : > { %v4785_v12 = vadd.f32 %v3525_v55, %v4687_v22  ;;  %v4788_v21 = vadd.f32 %v3589_v61, %v4690_v28 }
 0x1d2   : > { %v3526_v11 = vpop.f32.mrb[108].mxu0  ;;  %v3590_v3 = vpop.f32.mrb[108].mxu1 }
 0x1d3   : > { %v3527_v30 = vpop.f32.mrb[109].mxu0  ;;  %v3591_v16 = vpop.f32.mrb[109].mxu1 }
 0x1d4   : > { %v3528_v7 = vadd.f32 %v3527_v30, %v3526_v11  ;;  %v3592_v20 = vadd.f32 %v3591_v16, %v3590_v3  ;;  %v3529_v62 = vpop.f32.mrb[110].mxu0  ;;  %v3593_v18 = vpop.f32.mrb[110].mxu1 }
 0x1d5   : > { %v3530_v54 = vpop.f32.mrb[111].mxu0  ;;  %v3594_v10 = vpop.f32.mrb[111].mxu1 }
 0x1d6   : > { %v4791_v13 = vadd.f32 %v3528_v7, %v4696_v45  ;;  %v3531_v8 = vadd.f32 %v3530_v54, %v3529_v62  ;;  %v3595_v22 = vadd.f32 %v3594_v10, %v3593_v18  ;;  %v4794_v37 = vadd.f32 %v3592_v20, %v4699_v53 }
 0x1d8   : > { %v4797_v28 = vadd.f32 %v3531_v8, %v4701_v56  ;;  %v4800_v19 = vadd.f32 %v3595_v22, %v4704_v44 }
 0x1da   : > { %v3596_v9 = vpop.f32.mrb[112].mxu1  ;;  %v3686_v35 = vpop.f32.mrb[112].mxu0 }
 0x1db   : > { %v2395_v46 = vadd.f32 %v3686_v35, %v4722_v39  ;;  %v3597_v42 = vpop.f32.mrb[113].mxu1  ;;  %v2386_v34 = vpop.f32.mrb[113].mxu0 }
 0x1dc   : > { %v3598_v40 = vadd.f32 %v3597_v42, %v3596_v9  ;;  %v2387_v45 = vadd.f32 %v2386_v34, %v4710_v17  ;;  %v3599_v14 = vpop.f32.mrb[114].mxu1  ;;  %v3687_v36 = vpop.f32.mrb[114].mxu0 }
 0x1dd   : > { %v2398_v53 = vadd.f32 %v3687_v36, %v4728_v33  ;;  %v3600_v4 = vpop.f32.mrb[115].mxu1  ;;  %v2389_v56 = vpop.f32.mrb[115].mxu0  ;;  %v2515_v47 = vmax.f32 %v2395_v46, 0.0 }
 0x1de   : > { %v3601_v38 = vadd.f32 %v3600_v4, %v3599_v14  ;;  %v2390_v44 = vadd.f32 %v2389_v56, %v4716_v24  ;;  %v4808_v5 = vadd.f32 %v3598_v40, %v4707_v58  ;;  %v2513_v50 = vmax.f32 %v2387_v45, 0.0 }
 0x1df   : > { %v2516_v39 = vmax.f32 %v2398_v53, 0.0 }
 0x1e0   : > { %v2514_v17 = vmax.f32 %v2390_v44, 0.0  ;;  %v4816_v33 = vadd.f32 %v3601_v38, %v4713_v1 }
 0x1e1   : > { %v3109_v43 = vpack.c.bf16 %v2516_v39, %v2515_v47 }
 0x1e2   : > { %v3104_v55 = vpack.c.bf16 %v2514_v17, %v2513_v50  ;;  %v3602_v24 = vpop.f32.mrb[116].mxu1  ;;  %v3690_v61 = vpop.f32.mrb[116].mxu0 }
 0x1e3   : > { %3181 = vst [vmem:[%s4813_s9 + $0x8] sm:$0xff] %v3109_v43   ;;  %v2411_v58 = vadd.f32 %v3690_v61, %v4746_v31  ;;  %v3603_v11 = vpop.f32.mrb[117].mxu1  ;;  %v2402_v3 = vpop.f32.mrb[117].mxu0 }
 0x1e4   : > { %3105 = vst [vmem:[%s4813_s9] sm:$0xff] %v3104_v55   ;;  %v3604_v30 = vadd.f32 %v3603_v11, %v3602_v24  ;;  %v2403_v16 = vadd.f32 %v2402_v3, %v4734_v59  ;;  %v3605_v7 = vpop.f32.mrb[118].mxu1  ;;  %v3691_v20 = vpop.f32.mrb[118].mxu0 }
 0x1e5   : > { %v2414_v62 = vadd.f32 %v3691_v20, %v4752_v23  ;;  %v3606_v1 = vpop.f32.mrb[119].mxu1  ;;  %v2405_v18 = vpop.f32.mrb[119].mxu0  ;;  %v2519_v31 = vmax.f32 %v2411_v58, 0.0 }
 0x1e6   : > { %v3607_v54 = vadd.f32 %v3606_v1, %v3605_v7  ;;  %v2406_v10 = vadd.f32 %v2405_v18, %v4740_v63  ;;  %v2298_v8 = vadd.f32 %v3604_v30, %v4719_v51  ;;  %v2517_v9 = vmax.f32 %v2403_v16, 0.0 }
 0x1e7   : > { %v2520_v22 = vmax.f32 %v2414_v62, 0.0 }
 0x1e8   : > { %v2518_v35 = vmax.f32 %v2406_v10, 0.0  ;;  %v2301_v46 = vadd.f32 %v3607_v54, %v4725_v32 }
 0x1e9   : > { %v3119_v59 = vpack.c.bf16 %v2520_v22, %v2519_v31 }
 0x1ea   : > { %v3114_v42 = vpack.c.bf16 %v2518_v35, %v2517_v9  ;;  %v3608_v34 = vpop.f32.mrb[120].mxu1  ;;  %v3694_v40 = vpop.f32.mrb[120].mxu0 }
 0x1eb   : > { %3183 = vst [vmem:[%s4813_s9 + $0x18] sm:$0xff] %v3119_v59   ;;  %v2427_v23 = vadd.f32 %v3694_v40, %v4770_v29  ;;  %v3609_v45 = vpop.f32.mrb[121].mxu1  ;;  %v2418_v14 = vpop.f32.mrb[121].mxu0 }
 0x1ec   : > { %3182 = vst [vmem:[%s4813_s9 + $0x10] sm:$0xff] %v3114_v42   ;;  %v3610_v36 = vadd.f32 %v3609_v45, %v3608_v34  ;;  %v2419_v63 = vadd.f32 %v2418_v14, %v4758_v57  ;;  %v3611_v51 = vpop.f32.mrb[122].mxu1  ;;  %v3695_v53 = vpop.f32.mrb[122].mxu0 }
 0x1ed   : > { %v2430_v4 = vadd.f32 %v3695_v53, %v4776_v26  ;;  %v3612_v56 = vpop.f32.mrb[123].mxu1  ;;  %v2421_v32 = vpop.f32.mrb[123].mxu0  ;;  %v2523_v29 = vmax.f32 %v2427_v23, 0.0 }
 0x1ee   : > { %v3613_v38 = vadd.f32 %v3612_v56, %v3611_v51  ;;  %v2422_v44 = vadd.f32 %v2421_v32, %v4764_v0  ;;  %v4833_v47 = vadd.f32 %v3610_v36, %v4731_v52  ;;  %v2521_v50 = vmax.f32 %v2419_v63, 0.0 }
 0x1ef   : > { %v2524_v39 = vmax.f32 %v2430_v4, 0.0 }
 0x1f0   : > { %v2522_v17 = vmax.f32 %v2422_v44, 0.0  ;;  %v4836_v57 = vadd.f32 %v3613_v38, %v4737_v15 }
 0x1f1   : > { %v3129_v43 = vpack.c.bf16 %v2524_v39, %v2523_v29 }
 0x1f2   : > { %v3124_v55 = vpack.c.bf16 %v2522_v17, %v2521_v50  ;;  %v3614_v24 = vpop.f32.mrb[124].mxu1  ;;  %v3698_v26 = vpop.f32.mrb[124].mxu0 }
 0x1f3   : > { %3185 = vst [vmem:[%s4813_s9 + $0x28] sm:$0xff] %v3129_v43   ;;  %v2443_v61 = vadd.f32 %v3698_v26, %v4794_v37  ;;  %v3615_v58 = vpop.f32.mrb[125].mxu1  ;;  %v2434_v11 = vpop.f32.mrb[125].mxu0 }
 0x1f4   : > { %3184 = vst [vmem:[%s4813_s9 + $0x20] sm:$0xff] %v3124_v55   ;;  %v3616_v0 = vadd.f32 %v3615_v58, %v3614_v24  ;;  %v2435_v52 = vadd.f32 %v2434_v11, %v4782_v2  ;;  %v3617_v3 = vpop.f32.mrb[126].mxu1  ;;  %v3699_v30 = vpop.f32.mrb[126].mxu0 }
 0x1f5   : > { %v2446_v16 = vadd.f32 %v3699_v30, %v4800_v19  ;;  %v3618_v15 = vpop.f32.mrb[127].mxu1  ;;  %v2437_v7 = vpop.f32.mrb[127].mxu0  ;;  %v2527_v37 = vmax.f32 %v2443_v61, 0.0 }
 0x1f6   : > { %v3619_v20 = vadd.f32 %v3618_v15, %v3617_v3  ;;  %v2438_v62 = vadd.f32 %v2437_v7, %v4788_v21  ;;  %v2314_v1 = vadd.f32 %v3616_v0, %v4743_v41  ;;  %v2525_v54 = vmax.f32 %v2435_v52, 0.0 }
 0x1f7   : > { %v2528_v18 = vmax.f32 %v2446_v16, 0.0 }
 0x1f8   : > { %v2526_v10 = vmax.f32 %v2438_v62, 0.0  ;;  %v2317_v31 = vadd.f32 %v3619_v20, %v4749_v25 }
 0x1f9   : > { %v3139_v2 = vpack.c.bf16 %v2528_v18, %v2527_v37 }
 0x1fa   : > { %v3134_v22 = vpack.c.bf16 %v2526_v10, %v2525_v54  ;;  %v3620_v9 = vpop.f32.mrb[128].mxu1  ;;  %v3702_v35 = vpop.f32.mrb[128].mxu0 }
 0x1fb   : > { %3187 = vst [vmem:[%s4813_s9 + $0x38] sm:$0xff] %v3139_v2   ;;  %v2459_v19 = vadd.f32 %v3702_v35, %v2298_v8  ;;  %v3621_v59 = vpop.f32.mrb[129].mxu1  ;;  %v2450_v42 = vpop.f32.mrb[129].mxu0 }
 0x1fc   : > { %3186 = vst [vmem:[%s4813_s9 + $0x30] sm:$0xff] %v3134_v22   ;;  %v3622_v34 = vadd.f32 %v3621_v59, %v3620_v9  ;;  %v2451_v21 = vadd.f32 %v2450_v42, %v4808_v5  ;;  %v3623_v40 = vpop.f32.mrb[130].mxu1  ;;  %v3703_v41 = vpop.f32.mrb[130].mxu0 }
 0x1fd   : > { %v2462_v23 = vadd.f32 %v3703_v41, %v2301_v46  ;;  %v3624_v45 = vpop.f32.mrb[131].mxu1  ;;  %v2453_v14 = vpop.f32.mrb[131].mxu0  ;;  %v2531_v51 = vmax.f32 %v2459_v19, 0.0 }
 0x1fe   : > { %v3625_v36 = vadd.f32 %v3624_v45, %v3623_v40  ;;  %v2454_v25 = vadd.f32 %v2453_v14, %v4816_v33  ;;  %v2322_v63 = vadd.f32 %v3622_v34, %v4755_v6  ;;  %v2529_v53 = vmax.f32 %v2451_v21, 0.0 }
 0x1ff   : > { %v2532_v8 = vmax.f32 %v2462_v23, 0.0 }
 0x200   : > { %v2530_v4 = vmax.f32 %v2454_v25, 0.0  ;;  %v2325_v56 = vadd.f32 %v3625_v36, %v4761_v49 }
 0x201   : > { %v3149_v32 = vpack.c.bf16 %v2532_v8, %v2531_v51 }
 0x202   : > { %v3144_v5 = vpack.c.bf16 %v2530_v4, %v2529_v53  ;;  %v3626_v38 = vpop.f32.mrb[132].mxu1  ;;  %v3706_v44 = vpop.f32.mrb[132].mxu0 }
 0x203   : > { %3189 = vst [vmem:[%s4813_s9 + $0x48] sm:$0xff] %v3149_v32   ;;  %v2475_v46 = vadd.f32 %v3706_v44, %v2314_v1  ;;  %v3627_v29 = vpop.f32.mrb[133].mxu1  ;;  %v2466_v39 = vpop.f32.mrb[133].mxu0 }
 0x204   : > { %3188 = vst [vmem:[%s4813_s9 + $0x40] sm:$0xff] %v3144_v5   ;;  %v3628_v50 = vadd.f32 %v3627_v29, %v3626_v38  ;;  %v2467_v33 = vadd.f32 %v2466_v39, %v4833_v47  ;;  %v3629_v17 = vpop.f32.mrb[134].mxu1  ;;  %v3707_v6 = vpop.f32.mrb[134].mxu0 }
 0x205   : > { %v2478_v43 = vadd.f32 %v3707_v6, %v2317_v31  ;;  %v3630_v55 = vpop.f32.mrb[135].mxu1  ;;  %v2469_v24 = vpop.f32.mrb[135].mxu0  ;;  %v2535_v58 = vmax.f32 %v2475_v46, 0.0 }
 0x206   : > { %v3631_v26 = vadd.f32 %v3630_v55, %v3629_v17  ;;  %v2470_v49 = vadd.f32 %v2469_v24, %v4836_v57  ;;  %v2330_v61 = vadd.f32 %v3628_v50, %v4767_v27  ;;  %v2533_v0 = vmax.f32 %v2467_v33, 0.0 }
 0x207   : > { %v2536_v11 = vmax.f32 %v2478_v43, 0.0 }
 0x208   : > { %v2534_v52 = vmax.f32 %v2470_v49, 0.0  ;;  %v2333_v3 = vadd.f32 %v3631_v26, %v4773_v60 }
 0x209   : > { %v3159_v30 = vpack.c.bf16 %v2536_v11, %v2535_v58 }
 0x20a   : > { %v3154_v47 = vpack.c.bf16 %v2534_v52, %v2533_v0  ;;  %v3632_v16 = vpop.f32.mrb[136].mxu1  ;;  %v3710_v15 = vpop.f32.mrb[136].mxu0 }
 0x20b   : > { %3191 = vst [vmem:[%s4813_s9 + $0x58] sm:$0xff] %v3159_v30   ;;  %v2491_v7 = vadd.f32 %v3710_v15, %v2330_v61  ;;  %v3633_v20 = vpop.f32.mrb[137].mxu1  ;;  %v2482_v62 = vpop.f32.mrb[137].mxu0 }
 0x20c   : > { %3190 = vst [vmem:[%s4813_s9 + $0x50] sm:$0xff] %v3154_v47   ;;  %v3634_v1 = vadd.f32 %v3633_v20, %v3632_v16  ;;  %v2483_v37 = vadd.f32 %v2482_v62, %v2322_v63  ;;  %v3635_v57 = vpop.f32.mrb[138].mxu1  ;;  %v3711_v18 = vpop.f32.mrb[138].mxu0 }
 0x20d   : > { %v2494_v27 = vadd.f32 %v3711_v18, %v2333_v3  ;;  %v3636_v54 = vpop.f32.mrb[139].mxu1  ;;  %v2485_v10 = vpop.f32.mrb[139].mxu0  ;;  %v2539_v22 = vmax.f32 %v2491_v7, 0.0 }
 0x20e   : > { %v3637_v31 = vadd.f32 %v3636_v54, %v3635_v57  ;;  %v2486_v60 = vadd.f32 %v2485_v10, %v2325_v56  ;;  %v2338_v2 = vadd.f32 %v3634_v1, %v4779_v48  ;;  %v2537_v35 = vmax.f32 %v2483_v37, 0.0 }
 0x20f   : > { %v2540_v9 = vmax.f32 %v2494_v27, 0.0 }
 0x210   : > { %v2538_v19 = vmax.f32 %v2486_v60, 0.0  ;;  %v2341_v59 = vadd.f32 %v3637_v31, %v4785_v12 }
 0x211   : > { %v3169_v42 = vpack.c.bf16 %v2540_v9, %v2539_v22 }
 0x212   : > { %v3164_v34 = vpack.c.bf16 %v2538_v19, %v2537_v35  ;;  %v3638_v21 = vpop.f32.mrb[140].mxu1  ;;  %v3714_v40 = vpop.f32.mrb[140].mxu0 }
 0x213   : > { %3193 = vst [vmem:[%s4813_s9 + $0x68] sm:$0xff] %v3169_v42   ;;  %v3639_v41 = vpop.f32.mrb[141].mxu1  ;;  %v2498_v23 = vpop.f32.mrb[141].mxu0 }
 0x214   : > { %3192 = vst [vmem:[%s4813_s9 + $0x60] sm:$0xff] %v3164_v34   ;;  %v3640_v45 = vadd.f32 %v3639_v41, %v3638_v21  ;;  %v2499_v14 = vadd.f32 %v2498_v23, %v2338_v2  ;;  %v3641_v36 = vpop.f32.mrb[142].mxu1  ;;  %v3715_v25 = vpop.f32.mrb[142].mxu0 }
 0x215   : > { %v3642_v48 = vpop.f32.mrb[143].mxu1  ;;  %v2501_v63 = vpop.f32.mrb[143].mxu0 }
 0x216   : > { %v2346_v51 = vadd.f32 %v3640_v45, %v4791_v13  ;;  %v3643_v8 = vadd.f32 %v3642_v48, %v3641_v36  ;;  %v2502_v12 = vadd.f32 %v2501_v63, %v2341_v59  ;;  %v2541_v4 = vmax.f32 %v2499_v14, 0.0 }
 0x218   : > { %v2507_v53 = vadd.f32 %v3714_v40, %v2346_v51  ;;  %v2349_v56 = vadd.f32 %v3643_v8, %v4797_v28  ;;  %v2542_v32 = vmax.f32 %v2502_v12, 0.0 }
 0x21a   : > { %v2510_v5 = vadd.f32 %v3715_v25, %v2349_v56  ;;  %v3174_v38 = vpack.c.bf16 %v2542_v32, %v2541_v4  ;;  %v2543_v44 = vmax.f32 %v2507_v53, 0.0 }
 0x21c   : > { %v2544_v46 = vmax.f32 %v2510_v5, 0.0  ;;  %3194 = vst [vmem:[%s4813_s9 + $0x70] sm:$0xff] %v3174_v38  }
 0x21e   : > { %v3179_v29 = vpack.c.bf16 %v2544_v46, %v2543_v44 }
 0x220   : > { %3195 = vst [vmem:[%s4813_s9 + $0x78] sm:$0xff] %v3179_v29  }
 0x221 PF: > { %s13_s14 = sadd.s32 1, %s4059_s14   ;;  %s4881_s12 = smov %s4055_s13 }
 0x222   : > { %p10_p5 = scmp.ge.s32.totalorder %s13_s14, 4   ;;  %s4882_s13 = smov %s4884_s15 }
 0x224   :  { %12 = sbr.rel (!%p10_p5) target bundleno = 2 (0x2), region = 68 }

// kernel: pixel_encoder_forward.17
= control target key start
LH: loop header
LB: loop body
LE: loop exit
PB: predicated region body
PF: predicated region fallthrough
CT: control target
= control target key end

     0   :  { %s4338_s15 = smov 0   ;;  %s4340_s16 = smov 0   ;;  %s5165_s0 = inlined_call_operand.vmem [shape: bf16[512,1152], index: 0, kind: input, shape index: {}]   ;;  %s5166_s1 = inlined_call_operand.vmem [shape: bf16[1152,128], index: 1, kind: input, shape index: {}]   ;;  %s5167_s2 = inlined_call_operand.vmem [shape: f32[1,128], index: 2, kind: input, shape index: {}]   ;;  %s5168_s3 = inlined_call_operand.vmem [shape: bf16[512,128], index: 3, kind: input, shape index: {}]   ;;  %s5169_s4 = inlined_call_operand.vmem [shape: bf16[512,128], index: 4, kind: output, shape index: {}]  }
   0x1   :  { %s4342_s17 = smov 0  }
   0x2 LB: > { %s26_s18 = sadd.s32 1, %s4307_s16  ;;  %p2984_p0 = scmp.ge.s32.totalorder %s4311_s17, 1  ;;  %s4311_s17 = sphi %s4342_s17, %s14_s17   ;;  %s4307_s16 = sphi %s4340_s16, %s5171_s16   ;;  %s4303_s15 = sphi %s4338_s15, %s5170_s15  }
   0x3   : > { %p28_p1 = scmp.ge.s32.totalorder %s26_s18, 2  ;;  %p211_p2 = scmp.lt.s32.totalorder %s4311_s17, 3 }
   0x5   : > { %s5173_s18 = smov (%p28_p1, %s26_s18), 0  ;;  %p212_p3 = pnand %p2984_p0, %p211_p2 }
   0x6   : > { %v4009_v0 = vld [vmem:[%s5166_s1 + $0x40] sm:$0xff] (!%p212_p3)   ;;  %s2985_s21 = sshll.u32 (!%p212_p3), %s4303_s15, 5  ;;  %v4011_v2 = vld [vmem:[%s5166_s1 + $0x48] sm:$0xff] (!%p212_p3)   ;;  %v4013_v4 = vld [vmem:[%s5166_s1 + $0x50] sm:$0xff] (!%p212_p3)  }
   0x7   : > { %215 = sbr.rel (%p212_p3) target bundleno = 547 (0x223), region = 36  ;;  %v4010_v1 = vld [vmem:[%s5166_s1] sm:$0xff] (!%p212_p3)   ;;  %3448 = vmatprep.subr.bf16.mxu0 (!%p212_p3), %v4009_v0  ;;  %3968 = vmatprep.subr.bf16.mxu1 (!%p212_p3), %v4009_v0  ;;  %p257_p4 = scmp.lt.s32.totalorder (!%p212_p3), %s2985_s21, 63  ;;  %v4012_v3 = vld [vmem:[%s5166_s1 + $0x8] sm:$0xff] (!%p212_p3)   ;;  %v4014_v5 = vld [vmem:[%s5166_s1 + $0x10] sm:$0xff] (!%p212_p3)  }
   0x8   : > { %3449 = vmatpush3.bf16.msra.mxu0 (!%p212_p3), %v4010_v1  ;;  %3976 = vmatpush3.bf16.msra.mxu1 (!%p212_p3), %v4010_v1  ;;  %v4015_v6 = vld [vmem:[%s5166_s1 + $0x58] sm:$0xff] (!%p212_p3)   ;;  %v4017_v8 = vld [vmem:[%s5166_s1 + $0x60] sm:$0xff] (!%p212_p3)   ;;  %v4019_v10 = vld [vmem:[%s5166_s1 + $0x68] sm:$0xff] (!%p212_p3)  }
   0x9   : > { %3450 = vmatprep.subr.bf16.mxu0 (!%p212_p3), %v4011_v2  ;;  %3969 = vmatprep.subr.bf16.mxu1 (!%p212_p3), %v4011_v2  ;;  %v4016_v7 = vld [vmem:[%s5166_s1 + $0x18] sm:$0xff] (!%p212_p3)   ;;  %v4018_v9 = vld [vmem:[%s5166_s1 + $0x20] sm:$0xff] (!%p212_p3)   ;;  %v4020_v13 = vld [vmem:[%s5166_s1 + $0x28] sm:$0xff] (!%p212_p3)  }
   0xa   : > { %v4021_v14 = vld [vmem:[%s5166_s1 + $0x70] sm:$0xff] (!%p212_p3)   ;;  %v4023_v16 = vld [vmem:[%s5166_s1 + $0x78] sm:$0xff] (!%p212_p3)   ;;  %v4031_v18 = vld [vmem:[%s5166_s1 + $0xc0] sm:$0xff] (!%p212_p3)  }
   0xb   : > { %v4022_v15 = vld [vmem:[%s5166_s1 + $0x30] sm:$0xff] (!%p212_p3)   ;;  %v4024_v17 = vld [vmem:[%s5166_s1 + $0x38] sm:$0xff] (!%p212_p3)   ;;  %v4034_v21 = vld [vmem:[%s5166_s1 + $0x140] sm:$0xff] (!%p212_p3)  }
   0xc   : > { %3451 = vmatpush3.bf16.msra.mxu0 (!%p212_p3), %v4012_v3  ;;  %3977 = vmatpush3.bf16.msra.mxu1 (!%p212_p3), %v4012_v3  ;;  %v4032_v22 = vld [vmem:[%s5166_s1 + $0x80] sm:$0xff] (!%p212_p3)   ;;  %v4033_v23 = vld [vmem:[%s5166_s1 + $0xc8] sm:$0xff] (!%p212_p3)   ;;  %v4043_v31 = vld [vmem:[%s5166_s1 + $0xd0] sm:$0xff] (!%p212_p3)  }
   0xd   : > { %3452 = vmatprep.subr.bf16.mxu0 (!%p212_p3), %v4013_v4  ;;  %3970 = vmatprep.subr.bf16.mxu1 (!%p212_p3), %v4013_v4  ;;  %v4036_v24 = vld [vmem:[%s5166_s1 + $0x100] sm:$0xff] (!%p212_p3)   ;;  %v4035_v27 = vld [vmem:[%s5166_s1 + $0x88] sm:$0xff] (!%p212_p3)   ;;  %v4044_v32 = vld [vmem:[%s5166_s1 + $0x90] sm:$0xff] (!%p212_p3)  }
   0xe   : > { %s5175_s21 = smov (!%p257_p4, %s2985_s21), 63  ;;  %v4054_v28 = vld [vmem:[%s5166_s1 + $0x148] sm:$0xff]   ;;  %v4045_v34 = vld [vmem:[%s5166_s1 + $0xd8] sm:$0xff]   ;;  %v4053_v40 = vld [vmem:[%s5166_s1 + $0xe0] sm:$0xff]  }
   0xf   : > { %s3984_s8 = smul.u32 36, %s5175_s21  ;;  %v4056_v33 = vld [vmem:[%s5166_s1 + $0x108] sm:$0xff]   ;;  %v4046_v37 = vld [vmem:[%s5166_s1 + $0x98] sm:$0xff]   ;;  %v4055_v41 = vld [vmem:[%s5166_s1 + $0xa0] sm:$0xff]  }
  0x10   : > { %3453 = vmatpush3.bf16.msra.mxu0 %v4014_v5  ;;  %3978 = vmatpush3.bf16.msra.mxu1 %v4014_v5  ;;  %v4057_v42 = vld [vmem:[%s5166_s1 + $0xe8] sm:$0xff]   ;;  %v4068_v43 = vld [vmem:[%s5166_s1 + $0x150] sm:$0xff]   ;;  %v4067_v52 = vld [vmem:[%s5166_s1 + $0xf8] sm:$0xff]  }
  0x11   : > { %3454 = vmatprep.subr.bf16.mxu0 %v4015_v6  ;;  %3971 = vmatprep.subr.bf16.mxu1 %v4015_v6  ;;  %s4389_s15 = scalar_lea.vmem %s5165_s0, %s3984_s8  ;;  %v4070_v46 = vld [vmem:[%s5166_s1 + $0x110] sm:$0xff]   ;;  %v4058_v47 = vld [vmem:[%s5166_s1 + $0xa8] sm:$0xff]   ;;  %v4085_v55 = vld [vmem:[%s5166_s1 + $0x158] sm:$0xff]  }
  0x12   : > { %v4027_v11 = vld [vmem:[%s4389_s15 + $0x4] ss:$36 sps:$4 sm:$0xff]   ;;  %v4037_v25 = vld [vmem:[%s4389_s15 + $0x4c] ss:$36 sps:$4 sm:$0xff]   ;;  %v4047_v35 = vld [vmem:[%s4389_s15 + $0x94] ss:$36 sps:$4 sm:$0xff]  }
  0x13   : > { %v4030_v12 = vld [vmem:[%s4389_s15 + $0x364] ss:$36 sps:$4 sm:$0xff]   ;;  %1800 = vmatprep.mubr.bf16.mxu0 %v4027_v11  ;;  %v4039_v26 = vld [vmem:[%s4389_s15 + $0x3ac] ss:$36 sps:$4 sm:$0xff]   ;;  %v4049_v36 = vld [vmem:[%s4389_s15 + $0x3f4] ss:$36 sps:$4 sm:$0xff]  }
  0x14   : > { %3455 = vmatpush3.bf16.msra.mxu0 %v4016_v7  ;;  %3979 = vmatpush3.bf16.msra.mxu1 %v4016_v7  ;;  %v4025_v19 = vld [vmem:[%s4389_s15] ss:$36 sps:$4 sm:$0xff]   ;;  %v4041_v29 = vld [vmem:[%s4389_s15 + $0x48] ss:$36 sps:$4 sm:$0xff]   ;;  %v4051_v38 = vld [vmem:[%s4389_s15 + $0x90] ss:$36 sps:$4 sm:$0xff]  }
  0x15   : > { %3456 = vmatprep.subr.bf16.mxu0 %v4017_v8  ;;  %3972 = vmatprep.subr.bf16.mxu1 %v4017_v8  ;;  %v4028_v20 = vld [vmem:[%s4389_s15 + $0x360] ss:$36 sps:$4 sm:$0xff]   ;;  %v4042_v30 = vld [vmem:[%s4389_s15 + $0x3a8] ss:$36 sps:$4 sm:$0xff]   ;;  %v4052_v39 = vld [vmem:[%s4389_s15 + $0x3f0] ss:$36 sps:$4 sm:$0xff]  }
  0x16   : > { %1896 = vmatprep.mubr.bf16.mxu1 %v4030_v12  ;;  %v4059_v44 = vld [vmem:[%s4389_s15 + $0xdc] ss:$36 sps:$4 sm:$0xff]   ;;  %v4065_v48 = vld [vmem:[%s5166_s1 + $0xf0] sm:$0xff]   ;;  %v4071_v53 = vld [vmem:[%s4389_s15 + $0x124] ss:$36 sps:$4 sm:$0xff]  }
  0x17   : > { %v4061_v45 = vld [vmem:[%s4389_s15 + $0x43c] ss:$36 sps:$4 sm:$0xff]   ;;  %v4066_v51 = vld [vmem:[%s5166_s1 + $0xb0] sm:$0xff]   ;;  %v4073_v58 = vld [vmem:[%s4389_s15 + $0x8] ss:$36 sps:$4 sm:$0xff]  }
  0x18   : > { %3457 = vmatpush3.bf16.msra.mxu0 %v4018_v9  ;;  %3980 = vmatpush3.bf16.msra.mxu1 %v4018_v9  ;;  %v4063_v49 = vld [vmem:[%s4389_s15 + $0xd8] ss:$36 sps:$4 sm:$0xff]   ;;  %v4075_v54 = vld [vmem:[%s4389_s15 + $0xc] ss:$36 sps:$4 sm:$0xff]   ;;  %v4076_v59 = vld [vmem:[%s4389_s15 + $0x120] ss:$36 sps:$4 sm:$0xff]  }
  0x19   : > { %3458 = vmatprep.subr.bf16.mxu0 %v4019_v10  ;;  %3973 = vmatprep.subr.bf16.mxu1 %v4019_v10  ;;  %v4064_v50 = vld [vmem:[%s4389_s15 + $0x438] ss:$36 sps:$4 sm:$0xff]   ;;  %v4077_v60 = vld [vmem:[%s5166_s1 + $0x1c0] sm:$0xff]   ;;  %v4079_v62 = vld [vmem:[%s4389_s15 + $0x16c] ss:$36 sps:$4 sm:$0xff]  }
  0x1a   : > { %v4086_v56 = vld [vmem:[%s5166_s1 + $0x118] sm:$0xff]   ;;  %v4078_v61 = vld [vmem:[%s5166_s1 + $0x180] sm:$0xff]   ;;  %v4093_v1 = vld [vmem:[%s5166_s1 + $0x1c8] sm:$0xff]  }
  0x1b   : > { %v4069_v57 = vld [vmem:[%s5166_s1 + $0xb8] sm:$0xff]   ;;  %v4095_v0 = vld [vmem:[%s5166_s1 + $0x160] sm:$0xff]   ;;  %v4094_v3 = vld [vmem:[%s5166_s1 + $0x188] sm:$0xff]  }
  0x1c   : > { %3459 = vmatpush3.bf16.msra.mxu0 %v4020_v13  ;;  %3981 = vmatpush3.bf16.msra.mxu1 %v4020_v13  ;;  %v4081_v63 = vld [vmem:[%s4389_s15 + $0x54] ss:$36 sps:$4 sm:$0xff]   ;;  %v4096_v2 = vld [vmem:[%s5166_s1 + $0x120] sm:$0xff]   ;;  %v4083_v4 = vld [vmem:[%s4389_s15 + $0x168] ss:$36 sps:$4 sm:$0xff]  }
  0x1d   : > { %3460 = vmatprep.subr.bf16.mxu0 %v4021_v14  ;;  %3974 = vmatprep.subr.bf16.mxu1 %v4021_v14  ;;  %v4084_v5 = vld [vmem:[%s4389_s15 + $0x50] ss:$36 sps:$4 sm:$0xff]   ;;  %v4089_v7 = vld [vmem:[%s4389_s15 + $0x9c] ss:$36 sps:$4 sm:$0xff]   ;;  %v4109_v8 = vld [vmem:[%s5166_s1 + $0x168] sm:$0xff]  }
  0x1e   : > { %v4087_v6 = vld [vmem:[%s4389_s15 + $0x1b4] ss:$36 sps:$4 sm:$0xff]   ;;  %v4111_v10 = vld [vmem:[%s5166_s1 + $0x128] sm:$0xff]   ;;  %v4097_v14 = vld [vmem:[%s4389_s15 + $0x1fc] ss:$36 sps:$4 sm:$0xff]  }
  0x1f   : > { %v4110_v9 = vld [vmem:[%s5166_s1 + $0x1d0] sm:$0xff]   ;;  %v4092_v13 = vld [vmem:[%s4389_s15 + $0x98] ss:$36 sps:$4 sm:$0xff]  }
  0x20   : > { %3461 = vmatpush3.bf16.msra.mxu0 %v4022_v15  ;;  %3982 = vmatpush3.bf16.msra.mxu1 %v4022_v15  ;;  %v4112_v11 = vld [vmem:[%s5166_s1 + $0x190] sm:$0xff]  }
  0x21   : > { %3462 = vmatprep.subr.bf16.mxu0 %v4023_v16  ;;  %3975 = vmatprep.subr.bf16.mxu1 %v4023_v16  ;;  %v4091_v12 = vld [vmem:[%s4389_s15 + $0x1b0] ss:$36 sps:$4 sm:$0xff]  }
  0x22   : > { %v4119_v15 = vld [vmem:[%s5166_s1 + $0x170] sm:$0xff]  }
  0x23   : > { %v4120_v16 = vld [vmem:[%s5166_s1 + $0x130] sm:$0xff]  }
  0x24   : > { %3463 = vmatpush3.bf16.msra.mxu0 %v4024_v17  ;;  %3983 = vmatpush3.bf16.msra.mxu1 %v4024_v17  ;;  %v4099_v17 = vld [vmem:[%s4389_s15 + $0xe4] ss:$36 sps:$4 sm:$0xff]  }
  0x25   : > { %3560 = vmatprep.subr.bf16.mxu1 %v4031_v18  ;;  %3672 = vmatprep.subr.bf16.mxu0 %v4034_v21  ;;  %v4127_v18 = vld [vmem:[%s5166_s1 + $0x1d8] sm:$0xff]   ;;  %v4102_v21 = vld [vmem:[%s4389_s15 + $0xe0] ss:$36 sps:$4 sm:$0xff]  }
  0x27   : > { %1801 = vmatmul.mubr.bf16.vlgmr.msra.gmra.mrb[0].mxu0 %v4025_v19  ;;  %1897 = vmatmul.mubr.bf16.vlgmr.msra.gmra.mrb[0].mxu1 %v4028_v20  ;;  %v4128_v19 = vld [vmem:[%s5166_s1 + $0x198] sm:$0xff]  }
  0x28   : > { %3561 = vmatpush3.bf16.msra.mxu1 %v4032_v22  ;;  %3673 = vmatpush3.bf16.msra.mxu0 %v4036_v24  ;;  %v4101_v20 = vld [vmem:[%s4389_s15 + $0x1f8] ss:$36 sps:$4 sm:$0xff]   ;;  %v4103_v22 = vld [vmem:[%s4389_s15 + $0x244] ss:$36 sps:$4 sm:$0xff]  }
  0x29   : > { %3562 = vmatprep.subr.bf16.mxu1 %v4033_v23  ;;  %1808 = vmatprep.mubr.bf16.mxu0 %v4037_v25  ;;  %v4105_v23 = vld [vmem:[%s4389_s15 + $0x12c] ss:$36 sps:$4 sm:$0xff]   ;;  %v4135_v24 = vld [vmem:[%s5166_s1 + $0x178] sm:$0xff]  }
  0x2a   : > { %1904 = vmatprep.mubr.bf16.mxu1 %v4039_v26  ;;  %3674 = vmatprep.subr.bf16.mxu0 %v4054_v28  ;;  %v4136_v25 = vld [vmem:[%s5166_s1 + $0x138] sm:$0xff]   ;;  %v4143_v26 = vld [vmem:[%s5166_s1 + $0x1e0] sm:$0xff]  }
  0x2b   : > { %v4144_v28 = vld [vmem:[%s5166_s1 + $0x1a0] sm:$0xff]  }
  0x2c   : > { %3563 = vmatpush3.bf16.msra.mxu1 %v4035_v27  ;;  %3675 = vmatpush3.bf16.msra.mxu0 %v4056_v33  ;;  %v4107_v27 = vld [vmem:[%s4389_s15 + $0x240] ss:$36 sps:$4 sm:$0xff]   ;;  %v4158_v33 = vld [vmem:[%s5166_s1 + $0x1e8] sm:$0xff]  }
  0x2d   : > { %3564 = vmatprep.subr.bf16.mxu1 %v4043_v31  ;;  %3676 = vmatprep.subr.bf16.mxu0 %v4068_v43  ;;  %v4113_v31 = vld [vmem:[%s4389_s15 + $0x28c] ss:$36 sps:$4 sm:$0xff]   ;;  %v4129_v43 = vld [vmem:[%s4389_s15 + $0x31c] ss:$36 sps:$4 sm:$0xff]  }
  0x2f   : > { %1809 = vmatmul.mubr.bf16.gmra.mrb[4].mxu0 %v4041_v29  ;;  %1905 = vmatmul.mubr.bf16.gmra.mrb[4].mxu1 %v4042_v30  ;;  %v4145_v29 = vld [vmem:[%s5166_s1 + $0x200] sm:$0xff]   ;;  %v4108_v30 = vld [vmem:[%s4389_s15 + $0x128] ss:$36 sps:$4 sm:$0xff]  }
  0x30   : > { %3565 = vmatpush3.bf16.msra.mxu1 %v4044_v32  ;;  %1816 = vmatprep.mubr.bf16.mxu0 %v4047_v35  ;;  %v4115_v32 = vld [vmem:[%s4389_s15 + $0x174] ss:$36 sps:$4 sm:$0xff]   ;;  %v4159_v35 = vld [vmem:[%s5166_s1 + $0x1a8] sm:$0xff]  }
  0x31   : > { %3566 = vmatprep.subr.bf16.mxu1 %v4045_v34  ;;  %1912 = vmatprep.mubr.bf16.mxu1 %v4049_v36  ;;  %v4117_v34 = vld [vmem:[%s4389_s15 + $0x288] ss:$36 sps:$4 sm:$0xff]   ;;  %v4118_v36 = vld [vmem:[%s4389_s15 + $0x170] ss:$36 sps:$4 sm:$0xff]  }
  0x32   : > { %3677 = vmatpush3.bf16.msra.mxu0 %v4070_v46  ;;  %v4134_v46 = vld [vmem:[%s4389_s15 + $0x200] ss:$36 sps:$4 sm:$0xff]  }
  0x33   : > { %3678 = vmatprep.subr.bf16.mxu0 %v4085_v55  ;;  %v4160_v55 = vld [vmem:[%s5166_s1 + $0x208] sm:$0xff]  }
  0x34   : > { %3567 = vmatpush3.bf16.msra.mxu1 %v4046_v37  ;;  %v4121_v37 = vld [vmem:[%s4389_s15 + $0x2d4] ss:$36 sps:$4 sm:$0xff]  }
  0x35   : > { %3568 = vmatprep.subr.bf16.mxu1 %v4053_v40  ;;  %v4126_v40 = vld [vmem:[%s4389_s15 + $0x1b8] ss:$36 sps:$4 sm:$0xff]  }
  0x36   : > { %3679 = vmatpush3.bf16.msra.mxu0 %v4086_v56  ;;  %v4175_v56 = vld [vmem:[%s5166_s1 + $0x210] sm:$0xff]  }
  0x37   : > { %1817 = vmatmul.mubr.bf16.gmra.mrb[8].mxu0 %v4051_v38  ;;  %1913 = vmatmul.mubr.bf16.gmra.mrb[8].mxu1 %v4052_v39  ;;  %v4123_v38 = vld [vmem:[%s4389_s15 + $0x1bc] ss:$36 sps:$4 sm:$0xff]   ;;  %v4125_v39 = vld [vmem:[%s4389_s15 + $0x2d0] ss:$36 sps:$4 sm:$0xff]  }
  0x38   : > { %3569 = vmatpush3.bf16.msra.mxu1 %v4055_v41  ;;  %1824 = vmatprep.mubr.bf16.mxu0 %v4059_v44  ;;  %v4173_v41 = vld [vmem:[%s5166_s1 + $0x1f0] sm:$0xff]   ;;  %v4131_v44 = vld [vmem:[%s4389_s15 + $0x204] ss:$36 sps:$4 sm:$0xff]  }
  0x39   : > { %3570 = vmatprep.subr.bf16.mxu1 %v4057_v42  ;;  %1920 = vmatprep.mubr.bf16.mxu1 %v4061_v45  ;;  %v4174_v42 = vld [vmem:[%s5166_s1 + $0x1b0] sm:$0xff]   ;;  %v4133_v45 = vld [vmem:[%s4389_s15 + $0x318] ss:$36 sps:$4 sm:$0xff]  }
  0x3a   : > { %3680 = vmatprep.subr.bf16.mxu0 %v4095_v0  ;;  %v4157_v0 = vld [vmem:[%s4389_s15 + $0xa0] ss:$36 sps:$4 sm:$0xff]  }
  0x3b   : > { %3681 = vmatpush3.bf16.msra.mxu0 %v4096_v2  ;;  %v4163_v2 = vld [vmem:[%s4389_s15 + $0xec] ss:$36 sps:$4 sm:$0xff]  }
  0x3c   : > { %3571 = vmatpush3.bf16.msra.mxu1 %v4058_v47  ;;  %3682 = vmatprep.subr.bf16.mxu0 %v4109_v8  ;;  %v4188_v47 = vld [vmem:[%s5166_s1 + $0x1f8] sm:$0xff]  }
  0x3d   : > { %3572 = vmatprep.subr.bf16.mxu1 %v4065_v48  ;;  %v4189_v48 = vld [vmem:[%s5166_s1 + $0x1b8] sm:$0xff]  }
  0x3e   : > { %v4169_v8 = vld [vmem:[%s4389_s15 + $0x134] ss:$36 sps:$4 sm:$0xff]  }
  0x3f   : > { %1825 = vmatmul.mubr.bf16.gmra.mrb[12].mxu0 %v4063_v49  ;;  %1921 = vmatmul.mubr.bf16.gmra.mrb[12].mxu1 %v4064_v50  ;;  %v4137_v49 = vld [vmem:[%s4389_s15 + $0x24c] ss:$36 sps:$4 sm:$0xff]   ;;  %v4141_v50 = vld [vmem:[%s4389_s15 + $0x14] ss:$36 sps:$4 sm:$0xff]  }
  0x40   : > { %3573 = vmatpush3.bf16.msra.mxu1 %v4066_v51  ;;  %1832 = vmatprep.mubr.bf16.mxu0 %v4071_v53  ;;  %v4139_v51 = vld [vmem:[%s4389_s15 + $0x10] ss:$36 sps:$4 sm:$0xff]  }
  0x41   : > { %3574 = vmatprep.subr.bf16.mxu1 %v4067_v52  ;;  %1961 = vmatprep.mubr.bf16.mxu1 %v4075_v54  ;;  %v4142_v52 = vld [vmem:[%s4389_s15 + $0x248] ss:$36 sps:$4 sm:$0xff]   ;;  %v4146_v53 = vld [vmem:[%s4389_s15 + $0x294] ss:$36 sps:$4 sm:$0xff]   ;;  %v4148_v54 = vld [vmem:[%s4389_s15 + $0x5c] ss:$36 sps:$4 sm:$0xff]  }
  0x42   : > { %3683 = vmatpush3.bf16.msra.mxu0 %v4111_v10  ;;  %v4171_v10 = vld [vmem:[%s4389_s15 + $0x368] ss:$36 sps:$4 sm:$0xff]  }
  0x43   : > { %3684 = vmatprep.subr.bf16.mxu0 %v4119_v15  ;;  %v4181_v15 = vld [vmem:[%s4389_s15 + $0x178] ss:$36 sps:$4 sm:$0xff]  }
  0x44   : > { %3575 = vmatpush3.bf16.msra.mxu1 %v4069_v57  ;;  %v4150_v57 = vld [vmem:[%s4389_s15 + $0x290] ss:$36 sps:$4 sm:$0xff]  }
  0x45   : > { %3784 = vmatprep.subr.bf16.mxu1 %v4077_v60  ;;  %v4154_v60 = vld [vmem:[%s4389_s15 + $0xa4] ss:$36 sps:$4 sm:$0xff]  }
  0x46   : > { %3685 = vmatpush3.bf16.msra.mxu0 %v4120_v16  ;;  %v4182_v16 = vld [vmem:[%s4389_s15 + $0x3fc] ss:$36 sps:$4 sm:$0xff]  }
  0x47   : > { %1833 = vmatmul.mubr.bf16.gmra.mrb[16].mxu0 %v4076_v59  ;;  %1962 = vmatmul.mubr.bf16.vlgmr.msra.gmra.mrb[16].mxu1 %v4073_v58  ;;  %v4151_v58 = vld [vmem:[%s4389_s15 + $0x58] ss:$36 sps:$4 sm:$0xff]  }
  0x48   : > { %3785 = vmatpush3.bf16.msra.mxu1 %v4078_v61  ;;  %1840 = vmatprep.mubr.bf16.mxu0 %v4079_v62  ;;  %v4152_v59 = vld [vmem:[%s4389_s15 + $0x2dc] ss:$36 sps:$4 sm:$0xff]  }
  0x49   : > { %1969 = vmatprep.mubr.bf16.mxu1 %v4081_v63  ;;  %3786 = vmatprep.subr.bf16.mxu1 %v4093_v1  ;;  %v4190_v61 = vld [vmem:[%s5166_s1 + $0x218] sm:$0xff]   ;;  %v4203_v62 = vld [vmem:[%s5166_s1 + $0x220] sm:$0xff]  }
  0x4a   : > { %3686 = vmatprep.subr.bf16.mxu0 %v4135_v24  ;;  %v4156_v63 = vld [vmem:[%s4389_s15 + $0x2d8] ss:$36 sps:$4 sm:$0xff]   ;;  %v4161_v1 = vld [vmem:[%s4389_s15 + $0x324] ss:$36 sps:$4 sm:$0xff]  }
  0x4b   : > { %3687 = vmatpush3.bf16.msra.mxu0 %v4136_v25  ;;  %v4197_v24 = vld [vmem:[%s4389_s15 + $0x254] ss:$36 sps:$4 sm:$0xff]   ;;  %v4201_v25 = vld [vmem:[%s4389_s15 + $0x1c] ss:$36 sps:$4 sm:$0xff]  }
  0x4c   : > { %3787 = vmatpush3.bf16.msra.mxu1 %v4094_v3  ;;  %3920 = vmatprep.subr.bf16.mxu0 %v4145_v29  ;;  %v4216_v3 = vld [vmem:[%s5166_s1 + $0x228] sm:$0xff]  }
  0x4d   : > { %3788 = vmatprep.subr.bf16.mxu1 %v4110_v9  ;;  %v4242_v9 = vld [vmem:[%s5166_s1 + $0x238] sm:$0xff]  }
  0x4f   : > { %1841 = vmatmul.mubr.bf16.gmra.mrb[20].mxu0 %v4083_v4  ;;  %1970 = vmatmul.mubr.bf16.gmra.mrb[20].mxu1 %v4084_v5  ;;  %v4165_v4 = vld [vmem:[%s4389_s15 + $0x320] ss:$36 sps:$4 sm:$0xff]   ;;  %v4166_v5 = vld [vmem:[%s4389_s15 + $0xe8] ss:$36 sps:$4 sm:$0xff]  }
  0x50   : > { %1848 = vmatprep.mubr.bf16.mxu0 %v4087_v6  ;;  %1977 = vmatprep.mubr.bf16.mxu1 %v4089_v7  ;;  %v4229_v6 = vld [vmem:[%s5166_s1 + $0x230] sm:$0xff]  }
  0x51   : > { %3789 = vmatpush3.bf16.msra.mxu1 %v4112_v11  ;;  %v4167_v7 = vld [vmem:[%s4389_s15 + $0x36c] ss:$36 sps:$4 sm:$0xff]  }
  0x52   : > { %3790 = vmatprep.subr.bf16.mxu1 %v4127_v18  ;;  %v4172_v11 = vld [vmem:[%s4389_s15 + $0x130] ss:$36 sps:$4 sm:$0xff]   ;;  %v4186_v18 = vld [vmem:[%s4389_s15 + $0x3f8] ss:$36 sps:$4 sm:$0xff]  }
  0x55   : > { %3791 = vmatpush3.bf16.msra.mxu1 %v4128_v19  ;;  %v4187_v19 = vld [vmem:[%s4389_s15 + $0x1c0] ss:$36 sps:$4 sm:$0xff]  }
  0x56   : > { %3792 = vmatprep.subr.bf16.mxu1 %v4143_v26  ;;  %v4199_v26 = vld [vmem:[%s4389_s15 + $0x18] ss:$36 sps:$4 sm:$0xff]  }
  0x57   : > { %1849 = vmatmul.mubr.bf16.gmra.mrb[24].mxu0 %v4091_v12  ;;  %1978 = vmatmul.mubr.bf16.gmra.mrb[24].mxu1 %v4092_v13  ;;  %v4176_v12 = vld [vmem:[%s4389_s15 + $0x3b4] ss:$36 sps:$4 sm:$0xff]   ;;  %v4178_v13 = vld [vmem:[%s4389_s15 + $0x17c] ss:$36 sps:$4 sm:$0xff]  }
  0x58   : > { %1856 = vmatprep.mubr.bf16.mxu0 %v4097_v14  ;;  %1985 = vmatprep.mubr.bf16.mxu1 %v4099_v17  ;;  %v4180_v14 = vld [vmem:[%s4389_s15 + $0x3b0] ss:$36 sps:$4 sm:$0xff]   ;;  %v4184_v17 = vld [vmem:[%s4389_s15 + $0x1c4] ss:$36 sps:$4 sm:$0xff]  }
  0x59   : > { %3793 = vmatpush3.bf16.msra.mxu1 %v4144_v28  ;;  %v4204_v28 = vld [vmem:[%s4389_s15 + $0x29c] ss:$36 sps:$4 sm:$0xff]  }
  0x5a   : > { %3794 = vmatprep.subr.bf16.mxu1 %v4158_v33  ;;  %v4212_v33 = vld [vmem:[%s4389_s15 + $0xac] ss:$36 sps:$4 sm:$0xff]  }
  0x5d   : > { %3795 = vmatpush3.bf16.msra.mxu1 %v4159_v35  ;;  %v4215_v35 = vld [vmem:[%s4389_s15 + $0xa8] ss:$36 sps:$4 sm:$0xff]  }
  0x5e   : > { %3796 = vmatprep.subr.bf16.mxu1 %v4173_v41  ;;  %v4225_v41 = vld [vmem:[%s4389_s15 + $0x13c] ss:$36 sps:$4 sm:$0xff]  }
  0x5f   : > { %1857 = vmatmul.mubr.bf16.gmra.mrb[28].mxu0 %v4101_v20  ;;  %1986 = vmatmul.mubr.bf16.gmra.mrb[28].mxu1 %v4102_v21  ;;  %v4191_v20 = vld [vmem:[%s4389_s15 + $0x444] ss:$36 sps:$4 sm:$0xff]   ;;  %v4193_v21 = vld [vmem:[%s4389_s15 + $0x20c] ss:$36 sps:$4 sm:$0xff]  }
  0x60   : > { %1864 = vmatprep.mubr.bf16.mxu0 %v4103_v22  ;;  %1993 = vmatprep.mubr.bf16.mxu1 %v4105_v23  ;;  %v4195_v22 = vld [vmem:[%s4389_s15 + $0x440] ss:$36 sps:$4 sm:$0xff]   ;;  %v4196_v23 = vld [vmem:[%s4389_s15 + $0x208] ss:$36 sps:$4 sm:$0xff]  }
  0x61   : > { %3797 = vmatpush3.bf16.msra.mxu1 %v4174_v42  ;;  %v4227_v42 = vld [vmem:[%s4389_s15 + $0x370] ss:$36 sps:$4 sm:$0xff]  }
  0x62   : > { %3798 = vmatprep.subr.bf16.mxu1 %v4188_v47  ;;  %v4235_v47 = vld [vmem:[%s4389_s15 + $0x180] ss:$36 sps:$4 sm:$0xff]  }
  0x65   : > { %3799 = vmatpush3.bf16.msra.mxu1 %v4189_v48  ;;  %v4236_v48 = vld [vmem:[%s4389_s15 + $0x404] ss:$36 sps:$4 sm:$0xff]  }
  0x67   : > { %1865 = vmatmul.mubr.bf16.gmra.mrb[32].mxu0 %v4107_v27  ;;  %1994 = vmatmul.mubr.bf16.gmra.mrb[32].mxu1 %v4108_v30  ;;  %v4202_v27 = vld [vmem:[%s4389_s15 + $0x250] ss:$36 sps:$4 sm:$0xff]   ;;  %v4208_v30 = vld [vmem:[%s4389_s15 + $0x298] ss:$36 sps:$4 sm:$0xff]  }
  0x68   : > { %1872 = vmatprep.mubr.bf16.mxu0 %v4113_v31  ;;  %2001 = vmatprep.mubr.bf16.mxu1 %v4115_v32  ;;  %v4209_v31 = vld [vmem:[%s4389_s15 + $0x60] ss:$36 sps:$4 sm:$0xff]  }
  0x69   : > { %v4210_v32 = vld [vmem:[%s4389_s15 + $0x2e4] ss:$36 sps:$4 sm:$0xff]  }
  0x6f   : > { %1873 = vmatmul.mubr.bf16.gmra.mrb[36].mxu0 %v4117_v34  ;;  %2002 = vmatmul.mubr.bf16.gmra.mrb[36].mxu1 %v4118_v36  ;;  %v4214_v34 = vld [vmem:[%s4389_s15 + $0x2e0] ss:$36 sps:$4 sm:$0xff]   ;;  %v4217_v36 = vld [vmem:[%s4389_s15 + $0x32c] ss:$36 sps:$4 sm:$0xff]  }
  0x70   : > { %1880 = vmatprep.mubr.bf16.mxu0 %v4121_v37  ;;  %2009 = vmatprep.mubr.bf16.mxu1 %v4123_v38  ;;  %v4219_v37 = vld [vmem:[%s4389_s15 + $0xf4] ss:$36 sps:$4 sm:$0xff]   ;;  %v4221_v38 = vld [vmem:[%s4389_s15 + $0x328] ss:$36 sps:$4 sm:$0xff]  }
  0x77   : > { %1881 = vmatmul.mubr.bf16.gmra.mrb[40].mxu0 %v4125_v39  ;;  %2010 = vmatmul.mubr.bf16.gmra.mrb[40].mxu1 %v4126_v40  ;;  %v4222_v39 = vld [vmem:[%s4389_s15 + $0xf0] ss:$36 sps:$4 sm:$0xff]  }
  0x78   : > { %1888 = vmatprep.mubr.bf16.mxu0 %v4129_v43  ;;  %2017 = vmatprep.mubr.bf16.mxu1 %v4131_v44  ;;  %v4223_v40 = vld [vmem:[%s4389_s15 + $0x374] ss:$36 sps:$4 sm:$0xff]   ;;  %v4230_v44 = vld [vmem:[%s4389_s15 + $0x3bc] ss:$36 sps:$4 sm:$0xff]  }
  0x79   : > { %v4228_v43 = vld [vmem:[%s4389_s15 + $0x138] ss:$36 sps:$4 sm:$0xff]  }
  0x7f   : > { %1889 = vmatmul.mubr.bf16.gmra.mrb[44].mxu0 %v4133_v45  ;;  %2018 = vmatmul.mubr.bf16.gmra.mrb[44].mxu1 %v4134_v46  ;;  %v4232_v45 = vld [vmem:[%s4389_s15 + $0x184] ss:$36 sps:$4 sm:$0xff]   ;;  %v4234_v46 = vld [vmem:[%s4389_s15 + $0x3b8] ss:$36 sps:$4 sm:$0xff]  }
  0x80   : > { %2025 = vmatprep.mubr.bf16.mxu1 %v4137_v49  ;;  %2122 = vmatprep.mubr.bf16.mxu0 %v4141_v50  ;;  %v4238_v49 = vld [vmem:[%s4389_s15 + $0x1cc] ss:$36 sps:$4 sm:$0xff]   ;;  %v4240_v50 = vld [vmem:[%s4389_s15 + $0x400] ss:$36 sps:$4 sm:$0xff]  }
  0x87   : > { %2026 = vmatmul.mubr.bf16.gmra.mrb[48].mxu1 %v4142_v52  ;;  %2123 = vmatmul.mubr.bf16.vlgmr.msra.gmra.mrb[48].mxu0 %v4139_v51  ;;  %v4241_v51 = vld [vmem:[%s4389_s15 + $0x1c8] ss:$36 sps:$4 sm:$0xff]  }
  0x88   : > { %3921 = vmatpush3.bf16.msra.mxu0 %v4145_v29  ;;  %2033 = vmatprep.mubr.bf16.mxu1 %v4146_v53  ;;  %v4206_v29 = vld [vmem:[%s4389_s15 + $0x64] ss:$36 sps:$4 sm:$0xff]   ;;  %v4243_v52 = vld [vmem:[%s4389_s15 + $0x44c] ss:$36 sps:$4 sm:$0xff]   ;;  %v4245_v53 = vld [vmem:[%s4389_s15 + $0x214] ss:$36 sps:$4 sm:$0xff]  }
  0x89   : > { %2130 = vmatprep.mubr.bf16.mxu0 %v4148_v54  ;;  %3922 = vmatprep.subr.bf16.mxu0 %v4160_v55 }
  0x8c   : > { %3923 = vmatpush3.bf16.msra.mxu0 %v4160_v55 }
  0x8d   : > { %3924 = vmatprep.subr.bf16.mxu0 %v4175_v56 }
  0x8f   : > { %2034 = vmatmul.mubr.bf16.gmra.mrb[52].mxu1 %v4150_v57  ;;  %2131 = vmatmul.mubr.bf16.gmra.mrb[52].mxu0 %v4151_v58  ;;  %v4247_v58 = vld [vmem:[%s4389_s15 + $0x448] ss:$36 sps:$4 sm:$0xff]  }
  0x90   : > { %2041 = vmatprep.mubr.bf16.mxu1 %v4152_v59  ;;  %2138 = vmatprep.mubr.bf16.mxu0 %v4154_v60  ;;  %v4248_v59 = vld [vmem:[%s4389_s15 + $0x210] ss:$36 sps:$4 sm:$0xff]  }
  0x91   : > { %3925 = vmatpush3.bf16.msra.mxu0 %v4175_v56 }
  0x92   : > { %3926 = vmatprep.subr.bf16.mxu0 %v4190_v61 }
  0x95   : > { %3927 = vmatpush3.bf16.msra.mxu0 %v4190_v61 }
  0x96   : > { %3928 = vmatprep.subr.bf16.mxu0 %v4203_v62 }
  0x97   : > { %2042 = vmatmul.mubr.bf16.gmra.mrb[56].mxu1 %v4156_v63  ;;  %2139 = vmatmul.mubr.bf16.gmra.mrb[56].mxu0 %v4157_v0  ;;  %v4249_v0 = vld [vmem:[%s4389_s15 + $0x25c] ss:$36 sps:$4 sm:$0xff]  }
  0x98   : > { %2049 = vmatprep.mubr.bf16.mxu1 %v4161_v1  ;;  %2146 = vmatprep.mubr.bf16.mxu0 %v4163_v2  ;;  %v4251_v1 = vld [vmem:[%s4389_s15 + $0x20] ss:$36 sps:$4 sm:$0xff]  }
  0x99   : > { %3929 = vmatpush3.bf16.msra.mxu0 %v4203_v62 }
  0x9a   : > { %3930 = vmatprep.subr.bf16.mxu0 %v4216_v3 }
  0x9d   : > { %3931 = vmatpush3.bf16.msra.mxu0 %v4216_v3 }
  0x9e   : > { %3932 = vmatprep.subr.bf16.mxu0 %v4229_v6 }
  0x9f   : > { %2050 = vmatmul.mubr.bf16.gmra.mrb[60].mxu1 %v4165_v4  ;;  %2147 = vmatmul.mubr.bf16.gmra.mrb[60].mxu0 %v4166_v5 }
  0xa0   : > { %2057 = vmatprep.mubr.bf16.mxu1 %v4167_v7  ;;  %2154 = vmatprep.mubr.bf16.mxu0 %v4169_v8 }
  0xa1   : > { %3933 = vmatpush3.bf16.msra.mxu0 %v4229_v6 }
  0xa2   : > { %3934 = vmatprep.subr.bf16.mxu0 %v4242_v9 }
  0xa5   : > { %3935 = vmatpush3.bf16.msra.mxu0 %v4242_v9 }
  0xa7   : > { %2058 = vmatmul.mubr.bf16.gmra.mrb[64].mxu1 %v4171_v10  ;;  %2155 = vmatmul.mubr.bf16.gmra.mrb[64].mxu0 %v4172_v11  ;;  %v4252_v10 = vld [vmem:[%s4389_s15 + $0x258] ss:$36 sps:$4 sm:$0xff]   ;;  %v4253_v11 = vld [vmem:[%s4389_s15 + $0x68] ss:$36 sps:$4 sm:$0xff]  }
  0xa8   : > { %2065 = vmatprep.mubr.bf16.mxu1 %v4176_v12  ;;  %2162 = vmatprep.mubr.bf16.mxu0 %v4178_v13 }
  0xaf   : > { %2066 = vmatmul.mubr.bf16.gmra.mrb[68].mxu1 %v4180_v14  ;;  %2163 = vmatmul.mubr.bf16.gmra.mrb[68].mxu0 %v4181_v15 }
  0xb0   : > { %2073 = vmatprep.mubr.bf16.mxu1 %v4182_v16  ;;  %2170 = vmatprep.mubr.bf16.mxu0 %v4184_v17  ;;  %v4254_v16 = vld [vmem:[%s4389_s15 + $0x2a4] ss:$36 sps:$4 sm:$0xff]   ;;  %v4256_v17 = vld [vmem:[%s4389_s15 + $0xb0] ss:$36 sps:$4 sm:$0xff]  }
  0xb7   : > { %2074 = vmatmul.mubr.bf16.gmra.mrb[72].mxu1 %v4186_v18  ;;  %2171 = vmatmul.mubr.bf16.gmra.mrb[72].mxu0 %v4187_v19 }
  0xb8   : > { %2081 = vmatprep.mubr.bf16.mxu1 %v4191_v20  ;;  %2178 = vmatprep.mubr.bf16.mxu0 %v4193_v21 }
  0xbf   : > { %2082 = vmatmul.mubr.bf16.gmra.mrb[76].mxu1 %v4195_v22  ;;  %2179 = vmatmul.mubr.bf16.gmra.mrb[76].mxu0 %v4196_v23 }
  0xc0   : > { %2186 = vmatprep.mubr.bf16.mxu0 %v4197_v24  ;;  %2283 = vmatprep.mubr.bf16.mxu1 %v4201_v25 }
  0xc7   : > { %2187 = vmatmul.mubr.bf16.gmra.mrb[80].mxu0 %v4202_v27  ;;  %2284 = vmatmul.mubr.bf16.vlgmr.msra.gmra.mrb[80].mxu1 %v4199_v26  ;;  %v4257_v26 = vld [vmem:[%s4389_s15 + $0x2a0] ss:$36 sps:$4 sm:$0xff]   ;;  %v4258_v27 = vld [vmem:[%s4389_s15 + $0xf8] ss:$36 sps:$4 sm:$0xff]  }
  0xc8   : > { %2194 = vmatprep.mubr.bf16.mxu0 %v4204_v28  ;;  %2291 = vmatprep.mubr.bf16.mxu1 %v4206_v29 }
  0xcf   : > { %2195 = vmatmul.mubr.bf16.gmra.mrb[84].mxu0 %v4208_v30  ;;  %2292 = vmatmul.mubr.bf16.gmra.mrb[84].mxu1 %v4209_v31 }
  0xd0   : > { %2202 = vmatprep.mubr.bf16.mxu0 %v4210_v32  ;;  %2299 = vmatprep.mubr.bf16.mxu1 %v4212_v33  ;;  %v4259_v32 = vld [vmem:[%s4389_s15 + $0x2ec] ss:$36 sps:$4 sm:$0xff]   ;;  %v4261_v33 = vld [vmem:[%s4389_s15 + $0x140] ss:$36 sps:$4 sm:$0xff]  }
  0xd7   : > { %2203 = vmatmul.mubr.bf16.gmra.mrb[88].mxu0 %v4214_v34  ;;  %2300 = vmatmul.mubr.bf16.gmra.mrb[88].mxu1 %v4215_v35 }
  0xd8   : > { %2210 = vmatprep.mubr.bf16.mxu0 %v4217_v36  ;;  %2307 = vmatprep.mubr.bf16.mxu1 %v4219_v37 }
  0xdf   : > { %2211 = vmatmul.mubr.bf16.gmra.mrb[92].mxu0 %v4221_v38  ;;  %2308 = vmatmul.mubr.bf16.gmra.mrb[92].mxu1 %v4222_v39 }
  0xe0   : > { %2218 = vmatprep.mubr.bf16.mxu0 %v4223_v40  ;;  %2315 = vmatprep.mubr.bf16.mxu1 %v4225_v41 }
  0xe7   : > { %2219 = vmatmul.mubr.bf16.gmra.mrb[96].mxu0 %v4227_v42  ;;  %2316 = vmatmul.mubr.bf16.gmra.mrb[96].mxu1 %v4228_v43  ;;  %v4262_v42 = vld [vmem:[%s4389_s15 + $0x2e8] ss:$36 sps:$4 sm:$0xff]  }
  0xe8   : > { %2226 = vmatprep.mubr.bf16.mxu0 %v4230_v44  ;;  %2323 = vmatprep.mubr.bf16.mxu1 %v4232_v45  ;;  %v4263_v43 = vld [vmem:[%s4389_s15 + $0x188] ss:$36 sps:$4 sm:$0xff]  }
  0xef   : > { %2227 = vmatmul.mubr.bf16.gmra.mrb[100].mxu0 %v4234_v46  ;;  %2324 = vmatmul.mubr.bf16.gmra.mrb[100].mxu1 %v4235_v47 }
  0xf0   : > { %2234 = vmatprep.mubr.bf16.mxu0 %v4236_v48  ;;  %2331 = vmatprep.mubr.bf16.mxu1 %v4238_v49  ;;  %v4264_v48 = vld [vmem:[%s4389_s15 + $0x334] ss:$36 sps:$4 sm:$0xff]  }
  0xf1   : > { %v4266_v49 = vld [vmem:[%s4389_s15 + $0x1d0] ss:$36 sps:$4 sm:$0xff]  }
  0xf7   : > { %2235 = vmatmul.mubr.bf16.gmra.mrb[104].mxu0 %v4240_v50  ;;  %2332 = vmatmul.mubr.bf16.gmra.mrb[104].mxu1 %v4241_v51 }
  0xf8   : > { %2242 = vmatprep.mubr.bf16.mxu0 %v4243_v52  ;;  %2339 = vmatprep.mubr.bf16.mxu1 %v4245_v53 }
  0xfa   : > { %v3536_v54 = vpop.f32.mrb[0].mxu1  ;;  %v3464_v55 = vpop.f32.mrb[0].mxu0 }
  0xfb   : > { %v3537_v56 = vpop.f32.mrb[1].mxu1  ;;  %v3465_v57 = vpop.f32.mrb[1].mxu0 }
  0xfc   : > { %v4692_v60 = vadd.f32 %v3537_v56, %v3536_v54  ;;  %v3539_v61 = vpop.f32.mrb[2].mxu1  ;;  %v4694_v62 = vadd.f32 %v3465_v57, %v3464_v55  ;;  %v3467_v63 = vpop.f32.mrb[2].mxu0  ;;  %v4741_v54 = vld [vmem:[%s5167_s2] ss:$0 sm:$0xff] }
  0xfd   : > { %v3540_v2 = vpop.f32.mrb[3].mxu1  ;;  %v3468_v3 = vpop.f32.mrb[3].mxu0 }
  0xfe   : > { %v4698_v4 = vadd.f32 %v3540_v2, %v3539_v61  ;;  %v4700_v5 = vadd.f32 %v3468_v3, %v3467_v63  ;;  %v4268_v61 = vld [vmem:[%s4389_s15 + $0x218] ss:$36 sps:$4 sm:$0xff]   ;;  %v1803_v63 = vadd.f32 %v4694_v62, %v4741_v54 }
  0xff   : > { %2243 = vmatmul.mubr.bf16.gmra.mrb[108].mxu0 %v4247_v58  ;;  %2340 = vmatmul.mubr.bf16.gmra.mrb[108].mxu1 %v4248_v59  ;;  %v4267_v59 = vld [vmem:[%s4389_s15 + $0x330] ss:$36 sps:$4 sm:$0xff]  }
 0x100   : > { %2347 = vmatprep.mubr.bf16.mxu1 %v4249_v0  ;;  %3936 = vmatprep.mubr.bf16.mxu0 %v4251_v1 }
 0x102   : > { %v3542_v6 = vpop.f32.mrb[4].mxu1  ;;  %v3470_v7 = vpop.f32.mrb[4].mxu0 }
 0x103   : > { %v3543_v8 = vpop.f32.mrb[5].mxu1  ;;  %v3471_v9 = vpop.f32.mrb[5].mxu0 }
 0x104   : > { %v4704_v12 = vadd.f32 %v3543_v8, %v3542_v6  ;;  %v3545_v13 = vpop.f32.mrb[6].mxu1  ;;  %v4706_v14 = vadd.f32 %v3471_v9, %v3470_v7  ;;  %v3473_v15 = vpop.f32.mrb[6].mxu0  ;;  %v4269_v6 = vld [vmem:[%s4389_s15 + $0x37c] ss:$36 sps:$4 sm:$0xff]  }
 0x105   : > { %v3546_v18 = vpop.f32.mrb[7].mxu1  ;;  %v3474_v19 = vpop.f32.mrb[7].mxu0  ;;  %v4271_v7 = vld [vmem:[%s4389_s15 + $0x260] ss:$36 sps:$4 sm:$0xff]  }
 0x106   : > { %v4710_v20 = vadd.f32 %v3546_v18, %v3545_v13  ;;  %v4712_v21 = vadd.f32 %v3474_v19, %v3473_v15 }
 0x107   : > { %2348 = vmatmul.mubr.bf16.gmra.mrb[112].mxu1 %v4252_v10  ;;  %3937 = vmatmul.mubr.bf16.vlgmr.msra.gmra.mrb[112].mxu0 %v4253_v11  ;;  %v1806_v10 = vadd.f32 %v4700_v5, %v4741_v54  ;;  %v1811_v5 = vadd.f32 %v4706_v14, %v4741_v54 }
 0x108   : > { %2355 = vmatprep.mubr.bf16.mxu1 %v4254_v16  ;;  %3940 = vmatprep.mubr.bf16.mxu0 %v4256_v17 }
 0x10a   : > { %v3548_v22 = vpop.f32.mrb[8].mxu1  ;;  %v3476_v23 = vpop.f32.mrb[8].mxu0 }
 0x10b   : > { %v3549_v24 = vpop.f32.mrb[9].mxu1  ;;  %v3477_v25 = vpop.f32.mrb[9].mxu0 }
 0x10c   : > { %v4716_v28 = vadd.f32 %v3549_v24, %v3548_v22  ;;  %v3551_v29 = vpop.f32.mrb[10].mxu1  ;;  %v4718_v30 = vadd.f32 %v3477_v25, %v3476_v23  ;;  %v3479_v31 = vpop.f32.mrb[10].mxu0  ;;  %v4272_v22 = vld [vmem:[%s4389_s15 + $0x378] ss:$36 sps:$4 sm:$0xff]   ;;  %v4273_v23 = vld [vmem:[%s4389_s15 + $0x2a8] ss:$36 sps:$4 sm:$0xff]  }
 0x10d   : > { %v3552_v34 = vpop.f32.mrb[11].mxu1  ;;  %v3480_v35 = vpop.f32.mrb[11].mxu0 }
 0x10e   : > { %v4722_v36 = vadd.f32 %v3552_v34, %v3551_v29  ;;  %v4724_v37 = vadd.f32 %v3480_v35, %v3479_v31  ;;  %v4274_v29 = vld [vmem:[%s4389_s15 + $0x3c4] ss:$36 sps:$4 sm:$0xff]   ;;  %v4276_v31 = vld [vmem:[%s4389_s15 + $0x2f0] ss:$36 sps:$4 sm:$0xff]   ;;  %v1814_v34 = vadd.f32 %v4712_v21, %v4741_v54  ;;  %v1819_v21 = vadd.f32 %v4718_v30, %v4741_v54 }
 0x10f   : > { %2356 = vmatmul.mubr.bf16.gmra.mrb[116].mxu1 %v4257_v26  ;;  %3941 = vmatmul.mubr.bf16.gmra.mrb[116].mxu0 %v4258_v27 }
 0x110   : > { %2363 = vmatprep.mubr.bf16.mxu1 %v4259_v32  ;;  %3944 = vmatprep.mubr.bf16.mxu0 %v4261_v33 }
 0x112   : > { %v3554_v38 = vpop.f32.mrb[12].mxu1  ;;  %v3482_v39 = vpop.f32.mrb[12].mxu0 }
 0x113   : > { %v3555_v40 = vpop.f32.mrb[13].mxu1  ;;  %v3483_v41 = vpop.f32.mrb[13].mxu0 }
 0x114   : > { %v4728_v44 = vadd.f32 %v3555_v40, %v3554_v38  ;;  %v3557_v45 = vpop.f32.mrb[14].mxu1  ;;  %v4730_v46 = vadd.f32 %v3483_v41, %v3482_v39  ;;  %v3485_v47 = vpop.f32.mrb[14].mxu0 }
 0x115   : > { %v3558_v50 = vpop.f32.mrb[15].mxu1  ;;  %v3486_v51 = vpop.f32.mrb[15].mxu0 }
 0x116   : > { %v4734_v52 = vadd.f32 %v3558_v50, %v3557_v45  ;;  %v4736_v53 = vadd.f32 %v3486_v51, %v3485_v47  ;;  %v4277_v45 = vld [vmem:[%s4389_s15 + $0x3c0] ss:$36 sps:$4 sm:$0xff]   ;;  %v4278_v47 = vld [vmem:[%s4389_s15 + $0x338] ss:$36 sps:$4 sm:$0xff]  }
 0x117   : > { %2364 = vmatmul.mubr.bf16.gmra.mrb[120].mxu1 %v4262_v42  ;;  %3945 = vmatmul.mubr.bf16.gmra.mrb[120].mxu0 %v4263_v43 }
 0x118   : > { %2371 = vmatprep.mubr.bf16.mxu1 %v4264_v48  ;;  %3948 = vmatprep.mubr.bf16.mxu0 %v4266_v49 }
 0x11a   : > { %v3576_v55 = vpop.f32.mrb[16].mxu1  ;;  %v3488_v56 = vpop.f32.mrb[16].mxu0 }
 0x11b   : > { %v3577_v57 = vpop.f32.mrb[17].mxu1  ;;  %v3489_v58 = vpop.f32.mrb[17].mxu0 }
 0x11c   : > { %v3578_v0 = vadd.f32 %v3577_v57, %v3576_v55  ;;  %v3579_v1 = vpop.f32.mrb[18].mxu1  ;;  %v4747_v2 = vadd.f32 %v3489_v58, %v3488_v56  ;;  %v3491_v3 = vpop.f32.mrb[18].mxu0  ;;  %v4279_v55 = vld [vmem:[%s4389_s15 + $0x40c] ss:$36 sps:$4 sm:$0xff]   ;;  %v4281_v56 = vld [vmem:[%s4389_s15 + $0x380] ss:$36 sps:$4 sm:$0xff]  }
 0x11d   : > { %v3580_v8 = vpop.f32.mrb[19].mxu1  ;;  %v3492_v9 = vpop.f32.mrb[19].mxu0 }
 0x11e   : > { %v4753_v11 = vadd.f32 %v3578_v0, %v1803_v63  ;;  %v3581_v13 = vadd.f32 %v3580_v8, %v3579_v1  ;;  %v4755_v15 = vadd.f32 %v3492_v9, %v3491_v3  ;;  %v4282_v8 = vld [vmem:[%s4389_s15 + $0x408] ss:$36 sps:$4 sm:$0xff]  }
 0x11f   : > { %2372 = vmatmul.mubr.bf16.gmra.mrb[124].mxu1 %v4267_v59  ;;  %3949 = vmatmul.mubr.bf16.gmra.mrb[124].mxu0 %v4268_v61  ;;  %v1822_v59 = vadd.f32 %v4724_v37, %v4741_v54  ;;  %v4283_v9 = vld [vmem:[%s4389_s15 + $0x3c8] ss:$36 sps:$4 sm:$0xff]   ;;  %v1827_v37 = vadd.f32 %v4730_v46, %v4741_v54 }
 0x120   : > { %v4757_v62 = vadd.f32 %v3581_v13, %v1806_v10  ;;  %2379 = vmatprep.mubr.bf16.mxu1 %v4269_v6  ;;  %3952 = vmatprep.mubr.bf16.mxu0 %v4271_v7 }
 0x122   : > { %v3582_v16 = vpop.f32.mrb[20].mxu1  ;;  %v3494_v17 = vpop.f32.mrb[20].mxu0 }
 0x123   : > { %v3583_v18 = vpop.f32.mrb[21].mxu1  ;;  %v3495_v19 = vpop.f32.mrb[21].mxu0 }
 0x124   : > { %v3584_v24 = vadd.f32 %v3583_v18, %v3582_v16  ;;  %v3585_v25 = vpop.f32.mrb[22].mxu1  ;;  %v4763_v26 = vadd.f32 %v3495_v19, %v3494_v17  ;;  %v3497_v27 = vpop.f32.mrb[22].mxu0  ;;  %v4284_v18 = vld [vmem:[%s4389_s15 + $0x454] ss:$36 sps:$4 sm:$0xff]  }
 0x125   : > { %v3586_v32 = vpop.f32.mrb[23].mxu1  ;;  %v3498_v33 = vpop.f32.mrb[23].mxu0  ;;  %v4286_v19 = vld [vmem:[%s4389_s15 + $0x410] ss:$36 sps:$4 sm:$0xff]  }
 0x126   : > { %v4769_v35 = vadd.f32 %v3584_v24, %v1811_v5  ;;  %v3587_v38 = vadd.f32 %v3586_v32, %v3585_v25  ;;  %v4771_v39 = vadd.f32 %v3498_v33, %v3497_v27  ;;  %v1830_v5 = vadd.f32 %v4736_v53, %v4741_v54 }
 0x127   : > { %2380 = vmatmul.mubr.bf16.gmra.mrb[128].mxu1 %v4272_v22  ;;  %3953 = vmatmul.mubr.bf16.gmra.mrb[128].mxu0 %v4273_v23  ;;  %v1835_v53 = vadd.f32 %v4747_v2, %v4741_v54 }
 0x128   : > { %v4773_v14 = vadd.f32 %v3587_v38, %v1814_v34  ;;  %2387 = vmatprep.mubr.bf16.mxu1 %v4274_v29  ;;  %3956 = vmatprep.mubr.bf16.mxu0 %v4276_v31  ;;  %v4287_v34 = vld [vmem:[%s4389_s15 + $0x450] ss:$36 sps:$4 sm:$0xff]   ;;  %v4288_v38 = vld [vmem:[%s4389_s15 + $0x458] ss:$36 sps:$4 sm:$0xff]   ;;  %s2988_s15 = sshll.u32 %s5175_s21, 2 }
 0x129   : > { %s5053_s24 = scalar_lea.vmem %s5168_s3, %s2988_s15  ;;  %s5086_s27 = scalar_lea.vmem %s5169_s4, %s2988_s15 }
 0x12a   : > { %v3588_v40 = vpop.f32.mrb[24].mxu1  ;;  %v3500_v41 = vpop.f32.mrb[24].mxu0 }
 0x12b   : > { %v3589_v42 = vpop.f32.mrb[25].mxu1  ;;  %v3501_v43 = vpop.f32.mrb[25].mxu0 }
 0x12c   : > { %v3590_v48 = vadd.f32 %v3589_v42, %v3588_v40  ;;  %v3591_v49 = vpop.f32.mrb[26].mxu1  ;;  %v4779_v50 = vadd.f32 %v3501_v43, %v3500_v41  ;;  %v3503_v51 = vpop.f32.mrb[26].mxu0 }
 0x12d   : > { %v3592_v57 = vpop.f32.mrb[27].mxu1  ;;  %v3504_v58 = vpop.f32.mrb[27].mxu0 }
 0x12e   : > { %v4785_v61 = vadd.f32 %v3590_v48, %v1819_v21  ;;  %v3593_v63 = vadd.f32 %v3592_v57, %v3591_v49  ;;  %v4787_v0 = vadd.f32 %v3504_v58, %v3503_v51  ;;  %v1838_v21 = vadd.f32 %v4755_v15, %v4741_v54 }
 0x12f   : > { %2388 = vmatmul.mubr.bf16.gmra.mrb[132].mxu1 %v4277_v45  ;;  %3957 = vmatmul.mubr.bf16.gmra.mrb[132].mxu0 %v4278_v47 }
 0x130   : > { %v4789_v30 = vadd.f32 %v3593_v63, %v1822_v59  ;;  %2395 = vmatprep.mubr.bf16.mxu1 %v4279_v55  ;;  %3960 = vmatprep.mubr.bf16.mxu0 %v4281_v56  ;;  %v1843_v59 = vadd.f32 %v4763_v26, %v4741_v54 }
 0x132   : > { %v3594_v1 = vpop.f32.mrb[28].mxu1  ;;  %v3506_v3 = vpop.f32.mrb[28].mxu0 }
 0x133   : > { %v3595_v6 = vpop.f32.mrb[29].mxu1  ;;  %v3507_v7 = vpop.f32.mrb[29].mxu0 }
 0x134   : > { %v3596_v10 = vadd.f32 %v3595_v6, %v3594_v1  ;;  %v3597_v13 = vpop.f32.mrb[30].mxu1  ;;  %v4795_v16 = vadd.f32 %v3507_v7, %v3506_v3  ;;  %v3509_v17 = vpop.f32.mrb[30].mxu0 }
 0x135   : > { %v3598_v22 = vpop.f32.mrb[31].mxu1  ;;  %v3510_v23 = vpop.f32.mrb[31].mxu0 }
 0x136   : > { %v4801_v24 = vadd.f32 %v3596_v10, %v1827_v37  ;;  %v3599_v25 = vadd.f32 %v3598_v22, %v3597_v13  ;;  %v4803_v27 = vadd.f32 %v3510_v23, %v3509_v17  ;;  %v1851_v22 = vadd.f32 %v4779_v50, %v4741_v54 }
 0x137   : > { %2396 = vmatmul.mubr.bf16.gmra.mrb[136].mxu1 %v4282_v8  ;;  %3961 = vmatmul.mubr.bf16.gmra.mrb[136].mxu0 %v4283_v9  ;;  %v1846_v8 = vadd.f32 %v4771_v39, %v4741_v54 }
 0x138   : > { %v4805_v46 = vadd.f32 %v3599_v25, %v1830_v5  ;;  %2403 = vmatprep.mubr.bf16.mxu1 %v4284_v18  ;;  %3964 = vmatprep.mubr.bf16.mxu0 %v4286_v19 }
 0x13a   : > { %v3600_v29 = vpop.f32.mrb[32].mxu1  ;;  %v3512_v31 = vpop.f32.mrb[32].mxu0 }
 0x13b   : > { %v3601_v32 = vpop.f32.mrb[33].mxu1  ;;  %v3513_v33 = vpop.f32.mrb[33].mxu0 }
 0x13c   : > { %v3602_v40 = vadd.f32 %v3601_v32, %v3600_v29  ;;  %v3603_v41 = vpop.f32.mrb[34].mxu1  ;;  %v4811_v42 = vadd.f32 %v3513_v33, %v3512_v31  ;;  %v3515_v43 = vpop.f32.mrb[34].mxu0  ;;  %v1854_v32 = vadd.f32 %v4787_v0, %v4741_v54 }
 0x13d   : > { %v3604_v45 = vpop.f32.mrb[35].mxu1  ;;  %v3516_v47 = vpop.f32.mrb[35].mxu0 }
 0x13e   : > { %v4815_v48 = vadd.f32 %v3602_v40, %v1835_v53  ;;  %v3605_v49 = vadd.f32 %v3604_v45, %v3603_v41  ;;  %v3517_v51 = vadd.f32 %v3516_v47, %v3515_v43  ;;  %v1859_v45 = vadd.f32 %v4795_v16, %v4741_v54 }
 0x13f   : > { %2404 = vmatmul.mubr.bf16.gmra.mrb[140].mxu1 %v4287_v34  ;;  %3965 = vmatmul.mubr.bf16.gmra.mrb[140].mxu0 %v4288_v38 }
 0x140   : > { %v4817_v55 = vadd.f32 %v3605_v49, %v1838_v21 }
 0x142   : > { %v3606_v56 = vpop.f32.mrb[36].mxu1  ;;  %v3518_v2 = vpop.f32.mrb[36].mxu0 }
 0x143   : > { %v3607_v57 = vpop.f32.mrb[37].mxu1  ;;  %v3519_v58 = vpop.f32.mrb[37].mxu0 }
 0x144   : > { %v3608_v63 = vadd.f32 %v3607_v57, %v3606_v56  ;;  %v3609_v1 = vpop.f32.mrb[38].mxu1  ;;  %v4821_v3 = vadd.f32 %v3519_v58, %v3518_v2  ;;  %v3521_v15 = vpop.f32.mrb[38].mxu0  ;;  %v1862_v57 = vadd.f32 %v4803_v27, %v4741_v54  ;;  %v1870_v27 = vadd.f32 %v3517_v51, %v4741_v54 }
 0x145   : > { %v3610_v6 = vpop.f32.mrb[39].mxu1  ;;  %v3522_v7 = vpop.f32.mrb[39].mxu0 }
 0x146   : > { %v4825_v9 = vadd.f32 %v3608_v63, %v1843_v59  ;;  %v3611_v37 = vadd.f32 %v3610_v6, %v3609_v1  ;;  %v3523_v10 = vadd.f32 %v3522_v7, %v3521_v15  ;;  %v1875_v51 = vadd.f32 %v4821_v3, %v4741_v54 }
 0x148   : > { %v4827_v13 = vadd.f32 %v3611_v37, %v1846_v8  ;;  %v1867_v8 = vadd.f32 %v4811_v42, %v4741_v54 }
 0x14a   : > { %v3612_v17 = vpop.f32.mrb[40].mxu1  ;;  %v3524_v18 = vpop.f32.mrb[40].mxu0 }
 0x14b   : > { %v3613_v19 = vpop.f32.mrb[41].mxu1  ;;  %v3525_v26 = vpop.f32.mrb[41].mxu0 }
 0x14c   : > { %v3614_v23 = vadd.f32 %v3613_v19, %v3612_v17  ;;  %v3615_v5 = vpop.f32.mrb[42].mxu1  ;;  %v4831_v25 = vadd.f32 %v3525_v26, %v3524_v18  ;;  %v3527_v29 = vpop.f32.mrb[42].mxu0 }
 0x14d   : > { %v3616_v31 = vpop.f32.mrb[43].mxu1  ;;  %v3528_v39 = vpop.f32.mrb[43].mxu0 }
 0x14e   : > { %v4835_v33 = vadd.f32 %v3614_v23, %v1851_v22  ;;  %v3617_v34 = vadd.f32 %v3616_v31, %v3615_v5  ;;  %v4837_v38 = vadd.f32 %v3528_v39, %v3527_v29 }
 0x150   : > { %v4839_v53 = vadd.f32 %v3617_v34, %v1854_v32 }
 0x152   : > { %v3618_v40 = vpop.f32.mrb[44].mxu1  ;;  %v3530_v41 = vpop.f32.mrb[44].mxu0 }
 0x153   : > { %v3619_v50 = vpop.f32.mrb[45].mxu1  ;;  %v3531_v43 = vpop.f32.mrb[45].mxu0 }
 0x154   : > { %v3620_v47 = vadd.f32 %v3619_v50, %v3618_v40  ;;  %v3621_v21 = vpop.f32.mrb[46].mxu1  ;;  %v4843_v49 = vadd.f32 %v3531_v43, %v3530_v41  ;;  %v3533_v56 = vpop.f32.mrb[46].mxu0 }
 0x155   : > { %v3622_v0 = vpop.f32.mrb[47].mxu1  ;;  %v3534_v2 = vpop.f32.mrb[47].mxu0 }
 0x156   : > { %v4847_v58 = vadd.f32 %v3620_v47, %v1859_v45  ;;  %v3623_v59 = vadd.f32 %v3622_v0, %v3621_v21  ;;  %v4849_v63 = vadd.f32 %v3534_v2, %v3533_v56 }
 0x158   : > { %v4851_v1 = vadd.f32 %v3623_v59, %v1862_v57 }
 0x15a   : > { %v3624_v15 = vpop.f32.mrb[48].mxu1  ;;  %v3688_v6 = vpop.f32.mrb[48].mxu0 }
 0x15b   : > { %v3625_v16 = vpop.f32.mrb[49].mxu1  ;;  %v3689_v7 = vpop.f32.mrb[49].mxu0 }
 0x15c   : > { %v3626_v37 = vadd.f32 %v3625_v16, %v3624_v15  ;;  %v3690_v17 = vadd.f32 %v3689_v7, %v3688_v6  ;;  %v3627_v18 = vpop.f32.mrb[50].mxu1  ;;  %v3691_v19 = vpop.f32.mrb[50].mxu0 }
 0x15d   : > { %v3628_v26 = vpop.f32.mrb[51].mxu1  ;;  %v3692_v22 = vpop.f32.mrb[51].mxu0 }
 0x15e   : > { %v4856_v23 = vadd.f32 %v3626_v37, %v1867_v8  ;;  %v4859_v5 = vadd.f32 %v3690_v17, %v4753_v11  ;;  %v3629_v29 = vadd.f32 %v3628_v26, %v3627_v18  ;;  %v3693_v31 = vadd.f32 %v3692_v22, %v3691_v19 }
 0x15f   : > { %v1878_v11 = vadd.f32 %v3523_v10, %v4741_v54  ;;  %v1883_v10 = vadd.f32 %v4831_v25, %v4741_v54 }
 0x160   : > { %v4861_v39 = vadd.f32 %v3629_v29, %v1870_v27  ;;  %v4864_v32 = vadd.f32 %v3693_v31, %v4757_v62 }
 0x162   : > { %v3630_v42 = vpop.f32.mrb[52].mxu1  ;;  %v3694_v34 = vpop.f32.mrb[52].mxu0 }
 0x163   : > { %v3631_v40 = vpop.f32.mrb[53].mxu1  ;;  %v3695_v41 = vpop.f32.mrb[53].mxu0 }
 0x164   : > { %v3632_v50 = vadd.f32 %v3631_v40, %v3630_v42  ;;  %v3696_v43 = vadd.f32 %v3695_v41, %v3694_v34  ;;  %v3633_v45 = vpop.f32.mrb[54].mxu1  ;;  %v3697_v47 = vpop.f32.mrb[54].mxu0 }
 0x165   : > { %v3634_v21 = vpop.f32.mrb[55].mxu1  ;;  %v3698_v56 = vpop.f32.mrb[55].mxu0 }
 0x166   : > { %v4869_v0 = vadd.f32 %v3632_v50, %v1875_v51  ;;  %v4872_v62 = vadd.f32 %v3696_v43, %v4769_v35  ;;  %v3635_v2 = vadd.f32 %v3634_v21, %v3633_v45  ;;  %v3699_v57 = vadd.f32 %v3698_v56, %v3697_v47 }
 0x167   : > { %v1886_v35 = vadd.f32 %v4837_v38, %v4741_v54  ;;  %v1891_v38 = vadd.f32 %v4843_v49, %v4741_v54 }
 0x168   : > { %v4874_v59 = vadd.f32 %v3635_v2, %v1878_v11  ;;  %v4877_v15 = vadd.f32 %v3699_v57, %v4773_v14 }
 0x16a   : > { %v3636_v3 = vpop.f32.mrb[56].mxu1  ;;  %v3700_v6 = vpop.f32.mrb[56].mxu0 }
 0x16b   : > { %v3637_v16 = vpop.f32.mrb[57].mxu1  ;;  %v3701_v7 = vpop.f32.mrb[57].mxu0 }
 0x16c   : > { %v3638_v8 = vadd.f32 %v3637_v16, %v3636_v3  ;;  %v3702_v37 = vadd.f32 %v3701_v7, %v3700_v6  ;;  %v3639_v17 = vpop.f32.mrb[58].mxu1  ;;  %v3703_v18 = vpop.f32.mrb[58].mxu0 }
 0x16d   : > { %v3640_v19 = vpop.f32.mrb[59].mxu1  ;;  %v3704_v27 = vpop.f32.mrb[59].mxu0 }
 0x16e   : > { %v4883_v26 = vadd.f32 %v3638_v8, %v1883_v10  ;;  %v4886_v14 = vadd.f32 %v3702_v37, %v4785_v61  ;;  %v3641_v22 = vadd.f32 %v3640_v19, %v3639_v17  ;;  %v3705_v29 = vadd.f32 %v3704_v27, %v3703_v18 }
 0x16f   : > { %v1894_v61 = vadd.f32 %v4849_v63, %v4741_v54  ;;  %v1899_v63 = vadd.f32 %v4692_v60, %v4741_v54 }
 0x170   : > { %v4888_v31 = vadd.f32 %v3641_v22, %v1886_v35  ;;  %v4891_v25 = vadd.f32 %v3705_v29, %v4789_v30 }
 0x172   : > { %v3642_v42 = vpop.f32.mrb[60].mxu1  ;;  %v3706_v34 = vpop.f32.mrb[60].mxu0 }
 0x173   : > { %v3643_v40 = vpop.f32.mrb[61].mxu1  ;;  %v3707_v41 = vpop.f32.mrb[61].mxu0 }
 0x174   : > { %v3644_v51 = vadd.f32 %v3643_v40, %v3642_v42  ;;  %v3708_v50 = vadd.f32 %v3707_v41, %v3706_v34  ;;  %v3645_v43 = vpop.f32.mrb[62].mxu1  ;;  %v3709_v45 = vpop.f32.mrb[62].mxu0 }
 0x175   : > { %v3646_v47 = vpop.f32.mrb[63].mxu1  ;;  %v3710_v11 = vpop.f32.mrb[63].mxu0 }
 0x176   : > { %v4897_v21 = vadd.f32 %v3644_v51, %v1891_v38  ;;  %v4900_v30 = vadd.f32 %v3708_v50, %v4801_v24  ;;  %v3647_v56 = vadd.f32 %v3646_v47, %v3645_v43  ;;  %v3711_v2 = vadd.f32 %v3710_v11, %v3709_v45 }
 0x177   : > { %v1902_v24 = vadd.f32 %v4698_v4, %v4741_v54  ;;  %v1907_v4 = vadd.f32 %v4704_v12, %v4741_v54 }
 0x178   : > { %v4902_v57 = vadd.f32 %v3647_v56, %v1894_v61  ;;  %v4905_v49 = vadd.f32 %v3711_v2, %v4805_v46 }
 0x17a   : > { %v3648_v3 = vpop.f32.mrb[64].mxu1  ;;  %v3712_v6 = vpop.f32.mrb[64].mxu0 }
 0x17b   : > { %v3649_v16 = vpop.f32.mrb[65].mxu1  ;;  %v3713_v7 = vpop.f32.mrb[65].mxu0 }
 0x17c   : > { %v3650_v10 = vadd.f32 %v3649_v16, %v3648_v3  ;;  %v3714_v8 = vadd.f32 %v3713_v7, %v3712_v6  ;;  %v3651_v37 = vpop.f32.mrb[66].mxu1  ;;  %v3715_v17 = vpop.f32.mrb[66].mxu0 }
 0x17d   : > { %v3652_v18 = vpop.f32.mrb[67].mxu1  ;;  %v3716_v35 = vpop.f32.mrb[67].mxu0 }
 0x17e   : > { %v4911_v19 = vadd.f32 %v3650_v10, %v1899_v63  ;;  %v4914_v46 = vadd.f32 %v3714_v8, %v4815_v48  ;;  %v3653_v27 = vadd.f32 %v3652_v18, %v3651_v37  ;;  %v3717_v22 = vadd.f32 %v3716_v35, %v3715_v17 }
 0x17f   : > { %v1910_v48 = vadd.f32 %v4710_v20, %v4741_v54  ;;  %v1915_v20 = vadd.f32 %v4716_v28, %v4741_v54 }
 0x180   : > { %v4916_v29 = vadd.f32 %v3653_v27, %v1902_v24  ;;  %v4919_v60 = vadd.f32 %v3717_v22, %v4817_v55 }
 0x182   : > { %v3654_v42 = vpop.f32.mrb[68].mxu1  ;;  %v3718_v34 = vpop.f32.mrb[68].mxu0 }
 0x183   : > { %v3655_v40 = vpop.f32.mrb[69].mxu1  ;;  %v3719_v41 = vpop.f32.mrb[69].mxu0 }
 0x184   : > { %v3656_v38 = vadd.f32 %v3655_v40, %v3654_v42  ;;  %v3720_v51 = vadd.f32 %v3719_v41, %v3718_v34  ;;  %v3657_v50 = vpop.f32.mrb[70].mxu1  ;;  %v3721_v43 = vpop.f32.mrb[70].mxu0 }
 0x185   : > { %v3658_v45 = vpop.f32.mrb[71].mxu1  ;;  %v3722_v61 = vpop.f32.mrb[71].mxu0 }
 0x186   : > { %v4925_v47 = vadd.f32 %v3656_v38, %v1907_v4  ;;  %v4928_v55 = vadd.f32 %v3720_v51, %v4825_v9  ;;  %v3659_v11 = vadd.f32 %v3658_v45, %v3657_v50  ;;  %v3723_v56 = vadd.f32 %v3722_v61, %v3721_v43 }
 0x187   : > { %v1918_v9 = vadd.f32 %v4722_v36, %v4741_v54  ;;  %v1923_v36 = vadd.f32 %v4728_v44, %v4741_v54 }
 0x188   : > { %v4930_v2 = vadd.f32 %v3659_v11, %v1910_v48  ;;  %v4933_v12 = vadd.f32 %v3723_v56, %v4827_v13 }
 0x18a   : > { %v3660_v3 = vpop.f32.mrb[72].mxu1  ;;  %v3724_v6 = vpop.f32.mrb[72].mxu0 }
 0x18b   : > { %v3661_v16 = vpop.f32.mrb[73].mxu1  ;;  %v3725_v7 = vpop.f32.mrb[73].mxu0 }
 0x18c   : > { %v3662_v63 = vadd.f32 %v3661_v16, %v3660_v3  ;;  %v3726_v10 = vadd.f32 %v3725_v7, %v3724_v6  ;;  %v3663_v8 = vpop.f32.mrb[74].mxu1  ;;  %v3727_v37 = vpop.f32.mrb[74].mxu0 }
 0x18d   : > { %v3664_v17 = vpop.f32.mrb[75].mxu1  ;;  %v3728_v24 = vpop.f32.mrb[75].mxu0 }
 0x18e   : > { %v4939_v18 = vadd.f32 %v3662_v63, %v1915_v20  ;;  %v4942_v13 = vadd.f32 %v3726_v10, %v4835_v33  ;;  %v3665_v35 = vadd.f32 %v3664_v17, %v3663_v8  ;;  %v3729_v27 = vadd.f32 %v3728_v24, %v3727_v37 }
 0x18f   : > { %v1926_v33 = vadd.f32 %v4734_v52, %v4741_v54 }
 0x190   : > { %v4944_v22 = vadd.f32 %v3665_v35, %v1918_v9  ;;  %v4947_v28 = vadd.f32 %v3729_v27, %v4839_v53 }
 0x192   : > { %v3666_v42 = vpop.f32.mrb[76].mxu1  ;;  %v3730_v34 = vpop.f32.mrb[76].mxu0 }
 0x193   : > { %v3667_v40 = vpop.f32.mrb[77].mxu1  ;;  %v3731_v41 = vpop.f32.mrb[77].mxu0 }
 0x194   : > { %v3668_v4 = vadd.f32 %v3667_v40, %v3666_v42  ;;  %v3732_v38 = vadd.f32 %v3731_v41, %v3730_v34  ;;  %v3669_v51 = vpop.f32.mrb[78].mxu1  ;;  %v3733_v50 = vpop.f32.mrb[78].mxu0 }
 0x195   : > { %v3670_v43 = vpop.f32.mrb[79].mxu1  ;;  %v3734_v48 = vpop.f32.mrb[79].mxu0 }
 0x196   : > { %v4953_v45 = vadd.f32 %v3668_v4, %v1923_v36  ;;  %v4956_v53 = vadd.f32 %v3732_v38, %v4847_v58  ;;  %v3671_v61 = vadd.f32 %v3670_v43, %v3669_v51  ;;  %v3735_v11 = vadd.f32 %v3734_v48, %v3733_v50 }
 0x198   : > { %v4958_v56 = vadd.f32 %v3671_v61, %v1926_v33  ;;  %v4961_v44 = vadd.f32 %v3735_v11, %v4851_v1 }
 0x19a   : > { %v3736_v3 = vpop.f32.mrb[80].mxu0  ;;  %v3800_v6 = vpop.f32.mrb[80].mxu1 }
 0x19b   : > { %v3737_v16 = vpop.f32.mrb[81].mxu0  ;;  %v3801_v7 = vpop.f32.mrb[81].mxu1 }
 0x19c   : > { %v3738_v20 = vadd.f32 %v3737_v16, %v3736_v3  ;;  %v3802_v52 = vadd.f32 %v3801_v7, %v3800_v6  ;;  %v3739_v54 = vpop.f32.mrb[82].mxu0  ;;  %v3803_v63 = vpop.f32.mrb[82].mxu1 }
 0x19d   : > { %v3740_v10 = vpop.f32.mrb[83].mxu0  ;;  %v3804_v8 = vpop.f32.mrb[83].mxu1 }
 0x19e   : > { %v4964_v58 = vadd.f32 %v3738_v20, %v4856_v23  ;;  %v3741_v37 = vadd.f32 %v3740_v10, %v3739_v54  ;;  %v3805_v9 = vadd.f32 %v3804_v8, %v3803_v63  ;;  %v4967_v17 = vadd.f32 %v3802_v52, %v4859_v5 }
 0x1a0   : > { %v4970_v1 = vadd.f32 %v3741_v37, %v4861_v39  ;;  %v4973_v24 = vadd.f32 %v3805_v9, %v4864_v32 }
 0x1a2   : > { %v3742_v35 = vpop.f32.mrb[84].mxu0  ;;  %v3806_v27 = vpop.f32.mrb[84].mxu1 }
 0x1a3   : > { %v3743_v42 = vpop.f32.mrb[85].mxu0  ;;  %v3807_v34 = vpop.f32.mrb[85].mxu1 }
 0x1a4   : > { %v3744_v40 = vadd.f32 %v3743_v42, %v3742_v35  ;;  %v3808_v41 = vadd.f32 %v3807_v34, %v3806_v27  ;;  %v3745_v36 = vpop.f32.mrb[86].mxu0  ;;  %v3809_v23 = vpop.f32.mrb[86].mxu1 }
 0x1a5   : > { %v3746_v4 = vpop.f32.mrb[87].mxu0  ;;  %v3810_v38 = vpop.f32.mrb[87].mxu1 }
 0x1a6   : > { %v4976_v51 = vadd.f32 %v3744_v40, %v4869_v0  ;;  %v3747_v5 = vadd.f32 %v3746_v4, %v3745_v36  ;;  %v3811_v50 = vadd.f32 %v3810_v38, %v3809_v23  ;;  %v4979_v39 = vadd.f32 %v3808_v41, %v4872_v62 }
 0x1a8   : > { %v4982_v32 = vadd.f32 %v3747_v5, %v4874_v59  ;;  %v4985_v33 = vadd.f32 %v3811_v50, %v4877_v15 }
 0x1aa   : > { %v3748_v43 = vpop.f32.mrb[88].mxu0  ;;  %v3812_v48 = vpop.f32.mrb[88].mxu1 }
 0x1ab   : > { %v3749_v61 = vpop.f32.mrb[89].mxu0  ;;  %v3813_v11 = vpop.f32.mrb[89].mxu1 }
 0x1ac   : > { %v3750_v3 = vadd.f32 %v3749_v61, %v3748_v43  ;;  %v3814_v6 = vadd.f32 %v3813_v11, %v3812_v48  ;;  %v3751_v16 = vpop.f32.mrb[90].mxu0  ;;  %v3815_v0 = vpop.f32.mrb[90].mxu1 }
 0x1ad   : > { %v3752_v7 = vpop.f32.mrb[91].mxu0  ;;  %v3816_v20 = vpop.f32.mrb[91].mxu1 }
 0x1ae   : > { %v4988_v52 = vadd.f32 %v3750_v3, %v4883_v26  ;;  %v3753_v62 = vadd.f32 %v3752_v7, %v3751_v16  ;;  %v3817_v54 = vadd.f32 %v3816_v20, %v3815_v0  ;;  %v4991_v59 = vadd.f32 %v3814_v6, %v4886_v14 }
 0x1b0   : > { %v4994_v15 = vadd.f32 %v3753_v62, %v4888_v31  ;;  %v4997_v63 = vadd.f32 %v3817_v54, %v4891_v25 }
 0x1b2   : > { %v3754_v10 = vpop.f32.mrb[92].mxu0  ;;  %v3818_v8 = vpop.f32.mrb[92].mxu1 }
 0x1b3   : > { %v3755_v37 = vpop.f32.mrb[93].mxu0  ;;  %v3819_v9 = vpop.f32.mrb[93].mxu1 }
 0x1b4   : > { %v3756_v35 = vadd.f32 %v3755_v37, %v3754_v10  ;;  %v3820_v27 = vadd.f32 %v3819_v9, %v3818_v8  ;;  %v3757_v42 = vpop.f32.mrb[94].mxu0  ;;  %v3821_v26 = vpop.f32.mrb[94].mxu1 }
 0x1b5   : > { %v3758_v34 = vpop.f32.mrb[95].mxu0  ;;  %v3822_v40 = vpop.f32.mrb[95].mxu1 }
 0x1b6   : > { %v5000_v41 = vadd.f32 %v3756_v35, %v4897_v21  ;;  %v3759_v14 = vadd.f32 %v3758_v34, %v3757_v42  ;;  %v3823_v36 = vadd.f32 %v3822_v40, %v3821_v26  ;;  %v5003_v31 = vadd.f32 %v3820_v27, %v4900_v30 }
 0x1b8   : > { %v5006_v25 = vadd.f32 %v3759_v14, %v4902_v57  ;;  %v5009_v23 = vadd.f32 %v3823_v36, %v4905_v49 }
 0x1ba   : > { %v3760_v4 = vpop.f32.mrb[96].mxu0  ;;  %v3824_v38 = vpop.f32.mrb[96].mxu1 }
 0x1bb   : > { %v3761_v5 = vpop.f32.mrb[97].mxu0  ;;  %v3825_v50 = vpop.f32.mrb[97].mxu1 }
 0x1bc   : > { %v3762_v43 = vadd.f32 %v3761_v5, %v3760_v4  ;;  %v3826_v48 = vadd.f32 %v3825_v50, %v3824_v38  ;;  %v3763_v61 = vpop.f32.mrb[98].mxu0  ;;  %v3827_v21 = vpop.f32.mrb[98].mxu1 }
 0x1bd   : > { %v3764_v11 = vpop.f32.mrb[99].mxu0  ;;  %v3828_v3 = vpop.f32.mrb[99].mxu1 }
 0x1be   : > { %v5012_v6 = vadd.f32 %v3762_v43, %v4911_v19  ;;  %v3765_v30 = vadd.f32 %v3764_v11, %v3763_v61  ;;  %v3829_v16 = vadd.f32 %v3828_v3, %v3827_v21  ;;  %v5015_v57 = vadd.f32 %v3826_v48, %v4914_v46 }
 0x1c0   : > { %v5018_v49 = vadd.f32 %v3765_v30, %v4916_v29  ;;  %v5021_v0 = vadd.f32 %v3829_v16, %v4919_v60 }
 0x1c2   : > { %v3766_v7 = vpop.f32.mrb[100].mxu0  ;;  %v3830_v20 = vpop.f32.mrb[100].mxu1 }
 0x1c3   : > { %v3767_v62 = vpop.f32.mrb[101].mxu0  ;;  %v3831_v54 = vpop.f32.mrb[101].mxu1 }
 0x1c4   : > { %v3768_v10 = vadd.f32 %v3767_v62, %v3766_v7  ;;  %v3832_v8 = vadd.f32 %v3831_v54, %v3830_v20  ;;  %v3769_v37 = vpop.f32.mrb[102].mxu0  ;;  %v3833_v19 = vpop.f32.mrb[102].mxu1 }
 0x1c5   : > { %v3770_v9 = vpop.f32.mrb[103].mxu0  ;;  %v3834_v35 = vpop.f32.mrb[103].mxu1 }
 0x1c6   : > { %v5024_v27 = vadd.f32 %v3768_v10, %v4925_v47  ;;  %v3771_v46 = vadd.f32 %v3770_v9, %v3769_v37  ;;  %v3835_v42 = vadd.f32 %v3834_v35, %v3833_v19  ;;  %v5027_v29 = vadd.f32 %v3832_v8, %v4928_v55  ;;  %v3418_v8 = vld [vmem:[%s5053_s24 + $0x8] sm:$0xff]   ;;  %v3275_v19 = vld [vmem:[%s5053_s24] sm:$0xff]  }
 0x1c8   : > { %v5030_v60 = vadd.f32 %v3771_v46, %v4930_v2  ;;  %v5033_v26 = vadd.f32 %v3835_v42, %v4933_v12  ;;  %v3280_v46 = vunpack.c.l.bf16 %v3418_v8 }
 0x1ca   : > { %v3772_v34 = vpop.f32.mrb[104].mxu0  ;;  %v3836_v40 = vpop.f32.mrb[104].mxu1 }
 0x1cb   : > { %v3773_v14 = vpop.f32.mrb[105].mxu0  ;;  %v3837_v36 = vpop.f32.mrb[105].mxu1 }
 0x1cc   : > { %v3774_v4 = vadd.f32 %v3773_v14, %v3772_v34  ;;  %v3838_v38 = vadd.f32 %v3837_v36, %v3836_v40  ;;  %v3775_v47 = vpop.f32.mrb[106].mxu0  ;;  %v3839_v5 = vpop.f32.mrb[106].mxu1  ;;  %v3276_v40 = vunpack.c.l.bf16 %v3275_v19 }
 0x1cd   : > { %v3776_v50 = vpop.f32.mrb[107].mxu0  ;;  %v3840_v43 = vpop.f32.mrb[107].mxu1 }
 0x1ce   : > { %v5036_v55 = vadd.f32 %v3774_v4, %v4939_v18  ;;  %v3777_v2 = vadd.f32 %v3776_v50, %v3775_v47  ;;  %v3841_v48 = vadd.f32 %v3840_v43, %v3839_v5  ;;  %v5039_v12 = vadd.f32 %v3838_v38, %v4942_v13 }
 0x1cf   : > { %v3281_v4 = vunpack.c.h.bf16 %v3418_v8  ;;  %v3277_v5 = vunpack.c.h.bf16 %v3275_v19 }
 0x1d0   : > { %v5042_v61 = vadd.f32 %v3777_v2, %v4944_v22  ;;  %v5046_v21 = vadd.f32 %v3841_v48, %v4947_v28 }
 0x1d2   : > { %v3778_v11 = vpop.f32.mrb[108].mxu0  ;;  %v3842_v3 = vpop.f32.mrb[108].mxu1 }
 0x1d3   : > { %v3779_v30 = vpop.f32.mrb[109].mxu0  ;;  %v3843_v16 = vpop.f32.mrb[109].mxu1 }
 0x1d4   : > { %v3780_v18 = vadd.f32 %v3779_v30, %v3778_v11  ;;  %v3844_v13 = vadd.f32 %v3843_v16, %v3842_v3  ;;  %v3781_v22 = vpop.f32.mrb[110].mxu0  ;;  %v3845_v7 = vpop.f32.mrb[110].mxu1  ;;  %v3420_v3 = vld [vmem:[%s5053_s24 + $0x18] sm:$0xff]  }
 0x1d5   : > { %v3782_v20 = vpop.f32.mrb[111].mxu0  ;;  %v3846_v62 = vpop.f32.mrb[111].mxu1 }
 0x1d6   : > { %v5056_v28 = vadd.f32 %v3780_v18, %v4953_v45  ;;  %v3783_v54 = vadd.f32 %v3782_v20, %v3781_v22  ;;  %v3847_v10 = vadd.f32 %v3846_v62, %v3845_v7  ;;  %v5060_v37 = vadd.f32 %v3844_v13, %v4956_v53  ;;  %v3419_v18 = vld [vmem:[%s5053_s24 + $0x10] sm:$0xff]  }
 0x1d8   : > { %v5064_v9 = vadd.f32 %v3783_v54, %v4958_v56  ;;  %v5067_v35 = vadd.f32 %v3847_v10, %v4961_v44  ;;  %v3284_v54 = vunpack.c.l.bf16 %v3419_v18 }
 0x1da   : > { %v3848_v42 = vpop.f32.mrb[112].mxu1  ;;  %v3938_v34 = vpop.f32.mrb[112].mxu0 }
 0x1db   : > { %v2455_v45 = vadd.f32 %v3938_v34, %v4979_v39  ;;  %v3849_v14 = vpop.f32.mrb[113].mxu1  ;;  %v2446_v36 = vpop.f32.mrb[113].mxu0 }
 0x1dc   : > { %v3850_v53 = vadd.f32 %v3849_v14, %v3848_v42  ;;  %v2447_v38 = vadd.f32 %v2446_v36, %v4967_v17  ;;  %v3851_v47 = vpop.f32.mrb[114].mxu1  ;;  %v3939_v56 = vpop.f32.mrb[114].mxu0  ;;  %v3285_v36 = vunpack.c.h.bf16 %v3419_v18 }
 0x1dd   : > { %v2639_v50 = vadd.f32 %v3280_v46, %v2455_v45  ;;  %v2458_v44 = vadd.f32 %v3939_v56, %v4985_v33  ;;  %v3852_v43 = vpop.f32.mrb[115].mxu1  ;;  %v2449_v2 = vpop.f32.mrb[115].mxu0  ;;  %v3288_v33 = vunpack.c.l.bf16 %v3420_v3  ;;  %v3289_v46 = vunpack.c.h.bf16 %v3420_v3 }
 0x1de   : > { %v2637_v48 = vadd.f32 %v3276_v40, %v2447_v38  ;;  %v3853_v11 = vadd.f32 %v3852_v43, %v3851_v47  ;;  %v2450_v39 = vadd.f32 %v2449_v2, %v4973_v24  ;;  %v5075_v30 = vadd.f32 %v3850_v53, %v4964_v58  ;;  %v3421_v43 = vld [vmem:[%s5053_s24 + $0x20] sm:$0xff]  }
 0x1df   : > { %v2640_v16 = vadd.f32 %v3281_v4, %v2458_v44  ;;  %v2671_v22 = vmax.f32 %v2639_v50, 0.0  ;;  %v3422_v50 = vld [vmem:[%s5053_s24 + $0x28] sm:$0xff]  }
 0x1e0   : > { %v2638_v17 = vadd.f32 %v3277_v5, %v2450_v39  ;;  %v5079_v13 = vadd.f32 %v3853_v11, %v4970_v1  ;;  %v2669_v20 = vmax.f32 %v2637_v48, 0.0 }
 0x1e1   : > { %v2672_v7 = vmax.f32 %v2640_v16, 0.0 }
 0x1e2   : > { %v2670_v24 = vmax.f32 %v2638_v17, 0.0  ;;  %v3854_v58 = vpop.f32.mrb[116].mxu1  ;;  %v3942_v62 = vpop.f32.mrb[116].mxu0 }
 0x1e3   : > { %v3346_v10 = vpack.c.bf16 %v2672_v7, %v2671_v22  ;;  %v2471_v1 = vadd.f32 %v3942_v62, %v5003_v31  ;;  %v3855_v8 = vpop.f32.mrb[117].mxu1  ;;  %v2462_v19 = vpop.f32.mrb[117].mxu0  ;;  %v3292_v22 = vunpack.c.l.bf16 %v3421_v43 }
 0x1e4   : > { %v3341_v42 = vpack.c.bf16 %v2670_v24, %v2669_v20  ;;  %v3856_v34 = vadd.f32 %v3855_v8, %v3854_v58  ;;  %v2463_v40 = vadd.f32 %v2462_v19, %v4991_v59  ;;  %v3857_v45 = vpop.f32.mrb[118].mxu1  ;;  %v3943_v14 = vpop.f32.mrb[118].mxu0  ;;  %v3297_v20 = vunpack.c.h.bf16 %v3422_v50 }
 0x1e5   : > { %3433 = vst [vmem:[%s5086_s27 + $0x8] sm:$0xff] %v3346_v10   ;;  %v2643_v4 = vadd.f32 %v3288_v33, %v2471_v1  ;;  %v2474_v53 = vadd.f32 %v3943_v14, %v5009_v23  ;;  %v3858_v38 = vpop.f32.mrb[119].mxu1  ;;  %v2465_v47 = vpop.f32.mrb[119].mxu0  ;;  %v3296_v23 = vunpack.c.l.bf16 %v3422_v50  ;;  %v3293_v10 = vunpack.c.h.bf16 %v3421_v43  ;;  %v3423_v14 = vld [vmem:[%s5053_s24 + $0x30] sm:$0xff]  }
 0x1e6   : > { %3342 = vst [vmem:[%s5086_s27] sm:$0xff] %v3341_v42   ;;  %v2641_v31 = vadd.f32 %v3284_v54, %v2463_v40  ;;  %v3859_v56 = vadd.f32 %v3858_v38, %v3857_v45  ;;  %v2466_v5 = vadd.f32 %v2465_v47, %v4997_v63  ;;  %v5096_v44 = vadd.f32 %v3856_v34, %v4976_v51  ;;  %v3424_v40 = vld [vmem:[%s5053_s24 + $0x38] sm:$0xff]  }
 0x1e7   : > { %v2644_v59 = vadd.f32 %v3289_v46, %v2474_v53  ;;  %v2675_v11 = vmax.f32 %v2643_v4, 0.0  ;;  %v3300_v50 = vunpack.c.l.bf16 %v3423_v14 }
 0x1e8   : > { %v2642_v2 = vadd.f32 %v3285_v36, %v2466_v5  ;;  %v5100_v48 = vadd.f32 %v3859_v56, %v4982_v32  ;;  %v2673_v3 = vmax.f32 %v2641_v31, 0.0 }
 0x1e9   : > { %v2676_v39 = vmax.f32 %v2644_v59, 0.0 }
 0x1ea   : > { %v2674_v16 = vmax.f32 %v2642_v2, 0.0  ;;  %v3860_v18 = vpop.f32.mrb[120].mxu1  ;;  %v3946_v17 = vpop.f32.mrb[120].mxu0  ;;  %v3305_v2 = vunpack.c.h.bf16 %v3424_v40 }
 0x1eb   : > { %v3356_v63 = vpack.c.bf16 %v2676_v39, %v2675_v11  ;;  %v2487_v51 = vadd.f32 %v3946_v17, %v5027_v29  ;;  %v3861_v7 = vpop.f32.mrb[121].mxu1  ;;  %v2478_v33 = vpop.f32.mrb[121].mxu0 }
 0x1ec   : > { %v3351_v24 = vpack.c.bf16 %v2674_v16, %v2673_v3  ;;  %v3862_v32 = vadd.f32 %v3861_v7, %v3860_v18  ;;  %v2479_v58 = vadd.f32 %v2478_v33, %v5015_v57  ;;  %v3863_v62 = vpop.f32.mrb[122].mxu1  ;;  %v3947_v54 = vpop.f32.mrb[122].mxu0  ;;  %v3301_v16 = vunpack.c.h.bf16 %v3423_v14  ;;  %v3426_v33 = vld [vmem:[%s5053_s24 + $0x48] sm:$0xff]  }
 0x1ed   : > { %3435 = vst [vmem:[%s5086_s27 + $0x18] sm:$0xff] %v3356_v63   ;;  %v2647_v1 = vadd.f32 %v3296_v23, %v2487_v51  ;;  %v2490_v8 = vadd.f32 %v3947_v54, %v5033_v26  ;;  %v3864_v19 = vpop.f32.mrb[123].mxu1  ;;  %v2481_v46 = vpop.f32.mrb[123].mxu0  ;;  %v3304_v26 = vunpack.c.l.bf16 %v3424_v40 }
 0x1ee   : > { %3434 = vst [vmem:[%s5086_s27 + $0x10] sm:$0xff] %v3351_v24   ;;  %v2645_v29 = vadd.f32 %v3292_v22, %v2479_v58  ;;  %v3865_v42 = vadd.f32 %v3864_v19, %v3863_v62  ;;  %v2482_v34 = vadd.f32 %v2481_v46, %v5021_v0  ;;  %v5110_v45 = vadd.f32 %v3862_v32, %v4988_v52 }
 0x1ef   : > { %v2648_v57 = vadd.f32 %v3297_v20, %v2490_v8  ;;  %v2679_v53 = vmax.f32 %v2647_v1, 0.0 }
 0x1f0   : > { %v2646_v36 = vadd.f32 %v3293_v10, %v2482_v34  ;;  %v5114_v4 = vadd.f32 %v3865_v42, %v4994_v15  ;;  %v2677_v47 = vmax.f32 %v2645_v29, 0.0  ;;  %v3312_v10 = vunpack.c.l.bf16 %v3426_v33 }
 0x1f1   : > { %v2680_v38 = vmax.f32 %v2648_v57, 0.0  ;;  %v3313_v34 = vunpack.c.h.bf16 %v3426_v33 }
 0x1f2   : > { %v2678_v31 = vmax.f32 %v2646_v36, 0.0  ;;  %v3866_v56 = vpop.f32.mrb[124].mxu1  ;;  %v3950_v5 = vpop.f32.mrb[124].mxu0 }
 0x1f3   : > { %v3366_v0 = vpack.c.bf16 %v2680_v38, %v2679_v53  ;;  %v2503_v52 = vadd.f32 %v3950_v5, %v5060_v37  ;;  %v3867_v59 = vpop.f32.mrb[125].mxu1  ;;  %v2494_v43 = vpop.f32.mrb[125].mxu0 }
 0x1f4   : > { %v3361_v11 = vpack.c.bf16 %v2678_v31, %v2677_v47  ;;  %v3868_v15 = vadd.f32 %v3867_v59, %v3866_v56  ;;  %v2495_v39 = vadd.f32 %v2494_v43, %v5039_v12  ;;  %v3869_v23 = vpop.f32.mrb[126].mxu1  ;;  %v3951_v3 = vpop.f32.mrb[126].mxu0  ;;  %v3425_v12 = vld [vmem:[%s5053_s24 + $0x40] sm:$0xff]  }
 0x1f5   : > { %3437 = vst [vmem:[%s5086_s27 + $0x28] sm:$0xff] %v3366_v0   ;;  %v2651_v18 = vadd.f32 %v3304_v26, %v2503_v52  ;;  %v2506_v17 = vadd.f32 %v3951_v3, %v5067_v35  ;;  %v3870_v22 = vpop.f32.mrb[127].mxu1  ;;  %v2497_v63 = vpop.f32.mrb[127].mxu0  ;;  %v3308_v46 = vunpack.c.l.bf16 %v3425_v12  ;;  %v3309_v53 = vunpack.c.h.bf16 %v3425_v12 }
 0x1f6   : > { %3436 = vst [vmem:[%s5086_s27 + $0x20] sm:$0xff] %v3361_v11   ;;  %v2649_v37 = vadd.f32 %v3300_v50, %v2495_v39  ;;  %v3871_v51 = vadd.f32 %v3870_v22, %v3869_v23  ;;  %v2498_v7 = vadd.f32 %v2497_v63, %v5046_v21  ;;  %v2374_v20 = vadd.f32 %v3868_v15, %v5000_v41  ;;  %v3428_v50 = vld [vmem:[%s5053_s24 + $0x58] sm:$0xff]  }
 0x1f7   : > { %v2652_v24 = vadd.f32 %v3305_v2, %v2506_v17  ;;  %v2683_v62 = vmax.f32 %v2651_v18, 0.0  ;;  %v3320_v15 = vunpack.c.l.bf16 %v3428_v50 }
 0x1f8   : > { %v2650_v32 = vadd.f32 %v3301_v16, %v2498_v7  ;;  %v2377_v58 = vadd.f32 %v3871_v51, %v5006_v25  ;;  %v2681_v1 = vmax.f32 %v2649_v37, 0.0 }
 0x1f9   : > { %v2684_v54 = vmax.f32 %v2652_v24, 0.0 }
 0x1fa   : > { %v2682_v35 = vmax.f32 %v2650_v32, 0.0  ;;  %v3872_v8 = vpop.f32.mrb[128].mxu1  ;;  %v3954_v19 = vpop.f32.mrb[128].mxu0 }
 0x1fb   : > { %v3376_v29 = vpack.c.bf16 %v2684_v54, %v2683_v62  ;;  %v2519_v21 = vadd.f32 %v3954_v19, %v5096_v44  ;;  %v3873_v42 = vpop.f32.mrb[129].mxu1  ;;  %v2510_v41 = vpop.f32.mrb[129].mxu0  ;;  %v3429_v19 = vld [vmem:[%s5053_s24 + $0x60] sm:$0xff]  }
 0x1fc   : > { %v3371_v40 = vpack.c.bf16 %v2682_v35, %v2681_v1  ;;  %v3874_v57 = vadd.f32 %v3873_v42, %v3872_v8  ;;  %v2511_v25 = vadd.f32 %v2510_v41, %v5075_v30  ;;  %v3875_v14 = vpop.f32.mrb[130].mxu1  ;;  %v3955_v36 = vpop.f32.mrb[130].mxu0  ;;  %v3427_v30 = vld [vmem:[%s5053_s24 + $0x50] sm:$0xff]   ;;  %v3430_v35 = vld [vmem:[%s5053_s24 + $0x68] sm:$0xff]  }
 0x1fd   : > { %3439 = vst [vmem:[%s5086_s27 + $0x38] sm:$0xff] %v3376_v29   ;;  %v2655_v38 = vadd.f32 %v3312_v10, %v2519_v21  ;;  %v2522_v26 = vadd.f32 %v3955_v36, %v5100_v48  ;;  %v3876_v47 = vpop.f32.mrb[131].mxu1  ;;  %v2513_v31 = vpop.f32.mrb[131].mxu0  ;;  %v3316_v16 = vunpack.c.l.bf16 %v3427_v30  ;;  %v3317_v33 = vunpack.c.h.bf16 %v3427_v30 }
 0x1fe   : > { %3438 = vst [vmem:[%s5086_s27 + $0x30] sm:$0xff] %v3371_v40   ;;  %v2653_v44 = vadd.f32 %v3308_v46, %v2511_v25  ;;  %v3877_v56 = vadd.f32 %v3876_v47, %v3875_v14  ;;  %v2514_v5 = vadd.f32 %v2513_v31, %v5079_v13  ;;  %v2382_v0 = vadd.f32 %v3874_v57, %v5012_v6 }
 0x1ff   : > { %v2656_v52 = vadd.f32 %v3313_v34, %v2522_v26  ;;  %v2687_v2 = vmax.f32 %v2655_v38, 0.0  ;;  %v3321_v6 = vunpack.c.h.bf16 %v3428_v50  ;;  %v3328_v42 = vunpack.c.l.bf16 %v3430_v35 }
 0x200   : > { %v2654_v59 = vadd.f32 %v3309_v53, %v2514_v5  ;;  %v2385_v43 = vadd.f32 %v3877_v56, %v5018_v49  ;;  %v2685_v39 = vmax.f32 %v2653_v44, 0.0  ;;  %v3324_v57 = vunpack.c.l.bf16 %v3429_v19 }
 0x201   : > { %v2688_v11 = vmax.f32 %v2656_v52, 0.0  ;;  %v3329_v36 = vunpack.c.h.bf16 %v3430_v35  ;;  %v3325_v31 = vunpack.c.h.bf16 %v3429_v19 }
 0x202   : > { %v2686_v48 = vmax.f32 %v2654_v59, 0.0  ;;  %v3878_v23 = vpop.f32.mrb[132].mxu1  ;;  %v3958_v3 = vpop.f32.mrb[132].mxu0 }
 0x203   : > { %v3386_v18 = vpack.c.bf16 %v2688_v11, %v2687_v2  ;;  %v2535_v13 = vadd.f32 %v3958_v3, %v2374_v20  ;;  %v3879_v17 = vpop.f32.mrb[133].mxu1  ;;  %v2526_v22 = vpop.f32.mrb[133].mxu0 }
 0x204   : > { %v3381_v63 = vpack.c.bf16 %v2686_v48, %v2685_v39  ;;  %v3880_v37 = vadd.f32 %v3879_v17, %v3878_v23  ;;  %v2527_v49 = vadd.f32 %v2526_v22, %v5110_v45  ;;  %v3881_v51 = vpop.f32.mrb[134].mxu1  ;;  %v3959_v7 = vpop.f32.mrb[134].mxu0  ;;  %v3432_v17 = vld [vmem:[%s5053_s24 + $0x78] sm:$0xff]  }
 0x205   : > { %3441 = vst [vmem:[%s5086_s27 + $0x48] sm:$0xff] %v3386_v18   ;;  %v2659_v24 = vadd.f32 %v3320_v15, %v2535_v13  ;;  %v2538_v12 = vadd.f32 %v3959_v7, %v2377_v58  ;;  %v3882_v32 = vpop.f32.mrb[135].mxu1  ;;  %v2529_v62 = vpop.f32.mrb[135].mxu0  ;;  %v3431_v15 = vld [vmem:[%s5053_s24 + $0x70] sm:$0xff]   ;;  %v3337_v35 = vunpack.c.h.bf16 %v3432_v17 }
 0x206   : > { %3440 = vst [vmem:[%s5086_s27 + $0x40] sm:$0xff] %v3381_v63   ;;  %v2657_v54 = vadd.f32 %v3316_v16, %v2527_v49  ;;  %v3883_v20 = vadd.f32 %v3882_v32, %v3881_v51  ;;  %v2530_v10 = vadd.f32 %v2529_v62, %v5114_v4  ;;  %v2390_v1 = vadd.f32 %v3880_v37, %v5024_v27 }
 0x207   : > { %v2660_v8 = vadd.f32 %v3321_v6, %v2538_v12  ;;  %v2691_v29 = vmax.f32 %v2659_v24, 0.0  ;;  %v3332_v22 = vunpack.c.l.bf16 %v3431_v15 }
 0x208   : > { %v2658_v45 = vadd.f32 %v3317_v33, %v2530_v10  ;;  %v2393_v46 = vadd.f32 %v3883_v20, %v5030_v60  ;;  %v2689_v41 = vmax.f32 %v2657_v54, 0.0  ;;  %v3333_v33 = vunpack.c.h.bf16 %v3431_v15 }
 0x209   : > { %v2692_v21 = vmax.f32 %v2660_v8, 0.0 }
 0x20a   : > { %v2690_v58 = vmax.f32 %v2658_v45, 0.0  ;;  %v3884_v34 = vpop.f32.mrb[136].mxu1  ;;  %v3962_v40 = vpop.f32.mrb[136].mxu0 }
 0x20b   : > { %v3396_v25 = vpack.c.bf16 %v2692_v21, %v2691_v29  ;;  %v2551_v4 = vadd.f32 %v3962_v40, %v2390_v1  ;;  %v3885_v14 = vpop.f32.mrb[137].mxu1  ;;  %v2542_v27 = vpop.f32.mrb[137].mxu0 }
 0x20c   : > { %v3391_v53 = vpack.c.bf16 %v2690_v58, %v2689_v41  ;;  %v3886_v38 = vadd.f32 %v3885_v14, %v3884_v34  ;;  %v2543_v26 = vadd.f32 %v2542_v27, %v2382_v0  ;;  %v3887_v60 = vpop.f32.mrb[138].mxu1  ;;  %v3963_v47 = vpop.f32.mrb[138].mxu0 }
 0x20d   : > { %3443 = vst [vmem:[%s5086_s27 + $0x58] sm:$0xff] %v3396_v25   ;;  %v2663_v44 = vadd.f32 %v3328_v42, %v2551_v4  ;;  %v2554_v56 = vadd.f32 %v3963_v47, %v2393_v46  ;;  %v3888_v5 = vpop.f32.mrb[139].mxu1  ;;  %v2545_v50 = vpop.f32.mrb[139].mxu0 }
 0x20e   : > { %3442 = vst [vmem:[%s5086_s27 + $0x50] sm:$0xff] %v3391_v53   ;;  %v2661_v52 = vadd.f32 %v3324_v57, %v2543_v26  ;;  %v3889_v30 = vadd.f32 %v3888_v5, %v3887_v60  ;;  %v2546_v59 = vadd.f32 %v2545_v50, %v2385_v43  ;;  %v2398_v2 = vadd.f32 %v3886_v38, %v5036_v55 }
 0x20f   : > { %v2664_v11 = vadd.f32 %v3329_v36, %v2554_v56  ;;  %v2695_v48 = vmax.f32 %v2663_v44, 0.0 }
 0x210   : > { %v2662_v39 = vadd.f32 %v3325_v31, %v2546_v59  ;;  %v2401_v0 = vadd.f32 %v3889_v30, %v5042_v61  ;;  %v2693_v3 = vmax.f32 %v2661_v52, 0.0  ;;  %v3336_v61 = vunpack.c.l.bf16 %v3432_v17 }
 0x211   : > { %v2696_v23 = vmax.f32 %v2664_v11, 0.0 }
 0x212   : > { %v2694_v16 = vmax.f32 %v2662_v39, 0.0  ;;  %v3890_v18 = vpop.f32.mrb[140].mxu1  ;;  %v3966_v13 = vpop.f32.mrb[140].mxu0 }
 0x213   : > { %v3406_v6 = vpack.c.bf16 %v2696_v23, %v2695_v48  ;;  %v3891_v63 = vpop.f32.mrb[141].mxu1  ;;  %v2558_v43 = vpop.f32.mrb[141].mxu0 }
 0x214   : > { %v3401_v37 = vpack.c.bf16 %v2694_v16, %v2693_v3  ;;  %v3892_v55 = vadd.f32 %v3891_v63, %v3890_v18  ;;  %v2559_v49 = vadd.f32 %v2558_v43, %v2398_v2  ;;  %v3893_v51 = vpop.f32.mrb[142].mxu1  ;;  %v3967_v7 = vpop.f32.mrb[142].mxu0 }
 0x215   : > { %3445 = vst [vmem:[%s5086_s27 + $0x68] sm:$0xff] %v3406_v6   ;;  %v3894_v24 = vpop.f32.mrb[143].mxu1  ;;  %v2561_v12 = vpop.f32.mrb[143].mxu0 }
 0x216   : > { %3444 = vst [vmem:[%s5086_s27 + $0x60] sm:$0xff] %v3401_v37   ;;  %v2406_v32 = vadd.f32 %v3892_v55, %v5056_v28  ;;  %v2665_v62 = vadd.f32 %v3332_v22, %v2559_v49  ;;  %v3895_v54 = vadd.f32 %v3894_v24, %v3893_v51  ;;  %v2562_v20 = vadd.f32 %v2561_v12, %v2401_v0 }
 0x218   : > { %v2567_v10 = vadd.f32 %v3966_v13, %v2406_v32  ;;  %v2409_v1 = vadd.f32 %v3895_v54, %v5064_v9  ;;  %v2666_v8 = vadd.f32 %v3333_v33, %v2562_v20  ;;  %v2697_v45 = vmax.f32 %v2665_v62, 0.0 }
 0x21a   : > { %v2667_v19 = vadd.f32 %v3336_v61, %v2567_v10  ;;  %v2570_v46 = vadd.f32 %v3967_v7, %v2409_v1  ;;  %v2698_v29 = vmax.f32 %v2666_v8, 0.0 }
 0x21c   : > { %v2668_v21 = vadd.f32 %v3337_v35, %v2570_v46  ;;  %v3411_v42 = vpack.c.bf16 %v2698_v29, %v2697_v45  ;;  %v2699_v41 = vmax.f32 %v2667_v19, 0.0 }
 0x21e   : > { %v2700_v58 = vmax.f32 %v2668_v21, 0.0  ;;  %3446 = vst [vmem:[%s5086_s27 + $0x70] sm:$0xff] %v3411_v42  }
 0x220   : > { %v3416_v28 = vpack.c.bf16 %v2700_v58, %v2699_v41 }
 0x222   : > { %3447 = vst [vmem:[%s5086_s27 + $0x78] sm:$0xff] %v3416_v28  }
 0x223 PF: > { %s14_s17 = sadd.s32 1, %s4311_s17   ;;  %s5170_s15 = smov %s4307_s16 }
 0x224   : > { %p11_p5 = scmp.ge.s32.totalorder %s14_s17, 4   ;;  %s5171_s16 = smov %s5173_s18 }
 0x226   :  { %13 = sbr.rel (!%p11_p5) target bundleno = 2 (0x2), region = 75 }

// kernel: pixel_encoder_forward.20
= control target key start
LH: loop header
LB: loop body
LE: loop exit
PB: predicated region body
PF: predicated region fallthrough
CT: control target
= control target key end

     0   :  { %s2077_s12 = smov 0   ;;  %s2079_s13 = smov 0   ;;  %s2374_s0 = inlined_call_operand.vmem [shape: bf16[128,1152], index: 0, kind: input, shape index: {}]   ;;  %s2375_s1 = inlined_call_operand.vmem [shape: bf16[1152,128], index: 1, kind: input, shape index: {}]   ;;  %s2376_s2 = inlined_call_operand.vmem [shape: f32[1,128], index: 2, kind: input, shape index: {}]   ;;  %s2377_s3 = inlined_call_operand.vmem [shape: bf16[128,128], index: 3, kind: output, shape index: {}]  }
   0x1   :  { %s2081_s14 = smov 0  }
   0x2 LB: > { %s25_s15 = sadd.s32 1, %s2051_s13  ;;  %p1517_p0 = scmp.ge.s32.totalorder %s2055_s14, 1  ;;  %s2055_s14 = sphi %s2081_s14, %s13_s14   ;;  %s2051_s13 = sphi %s2079_s13, %s2379_s13   ;;  %s2047_s12 = sphi %s2077_s12, %s2378_s12  }
   0x3   : > { %p27_p1 = scmp.ge.s32.totalorder %s25_s15, 2  ;;  %p170_p2 = scmp.lt.s32.totalorder %s2055_s14, 3 }
   0x5   : > { %s2381_s15 = smov (%p27_p1, %s25_s15), 0  ;;  %p171_p3 = pnand %p1517_p0, %p170_p2 }
   0x6   : > { %v1909_v0 = vld [vmem:[%s2375_s1 + $0x40] sm:$0xff] (!%p171_p3)   ;;  %v1913_v4 = vld [vmem:[%s2375_s1 + $0x48] sm:$0xff] (!%p171_p3)   ;;  %v1917_v8 = vld [vmem:[%s2375_s1 + $0x50] sm:$0xff] (!%p171_p3)   ;;  %s1518_s23 = sshll.u32 (!%p171_p3), %s2047_s12, 3 }
   0x7   : > { %174 = sbr.rel (%p171_p3) target bundleno = 328 (0x148), region = 32  ;;  %v1910_v1 = vld [vmem:[%s2375_s1 + $0xc0] sm:$0xff] (!%p171_p3)   ;;  %1672 = vmatprep.subr.bf16.mxu0 (!%p171_p3), %v1909_v0  ;;  %v1914_v5 = vld [vmem:[%s2375_s1 + $0xc8] sm:$0xff] (!%p171_p3)   ;;  %v1918_v9 = vld [vmem:[%s2375_s1 + $0xd0] sm:$0xff] (!%p171_p3)   ;;  %p206_p4 = scmp.lt.s32.totalorder (!%p171_p3), %s1518_s23, 15 }
   0x8   : > { %v1911_v2 = vld [vmem:[%s2375_s1] sm:$0xff] (!%p171_p3)   ;;  %1712 = vmatprep.subr.bf16.mxu1 (!%p171_p3), %v1910_v1  ;;  %v1915_v6 = vld [vmem:[%s2375_s1 + $0x8] sm:$0xff] (!%p171_p3)   ;;  %v1919_v10 = vld [vmem:[%s2375_s1 + $0x10] sm:$0xff] (!%p171_p3)  }
   0x9   : > { %v1912_v3 = vld [vmem:[%s2375_s1 + $0x80] sm:$0xff] (!%p171_p3)   ;;  %1673 = vmatpush3.bf16.msra.mxu0 (!%p171_p3), %v1911_v2  ;;  %v1916_v7 = vld [vmem:[%s2375_s1 + $0x88] sm:$0xff] (!%p171_p3)   ;;  %v1920_v11 = vld [vmem:[%s2375_s1 + $0x90] sm:$0xff] (!%p171_p3)  }
   0xa   : > { %1713 = vmatpush3.bf16.msra.mxu1 (!%p171_p3), %v1912_v3  ;;  %1674 = vmatprep.subr.bf16.mxu0 (!%p171_p3), %v1913_v4  ;;  %v1921_v12 = vld [vmem:[%s2375_s1 + $0x58] sm:$0xff] (!%p171_p3)   ;;  %v1925_v16 = vld [vmem:[%s2375_s1 + $0x60] sm:$0xff] (!%p171_p3)   ;;  %v1929_v20 = vld [vmem:[%s2375_s1 + $0x68] sm:$0xff] (!%p171_p3)  }
   0xb   : > { %1714 = vmatprep.subr.bf16.mxu1 (!%p171_p3), %v1914_v5  ;;  %v1922_v13 = vld [vmem:[%s2375_s1 + $0xd8] sm:$0xff] (!%p171_p3)   ;;  %v1926_v17 = vld [vmem:[%s2375_s1 + $0xe0] sm:$0xff] (!%p171_p3)   ;;  %v1930_v21 = vld [vmem:[%s2375_s1 + $0xe8] sm:$0xff] (!%p171_p3)  }
   0xc   : > { %v1923_v14 = vld [vmem:[%s2375_s1 + $0x18] sm:$0xff] (!%p171_p3)   ;;  %v1927_v18 = vld [vmem:[%s2375_s1 + $0x20] sm:$0xff] (!%p171_p3)   ;;  %v1931_v22 = vld [vmem:[%s2375_s1 + $0x28] sm:$0xff] (!%p171_p3)  }
   0xd   : > { %1675 = vmatpush3.bf16.msra.mxu0 (!%p171_p3), %v1915_v6  ;;  %v1924_v15 = vld [vmem:[%s2375_s1 + $0x98] sm:$0xff] (!%p171_p3)   ;;  %v1928_v19 = vld [vmem:[%s2375_s1 + $0xa0] sm:$0xff] (!%p171_p3)   ;;  %v1932_v23 = vld [vmem:[%s2375_s1 + $0xa8] sm:$0xff] (!%p171_p3)  }
   0xe   : > { %1715 = vmatpush3.bf16.msra.mxu1 %v1916_v7  ;;  %1676 = vmatprep.subr.bf16.mxu0 %v1917_v8  ;;  %s2383_s23 = smov (!%p206_p4, %s1518_s23), 15  ;;  %v1933_v24 = vld [vmem:[%s2375_s1 + $0x70] sm:$0xff]   ;;  %v1937_v28 = vld [vmem:[%s2375_s1 + $0x78] sm:$0xff]   ;;  %v1947_v36 = vld [vmem:[%s2375_s1 + $0x140] sm:$0xff]  }
   0xf   : > { %1716 = vmatprep.subr.bf16.mxu1 %v1918_v9  ;;  %v1934_v25 = vld [vmem:[%s2375_s1 + $0xf0] sm:$0xff]   ;;  %s1884_s22 = smul.u32 36, %s2383_s23  ;;  %v1938_v29 = vld [vmem:[%s2375_s1 + $0xf8] sm:$0xff]   ;;  %v1948_v37 = vld [vmem:[%s2375_s1 + $0x1c0] sm:$0xff]  }
  0x10   : > { %v1935_v26 = vld [vmem:[%s2375_s1 + $0x30] sm:$0xff]   ;;  %v1939_v30 = vld [vmem:[%s2375_s1 + $0x38] sm:$0xff]   ;;  %v1949_v38 = vld [vmem:[%s2375_s1 + $0x100] sm:$0xff]  }
  0x11   : > { %1677 = vmatpush3.bf16.msra.mxu0 %v1919_v10  ;;  %v1936_v27 = vld [vmem:[%s2375_s1 + $0xb0] sm:$0xff]   ;;  %s2194_s6 = scalar_lea.vmem %s2374_s0, %s1884_s22  ;;  %v1940_v31 = vld [vmem:[%s2375_s1 + $0xb8] sm:$0xff]   ;;  %v1950_v39 = vld [vmem:[%s2375_s1 + $0x180] sm:$0xff]  }
  0x12   : > { %1717 = vmatpush3.bf16.msra.mxu1 %v1920_v11  ;;  %1678 = vmatprep.subr.bf16.mxu0 %v1921_v12  ;;  %v1941_v32 = vld [vmem:[%s2194_s6] ss:$36 sps:$4 sm:$0xff]   ;;  %v1944_v34 = vld [vmem:[%s2194_s6 + $0x8] ss:$36 sps:$4 sm:$0xff]   ;;  %v1957_v45 = vld [vmem:[%s2194_s6 + $0x54] ss:$36 sps:$4 sm:$0xff]  }
  0x13   : > { %1718 = vmatprep.subr.bf16.mxu1 %v1922_v13  ;;  %v1943_v33 = vld [vmem:[%s2194_s6 + $0x4] ss:$36 sps:$4 sm:$0xff]   ;;  %v1946_v35 = vld [vmem:[%s2194_s6 + $0xc] ss:$36 sps:$4 sm:$0xff]   ;;  %v1965_v52 = vld [vmem:[%s2375_s1 + $0x158] sm:$0xff]  }
  0x14   : > { %1068 = vmatprep.mubr.bf16.mxu0 %v1943_v33  ;;  %1133 = vmatprep.mubr.bf16.mxu1 %v1946_v35  ;;  %v1951_v40 = vld [vmem:[%s2375_s1 + $0x148] sm:$0xff]   ;;  %v1960_v47 = vld [vmem:[%s2194_s6 + $0x50] ss:$36 sps:$4 sm:$0xff]   ;;  %v1966_v53 = vld [vmem:[%s2375_s1 + $0x1d8] sm:$0xff]  }
  0x15   : > { %1679 = vmatpush3.bf16.msra.mxu0 %v1923_v14  ;;  %v1952_v41 = vld [vmem:[%s2375_s1 + $0x1c8] sm:$0xff]   ;;  %v1961_v48 = vld [vmem:[%s2375_s1 + $0x150] sm:$0xff]   ;;  %v1967_v54 = vld [vmem:[%s2375_s1 + $0x118] sm:$0xff]  }
  0x16   : > { %1719 = vmatpush3.bf16.msra.mxu1 %v1924_v15  ;;  %1680 = vmatprep.subr.bf16.mxu0 %v1925_v16  ;;  %v1953_v42 = vld [vmem:[%s2375_s1 + $0x108] sm:$0xff]   ;;  %v1962_v49 = vld [vmem:[%s2375_s1 + $0x1d0] sm:$0xff]   ;;  %v1968_v55 = vld [vmem:[%s2375_s1 + $0x198] sm:$0xff]  }
  0x17   : > { %1720 = vmatprep.subr.bf16.mxu1 %v1926_v17  ;;  %v1954_v43 = vld [vmem:[%s2375_s1 + $0x188] sm:$0xff]   ;;  %v1963_v50 = vld [vmem:[%s2375_s1 + $0x110] sm:$0xff]   ;;  %v1971_v57 = vld [vmem:[%s2194_s6 + $0x9c] ss:$36 sps:$4 sm:$0xff]  }
  0x18   : > { %v1955_v44 = vld [vmem:[%s2194_s6 + $0x4c] ss:$36 sps:$4 sm:$0xff]   ;;  %v1969_v56 = vld [vmem:[%s2194_s6 + $0x94] ss:$36 sps:$4 sm:$0xff]   ;;  %v1975_v60 = vld [vmem:[%s2375_s1 + $0x160] sm:$0xff]  }
  0x19   : > { %1681 = vmatpush3.bf16.msra.mxu0 %v1927_v18  ;;  %v1959_v46 = vld [vmem:[%s2194_s6 + $0x48] ss:$36 sps:$4 sm:$0xff]   ;;  %v1964_v51 = vld [vmem:[%s2375_s1 + $0x190] sm:$0xff]   ;;  %v1974_v59 = vld [vmem:[%s2194_s6 + $0x98] ss:$36 sps:$4 sm:$0xff]  }
  0x1a   : > { %1721 = vmatpush3.bf16.msra.mxu1 %v1928_v19  ;;  %1682 = vmatprep.subr.bf16.mxu0 %v1929_v20  ;;  %v1973_v58 = vld [vmem:[%s2194_s6 + $0x90] ss:$36 sps:$4 sm:$0xff]   ;;  %v1976_v61 = vld [vmem:[%s2375_s1 + $0x1e0] sm:$0xff]   ;;  %v1979_v0 = vld [vmem:[%s2375_s1 + $0x168] sm:$0xff]  }
  0x1b   : > { %1722 = vmatprep.subr.bf16.mxu1 %v1930_v21  ;;  %v1977_v62 = vld [vmem:[%s2375_s1 + $0x120] sm:$0xff]   ;;  %v1980_v1 = vld [vmem:[%s2375_s1 + $0x1e8] sm:$0xff]   ;;  %v1987_v6 = vld [vmem:[%s2194_s6 + $0xd8] ss:$36 sps:$4 sm:$0xff]  }
  0x1c   : > { %v1978_v63 = vld [vmem:[%s2375_s1 + $0x1a0] sm:$0xff]   ;;  %v1981_v2 = vld [vmem:[%s2375_s1 + $0x128] sm:$0xff]   ;;  %v1989_v8 = vld [vmem:[%s2375_s1 + $0x170] sm:$0xff]  }
  0x1d   : > { %1683 = vmatpush3.bf16.msra.mxu0 %v1931_v22  ;;  %v1982_v3 = vld [vmem:[%s2375_s1 + $0x1a8] sm:$0xff]   ;;  %v1983_v4 = vld [vmem:[%s2194_s6 + $0xdc] ss:$36 sps:$4 sm:$0xff]   ;;  %v1990_v9 = vld [vmem:[%s2375_s1 + $0x1f0] sm:$0xff]  }
  0x1e   : > { %1723 = vmatpush3.bf16.msra.mxu1 %v1932_v23  ;;  %1684 = vmatprep.subr.bf16.mxu0 %v1933_v24  ;;  %v1985_v5 = vld [vmem:[%s2194_s6 + $0xe4] ss:$36 sps:$4 sm:$0xff]   ;;  %v1991_v10 = vld [vmem:[%s2375_s1 + $0x130] sm:$0xff]   ;;  %v1993_v12 = vld [vmem:[%s2375_s1 + $0x178] sm:$0xff]  }
  0x1f   : > { %1724 = vmatprep.subr.bf16.mxu1 %v1934_v25  ;;  %v1988_v7 = vld [vmem:[%s2194_s6 + $0xe0] ss:$36 sps:$4 sm:$0xff]   ;;  %v1992_v11 = vld [vmem:[%s2375_s1 + $0x1b0] sm:$0xff]   ;;  %v1994_v13 = vld [vmem:[%s2375_s1 + $0x1f8] sm:$0xff]  }
  0x20   : > { %v1995_v14 = vld [vmem:[%s2375_s1 + $0x138] sm:$0xff]   ;;  %v1997_v16 = vld [vmem:[%s2194_s6 + $0x10] ss:$36 sps:$4 sm:$0xff]   ;;  %v2003_v20 = vld [vmem:[%s2375_s1 + $0x200] sm:$0xff]  }
  0x21   : > { %1685 = vmatpush3.bf16.msra.mxu0 %v1935_v26  ;;  %v1996_v15 = vld [vmem:[%s2375_s1 + $0x1b8] sm:$0xff]   ;;  %v2004_v21 = vld [vmem:[%s2375_s1 + $0x208] sm:$0xff]   ;;  %v2010_v25 = vld [vmem:[%s2194_s6 + $0x60] ss:$36 sps:$4 sm:$0xff]  }
  0x22   : > { %1725 = vmatpush3.bf16.msra.mxu1 %v1936_v27  ;;  %1686 = vmatprep.subr.bf16.mxu0 %v1937_v28  ;;  %v1999_v17 = vld [vmem:[%s2194_s6 + $0x14] ss:$36 sps:$4 sm:$0xff]   ;;  %v2002_v19 = vld [vmem:[%s2194_s6 + $0x1c] ss:$36 sps:$4 sm:$0xff]   ;;  %v2007_v23 = vld [vmem:[%s2194_s6 + $0x64] ss:$36 sps:$4 sm:$0xff]  }
  0x23   : > { %1726 = vmatprep.subr.bf16.mxu1 %v1938_v29  ;;  %v2000_v18 = vld [vmem:[%s2194_s6 + $0x18] ss:$36 sps:$4 sm:$0xff]   ;;  %v2011_v26 = vld [vmem:[%s2375_s1 + $0x210] sm:$0xff]   ;;  %v2013_v27 = vld [vmem:[%s2194_s6 + $0xa4] ss:$36 sps:$4 sm:$0xff]  }
  0x24   : > { %v2005_v22 = vld [vmem:[%s2194_s6 + $0x5c] ss:$36 sps:$4 sm:$0xff]   ;;  %v2015_v28 = vld [vmem:[%s2194_s6 + $0xac] ss:$36 sps:$4 sm:$0xff]  }
  0x25   : > { %1687 = vmatpush3.bf16.msra.mxu0 %v1939_v30  ;;  %v2009_v24 = vld [vmem:[%s2194_s6 + $0x58] ss:$36 sps:$4 sm:$0xff]   ;;  %v2017_v30 = vld [vmem:[%s2194_s6 + $0xa0] ss:$36 sps:$4 sm:$0xff]   ;;  %v2021_v33 = vld [vmem:[%s2194_s6 + $0xec] ss:$36 sps:$4 sm:$0xff]  }
  0x26   : > { %1727 = vmatpush3.bf16.msra.mxu1 %v1940_v31  ;;  %1752 = vmatprep.subr.bf16.mxu0 %v1947_v36  ;;  %v2012_v29 = vld [vmem:[%s2375_s1 + $0x218] sm:$0xff]   ;;  %v2018_v31 = vld [vmem:[%s2194_s6 + $0xa8] ss:$36 sps:$4 sm:$0xff]  }
  0x27   : > { %1792 = vmatprep.subr.bf16.mxu1 %v1948_v37  ;;  %v2020_v35 = vld [vmem:[%s2375_s1 + $0x228] sm:$0xff]   ;;  %v2027_v37 = vld [vmem:[%s2375_s1 + $0x230] sm:$0xff]  }
  0x28   : > { %1069 = vmatmul.mubr.bf16.vlgmr.msra.gmra.mrb[0].mxu0 %v1941_v32  ;;  %v2019_v32 = vld [vmem:[%s2375_s1 + $0x220] sm:$0xff]   ;;  %v2025_v36 = vld [vmem:[%s2194_s6 + $0xe8] ss:$36 sps:$4 sm:$0xff]  }
  0x29   : > { %1134 = vmatmul.mubr.bf16.vlgmr.msra.gmra.mrb[0].mxu1 %v1944_v34  ;;  %1753 = vmatpush3.bf16.msra.mxu0 %v1949_v38  ;;  %v2023_v34 = vld [vmem:[%s2194_s6 + $0xf4] ss:$36 sps:$4 sm:$0xff]  }
  0x2a   : > { %1793 = vmatpush3.bf16.msra.mxu1 %v1950_v39  ;;  %1754 = vmatprep.subr.bf16.mxu0 %v1951_v40  ;;  %v2026_v38 = vld [vmem:[%s2194_s6 + $0xf0] ss:$36 sps:$4 sm:$0xff]   ;;  %v2029_v39 = vld [vmem:[%s2194_s6 + $0x20] ss:$36 sps:$4 sm:$0xff]  }
  0x2b   : > { %1794 = vmatprep.subr.bf16.mxu1 %v1952_v41  ;;  %1076 = vmatprep.mubr.bf16.mxu0 %v1955_v44  ;;  %v2030_v40 = vld [vmem:[%s2194_s6 + $0xb0] ss:$36 sps:$4 sm:$0xff]   ;;  %v2028_v41 = vld [vmem:[%s2375_s1 + $0x238] sm:$0xff]  }
  0x2c   : > { %1141 = vmatprep.mubr.bf16.mxu1 %v1957_v45 }
  0x2d   : > { %1755 = vmatpush3.bf16.msra.mxu0 %v1953_v42  ;;  %v2031_v42 = vld [vmem:[%s2194_s6 + $0x68] ss:$36 sps:$4 sm:$0xff]  }
  0x2e   : > { %1795 = vmatpush3.bf16.msra.mxu1 %v1954_v43  ;;  %1756 = vmatprep.subr.bf16.mxu0 %v1961_v48  ;;  %v2032_v43 = vld [vmem:[%s2194_s6 + $0xf8] ss:$36 sps:$4 sm:$0xff]   ;;  %s1521_s6 = sshll.u32 %s2383_s23, 2 }
  0x2f   : > { %1796 = vmatprep.subr.bf16.mxu1 %v1962_v49  ;;  %s226_s7 = scalar_lea.vmem %s2377_s3, %s1521_s6 }
  0x30   : > { %1077 = vmatmul.mubr.bf16.gmra.mrb[4].mxu0 %v1959_v46  ;;  %v1522_v46 = vld [vmem:[%s2376_s2] ss:$0 sm:$0xff] }
  0x31   : > { %1142 = vmatmul.mubr.bf16.gmra.mrb[4].mxu1 %v1960_v47  ;;  %1757 = vmatpush3.bf16.msra.mxu0 %v1963_v50 }
  0x32   : > { %1797 = vmatpush3.bf16.msra.mxu1 %v1964_v51  ;;  %1758 = vmatprep.subr.bf16.mxu0 %v1965_v52 }
  0x33   : > { %1798 = vmatprep.subr.bf16.mxu1 %v1966_v53  ;;  %1084 = vmatprep.mubr.bf16.mxu0 %v1969_v56 }
  0x34   : > { %1149 = vmatprep.mubr.bf16.mxu1 %v1971_v57 }
  0x35   : > { %1759 = vmatpush3.bf16.msra.mxu0 %v1967_v54 }
  0x36   : > { %1799 = vmatpush3.bf16.msra.mxu1 %v1968_v55  ;;  %1760 = vmatprep.subr.bf16.mxu0 %v1975_v60 }
  0x37   : > { %1800 = vmatprep.subr.bf16.mxu1 %v1976_v61 }
  0x38   : > { %1085 = vmatmul.mubr.bf16.gmra.mrb[8].mxu0 %v1973_v58 }
  0x39   : > { %1150 = vmatmul.mubr.bf16.gmra.mrb[8].mxu1 %v1974_v59  ;;  %1761 = vmatpush3.bf16.msra.mxu0 %v1977_v62 }
  0x3a   : > { %1801 = vmatpush3.bf16.msra.mxu1 %v1978_v63  ;;  %1762 = vmatprep.subr.bf16.mxu0 %v1979_v0 }
  0x3b   : > { %1802 = vmatprep.subr.bf16.mxu1 %v1980_v1  ;;  %1092 = vmatprep.mubr.bf16.mxu0 %v1983_v4 }
  0x3c   : > { %1157 = vmatprep.mubr.bf16.mxu1 %v1985_v5 }
  0x3d   : > { %1763 = vmatpush3.bf16.msra.mxu0 %v1981_v2 }
  0x3e   : > { %1803 = vmatpush3.bf16.msra.mxu1 %v1982_v3  ;;  %1764 = vmatprep.subr.bf16.mxu0 %v1989_v8 }
  0x3f   : > { %1804 = vmatprep.subr.bf16.mxu1 %v1990_v9 }
  0x40   : > { %1093 = vmatmul.mubr.bf16.gmra.mrb[12].mxu0 %v1987_v6 }
  0x41   : > { %1158 = vmatmul.mubr.bf16.gmra.mrb[12].mxu1 %v1988_v7  ;;  %1765 = vmatpush3.bf16.msra.mxu0 %v1991_v10 }
  0x42   : > { %1805 = vmatpush3.bf16.msra.mxu1 %v1992_v11  ;;  %1766 = vmatprep.subr.bf16.mxu0 %v1993_v12 }
  0x43   : > { %1806 = vmatprep.subr.bf16.mxu1 %v1994_v13  ;;  %1198 = vmatprep.mubr.bf16.mxu0 %v1999_v17 }
  0x44   : > { %1263 = vmatprep.mubr.bf16.mxu1 %v2002_v19 }
  0x45   : > { %1767 = vmatpush3.bf16.msra.mxu0 %v1995_v14 }
  0x46   : > { %1807 = vmatpush3.bf16.msra.mxu1 %v1996_v15  ;;  %1844 = vmatprep.subr.bf16.mxu0 %v2003_v20 }
  0x47   : > { %1868 = vmatprep.subr.bf16.mxu1 %v2003_v20 }
  0x48   : > { %1199 = vmatmul.mubr.bf16.vlgmr.msra.gmra.mrb[16].mxu0 %v1997_v16 }
  0x49   : > { %1264 = vmatmul.mubr.bf16.vlgmr.msra.gmra.mrb[16].mxu1 %v2000_v18  ;;  %1845 = vmatpush3.bf16.msra.mxu0 %v2003_v20 }
  0x4a   : > { %1876 = vmatpush3.bf16.msra.mxu1 %v2003_v20  ;;  %1846 = vmatprep.subr.bf16.mxu0 %v2004_v21 }
  0x4b   : > { %1869 = vmatprep.subr.bf16.mxu1 %v2004_v21  ;;  %1206 = vmatprep.mubr.bf16.mxu0 %v2005_v22 }
  0x4c   : > { %1271 = vmatprep.mubr.bf16.mxu1 %v2007_v23 }
  0x4d   : > { %1847 = vmatpush3.bf16.msra.mxu0 %v2004_v21 }
  0x4e   : > { %1877 = vmatpush3.bf16.msra.mxu1 %v2004_v21  ;;  %1848 = vmatprep.subr.bf16.mxu0 %v2011_v26 }
  0x4f   : > { %1870 = vmatprep.subr.bf16.mxu1 %v2011_v26 }
  0x50   : > { %1207 = vmatmul.mubr.bf16.gmra.mrb[20].mxu0 %v2009_v24 }
  0x51   : > { %1272 = vmatmul.mubr.bf16.gmra.mrb[20].mxu1 %v2010_v25  ;;  %1214 = vmatprep.mubr.bf16.mxu0 %v2013_v27 }
  0x52   : > { %1849 = vmatpush3.bf16.msra.mxu0 %v2011_v26  ;;  %1279 = vmatprep.mubr.bf16.mxu1 %v2015_v28 }
  0x53   : > { %1878 = vmatpush3.bf16.msra.mxu1 %v2011_v26  ;;  %1850 = vmatprep.subr.bf16.mxu0 %v2012_v29 }
  0x54   : > { %1871 = vmatprep.subr.bf16.mxu1 %v2012_v29 }
  0x56   : > { %1851 = vmatpush3.bf16.msra.mxu0 %v2012_v29 }
  0x57   : > { %1879 = vmatpush3.bf16.msra.mxu1 %v2012_v29  ;;  %1852 = vmatprep.subr.bf16.mxu0 %v2019_v32 }
  0x58   : > { %1215 = vmatmul.mubr.bf16.gmra.mrb[24].mxu0 %v2017_v30  ;;  %1872 = vmatprep.subr.bf16.mxu1 %v2019_v32 }
  0x59   : > { %1280 = vmatmul.mubr.bf16.gmra.mrb[24].mxu1 %v2018_v31  ;;  %1222 = vmatprep.mubr.bf16.mxu0 %v2021_v33 }
  0x5a   : > { %1853 = vmatpush3.bf16.msra.mxu0 %v2019_v32  ;;  %1287 = vmatprep.mubr.bf16.mxu1 %v2023_v34 }
  0x5b   : > { %1880 = vmatpush3.bf16.msra.mxu1 %v2019_v32  ;;  %1854 = vmatprep.subr.bf16.mxu0 %v2020_v35 }
  0x5c   : > { %1873 = vmatprep.subr.bf16.mxu1 %v2020_v35 }
  0x5e   : > { %1855 = vmatpush3.bf16.msra.mxu0 %v2020_v35 }
  0x5f   : > { %1881 = vmatpush3.bf16.msra.mxu1 %v2020_v35  ;;  %1856 = vmatprep.subr.bf16.mxu0 %v2027_v37 }
  0x60   : > { %1223 = vmatmul.mubr.bf16.gmra.mrb[28].mxu0 %v2025_v36  ;;  %1874 = vmatprep.subr.bf16.mxu1 %v2027_v37 }
  0x61   : > { %1288 = vmatmul.mubr.bf16.gmra.mrb[28].mxu1 %v2026_v38  ;;  %1860 = vmatprep.mubr.bf16.mxu0 %v2029_v39 }
  0x62   : > { %1857 = vmatpush3.bf16.msra.mxu0 %v2027_v37  ;;  %1864 = vmatprep.mubr.bf16.mxu1 %v2030_v40 }
  0x63   : > { %1882 = vmatpush3.bf16.msra.mxu1 %v2027_v37  ;;  %1858 = vmatprep.subr.bf16.mxu0 %v2028_v41 }
  0x64   : > { %1875 = vmatprep.subr.bf16.mxu1 %v2028_v41 }
  0x66   : > { %1859 = vmatpush3.bf16.msra.mxu0 %v2028_v41 }
  0x67   : > { %1883 = vmatpush3.bf16.msra.mxu1 %v2028_v41 }
  0x69   : > { %1861 = vmatmul.mubr.bf16.vlgmr.msra.gmra.mrb[32].mxu0 %v2031_v42 }
  0x6a   : > { %1865 = vmatmul.mubr.bf16.vlgmr.msra.gmra.mrb[32].mxu1 %v2032_v43 }
  0xfb   : > { %v1688_v44 = vpop.f32.mrb[0].mxu0 }
  0xfc   : > { %v1728_v45 = vpop.f32.mrb[0].mxu1  ;;  %v1689_v47 = vpop.f32.mrb[1].mxu0 }
  0xfd   : > { %v1690_v48 = vadd.f32 %v1689_v47, %v1688_v44  ;;  %v1729_v49 = vpop.f32.mrb[1].mxu1  ;;  %v1691_v50 = vpop.f32.mrb[2].mxu0 }
  0xfe   : > { %v1730_v51 = vadd.f32 %v1729_v49, %v1728_v45  ;;  %v1731_v52 = vpop.f32.mrb[2].mxu1  ;;  %v1692_v53 = vpop.f32.mrb[3].mxu0 }
  0xff   : > { %v1071_v54 = vadd.f32 %v1690_v48, %v1522_v46  ;;  %v1693_v55 = vadd.f32 %v1692_v53, %v1691_v50  ;;  %v1732_v56 = vpop.f32.mrb[3].mxu1 }
 0x100   : > { %v1733_v57 = vadd.f32 %v1732_v56, %v1731_v52 }
 0x101   : > { %v1136_v58 = vadd.f32 %v1730_v51, %v1071_v54  ;;  %v1074_v59 = vadd.f32 %v1693_v55, %v1522_v46 }
 0x103   : > { %v1139_v60 = vadd.f32 %v1733_v57, %v1074_v59  ;;  %v1694_v61 = vpop.f32.mrb[4].mxu0 }
 0x104   : > { %v1734_v62 = vpop.f32.mrb[4].mxu1  ;;  %v1695_v63 = vpop.f32.mrb[5].mxu0 }
 0x105   : > { %v1696_v0 = vadd.f32 %v1695_v63, %v1694_v61  ;;  %v1735_v1 = vpop.f32.mrb[5].mxu1  ;;  %v1697_v2 = vpop.f32.mrb[6].mxu0 }
 0x106   : > { %v1736_v3 = vadd.f32 %v1735_v1, %v1734_v62  ;;  %v1737_v4 = vpop.f32.mrb[6].mxu1  ;;  %v1698_v5 = vpop.f32.mrb[7].mxu0 }
 0x107   : > { %v1079_v6 = vadd.f32 %v1696_v0, %v1522_v46  ;;  %v1699_v7 = vadd.f32 %v1698_v5, %v1697_v2  ;;  %v1738_v8 = vpop.f32.mrb[7].mxu1 }
 0x108   : > { %v1739_v9 = vadd.f32 %v1738_v8, %v1737_v4 }
 0x109   : > { %v1144_v10 = vadd.f32 %v1736_v3, %v1079_v6  ;;  %v1082_v11 = vadd.f32 %v1699_v7, %v1522_v46 }
 0x10b   : > { %v1147_v12 = vadd.f32 %v1739_v9, %v1082_v11  ;;  %v1700_v13 = vpop.f32.mrb[8].mxu0 }
 0x10c   : > { %v1740_v14 = vpop.f32.mrb[8].mxu1  ;;  %v1701_v15 = vpop.f32.mrb[9].mxu0 }
 0x10d   : > { %v1702_v16 = vadd.f32 %v1701_v15, %v1700_v13  ;;  %v1741_v17 = vpop.f32.mrb[9].mxu1  ;;  %v1703_v18 = vpop.f32.mrb[10].mxu0 }
 0x10e   : > { %v1742_v19 = vadd.f32 %v1741_v17, %v1740_v14  ;;  %v1743_v20 = vpop.f32.mrb[10].mxu1  ;;  %v1704_v21 = vpop.f32.mrb[11].mxu0 }
 0x10f   : > { %v1087_v22 = vadd.f32 %v1702_v16, %v1522_v46  ;;  %v1705_v23 = vadd.f32 %v1704_v21, %v1703_v18  ;;  %v1744_v24 = vpop.f32.mrb[11].mxu1 }
 0x110   : > { %v1745_v25 = vadd.f32 %v1744_v24, %v1743_v20 }
 0x111   : > { %v1152_v26 = vadd.f32 %v1742_v19, %v1087_v22  ;;  %v1090_v27 = vadd.f32 %v1705_v23, %v1522_v46 }
 0x113   : > { %v1155_v28 = vadd.f32 %v1745_v25, %v1090_v27  ;;  %v1706_v29 = vpop.f32.mrb[12].mxu0 }
 0x114   : > { %v1746_v30 = vpop.f32.mrb[12].mxu1  ;;  %v1707_v31 = vpop.f32.mrb[13].mxu0 }
 0x115   : > { %v1747_v32 = vpop.f32.mrb[13].mxu1  ;;  %v1708_v33 = vadd.f32 %v1707_v31, %v1706_v29  ;;  %v1709_v35 = vpop.f32.mrb[14].mxu0 }
 0x116   : > { %v1748_v34 = vadd.f32 %v1747_v32, %v1746_v30  ;;  %v1749_v36 = vpop.f32.mrb[14].mxu1  ;;  %v1710_v37 = vpop.f32.mrb[15].mxu0 }
 0x117   : > { %v1750_v38 = vpop.f32.mrb[15].mxu1  ;;  %v1095_v39 = vadd.f32 %v1708_v33, %v1522_v46  ;;  %v1711_v40 = vadd.f32 %v1710_v37, %v1709_v35 }
 0x118   : > { %v1751_v41 = vadd.f32 %v1750_v38, %v1749_v36 }
 0x119   : > { %v1160_v42 = vadd.f32 %v1748_v34, %v1095_v39  ;;  %v1098_v43 = vadd.f32 %v1711_v40, %v1522_v46 }
 0x11b   : > { %v1163_v44 = vadd.f32 %v1751_v41, %v1098_v43  ;;  %v1768_v45 = vpop.f32.mrb[16].mxu0 }
 0x11c   : > { %v1769_v47 = vpop.f32.mrb[17].mxu0  ;;  %v1808_v48 = vpop.f32.mrb[16].mxu1 }
 0x11d   : > { %v1770_v49 = vadd.f32 %v1769_v47, %v1768_v45  ;;  %v1771_v50 = vpop.f32.mrb[18].mxu0  ;;  %v1809_v51 = vpop.f32.mrb[17].mxu1 }
 0x11e   : > { %v1772_v52 = vpop.f32.mrb[19].mxu0  ;;  %v1810_v54 = vadd.f32 %v1809_v51, %v1808_v48  ;;  %v1811_v55 = vpop.f32.mrb[18].mxu1 }
 0x11f   : > { %v1201_v53 = vadd.f32 %v1770_v49, %v1136_v58  ;;  %v1773_v56 = vadd.f32 %v1772_v52, %v1771_v50  ;;  %v1812_v57 = vpop.f32.mrb[19].mxu1 }
 0x120   : > { %v1813_v61 = vadd.f32 %v1812_v57, %v1811_v55 }
 0x121   : > { %v1204_v59 = vadd.f32 %v1773_v56, %v1139_v60  ;;  %v1266_v62 = vadd.f32 %v1810_v54, %v1201_v53 }
 0x123   : > { %v1774_v63 = vpop.f32.mrb[20].mxu0  ;;  %v1269_v0 = vadd.f32 %v1813_v61, %v1204_v59 }
 0x124   : > { %v1775_v1 = vpop.f32.mrb[21].mxu0  ;;  %v1814_v46 = vpop.f32.mrb[20].mxu1 }
 0x125   : > { %v1776_v2 = vadd.f32 %v1775_v1, %v1774_v63  ;;  %v1777_v3 = vpop.f32.mrb[22].mxu0  ;;  %v1815_v4 = vpop.f32.mrb[21].mxu1 }
 0x126   : > { %v1778_v5 = vpop.f32.mrb[23].mxu0  ;;  %v1816_v7 = vadd.f32 %v1815_v4, %v1814_v46  ;;  %v1817_v8 = vpop.f32.mrb[22].mxu1 }
 0x127   : > { %v1209_v6 = vadd.f32 %v1776_v2, %v1144_v10  ;;  %v1779_v9 = vadd.f32 %v1778_v5, %v1777_v3  ;;  %v1818_v58 = vpop.f32.mrb[23].mxu1 }
 0x128   : > { %v1819_v13 = vadd.f32 %v1818_v58, %v1817_v8 }
 0x129   : > { %v1212_v11 = vadd.f32 %v1779_v9, %v1147_v12  ;;  %v1274_v14 = vadd.f32 %v1816_v7, %v1209_v6 }
 0x12b   : > { %v1780_v15 = vpop.f32.mrb[24].mxu0  ;;  %v1277_v60 = vadd.f32 %v1819_v13, %v1212_v11 }
 0x12c   : > { %v1781_v16 = vpop.f32.mrb[25].mxu0  ;;  %v1820_v17 = vpop.f32.mrb[24].mxu1 }
 0x12d   : > { %v1782_v18 = vadd.f32 %v1781_v16, %v1780_v15  ;;  %v1783_v19 = vpop.f32.mrb[26].mxu0  ;;  %v1821_v20 = vpop.f32.mrb[25].mxu1 }
 0x12e   : > { %v1784_v21 = vpop.f32.mrb[27].mxu0  ;;  %v1822_v23 = vadd.f32 %v1821_v20, %v1820_v17  ;;  %v1823_v24 = vpop.f32.mrb[26].mxu1 }
 0x12f   : > { %v1217_v22 = vadd.f32 %v1782_v18, %v1152_v26  ;;  %v1785_v25 = vadd.f32 %v1784_v21, %v1783_v19  ;;  %v1824_v10 = vpop.f32.mrb[27].mxu1 }
 0x130   : > { %v1825_v29 = vadd.f32 %v1824_v10, %v1823_v24 }
 0x131   : > { %v1220_v27 = vadd.f32 %v1785_v25, %v1155_v28  ;;  %v1282_v30 = vadd.f32 %v1822_v23, %v1217_v22 }
 0x133   : > { %v1786_v31 = vpop.f32.mrb[28].mxu0  ;;  %v1285_v12 = vadd.f32 %v1825_v29, %v1220_v27 }
 0x134   : > { %v1787_v32 = vpop.f32.mrb[29].mxu0  ;;  %v1826_v33 = vpop.f32.mrb[28].mxu1 }
 0x135   : > { %v1788_v34 = vadd.f32 %v1787_v32, %v1786_v31  ;;  %v1789_v35 = vpop.f32.mrb[30].mxu0  ;;  %v1827_v36 = vpop.f32.mrb[29].mxu1 }
 0x136   : > { %v1790_v37 = vpop.f32.mrb[31].mxu0  ;;  %v1828_v39 = vadd.f32 %v1827_v36, %v1826_v33  ;;  %v1829_v40 = vpop.f32.mrb[30].mxu1 }
 0x137   : > { %v1225_v38 = vadd.f32 %v1788_v34, %v1160_v42  ;;  %v1791_v26 = vadd.f32 %v1790_v37, %v1789_v35  ;;  %v1830_v41 = vpop.f32.mrb[31].mxu1 }
 0x138   : > { %v1831_v45 = vadd.f32 %v1830_v41, %v1829_v40 }
 0x139   : > { %v1228_v43 = vadd.f32 %v1791_v26, %v1163_v44  ;;  %v1290_v47 = vadd.f32 %v1828_v39, %v1225_v38 }
 0x13b   : > { %v1293_v28 = vadd.f32 %v1831_v45, %v1228_v43 }
 0x13c   : > { %v1862_v48 = vpop.f32.mrb[32].mxu0 }
 0x13d   : > { %v1339_v49 = vadd.f32 %v1862_v48, %v1274_v14  ;;  %v1866_v50 = vpop.f32.mrb[32].mxu1  ;;  %v1330_v51 = vpop.f32.mrb[33].mxu0 }
 0x13e   : > { %v1355_v52 = vadd.f32 %v1866_v50, %v1290_v47  ;;  %v1331_v53 = vadd.f32 %v1330_v51, %v1266_v62  ;;  %v1346_v54 = vpop.f32.mrb[33].mxu1  ;;  %v1863_v55 = vpop.f32.mrb[34].mxu0 }
 0x13f   : > { %v1347_v56 = vadd.f32 %v1346_v54, %v1282_v30  ;;  %v1342_v42 = vadd.f32 %v1863_v55, %v1277_v60  ;;  %v1867_v57 = vpop.f32.mrb[34].mxu1  ;;  %v1333_v59 = vpop.f32.mrb[35].mxu0  ;;  %v1363_v44 = vmax.f32 %v1339_v49, 0.0 }
 0x140   : > { %v1358_v61 = vadd.f32 %v1867_v57, %v1293_v28  ;;  %v1334_v63 = vadd.f32 %v1333_v59, %v1269_v0  ;;  %v1349_v1 = vpop.f32.mrb[35].mxu1  ;;  %v1367_v3 = vmax.f32 %v1355_v52, 0.0  ;;  %v1361_v4 = vmax.f32 %v1331_v53, 0.0 }
 0x141   : > { %v1364_v46 = vmax.f32 %v1342_v42, 0.0  ;;  %v1350_v2 = vadd.f32 %v1349_v1, %v1285_v12  ;;  %v1365_v6 = vmax.f32 %v1347_v56, 0.0 }
 0x142   : > { %v1368_v62 = vmax.f32 %v1358_v61, 0.0  ;;  %v1362_v5 = vmax.f32 %v1334_v63, 0.0 }
 0x143   : > { %v1657_v7 = vpack.c.bf16 %v1364_v46, %v1363_v44  ;;  %v1366_v8 = vmax.f32 %v1350_v2, 0.0 }
 0x144   : > { %v1667_v9 = vpack.c.bf16 %v1368_v62, %v1367_v3  ;;  %v1652_v58 = vpack.c.bf16 %v1362_v5, %v1361_v4 }
 0x145   : > { %1669 = vst [vmem:[%s226_s7 + $0x8] sm:$0xff] %v1657_v7   ;;  %v1662_v11 = vpack.c.bf16 %v1366_v8, %v1365_v6 }
 0x146   : > { %1671 = vst [vmem:[%s226_s7 + $0x18] sm:$0xff] %v1667_v9   ;;  %1653 = vst [vmem:[%s226_s7] sm:$0xff] %v1652_v58  }
 0x147   : > { %1670 = vst [vmem:[%s226_s7 + $0x10] sm:$0xff] %v1662_v11  }
 0x148 PF: > { %s13_s14 = sadd.s32 1, %s2055_s14   ;;  %s2378_s12 = smov %s2051_s13 }
 0x149   : > { %p10_p5 = scmp.ge.s32.totalorder %s13_s14, 4   ;;  %s2379_s13 = smov %s2381_s15 }
 0x14b   :  { %12 = sbr.rel (!%p10_p5) target bundleno = 2 (0x2), region = 68 }

// kernel: pixel_encoder_forward.21
= control target key start
LH: loop header
LB: loop body
LE: loop exit
PB: predicated region body
PF: predicated region fallthrough
CT: control target
= control target key end

     0   :  { %s733_s12 = smov 0   ;;  %s735_s13 = smov 0   ;;  %s806_s0 = inlined_call_operand.vmem [shape: bf16[128,128], index: 0, kind: input, shape index: {}]   ;;  %s807_s1 = inlined_call_operand.vmem [shape: bf16[128,128], index: 1, kind: input, shape index: {}]   ;;  %s808_s2 = inlined_call_operand.vmem [shape: f32[1,128], index: 2, kind: input, shape index: {}]   ;;  %s809_s3 = inlined_call_operand.vmem [shape: bf16[128,128], index: 3, kind: output, shape index: {}]  }
   0x1   :  { %s737_s14 = smov 0  }
   0x2 LB: > { %s25_s15 = sadd.s32 1, %s707_s13  ;;  %p542_p0 = scmp.ge.s32.totalorder %s711_s14, 1  ;;  %s711_s14 = sphi %s737_s14, %s13_s14   ;;  %s707_s13 = sphi %s735_s13, %s811_s13   ;;  %s703_s12 = sphi %s733_s12, %s810_s12  }
   0x3   : > { %p27_p1 = scmp.ge.s32.totalorder %s25_s15, 2  ;;  %p169_p2 = scmp.lt.s32.totalorder %s711_s14, 3 }
   0x5   : > { %s813_s15 = smov (%p27_p1, %s25_s15), 0  ;;  %p170_p3 = pnand %p542_p0, %p169_p2 }
   0x6   : > { %v677_v0 = vld [vmem:[%s807_s1] sm:$0xff] (!%p170_p3)   ;;  %s543_s18 = sshll.u32 (!%p170_p3), %s703_s12, 3  ;;  %v678_v1 = vld [vmem:[%s807_s1 + $0x8] sm:$0xff] (!%p170_p3)   ;;  %v679_v2 = vld [vmem:[%s807_s1 + $0x10] sm:$0xff] (!%p170_p3)  }
   0x7   : > { %173 = sbr.rel (%p170_p3) target bundleno = 259 (0x103), region = 32  ;;  %p204_p4 = scmp.lt.s32.totalorder (!%p170_p3), %s543_s18, 15  ;;  %613 = vmatprep.subr.bf16.mxu0 (!%p170_p3), %v677_v0  ;;  %637 = vmatprep.subr.bf16.mxu1 (!%p170_p3), %v677_v0  ;;  %v680_v3 = vld [vmem:[%s807_s1 + $0x18] sm:$0xff] (!%p170_p3)   ;;  %v681_v6 = vld [vmem:[%s807_s1 + $0x20] sm:$0xff] (!%p170_p3)   ;;  %v682_v7 = vld [vmem:[%s807_s1 + $0x28] sm:$0xff] (!%p170_p3)  }
   0x8   : > { %614 = vmatpush3.bf16.msra.mxu0 (!%p170_p3), %v677_v0  ;;  %645 = vmatpush3.bf16.msra.mxu1 (!%p170_p3), %v677_v0  ;;  %v683_v8 = vld [vmem:[%s807_s1 + $0x30] sm:$0xff] (!%p170_p3)   ;;  %v684_v9 = vld [vmem:[%s807_s1 + $0x38] sm:$0xff] (!%p170_p3)   ;;  %v547_v13 = vld [vmem:[%s808_s2] ss:$0 sm:$0xff] (!%p170_p3) }
   0x9   : > { %615 = vmatprep.subr.bf16.mxu0 (!%p170_p3), %v678_v1  ;;  %638 = vmatprep.subr.bf16.mxu1 (!%p170_p3), %v678_v1 }
   0xc   : > { %616 = vmatpush3.bf16.msra.mxu0 (!%p170_p3), %v678_v1  ;;  %646 = vmatpush3.bf16.msra.mxu1 (!%p170_p3), %v678_v1 }
   0xd   : > { %617 = vmatprep.subr.bf16.mxu0 (!%p170_p3), %v679_v2  ;;  %639 = vmatprep.subr.bf16.mxu1 (!%p170_p3), %v679_v2 }
   0xe   : > { %s815_s18 = smov (!%p204_p4, %s543_s18), 15 }
   0xf   : > { %s544_s23 = sshll.u32 %s815_s18, 2 }
  0x10   : > { %s768_s26 = scalar_lea.vmem %s806_s0, %s544_s23  ;;  %618 = vmatpush3.bf16.msra.mxu0 %v679_v2  ;;  %647 = vmatpush3.bf16.msra.mxu1 %v679_v2  ;;  %s223_s17 = scalar_lea.vmem %s809_s3, %s544_s23 }
  0x11   : > { %v685_v4 = vld [vmem:[%s768_s26] sm:$0xff]   ;;  %v686_v5 = vld [vmem:[%s768_s26 + $0x10] sm:$0xff]   ;;  %619 = vmatprep.subr.bf16.mxu0 %v680_v3  ;;  %640 = vmatprep.subr.bf16.mxu1 %v680_v3  ;;  %v687_v10 = vld [vmem:[%s768_s26 + $0x8] sm:$0xff]  }
  0x12   : > { %629 = vmatprep.mubr.bf16.mxu0 %v685_v4  ;;  %633 = vmatprep.mubr.bf16.mxu1 %v686_v5  ;;  %v688_v11 = vld [vmem:[%s768_s26 + $0x18] sm:$0xff]  }
  0x14   : > { %620 = vmatpush3.bf16.msra.mxu0 %v680_v3  ;;  %648 = vmatpush3.bf16.msra.mxu1 %v680_v3 }
  0x15   : > { %621 = vmatprep.subr.bf16.mxu0 %v681_v6  ;;  %641 = vmatprep.subr.bf16.mxu1 %v681_v6 }
  0x18   : > { %622 = vmatpush3.bf16.msra.mxu0 %v681_v6  ;;  %649 = vmatpush3.bf16.msra.mxu1 %v681_v6 }
  0x19   : > { %623 = vmatprep.subr.bf16.mxu0 %v682_v7  ;;  %642 = vmatprep.subr.bf16.mxu1 %v682_v7 }
  0x1c   : > { %624 = vmatpush3.bf16.msra.mxu0 %v682_v7  ;;  %650 = vmatpush3.bf16.msra.mxu1 %v682_v7 }
  0x1d   : > { %625 = vmatprep.subr.bf16.mxu0 %v683_v8  ;;  %643 = vmatprep.subr.bf16.mxu1 %v683_v8 }
  0x20   : > { %626 = vmatpush3.bf16.msra.mxu0 %v683_v8  ;;  %651 = vmatpush3.bf16.msra.mxu1 %v683_v8 }
  0x21   : > { %627 = vmatprep.subr.bf16.mxu0 %v684_v9  ;;  %644 = vmatprep.subr.bf16.mxu1 %v684_v9 }
  0x24   : > { %628 = vmatpush3.bf16.msra.mxu0 %v684_v9  ;;  %652 = vmatpush3.bf16.msra.mxu1 %v684_v9 }
  0x27   : > { %630 = vmatmul.mubr.bf16.vlgmr.msra.gmra.mrb[0].mxu0 %v687_v10  ;;  %634 = vmatmul.mubr.bf16.vlgmr.msra.gmra.mrb[0].mxu1 %v688_v11 }
  0xfa   : > { %v631_v12 = vpop.f32.mrb[0].mxu0  ;;  %v635_v14 = vpop.f32.mrb[0].mxu1 }
  0xfb   : > { %v363_v15 = vpop.f32.mrb[1].mxu0  ;;  %v379_v16 = vpop.f32.mrb[1].mxu1  ;;  %v372_v19 = vadd.f32 %v631_v12, %v547_v13  ;;  %v388_v20 = vadd.f32 %v635_v14, %v547_v13 }
  0xfc   : > { %v632_v17 = vpop.f32.mrb[2].mxu0  ;;  %v636_v18 = vpop.f32.mrb[2].mxu1  ;;  %v364_v25 = vadd.f32 %v547_v13, %v363_v15  ;;  %v380_v26 = vadd.f32 %v547_v13, %v379_v16 }
  0xfd   : > { %v375_v21 = vadd.f32 %v632_v17, %v547_v13  ;;  %v391_v22 = vadd.f32 %v636_v18, %v547_v13  ;;  %v366_v23 = vpop.f32.mrb[3].mxu0  ;;  %v382_v24 = vpop.f32.mrb[3].mxu1 }
  0xfe   : > { %v367_v27 = vadd.f32 %v547_v13, %v366_v23  ;;  %v383_v28 = vadd.f32 %v547_v13, %v382_v24 }
  0xff   : > { %v586_v29 = vpack.c.bf16 %v375_v21, %v372_v19  ;;  %v596_v30 = vpack.c.bf16 %v391_v22, %v388_v20 }
 0x100   : > { %v581_v31 = vpack.c.bf16 %v367_v27, %v364_v25  ;;  %v591_v32 = vpack.c.bf16 %v383_v28, %v380_v26 }
 0x101   : > { %598 = vst [vmem:[%s223_s17 + $0x8] sm:$0xff] %v586_v29   ;;  %600 = vst [vmem:[%s223_s17 + $0x18] sm:$0xff] %v596_v30  }
 0x102   : > { %582 = vst [vmem:[%s223_s17] sm:$0xff] %v581_v31   ;;  %599 = vst [vmem:[%s223_s17 + $0x10] sm:$0xff] %v591_v32  }
 0x103 PF: > { %s13_s14 = sadd.s32 1, %s711_s14   ;;  %s810_s12 = smov %s707_s13 }
 0x104   : > { %p10_p5 = scmp.ge.s32.totalorder %s13_s14, 4   ;;  %s811_s13 = smov %s813_s15 }
 0x106   :  { %12 = sbr.rel (!%p10_p5) target bundleno = 2 (0x2), region = 68 }

// kernel: pixel_encoder_forward.22
= control target key start
LH: loop header
LB: loop body
LE: loop exit
PB: predicated region body
PF: predicated region fallthrough
CT: control target
= control target key end

     0   :  { %s2202_s15 = smov 0   ;;  %s2204_s16 = smov 0   ;;  %s2515_s0 = inlined_call_operand.vmem [shape: bf16[128,1152], index: 0, kind: input, shape index: {}]   ;;  %s2516_s1 = inlined_call_operand.vmem [shape: bf16[1152,128], index: 1, kind: input, shape index: {}]   ;;  %s2517_s2 = inlined_call_operand.vmem [shape: f32[1,128], index: 2, kind: input, shape index: {}]   ;;  %s2518_s3 = inlined_call_operand.vmem [shape: bf16[128,128], index: 3, kind: input, shape index: {}]   ;;  %s2519_s4 = inlined_call_operand.vmem [shape: bf16[128,128], index: 4, kind: output, shape index: {}]  }
   0x1   :  { %s2206_s17 = smov 0  }
   0x2 LB: > { %s26_s18 = sadd.s32 1, %s2171_s16  ;;  %p1616_p0 = scmp.ge.s32.totalorder %s2175_s17, 1  ;;  %s2175_s17 = sphi %s2206_s17, %s14_s17   ;;  %s2171_s16 = sphi %s2204_s16, %s2521_s16   ;;  %s2167_s15 = sphi %s2202_s15, %s2520_s15  }
   0x3   : > { %p28_p1 = scmp.ge.s32.totalorder %s26_s18, 2  ;;  %p211_p2 = scmp.lt.s32.totalorder %s2175_s17, 3 }
   0x5   : > { %s2523_s18 = smov (%p28_p1, %s26_s18), 0  ;;  %p212_p3 = pnand %p1616_p0, %p211_p2 }
   0x6   : > { %v2029_v0 = vld [vmem:[%s2516_s1 + $0x40] sm:$0xff] (!%p212_p3)   ;;  %v2033_v4 = vld [vmem:[%s2516_s1 + $0x48] sm:$0xff] (!%p212_p3)   ;;  %v2037_v8 = vld [vmem:[%s2516_s1 + $0x50] sm:$0xff] (!%p212_p3)   ;;  %s1617_s27 = sshll.u32 (!%p212_p3), %s2167_s15, 3 }
   0x7   : > { %215 = sbr.rel (%p212_p3) target bundleno = 330 (0x14a), region = 36  ;;  %v2030_v1 = vld [vmem:[%s2516_s1 + $0xc0] sm:$0xff] (!%p212_p3)   ;;  %1792 = vmatprep.subr.bf16.mxu0 (!%p212_p3), %v2029_v0  ;;  %v2034_v5 = vld [vmem:[%s2516_s1 + $0xc8] sm:$0xff] (!%p212_p3)   ;;  %v2038_v9 = vld [vmem:[%s2516_s1 + $0xd0] sm:$0xff] (!%p212_p3)   ;;  %p257_p4 = scmp.lt.s32.totalorder (!%p212_p3), %s1617_s27, 15 }
   0x8   : > { %v2031_v2 = vld [vmem:[%s2516_s1] sm:$0xff] (!%p212_p3)   ;;  %1832 = vmatprep.subr.bf16.mxu1 (!%p212_p3), %v2030_v1  ;;  %v2035_v6 = vld [vmem:[%s2516_s1 + $0x8] sm:$0xff] (!%p212_p3)   ;;  %v2039_v10 = vld [vmem:[%s2516_s1 + $0x10] sm:$0xff] (!%p212_p3)  }
   0x9   : > { %v2032_v3 = vld [vmem:[%s2516_s1 + $0x80] sm:$0xff] (!%p212_p3)   ;;  %1793 = vmatpush3.bf16.msra.mxu0 (!%p212_p3), %v2031_v2  ;;  %v2036_v7 = vld [vmem:[%s2516_s1 + $0x88] sm:$0xff] (!%p212_p3)   ;;  %v2040_v11 = vld [vmem:[%s2516_s1 + $0x90] sm:$0xff] (!%p212_p3)  }
   0xa   : > { %1833 = vmatpush3.bf16.msra.mxu1 (!%p212_p3), %v2032_v3  ;;  %1794 = vmatprep.subr.bf16.mxu0 (!%p212_p3), %v2033_v4  ;;  %v2041_v12 = vld [vmem:[%s2516_s1 + $0x58] sm:$0xff] (!%p212_p3)   ;;  %v2045_v16 = vld [vmem:[%s2516_s1 + $0x60] sm:$0xff] (!%p212_p3)   ;;  %v2049_v20 = vld [vmem:[%s2516_s1 + $0x68] sm:$0xff] (!%p212_p3)  }
   0xb   : > { %1834 = vmatprep.subr.bf16.mxu1 (!%p212_p3), %v2034_v5  ;;  %v2042_v13 = vld [vmem:[%s2516_s1 + $0xd8] sm:$0xff] (!%p212_p3)   ;;  %v2046_v17 = vld [vmem:[%s2516_s1 + $0xe0] sm:$0xff] (!%p212_p3)   ;;  %v2050_v21 = vld [vmem:[%s2516_s1 + $0xe8] sm:$0xff] (!%p212_p3)  }
   0xc   : > { %v2043_v14 = vld [vmem:[%s2516_s1 + $0x18] sm:$0xff] (!%p212_p3)   ;;  %v2047_v18 = vld [vmem:[%s2516_s1 + $0x20] sm:$0xff] (!%p212_p3)   ;;  %v2051_v22 = vld [vmem:[%s2516_s1 + $0x28] sm:$0xff] (!%p212_p3)  }
   0xd   : > { %1795 = vmatpush3.bf16.msra.mxu0 (!%p212_p3), %v2035_v6  ;;  %v2044_v15 = vld [vmem:[%s2516_s1 + $0x98] sm:$0xff] (!%p212_p3)   ;;  %v2048_v19 = vld [vmem:[%s2516_s1 + $0xa0] sm:$0xff] (!%p212_p3)   ;;  %v2052_v23 = vld [vmem:[%s2516_s1 + $0xa8] sm:$0xff] (!%p212_p3)  }
   0xe   : > { %1835 = vmatpush3.bf16.msra.mxu1 %v2036_v7  ;;  %1796 = vmatprep.subr.bf16.mxu0 %v2037_v8  ;;  %s2525_s27 = smov (!%p257_p4, %s1617_s27), 15  ;;  %v2053_v24 = vld [vmem:[%s2516_s1 + $0x70] sm:$0xff]   ;;  %v2057_v28 = vld [vmem:[%s2516_s1 + $0x78] sm:$0xff]   ;;  %v2067_v36 = vld [vmem:[%s2516_s1 + $0x140] sm:$0xff]  }
   0xf   : > { %1836 = vmatprep.subr.bf16.mxu1 %v2038_v9  ;;  %v2054_v25 = vld [vmem:[%s2516_s1 + $0xf0] sm:$0xff]   ;;  %s2004_s28 = smul.u32 36, %s2525_s27  ;;  %v2058_v29 = vld [vmem:[%s2516_s1 + $0xf8] sm:$0xff]   ;;  %v2068_v37 = vld [vmem:[%s2516_s1 + $0x1c0] sm:$0xff]  }
  0x10   : > { %v2055_v26 = vld [vmem:[%s2516_s1 + $0x30] sm:$0xff]   ;;  %v2059_v30 = vld [vmem:[%s2516_s1 + $0x38] sm:$0xff]   ;;  %v2069_v38 = vld [vmem:[%s2516_s1 + $0x100] sm:$0xff]  }
  0x11   : > { %1797 = vmatpush3.bf16.msra.mxu0 %v2039_v10  ;;  %v2056_v27 = vld [vmem:[%s2516_s1 + $0xb0] sm:$0xff]   ;;  %s2319_s12 = scalar_lea.vmem %s2515_s0, %s2004_s28  ;;  %v2060_v31 = vld [vmem:[%s2516_s1 + $0xb8] sm:$0xff]   ;;  %v2070_v39 = vld [vmem:[%s2516_s1 + $0x180] sm:$0xff]  }
  0x12   : > { %1837 = vmatpush3.bf16.msra.mxu1 %v2040_v11  ;;  %1798 = vmatprep.subr.bf16.mxu0 %v2041_v12  ;;  %v2061_v32 = vld [vmem:[%s2319_s12] ss:$36 sps:$4 sm:$0xff]   ;;  %v2064_v34 = vld [vmem:[%s2319_s12 + $0x8] ss:$36 sps:$4 sm:$0xff]   ;;  %v2077_v45 = vld [vmem:[%s2319_s12 + $0x54] ss:$36 sps:$4 sm:$0xff]  }
  0x13   : > { %1838 = vmatprep.subr.bf16.mxu1 %v2042_v13  ;;  %v2063_v33 = vld [vmem:[%s2319_s12 + $0x4] ss:$36 sps:$4 sm:$0xff]   ;;  %v2066_v35 = vld [vmem:[%s2319_s12 + $0xc] ss:$36 sps:$4 sm:$0xff]   ;;  %v2085_v52 = vld [vmem:[%s2516_s1 + $0x158] sm:$0xff]  }
  0x14   : > { %1128 = vmatprep.mubr.bf16.mxu0 %v2063_v33  ;;  %1193 = vmatprep.mubr.bf16.mxu1 %v2066_v35  ;;  %v2071_v40 = vld [vmem:[%s2516_s1 + $0x148] sm:$0xff]   ;;  %v2080_v47 = vld [vmem:[%s2319_s12 + $0x50] ss:$36 sps:$4 sm:$0xff]   ;;  %v2086_v53 = vld [vmem:[%s2516_s1 + $0x1d8] sm:$0xff]  }
  0x15   : > { %1799 = vmatpush3.bf16.msra.mxu0 %v2043_v14  ;;  %v2072_v41 = vld [vmem:[%s2516_s1 + $0x1c8] sm:$0xff]   ;;  %v2081_v48 = vld [vmem:[%s2516_s1 + $0x150] sm:$0xff]   ;;  %v2087_v54 = vld [vmem:[%s2516_s1 + $0x118] sm:$0xff]  }
  0x16   : > { %1839 = vmatpush3.bf16.msra.mxu1 %v2044_v15  ;;  %1800 = vmatprep.subr.bf16.mxu0 %v2045_v16  ;;  %v2073_v42 = vld [vmem:[%s2516_s1 + $0x108] sm:$0xff]   ;;  %v2082_v49 = vld [vmem:[%s2516_s1 + $0x1d0] sm:$0xff]   ;;  %v2088_v55 = vld [vmem:[%s2516_s1 + $0x198] sm:$0xff]  }
  0x17   : > { %1840 = vmatprep.subr.bf16.mxu1 %v2046_v17  ;;  %v2074_v43 = vld [vmem:[%s2516_s1 + $0x188] sm:$0xff]   ;;  %v2083_v50 = vld [vmem:[%s2516_s1 + $0x110] sm:$0xff]   ;;  %v2091_v57 = vld [vmem:[%s2319_s12 + $0x9c] ss:$36 sps:$4 sm:$0xff]  }
  0x18   : > { %v2075_v44 = vld [vmem:[%s2319_s12 + $0x4c] ss:$36 sps:$4 sm:$0xff]   ;;  %v2089_v56 = vld [vmem:[%s2319_s12 + $0x94] ss:$36 sps:$4 sm:$0xff]   ;;  %v2095_v60 = vld [vmem:[%s2516_s1 + $0x160] sm:$0xff]  }
  0x19   : > { %1801 = vmatpush3.bf16.msra.mxu0 %v2047_v18  ;;  %v2079_v46 = vld [vmem:[%s2319_s12 + $0x48] ss:$36 sps:$4 sm:$0xff]   ;;  %v2084_v51 = vld [vmem:[%s2516_s1 + $0x190] sm:$0xff]   ;;  %v2094_v59 = vld [vmem:[%s2319_s12 + $0x98] ss:$36 sps:$4 sm:$0xff]  }
  0x1a   : > { %1841 = vmatpush3.bf16.msra.mxu1 %v2048_v19  ;;  %1802 = vmatprep.subr.bf16.mxu0 %v2049_v20  ;;  %v2093_v58 = vld [vmem:[%s2319_s12 + $0x90] ss:$36 sps:$4 sm:$0xff]   ;;  %v2096_v61 = vld [vmem:[%s2516_s1 + $0x1e0] sm:$0xff]   ;;  %v2099_v0 = vld [vmem:[%s2516_s1 + $0x168] sm:$0xff]  }
  0x1b   : > { %1842 = vmatprep.subr.bf16.mxu1 %v2050_v21  ;;  %v2097_v62 = vld [vmem:[%s2516_s1 + $0x120] sm:$0xff]   ;;  %v2100_v1 = vld [vmem:[%s2516_s1 + $0x1e8] sm:$0xff]   ;;  %v2107_v6 = vld [vmem:[%s2319_s12 + $0xd8] ss:$36 sps:$4 sm:$0xff]  }
  0x1c   : > { %v2098_v63 = vld [vmem:[%s2516_s1 + $0x1a0] sm:$0xff]   ;;  %v2101_v2 = vld [vmem:[%s2516_s1 + $0x128] sm:$0xff]   ;;  %v2109_v8 = vld [vmem:[%s2516_s1 + $0x170] sm:$0xff]  }
  0x1d   : > { %1803 = vmatpush3.bf16.msra.mxu0 %v2051_v22  ;;  %v2102_v3 = vld [vmem:[%s2516_s1 + $0x1a8] sm:$0xff]   ;;  %v2103_v4 = vld [vmem:[%s2319_s12 + $0xdc] ss:$36 sps:$4 sm:$0xff]   ;;  %v2110_v9 = vld [vmem:[%s2516_s1 + $0x1f0] sm:$0xff]  }
  0x1e   : > { %1843 = vmatpush3.bf16.msra.mxu1 %v2052_v23  ;;  %1804 = vmatprep.subr.bf16.mxu0 %v2053_v24  ;;  %v2105_v5 = vld [vmem:[%s2319_s12 + $0xe4] ss:$36 sps:$4 sm:$0xff]   ;;  %v2111_v10 = vld [vmem:[%s2516_s1 + $0x130] sm:$0xff]   ;;  %v2113_v12 = vld [vmem:[%s2516_s1 + $0x178] sm:$0xff]  }
  0x1f   : > { %1844 = vmatprep.subr.bf16.mxu1 %v2054_v25  ;;  %v2108_v7 = vld [vmem:[%s2319_s12 + $0xe0] ss:$36 sps:$4 sm:$0xff]   ;;  %v2112_v11 = vld [vmem:[%s2516_s1 + $0x1b0] sm:$0xff]   ;;  %v2114_v13 = vld [vmem:[%s2516_s1 + $0x1f8] sm:$0xff]  }
  0x20   : > { %v2115_v14 = vld [vmem:[%s2516_s1 + $0x138] sm:$0xff]   ;;  %v2117_v16 = vld [vmem:[%s2319_s12 + $0x10] ss:$36 sps:$4 sm:$0xff]   ;;  %v2123_v20 = vld [vmem:[%s2516_s1 + $0x200] sm:$0xff]  }
  0x21   : > { %1805 = vmatpush3.bf16.msra.mxu0 %v2055_v26  ;;  %v2116_v15 = vld [vmem:[%s2516_s1 + $0x1b8] sm:$0xff]   ;;  %v2124_v21 = vld [vmem:[%s2516_s1 + $0x208] sm:$0xff]   ;;  %v2130_v25 = vld [vmem:[%s2319_s12 + $0x60] ss:$36 sps:$4 sm:$0xff]  }
  0x22   : > { %1845 = vmatpush3.bf16.msra.mxu1 %v2056_v27  ;;  %1806 = vmatprep.subr.bf16.mxu0 %v2057_v28  ;;  %v2119_v17 = vld [vmem:[%s2319_s12 + $0x14] ss:$36 sps:$4 sm:$0xff]   ;;  %v2122_v19 = vld [vmem:[%s2319_s12 + $0x1c] ss:$36 sps:$4 sm:$0xff]   ;;  %v2127_v23 = vld [vmem:[%s2319_s12 + $0x64] ss:$36 sps:$4 sm:$0xff]  }
  0x23   : > { %1846 = vmatprep.subr.bf16.mxu1 %v2058_v29  ;;  %v2120_v18 = vld [vmem:[%s2319_s12 + $0x18] ss:$36 sps:$4 sm:$0xff]   ;;  %v2131_v26 = vld [vmem:[%s2516_s1 + $0x210] sm:$0xff]   ;;  %v2133_v27 = vld [vmem:[%s2319_s12 + $0xa4] ss:$36 sps:$4 sm:$0xff]  }
  0x24   : > { %v2125_v22 = vld [vmem:[%s2319_s12 + $0x5c] ss:$36 sps:$4 sm:$0xff]   ;;  %v2135_v28 = vld [vmem:[%s2319_s12 + $0xac] ss:$36 sps:$4 sm:$0xff]  }
  0x25   : > { %1807 = vmatpush3.bf16.msra.mxu0 %v2059_v30  ;;  %v2129_v24 = vld [vmem:[%s2319_s12 + $0x58] ss:$36 sps:$4 sm:$0xff]   ;;  %v2137_v30 = vld [vmem:[%s2319_s12 + $0xa0] ss:$36 sps:$4 sm:$0xff]   ;;  %v2141_v33 = vld [vmem:[%s2319_s12 + $0xec] ss:$36 sps:$4 sm:$0xff]  }
  0x26   : > { %1847 = vmatpush3.bf16.msra.mxu1 %v2060_v31  ;;  %1872 = vmatprep.subr.bf16.mxu0 %v2067_v36  ;;  %v2132_v29 = vld [vmem:[%s2516_s1 + $0x218] sm:$0xff]   ;;  %v2138_v31 = vld [vmem:[%s2319_s12 + $0xa8] ss:$36 sps:$4 sm:$0xff]  }
  0x27   : > { %1912 = vmatprep.subr.bf16.mxu1 %v2068_v37  ;;  %v2140_v35 = vld [vmem:[%s2516_s1 + $0x228] sm:$0xff]   ;;  %v2147_v37 = vld [vmem:[%s2516_s1 + $0x230] sm:$0xff]  }
  0x28   : > { %1129 = vmatmul.mubr.bf16.vlgmr.msra.gmra.mrb[0].mxu0 %v2061_v32  ;;  %v2139_v32 = vld [vmem:[%s2516_s1 + $0x220] sm:$0xff]   ;;  %v2145_v36 = vld [vmem:[%s2319_s12 + $0xe8] ss:$36 sps:$4 sm:$0xff]  }
  0x29   : > { %1194 = vmatmul.mubr.bf16.vlgmr.msra.gmra.mrb[0].mxu1 %v2064_v34  ;;  %1873 = vmatpush3.bf16.msra.mxu0 %v2069_v38  ;;  %v2143_v34 = vld [vmem:[%s2319_s12 + $0xf4] ss:$36 sps:$4 sm:$0xff]  }
  0x2a   : > { %1913 = vmatpush3.bf16.msra.mxu1 %v2070_v39  ;;  %1874 = vmatprep.subr.bf16.mxu0 %v2071_v40  ;;  %v2146_v38 = vld [vmem:[%s2319_s12 + $0xf0] ss:$36 sps:$4 sm:$0xff]   ;;  %v2149_v39 = vld [vmem:[%s2319_s12 + $0x20] ss:$36 sps:$4 sm:$0xff]  }
  0x2b   : > { %1914 = vmatprep.subr.bf16.mxu1 %v2072_v41  ;;  %1136 = vmatprep.mubr.bf16.mxu0 %v2075_v44  ;;  %v2150_v40 = vld [vmem:[%s2319_s12 + $0xb0] ss:$36 sps:$4 sm:$0xff]   ;;  %v2148_v41 = vld [vmem:[%s2516_s1 + $0x238] sm:$0xff]  }
  0x2c   : > { %1201 = vmatprep.mubr.bf16.mxu1 %v2077_v45 }
  0x2d   : > { %1875 = vmatpush3.bf16.msra.mxu0 %v2073_v42  ;;  %v2151_v42 = vld [vmem:[%s2319_s12 + $0x68] ss:$36 sps:$4 sm:$0xff]  }
  0x2e   : > { %1915 = vmatpush3.bf16.msra.mxu1 %v2074_v43  ;;  %1876 = vmatprep.subr.bf16.mxu0 %v2081_v48  ;;  %v2152_v43 = vld [vmem:[%s2319_s12 + $0xf8] ss:$36 sps:$4 sm:$0xff]   ;;  %s1620_s12 = sshll.u32 %s2525_s27, 2 }
  0x2f   : > { %1916 = vmatprep.subr.bf16.mxu1 %v2082_v49  ;;  %s277_s21 = scalar_lea.vmem %s2518_s3, %s1620_s12  ;;  %s286_s24 = scalar_lea.vmem %s2519_s4, %s1620_s12 }
  0x30   : > { %1137 = vmatmul.mubr.bf16.gmra.mrb[4].mxu0 %v2079_v46  ;;  %v1623_v46 = vld [vmem:[%s2517_s2] ss:$0 sm:$0xff] }
  0x31   : > { %1202 = vmatmul.mubr.bf16.gmra.mrb[4].mxu1 %v2080_v47  ;;  %1877 = vmatpush3.bf16.msra.mxu0 %v2083_v50 }
  0x32   : > { %1917 = vmatpush3.bf16.msra.mxu1 %v2084_v51  ;;  %1878 = vmatprep.subr.bf16.mxu0 %v2085_v52 }
  0x33   : > { %1918 = vmatprep.subr.bf16.mxu1 %v2086_v53  ;;  %1144 = vmatprep.mubr.bf16.mxu0 %v2089_v56 }
  0x34   : > { %1209 = vmatprep.mubr.bf16.mxu1 %v2091_v57 }
  0x35   : > { %1879 = vmatpush3.bf16.msra.mxu0 %v2087_v54 }
  0x36   : > { %1919 = vmatpush3.bf16.msra.mxu1 %v2088_v55  ;;  %1880 = vmatprep.subr.bf16.mxu0 %v2095_v60 }
  0x37   : > { %1920 = vmatprep.subr.bf16.mxu1 %v2096_v61 }
  0x38   : > { %1145 = vmatmul.mubr.bf16.gmra.mrb[8].mxu0 %v2093_v58 }
  0x39   : > { %1210 = vmatmul.mubr.bf16.gmra.mrb[8].mxu1 %v2094_v59  ;;  %1881 = vmatpush3.bf16.msra.mxu0 %v2097_v62 }
  0x3a   : > { %1921 = vmatpush3.bf16.msra.mxu1 %v2098_v63  ;;  %1882 = vmatprep.subr.bf16.mxu0 %v2099_v0 }
  0x3b   : > { %1922 = vmatprep.subr.bf16.mxu1 %v2100_v1  ;;  %1152 = vmatprep.mubr.bf16.mxu0 %v2103_v4 }
  0x3c   : > { %1217 = vmatprep.mubr.bf16.mxu1 %v2105_v5 }
  0x3d   : > { %1883 = vmatpush3.bf16.msra.mxu0 %v2101_v2 }
  0x3e   : > { %1923 = vmatpush3.bf16.msra.mxu1 %v2102_v3  ;;  %1884 = vmatprep.subr.bf16.mxu0 %v2109_v8 }
  0x3f   : > { %1924 = vmatprep.subr.bf16.mxu1 %v2110_v9 }
  0x40   : > { %1153 = vmatmul.mubr.bf16.gmra.mrb[12].mxu0 %v2107_v6 }
  0x41   : > { %1218 = vmatmul.mubr.bf16.gmra.mrb[12].mxu1 %v2108_v7  ;;  %1885 = vmatpush3.bf16.msra.mxu0 %v2111_v10 }
  0x42   : > { %1925 = vmatpush3.bf16.msra.mxu1 %v2112_v11  ;;  %1886 = vmatprep.subr.bf16.mxu0 %v2113_v12 }
  0x43   : > { %1926 = vmatprep.subr.bf16.mxu1 %v2114_v13  ;;  %1258 = vmatprep.mubr.bf16.mxu0 %v2119_v17 }
  0x44   : > { %1323 = vmatprep.mubr.bf16.mxu1 %v2122_v19 }
  0x45   : > { %1887 = vmatpush3.bf16.msra.mxu0 %v2115_v14 }
  0x46   : > { %1927 = vmatpush3.bf16.msra.mxu1 %v2116_v15  ;;  %1964 = vmatprep.subr.bf16.mxu0 %v2123_v20 }
  0x47   : > { %1988 = vmatprep.subr.bf16.mxu1 %v2123_v20 }
  0x48   : > { %1259 = vmatmul.mubr.bf16.vlgmr.msra.gmra.mrb[16].mxu0 %v2117_v16 }
  0x49   : > { %1324 = vmatmul.mubr.bf16.vlgmr.msra.gmra.mrb[16].mxu1 %v2120_v18  ;;  %1965 = vmatpush3.bf16.msra.mxu0 %v2123_v20 }
  0x4a   : > { %1996 = vmatpush3.bf16.msra.mxu1 %v2123_v20  ;;  %1966 = vmatprep.subr.bf16.mxu0 %v2124_v21 }
  0x4b   : > { %1989 = vmatprep.subr.bf16.mxu1 %v2124_v21  ;;  %1266 = vmatprep.mubr.bf16.mxu0 %v2125_v22 }
  0x4c   : > { %1331 = vmatprep.mubr.bf16.mxu1 %v2127_v23 }
  0x4d   : > { %1967 = vmatpush3.bf16.msra.mxu0 %v2124_v21 }
  0x4e   : > { %1997 = vmatpush3.bf16.msra.mxu1 %v2124_v21  ;;  %1968 = vmatprep.subr.bf16.mxu0 %v2131_v26 }
  0x4f   : > { %1990 = vmatprep.subr.bf16.mxu1 %v2131_v26 }
  0x50   : > { %1267 = vmatmul.mubr.bf16.gmra.mrb[20].mxu0 %v2129_v24 }
  0x51   : > { %1332 = vmatmul.mubr.bf16.gmra.mrb[20].mxu1 %v2130_v25  ;;  %1274 = vmatprep.mubr.bf16.mxu0 %v2133_v27 }
  0x52   : > { %1969 = vmatpush3.bf16.msra.mxu0 %v2131_v26  ;;  %1339 = vmatprep.mubr.bf16.mxu1 %v2135_v28 }
  0x53   : > { %1998 = vmatpush3.bf16.msra.mxu1 %v2131_v26  ;;  %1970 = vmatprep.subr.bf16.mxu0 %v2132_v29 }
  0x54   : > { %1991 = vmatprep.subr.bf16.mxu1 %v2132_v29 }
  0x56   : > { %1971 = vmatpush3.bf16.msra.mxu0 %v2132_v29 }
  0x57   : > { %1999 = vmatpush3.bf16.msra.mxu1 %v2132_v29  ;;  %1972 = vmatprep.subr.bf16.mxu0 %v2139_v32 }
  0x58   : > { %1275 = vmatmul.mubr.bf16.gmra.mrb[24].mxu0 %v2137_v30  ;;  %1992 = vmatprep.subr.bf16.mxu1 %v2139_v32 }
  0x59   : > { %1340 = vmatmul.mubr.bf16.gmra.mrb[24].mxu1 %v2138_v31  ;;  %1282 = vmatprep.mubr.bf16.mxu0 %v2141_v33 }
  0x5a   : > { %1973 = vmatpush3.bf16.msra.mxu0 %v2139_v32  ;;  %1347 = vmatprep.mubr.bf16.mxu1 %v2143_v34 }
  0x5b   : > { %2000 = vmatpush3.bf16.msra.mxu1 %v2139_v32  ;;  %1974 = vmatprep.subr.bf16.mxu0 %v2140_v35 }
  0x5c   : > { %1993 = vmatprep.subr.bf16.mxu1 %v2140_v35 }
  0x5e   : > { %1975 = vmatpush3.bf16.msra.mxu0 %v2140_v35 }
  0x5f   : > { %2001 = vmatpush3.bf16.msra.mxu1 %v2140_v35  ;;  %1976 = vmatprep.subr.bf16.mxu0 %v2147_v37 }
  0x60   : > { %1283 = vmatmul.mubr.bf16.gmra.mrb[28].mxu0 %v2145_v36  ;;  %1994 = vmatprep.subr.bf16.mxu1 %v2147_v37 }
  0x61   : > { %1348 = vmatmul.mubr.bf16.gmra.mrb[28].mxu1 %v2146_v38  ;;  %1980 = vmatprep.mubr.bf16.mxu0 %v2149_v39 }
  0x62   : > { %1977 = vmatpush3.bf16.msra.mxu0 %v2147_v37  ;;  %1984 = vmatprep.mubr.bf16.mxu1 %v2150_v40 }
  0x63   : > { %2002 = vmatpush3.bf16.msra.mxu1 %v2147_v37  ;;  %1978 = vmatprep.subr.bf16.mxu0 %v2148_v41 }
  0x64   : > { %1995 = vmatprep.subr.bf16.mxu1 %v2148_v41 }
  0x66   : > { %1979 = vmatpush3.bf16.msra.mxu0 %v2148_v41 }
  0x67   : > { %2003 = vmatpush3.bf16.msra.mxu1 %v2148_v41 }
  0x69   : > { %1981 = vmatmul.mubr.bf16.vlgmr.msra.gmra.mrb[32].mxu0 %v2151_v42 }
  0x6a   : > { %1985 = vmatmul.mubr.bf16.vlgmr.msra.gmra.mrb[32].mxu1 %v2152_v43 }
  0xfb   : > { %v1808_v44 = vpop.f32.mrb[0].mxu0 }
  0xfc   : > { %v1848_v45 = vpop.f32.mrb[0].mxu1  ;;  %v1809_v47 = vpop.f32.mrb[1].mxu0 }
  0xfd   : > { %v1810_v48 = vadd.f32 %v1809_v47, %v1808_v44  ;;  %v1849_v49 = vpop.f32.mrb[1].mxu1  ;;  %v1811_v50 = vpop.f32.mrb[2].mxu0 }
  0xfe   : > { %v1850_v51 = vadd.f32 %v1849_v49, %v1848_v45  ;;  %v1851_v52 = vpop.f32.mrb[2].mxu1  ;;  %v1812_v53 = vpop.f32.mrb[3].mxu0 }
  0xff   : > { %v1131_v54 = vadd.f32 %v1810_v48, %v1623_v46  ;;  %v1813_v55 = vadd.f32 %v1812_v53, %v1811_v50  ;;  %v1852_v56 = vpop.f32.mrb[3].mxu1 }
 0x100   : > { %v1853_v57 = vadd.f32 %v1852_v56, %v1851_v52 }
 0x101   : > { %v1196_v58 = vadd.f32 %v1850_v51, %v1131_v54  ;;  %v1134_v59 = vadd.f32 %v1813_v55, %v1623_v46 }
 0x103   : > { %v1199_v60 = vadd.f32 %v1853_v57, %v1134_v59  ;;  %v1814_v61 = vpop.f32.mrb[4].mxu0 }
 0x104   : > { %v1854_v62 = vpop.f32.mrb[4].mxu1  ;;  %v1815_v63 = vpop.f32.mrb[5].mxu0 }
 0x105   : > { %v1816_v0 = vadd.f32 %v1815_v63, %v1814_v61  ;;  %v1855_v1 = vpop.f32.mrb[5].mxu1  ;;  %v1817_v2 = vpop.f32.mrb[6].mxu0 }
 0x106   : > { %v1856_v3 = vadd.f32 %v1855_v1, %v1854_v62  ;;  %v1857_v4 = vpop.f32.mrb[6].mxu1  ;;  %v1818_v5 = vpop.f32.mrb[7].mxu0 }
 0x107   : > { %v1139_v6 = vadd.f32 %v1816_v0, %v1623_v46  ;;  %v1819_v7 = vadd.f32 %v1818_v5, %v1817_v2  ;;  %v1858_v8 = vpop.f32.mrb[7].mxu1 }
 0x108   : > { %v1859_v9 = vadd.f32 %v1858_v8, %v1857_v4 }
 0x109   : > { %v1204_v10 = vadd.f32 %v1856_v3, %v1139_v6  ;;  %v1142_v11 = vadd.f32 %v1819_v7, %v1623_v46 }
 0x10b   : > { %v1207_v12 = vadd.f32 %v1859_v9, %v1142_v11  ;;  %v1820_v13 = vpop.f32.mrb[8].mxu0 }
 0x10c   : > { %v1860_v14 = vpop.f32.mrb[8].mxu1  ;;  %v1821_v15 = vpop.f32.mrb[9].mxu0 }
 0x10d   : > { %v1822_v16 = vadd.f32 %v1821_v15, %v1820_v13  ;;  %v1861_v17 = vpop.f32.mrb[9].mxu1  ;;  %v1823_v18 = vpop.f32.mrb[10].mxu0 }
 0x10e   : > { %v1862_v19 = vadd.f32 %v1861_v17, %v1860_v14  ;;  %v1863_v20 = vpop.f32.mrb[10].mxu1  ;;  %v1824_v21 = vpop.f32.mrb[11].mxu0 }
 0x10f   : > { %v1147_v22 = vadd.f32 %v1822_v16, %v1623_v46  ;;  %v1825_v23 = vadd.f32 %v1824_v21, %v1823_v18  ;;  %v1864_v24 = vpop.f32.mrb[11].mxu1 }
 0x110   : > { %v1865_v25 = vadd.f32 %v1864_v24, %v1863_v20 }
 0x111   : > { %v1212_v26 = vadd.f32 %v1862_v19, %v1147_v22  ;;  %v1150_v27 = vadd.f32 %v1825_v23, %v1623_v46 }
 0x113   : > { %v1215_v28 = vadd.f32 %v1865_v25, %v1150_v27  ;;  %v1826_v29 = vpop.f32.mrb[12].mxu0 }
 0x114   : > { %v1866_v30 = vpop.f32.mrb[12].mxu1  ;;  %v1827_v31 = vpop.f32.mrb[13].mxu0 }
 0x115   : > { %v1867_v32 = vpop.f32.mrb[13].mxu1  ;;  %v1828_v33 = vadd.f32 %v1827_v31, %v1826_v29  ;;  %v1829_v35 = vpop.f32.mrb[14].mxu0 }
 0x116   : > { %v1868_v34 = vadd.f32 %v1867_v32, %v1866_v30  ;;  %v1869_v36 = vpop.f32.mrb[14].mxu1  ;;  %v1830_v37 = vpop.f32.mrb[15].mxu0 }
 0x117   : > { %v1870_v38 = vpop.f32.mrb[15].mxu1  ;;  %v1155_v39 = vadd.f32 %v1828_v33, %v1623_v46  ;;  %v1831_v40 = vadd.f32 %v1830_v37, %v1829_v35 }
 0x118   : > { %v1871_v41 = vadd.f32 %v1870_v38, %v1869_v36 }
 0x119   : > { %v1220_v42 = vadd.f32 %v1868_v34, %v1155_v39  ;;  %v1158_v43 = vadd.f32 %v1831_v40, %v1623_v46 }
 0x11b   : > { %v2486_v44 = vadd.f32 %v1871_v41, %v1158_v43  ;;  %v1888_v45 = vpop.f32.mrb[16].mxu0 }
 0x11c   : > { %v1889_v47 = vpop.f32.mrb[17].mxu0  ;;  %v1928_v48 = vpop.f32.mrb[16].mxu1 }
 0x11d   : > { %v1890_v49 = vadd.f32 %v1889_v47, %v1888_v45  ;;  %v1891_v50 = vpop.f32.mrb[18].mxu0  ;;  %v1929_v51 = vpop.f32.mrb[17].mxu1  ;;  %v1786_v45 = vld [vmem:[%s277_s21 + $0x8] sm:$0xff]  }
 0x11e   : > { %v1892_v52 = vpop.f32.mrb[19].mxu0  ;;  %v1930_v54 = vadd.f32 %v1929_v51, %v1928_v48  ;;  %v1931_v55 = vpop.f32.mrb[18].mxu1  ;;  %v1788_v48 = vld [vmem:[%s277_s21 + $0x18] sm:$0xff]  }
 0x11f   : > { %v1261_v53 = vadd.f32 %v1890_v49, %v1196_v58  ;;  %v1893_v56 = vadd.f32 %v1892_v52, %v1891_v50  ;;  %v1932_v57 = vpop.f32.mrb[19].mxu1  ;;  %v1751_v49 = vld [vmem:[%s277_s21] sm:$0xff]   ;;  %v1787_v50 = vld [vmem:[%s277_s21 + $0x10] sm:$0xff]   ;;  %v1756_v52 = vunpack.c.l.bf16 %v1786_v45 }
 0x120   : > { %v1933_v61 = vadd.f32 %v1932_v57, %v1931_v55  ;;  %v1752_v55 = vunpack.c.l.bf16 %v1751_v49 }
 0x121   : > { %v1264_v59 = vadd.f32 %v1893_v56, %v1199_v60  ;;  %v2488_v62 = vadd.f32 %v1930_v54, %v1261_v53  ;;  %v1764_v54 = vunpack.c.l.bf16 %v1788_v48 }
 0x123   : > { %v1894_v63 = vpop.f32.mrb[20].mxu0  ;;  %v2490_v46 = vadd.f32 %v1933_v61, %v1264_v59  ;;  %v1760_v59 = vunpack.c.l.bf16 %v1787_v50  ;;  %v1757_v61 = vunpack.c.h.bf16 %v1786_v45 }
 0x124   : > { %v1895_v0 = vpop.f32.mrb[21].mxu0  ;;  %v1934_v1 = vpop.f32.mrb[20].mxu1 }
 0x125   : > { %v1896_v2 = vadd.f32 %v1895_v0, %v1894_v63  ;;  %v1897_v3 = vpop.f32.mrb[22].mxu0  ;;  %v1935_v4 = vpop.f32.mrb[21].mxu1 }
 0x126   : > { %v1898_v5 = vpop.f32.mrb[23].mxu0  ;;  %v1936_v7 = vadd.f32 %v1935_v4, %v1934_v1  ;;  %v1937_v58 = vpop.f32.mrb[22].mxu1 }
 0x127   : > { %v1269_v6 = vadd.f32 %v1896_v2, %v1204_v10  ;;  %v1899_v8 = vadd.f32 %v1898_v5, %v1897_v3  ;;  %v1938_v9 = vpop.f32.mrb[23].mxu1  ;;  %v1765_v2 = vunpack.c.h.bf16 %v1788_v48  ;;  %v1753_v3 = vunpack.c.h.bf16 %v1751_v49 }
 0x128   : > { %v1939_v13 = vadd.f32 %v1938_v9, %v1937_v58 }
 0x129   : > { %v1272_v11 = vadd.f32 %v1899_v8, %v1207_v12  ;;  %v1334_v60 = vadd.f32 %v1936_v7, %v1269_v6  ;;  %v1761_v8 = vunpack.c.h.bf16 %v1787_v50 }
 0x12b   : > { %v1900_v14 = vpop.f32.mrb[24].mxu0  ;;  %v1337_v15 = vadd.f32 %v1939_v13, %v1272_v11 }
 0x12c   : > { %v1901_v16 = vpop.f32.mrb[25].mxu0  ;;  %v1940_v17 = vpop.f32.mrb[24].mxu1 }
 0x12d   : > { %v1902_v18 = vadd.f32 %v1901_v16, %v1900_v14  ;;  %v1903_v19 = vpop.f32.mrb[26].mxu0  ;;  %v1941_v20 = vpop.f32.mrb[25].mxu1 }
 0x12e   : > { %v1904_v21 = vpop.f32.mrb[27].mxu0  ;;  %v1942_v23 = vadd.f32 %v1941_v20, %v1940_v17  ;;  %v1943_v10 = vpop.f32.mrb[26].mxu1 }
 0x12f   : > { %v1277_v22 = vadd.f32 %v1902_v18, %v1212_v26  ;;  %v1905_v24 = vadd.f32 %v1904_v21, %v1903_v19  ;;  %v1944_v25 = vpop.f32.mrb[27].mxu1 }
 0x130   : > { %v1945_v29 = vadd.f32 %v1944_v25, %v1943_v10 }
 0x131   : > { %v1280_v27 = vadd.f32 %v1905_v24, %v1215_v28  ;;  %v1342_v12 = vadd.f32 %v1942_v23, %v1277_v22 }
 0x133   : > { %v1906_v30 = vpop.f32.mrb[28].mxu0  ;;  %v1345_v31 = vadd.f32 %v1945_v29, %v1280_v27 }
 0x134   : > { %v1907_v32 = vpop.f32.mrb[29].mxu0  ;;  %v1946_v33 = vpop.f32.mrb[28].mxu1 }
 0x135   : > { %v1908_v34 = vadd.f32 %v1907_v32, %v1906_v30  ;;  %v1909_v35 = vpop.f32.mrb[30].mxu0  ;;  %v1947_v36 = vpop.f32.mrb[29].mxu1 }
 0x136   : > { %v1910_v37 = vpop.f32.mrb[31].mxu0  ;;  %v1948_v38 = vadd.f32 %v1947_v36, %v1946_v33  ;;  %v1949_v39 = vpop.f32.mrb[30].mxu1 }
 0x137   : > { %v1285_v26 = vadd.f32 %v1908_v34, %v1220_v42  ;;  %v1911_v28 = vadd.f32 %v1910_v37, %v1909_v35  ;;  %v1950_v40 = vpop.f32.mrb[31].mxu1 }
 0x138   : > { %v1951_v43 = vadd.f32 %v1950_v40, %v1949_v39 }
 0x139   : > { %v1288_v41 = vadd.f32 %v1911_v28, %v2486_v44  ;;  %v1350_v47 = vadd.f32 %v1948_v38, %v1285_v26 }
 0x13b   : > { %v1353_v51 = vadd.f32 %v1951_v43, %v1288_v41 }
 0x13c   : > { %v1982_v53 = vpop.f32.mrb[32].mxu0 }
 0x13d   : > { %v1399_v56 = vadd.f32 %v1982_v53, %v1334_v60  ;;  %v1986_v57 = vpop.f32.mrb[32].mxu1  ;;  %v1390_v42 = vpop.f32.mrb[33].mxu0 }
 0x13e   : > { %v1415_v63 = vadd.f32 %v1986_v57, %v1350_v47  ;;  %v1391_v0 = vadd.f32 %v1390_v42, %v2488_v62  ;;  %v1406_v44 = vpop.f32.mrb[33].mxu1  ;;  %v1983_v1 = vpop.f32.mrb[34].mxu0 }
 0x13f   : > { %v1439_v4 = vadd.f32 %v1756_v52, %v1399_v56  ;;  %v1407_v5 = vadd.f32 %v1406_v44, %v1342_v12  ;;  %v1402_v6 = vadd.f32 %v1983_v1, %v1337_v15  ;;  %v1987_v7 = vpop.f32.mrb[34].mxu1  ;;  %v1393_v58 = vpop.f32.mrb[35].mxu0 }
 0x140   : > { %v1443_v9 = vadd.f32 %v1764_v54, %v1415_v63  ;;  %v1437_v11 = vadd.f32 %v1752_v55, %v1391_v0  ;;  %v1418_v13 = vadd.f32 %v1987_v7, %v1353_v51  ;;  %v1394_v60 = vadd.f32 %v1393_v58, %v2490_v46  ;;  %v1409_v14 = vpop.f32.mrb[35].mxu1 }
 0x141   : > { %v1441_v16 = vadd.f32 %v1760_v59, %v1407_v5  ;;  %v1440_v17 = vadd.f32 %v1757_v61, %v1402_v6  ;;  %v1410_v62 = vadd.f32 %v1409_v14, %v1345_v31  ;;  %v1447_v20 = vmax.f32 %v1439_v4, 0.0 }
 0x142   : > { %v1444_v18 = vadd.f32 %v1765_v2, %v1418_v13  ;;  %v1438_v19 = vadd.f32 %v1753_v3, %v1394_v60  ;;  %v1451_v23 = vmax.f32 %v1443_v9, 0.0  ;;  %v1445_v15 = vmax.f32 %v1437_v11, 0.0 }
 0x143   : > { %v1448_v21 = vmax.f32 %v1440_v17, 0.0  ;;  %v1442_v22 = vadd.f32 %v1761_v8, %v1410_v62  ;;  %v1449_v25 = vmax.f32 %v1441_v16, 0.0 }
 0x144   : > { %v1452_v10 = vmax.f32 %v1444_v18, 0.0  ;;  %v1446_v24 = vmax.f32 %v1438_v19, 0.0 }
 0x145   : > { %v1774_v46 = vpack.c.bf16 %v1448_v21, %v1447_v20  ;;  %v1450_v27 = vmax.f32 %v1442_v22, 0.0 }
 0x146   : > { %v1784_v29 = vpack.c.bf16 %v1452_v10, %v1451_v23  ;;  %v1769_v12 = vpack.c.bf16 %v1446_v24, %v1445_v15 }
 0x147   : > { %1789 = vst [vmem:[%s286_s24 + $0x8] sm:$0xff] %v1774_v46   ;;  %v1779_v30 = vpack.c.bf16 %v1450_v27, %v1449_v25 }
 0x148   : > { %1791 = vst [vmem:[%s286_s24 + $0x18] sm:$0xff] %v1784_v29   ;;  %1770 = vst [vmem:[%s286_s24] sm:$0xff] %v1769_v12  }
 0x149   : > { %1790 = vst [vmem:[%s286_s24 + $0x10] sm:$0xff] %v1779_v30  }
 0x14a PF: > { %s14_s17 = sadd.s32 1, %s2175_s17   ;;  %s2520_s15 = smov %s2171_s16 }
 0x14b   : > { %p11_p5 = scmp.ge.s32.totalorder %s14_s17, 4   ;;  %s2521_s16 = smov %s2523_s18 }
 0x14d   :  { %13 = sbr.rel (!%p11_p5) target bundleno = 2 (0x2), region = 75 }

// kernel: pixel_encoder_forward.25
= control target key start
LH: loop header
LB: loop body
LE: loop exit
PB: predicated region body
PF: predicated region fallthrough
CT: control target
= control target key end

     0   :  { %s2012_s12 = smov 0   ;;  %s2014_s13 = smov 0   ;;  %s2498_s0 = inlined_call_operand.vmem [shape: bf16[32,1152], index: 0, kind: input, shape index: {}]   ;;  %s2499_s1 = inlined_call_operand.vmem [shape: bf16[1152,256], index: 1, kind: input, shape index: {}]   ;;  %s2500_s2 = inlined_call_operand.vmem [shape: f32[1,256], index: 2, kind: input, shape index: {}]   ;;  %s2501_s3 = inlined_call_operand.vmem [shape: bf16[32,256], index: 3, kind: output, shape index: {}]  }
   0x1   :  { %s2016_s14 = smov 0  }
   0x2 LB: > { %s25_s15 = sadd.s32 1, %s1985_s13  ;;  %p1526_p0 = scmp.ge.s32.totalorder %s1989_s14, 1  ;;  %s1989_s14 = sphi %s2016_s14, %s13_s14   ;;  %s1985_s13 = sphi %s2014_s13, %s2503_s13   ;;  %s1981_s12 = sphi %s2012_s12, %s2502_s12  }
   0x3   : > { %p27_p1 = scmp.ge.s32.totalorder %s25_s15, 2  ;;  %p174_p2 = scmp.lt.s32.totalorder %s1989_s14, 3 }
   0x5   : > { %s2505_s15 = smov (%p27_p1, %s25_s15), 0  ;;  %p175_p3 = pnand %p1526_p0, %p174_p2 }
   0x6   : > { %v1738_v0 = vld [vmem:[%s2499_s1 + $0x4] ss:$8 sps:$4 sm:$0xff] (!%p175_p3)   ;;  %v1742_v2 = vld [vmem:[%s2499_s1] ss:$8 sps:$4 sm:$0xff] (!%p175_p3)   ;;  %v1744_v4 = vld [vmem:[%s2499_s1 + $0x14] ss:$8 sps:$4 sm:$0xff] (!%p175_p3)  }
   0x7   : > { %178 = sbr.rel (%p175_p3) target bundleno = 390 (0x186), region = 32  ;;  %v1740_v1 = vld [vmem:[%s2499_s1 + $0x204] ss:$8 sps:$4 sm:$0xff] (!%p175_p3)   ;;  %1176 = vmatprep.subr.bf16.mxu1 (!%p175_p3), %v1738_v0  ;;  %v1743_v3 = vld [vmem:[%s2499_s1 + $0x200] ss:$8 sps:$4 sm:$0xff] (!%p175_p3)   ;;  %s1527_s30 = sshll.u32 (!%p175_p3), %s1981_s12, 1 }
   0x8   : > { %1262 = vmatprep.subr.bf16.mxu0 (!%p175_p3), %v1740_v1  ;;  %1177 = vmatpush1.bf16.msra.mxu1 (!%p175_p3), %v1742_v2  ;;  %v1746_v5 = vld [vmem:[%s2499_s1 + $0x214] ss:$8 sps:$4 sm:$0xff] (!%p175_p3)   ;;  %v1748_v6 = vld [vmem:[%s2499_s1 + $0x10] ss:$8 sps:$4 sm:$0xff] (!%p175_p3)   ;;  %v1750_v8 = vld [vmem:[%s2499_s1 + $0x24] ss:$8 sps:$4 sm:$0xff] (!%p175_p3)  }
   0x9   : > { %1263 = vmatpush1.bf16.msra.mxu0 (!%p175_p3), %v1743_v3  ;;  %1178 = vmatprep.subr.bf16.mxu1 (!%p175_p3), %v1744_v4  ;;  %v1749_v7 = vld [vmem:[%s2499_s1 + $0x210] ss:$8 sps:$4 sm:$0xff] (!%p175_p3)   ;;  %v1752_v9 = vld [vmem:[%s2499_s1 + $0x224] ss:$8 sps:$4 sm:$0xff] (!%p175_p3)   ;;  %v1754_v10 = vld [vmem:[%s2499_s1 + $0x20] ss:$8 sps:$4 sm:$0xff] (!%p175_p3)  }
   0xa   : > { %1264 = vmatprep.subr.bf16.mxu0 (!%p175_p3), %v1746_v5  ;;  %v1755_v11 = vld [vmem:[%s2499_s1 + $0x220] ss:$8 sps:$4 sm:$0xff] (!%p175_p3)   ;;  %v1756_v12 = vld [vmem:[%s2499_s1 + $0x34] ss:$8 sps:$4 sm:$0xff] (!%p175_p3)   ;;  %v1760_v14 = vld [vmem:[%s2499_s1 + $0x30] ss:$8 sps:$4 sm:$0xff] (!%p175_p3)  }
   0xb   : > { %v1758_v13 = vld [vmem:[%s2499_s1 + $0x234] ss:$8 sps:$4 sm:$0xff] (!%p175_p3)   ;;  %v1761_v15 = vld [vmem:[%s2499_s1 + $0x230] ss:$8 sps:$4 sm:$0xff] (!%p175_p3)   ;;  %v1762_v16 = vld [vmem:[%s2499_s1 + $0x44] ss:$8 sps:$4 sm:$0xff] (!%p175_p3)  }
   0xc   : > { %1179 = vmatpush1.bf16.msra.mxu1 (!%p175_p3), %v1748_v6  ;;  %v1764_v17 = vld [vmem:[%s2499_s1 + $0x244] ss:$8 sps:$4 sm:$0xff] (!%p175_p3)   ;;  %v1766_v18 = vld [vmem:[%s2499_s1 + $0x40] ss:$8 sps:$4 sm:$0xff] (!%p175_p3)   ;;  %v1768_v20 = vld [vmem:[%s2499_s1 + $0x54] ss:$8 sps:$4 sm:$0xff] (!%p175_p3)  }
   0xd   : > { %1265 = vmatpush1.bf16.msra.mxu0 (!%p175_p3), %v1749_v7  ;;  %1180 = vmatprep.subr.bf16.mxu1 (!%p175_p3), %v1750_v8  ;;  %v1767_v19 = vld [vmem:[%s2499_s1 + $0x240] ss:$8 sps:$4 sm:$0xff] (!%p175_p3)   ;;  %v1770_v21 = vld [vmem:[%s2499_s1 + $0x254] ss:$8 sps:$4 sm:$0xff] (!%p175_p3)   ;;  %v1772_v22 = vld [vmem:[%s2499_s1 + $0x50] ss:$8 sps:$4 sm:$0xff] (!%p175_p3)  }
   0xe   : > { %1266 = vmatprep.subr.bf16.mxu0 %v1752_v9  ;;  %v1773_v23 = vld [vmem:[%s2499_s1 + $0x250] ss:$8 sps:$4 sm:$0xff]   ;;  %v1774_v24 = vld [vmem:[%s2499_s1 + $0x64] ss:$8 sps:$4 sm:$0xff]   ;;  %v1778_v26 = vld [vmem:[%s2499_s1 + $0x60] ss:$8 sps:$4 sm:$0xff]  }
   0xf   : > { %v1776_v25 = vld [vmem:[%s2499_s1 + $0x264] ss:$8 sps:$4 sm:$0xff]   ;;  %v1779_v27 = vld [vmem:[%s2499_s1 + $0x260] ss:$8 sps:$4 sm:$0xff]   ;;  %v1780_v28 = vld [vmem:[%s2499_s1 + $0x74] ss:$8 sps:$4 sm:$0xff]  }
  0x10   : > { %1181 = vmatpush1.bf16.msra.mxu1 %v1754_v10  ;;  %v1782_v29 = vld [vmem:[%s2499_s1 + $0x274] ss:$8 sps:$4 sm:$0xff]   ;;  %v1784_v30 = vld [vmem:[%s2499_s1 + $0x70] ss:$8 sps:$4 sm:$0xff]   ;;  %v1786_v32 = vld [vmem:[%s2499_s1 + $0x84] ss:$8 sps:$4 sm:$0xff]  }
  0x11   : > { %1267 = vmatpush1.bf16.msra.mxu0 %v1755_v11  ;;  %1182 = vmatprep.subr.bf16.mxu1 %v1756_v12  ;;  %v1785_v31 = vld [vmem:[%s2499_s1 + $0x270] ss:$8 sps:$4 sm:$0xff]   ;;  %p214_p4 = scmp.lt.s32.totalorder %s1527_s30, 3  ;;  %v1788_v33 = vld [vmem:[%s2499_s1 + $0x284] ss:$8 sps:$4 sm:$0xff]  }
  0x12   : > { %1268 = vmatprep.subr.bf16.mxu0 %v1758_v13  ;;  %v1790_v34 = vld [vmem:[%s2499_s1 + $0x80] ss:$8 sps:$4 sm:$0xff]   ;;  %v1792_v36 = vld [vmem:[%s2499_s1 + $0x94] ss:$8 sps:$4 sm:$0xff]   ;;  %v1796_v38 = vld [vmem:[%s2499_s1 + $0x90] ss:$8 sps:$4 sm:$0xff]  }
  0x13   : > { %v1791_v35 = vld [vmem:[%s2499_s1 + $0x280] ss:$8 sps:$4 sm:$0xff]   ;;  %s2507_s30 = smov (!%p214_p4, %s1527_s30), 3  ;;  %v1794_v37 = vld [vmem:[%s2499_s1 + $0x294] ss:$8 sps:$4 sm:$0xff]  }
  0x14   : > { %1183 = vmatpush1.bf16.msra.mxu1 %v1760_v14  ;;  %v1797_v39 = vld [vmem:[%s2499_s1 + $0x290] ss:$8 sps:$4 sm:$0xff]   ;;  %v1798_v40 = vld [vmem:[%s2499_s1 + $0xa4] ss:$8 sps:$4 sm:$0xff]   ;;  %s1712_s29 = smul.u32 36, %s2507_s30 }
  0x15   : > { %1269 = vmatpush1.bf16.msra.mxu0 %v1761_v15  ;;  %1184 = vmatprep.subr.bf16.mxu1 %v1762_v16  ;;  %v1800_v41 = vld [vmem:[%s2499_s1 + $0x2a4] ss:$8 sps:$4 sm:$0xff]   ;;  %v1802_v42 = vld [vmem:[%s2499_s1 + $0xa0] ss:$8 sps:$4 sm:$0xff]   ;;  %v1804_v44 = vld [vmem:[%s2499_s1 + $0xb4] ss:$8 sps:$4 sm:$0xff]  }
  0x16   : > { %1270 = vmatprep.subr.bf16.mxu0 %v1764_v17  ;;  %v1803_v43 = vld [vmem:[%s2499_s1 + $0x2a0] ss:$8 sps:$4 sm:$0xff]   ;;  %s2174_s17 = scalar_lea.vmem %s2498_s0, %s1712_s29  ;;  %v1806_v45 = vld [vmem:[%s2499_s1 + $0x2b4] ss:$8 sps:$4 sm:$0xff]   ;;  %v1808_v46 = vld [vmem:[%s2499_s1 + $0xb0] ss:$8 sps:$4 sm:$0xff]  }
  0x17   : > { %v1809_v47 = vld [vmem:[%s2499_s1 + $0x2b0] ss:$8 sps:$4 sm:$0xff]   ;;  %v1836_v48 = vld [vmem:[%s2174_s17 + $0x4] ss:$36 sps:$4 sm:$0xff]   ;;  %v1816_v54 = vld [vmem:[%s2499_s1 + $0xd4] ss:$8 sps:$4 sm:$0xff]  }
  0x18   : > { %1185 = vmatpush1.bf16.msra.mxu1 %v1766_v18  ;;  %v1810_v49 = vld [vmem:[%s2499_s1 + $0xc4] ss:$8 sps:$4 sm:$0xff]   ;;  %1208 = vmatprep.mubr.bf16.mxu1 %v1836_v48  ;;  %v1842_v51 = vld [vmem:[%s2174_s17 + $0x14] ss:$36 sps:$4 sm:$0xff]   ;;  %v1814_v52 = vld [vmem:[%s2499_s1 + $0xc0] ss:$8 sps:$4 sm:$0xff]  }
  0x19   : > { %1271 = vmatpush1.bf16.msra.mxu0 %v1767_v19  ;;  %1186 = vmatprep.subr.bf16.mxu1 %v1768_v20  ;;  %v1812_v50 = vld [vmem:[%s2499_s1 + $0x2c4] ss:$8 sps:$4 sm:$0xff]   ;;  %v1815_v53 = vld [vmem:[%s2499_s1 + $0x2c0] ss:$8 sps:$4 sm:$0xff]   ;;  %v1818_v55 = vld [vmem:[%s2499_s1 + $0x2d4] ss:$8 sps:$4 sm:$0xff]  }
  0x1a   : > { %1272 = vmatprep.subr.bf16.mxu0 %v1770_v21  ;;  %1294 = vmatprep.mubr.bf16.mxu0 %v1842_v51  ;;  %v1820_v56 = vld [vmem:[%s2499_s1 + $0xd0] ss:$8 sps:$4 sm:$0xff]   ;;  %v1822_v58 = vld [vmem:[%s2499_s1 + $0xe4] ss:$8 sps:$4 sm:$0xff]   ;;  %v1826_v60 = vld [vmem:[%s2499_s1 + $0xe0] ss:$8 sps:$4 sm:$0xff]  }
  0x1b   : > { %v1821_v57 = vld [vmem:[%s2499_s1 + $0x2d0] ss:$8 sps:$4 sm:$0xff]   ;;  %v1824_v59 = vld [vmem:[%s2499_s1 + $0x2e4] ss:$8 sps:$4 sm:$0xff]   ;;  %v1827_v61 = vld [vmem:[%s2499_s1 + $0x2e0] ss:$8 sps:$4 sm:$0xff]  }
  0x1c   : > { %1187 = vmatpush1.bf16.msra.mxu1 %v1772_v22  ;;  %v1828_v62 = vld [vmem:[%s2499_s1 + $0xf4] ss:$8 sps:$4 sm:$0xff]   ;;  %v1832_v0 = vld [vmem:[%s2499_s1 + $0xf0] ss:$8 sps:$4 sm:$0xff]   ;;  %v1839_v2 = vld [vmem:[%s2499_s1 + $0x104] ss:$8 sps:$4 sm:$0xff]  }
  0x1d   : > { %1273 = vmatpush1.bf16.msra.mxu0 %v1773_v23  ;;  %1188 = vmatprep.subr.bf16.mxu1 %v1774_v24  ;;  %v1830_v63 = vld [vmem:[%s2499_s1 + $0x2f4] ss:$8 sps:$4 sm:$0xff]   ;;  %v1833_v1 = vld [vmem:[%s2499_s1 + $0x2f0] ss:$8 sps:$4 sm:$0xff]   ;;  %v1845_v3 = vld [vmem:[%s2499_s1 + $0x304] ss:$8 sps:$4 sm:$0xff]  }
  0x1e   : > { %1274 = vmatprep.subr.bf16.mxu0 %v1776_v25  ;;  %v1834_v4 = vld [vmem:[%s2174_s17] ss:$36 sps:$4 sm:$0xff]   ;;  %v1840_v6 = vld [vmem:[%s2174_s17 + $0x10] ss:$36 sps:$4 sm:$0xff]  }
  0x1f   : > { %v1837_v5 = vld [vmem:[%s2499_s1 + $0x100] ss:$8 sps:$4 sm:$0xff]   ;;  %v1848_v8 = vld [vmem:[%s2499_s1 + $0x114] ss:$8 sps:$4 sm:$0xff]   ;;  %v1846_v10 = vld [vmem:[%s2499_s1 + $0x110] ss:$8 sps:$4 sm:$0xff]  }
  0x20   : > { %1189 = vmatpush1.bf16.msra.mxu1 %v1778_v26  ;;  %v1843_v7 = vld [vmem:[%s2499_s1 + $0x300] ss:$8 sps:$4 sm:$0xff]   ;;  %v1851_v9 = vld [vmem:[%s2499_s1 + $0x314] ss:$8 sps:$4 sm:$0xff]   ;;  %v1849_v11 = vld [vmem:[%s2499_s1 + $0x310] ss:$8 sps:$4 sm:$0xff]  }
  0x21   : > { %1275 = vmatpush1.bf16.msra.mxu0 %v1779_v27  ;;  %1190 = vmatprep.subr.bf16.mxu1 %v1780_v28  ;;  %v1854_v12 = vld [vmem:[%s2499_s1 + $0x124] ss:$8 sps:$4 sm:$0xff]   ;;  %v1852_v14 = vld [vmem:[%s2499_s1 + $0x120] ss:$8 sps:$4 sm:$0xff]   ;;  %v1860_v16 = vld [vmem:[%s2499_s1 + $0x134] ss:$8 sps:$4 sm:$0xff]  }
  0x22   : > { %1276 = vmatprep.subr.bf16.mxu0 %v1782_v29  ;;  %v1857_v13 = vld [vmem:[%s2499_s1 + $0x324] ss:$8 sps:$4 sm:$0xff]   ;;  %v1855_v15 = vld [vmem:[%s2499_s1 + $0x320] ss:$8 sps:$4 sm:$0xff]   ;;  %v1863_v17 = vld [vmem:[%s2499_s1 + $0x334] ss:$8 sps:$4 sm:$0xff]  }
  0x23   : > { %v1858_v18 = vld [vmem:[%s2499_s1 + $0x130] ss:$8 sps:$4 sm:$0xff]   ;;  %v1866_v20 = vld [vmem:[%s2499_s1 + $0x144] ss:$8 sps:$4 sm:$0xff]   ;;  %v1864_v22 = vld [vmem:[%s2499_s1 + $0x140] ss:$8 sps:$4 sm:$0xff]  }
  0x24   : > { %1191 = vmatpush1.bf16.msra.mxu1 %v1784_v30  ;;  %v1861_v19 = vld [vmem:[%s2499_s1 + $0x330] ss:$8 sps:$4 sm:$0xff]   ;;  %v1869_v21 = vld [vmem:[%s2499_s1 + $0x344] ss:$8 sps:$4 sm:$0xff]   ;;  %v1867_v23 = vld [vmem:[%s2499_s1 + $0x340] ss:$8 sps:$4 sm:$0xff]  }
  0x25   : > { %1277 = vmatpush1.bf16.msra.mxu0 %v1785_v31  ;;  %1192 = vmatprep.subr.bf16.mxu1 %v1786_v32  ;;  %v1872_v24 = vld [vmem:[%s2499_s1 + $0x154] ss:$8 sps:$4 sm:$0xff]   ;;  %v1870_v26 = vld [vmem:[%s2499_s1 + $0x150] ss:$8 sps:$4 sm:$0xff]   ;;  %v1878_v28 = vld [vmem:[%s2499_s1 + $0x164] ss:$8 sps:$4 sm:$0xff]  }
  0x26   : > { %1278 = vmatprep.subr.bf16.mxu0 %v1788_v33  ;;  %v1875_v25 = vld [vmem:[%s2499_s1 + $0x354] ss:$8 sps:$4 sm:$0xff]   ;;  %v1873_v27 = vld [vmem:[%s2499_s1 + $0x350] ss:$8 sps:$4 sm:$0xff]   ;;  %v1881_v29 = vld [vmem:[%s2499_s1 + $0x364] ss:$8 sps:$4 sm:$0xff]  }
  0x27   : > { %v1876_v30 = vld [vmem:[%s2499_s1 + $0x160] ss:$8 sps:$4 sm:$0xff]   ;;  %v1884_v32 = vld [vmem:[%s2499_s1 + $0x174] ss:$8 sps:$4 sm:$0xff]  }
  0x28   : > { %1193 = vmatpush1.bf16.msra.mxu1 %v1790_v34  ;;  %v1879_v31 = vld [vmem:[%s2499_s1 + $0x360] ss:$8 sps:$4 sm:$0xff]   ;;  %v1887_v33 = vld [vmem:[%s2499_s1 + $0x374] ss:$8 sps:$4 sm:$0xff]   ;;  %v1938_v34 = vld [vmem:[%s2174_s17 + $0xc] ss:$36 sps:$4 sm:$0xff]  }
  0x29   : > { %1279 = vmatpush1.bf16.msra.mxu0 %v1791_v35  ;;  %1194 = vmatprep.subr.bf16.mxu1 %v1792_v36  ;;  %v1941_v35 = vld [vmem:[%s2174_s17 + $0x1c] ss:$36 sps:$4 sm:$0xff]   ;;  %v1882_v36 = vld [vmem:[%s2499_s1 + $0x170] ss:$8 sps:$4 sm:$0xff]  }
  0x2a   : > { %1280 = vmatprep.subr.bf16.mxu0 %v1794_v37  ;;  %v1885_v37 = vld [vmem:[%s2499_s1 + $0x370] ss:$8 sps:$4 sm:$0xff]   ;;  %v1900_v48 = vld [vmem:[%s2499_s1 + $0x1a0] ss:$8 sps:$4 sm:$0xff]   ;;  %v1911_v51 = vld [vmem:[%s2499_s1 + $0x3b4] ss:$8 sps:$4 sm:$0xff]  }
  0x2c   : > { %1195 = vmatpush1.bf16.msra.mxu1 %v1796_v38  ;;  %v1890_v38 = vld [vmem:[%s2499_s1 + $0x184] ss:$8 sps:$4 sm:$0xff]  }
  0x2d   : > { %1281 = vmatpush1.bf16.msra.mxu0 %v1797_v39  ;;  %1196 = vmatprep.subr.bf16.mxu1 %v1798_v40  ;;  %v1893_v39 = vld [vmem:[%s2499_s1 + $0x384] ss:$8 sps:$4 sm:$0xff]   ;;  %v1888_v40 = vld [vmem:[%s2499_s1 + $0x180] ss:$8 sps:$4 sm:$0xff]  }
  0x2e   : > { %1282 = vmatprep.subr.bf16.mxu0 %v1800_v41  ;;  %v1891_v41 = vld [vmem:[%s2499_s1 + $0x380] ss:$8 sps:$4 sm:$0xff]  }
  0x30   : > { %1197 = vmatpush1.bf16.msra.mxu1 %v1802_v42  ;;  %v1896_v42 = vld [vmem:[%s2499_s1 + $0x194] ss:$8 sps:$4 sm:$0xff]  }
  0x31   : > { %1283 = vmatpush1.bf16.msra.mxu0 %v1803_v43  ;;  %1198 = vmatprep.subr.bf16.mxu1 %v1804_v44  ;;  %v1899_v43 = vld [vmem:[%s2499_s1 + $0x394] ss:$8 sps:$4 sm:$0xff]   ;;  %v1894_v44 = vld [vmem:[%s2499_s1 + $0x190] ss:$8 sps:$4 sm:$0xff]  }
  0x32   : > { %1284 = vmatprep.subr.bf16.mxu0 %v1806_v45  ;;  %v1897_v45 = vld [vmem:[%s2499_s1 + $0x390] ss:$8 sps:$4 sm:$0xff]  }
  0x34   : > { %1199 = vmatpush1.bf16.msra.mxu1 %v1808_v46  ;;  %v1902_v46 = vld [vmem:[%s2499_s1 + $0x1a4] ss:$8 sps:$4 sm:$0xff]  }
  0x35   : > { %1285 = vmatpush1.bf16.msra.mxu0 %v1809_v47  ;;  %1200 = vmatprep.subr.bf16.mxu1 %v1810_v49  ;;  %v1905_v47 = vld [vmem:[%s2499_s1 + $0x3a4] ss:$8 sps:$4 sm:$0xff]   ;;  %v1903_v49 = vld [vmem:[%s2499_s1 + $0x3a0] ss:$8 sps:$4 sm:$0xff]  }
  0x36   : > { %1286 = vmatprep.subr.bf16.mxu0 %v1812_v50  ;;  %v1908_v50 = vld [vmem:[%s2499_s1 + $0x1b4] ss:$8 sps:$4 sm:$0xff]  }
  0x38   : > { %1201 = vmatpush1.bf16.msra.mxu1 %v1814_v52  ;;  %v1906_v52 = vld [vmem:[%s2499_s1 + $0x1b0] ss:$8 sps:$4 sm:$0xff]  }
  0x39   : > { %1287 = vmatpush1.bf16.msra.mxu0 %v1815_v53  ;;  %1202 = vmatprep.subr.bf16.mxu1 %v1816_v54  ;;  %v1909_v53 = vld [vmem:[%s2499_s1 + $0x3b0] ss:$8 sps:$4 sm:$0xff]   ;;  %v1914_v54 = vld [vmem:[%s2499_s1 + $0x1c4] ss:$8 sps:$4 sm:$0xff]  }
  0x3a   : > { %1288 = vmatprep.subr.bf16.mxu0 %v1818_v55  ;;  %v1917_v55 = vld [vmem:[%s2499_s1 + $0x3c4] ss:$8 sps:$4 sm:$0xff]  }
  0x3c   : > { %1203 = vmatpush1.bf16.msra.mxu1 %v1820_v56  ;;  %v1912_v56 = vld [vmem:[%s2499_s1 + $0x1c0] ss:$8 sps:$4 sm:$0xff]  }
  0x3d   : > { %1289 = vmatpush1.bf16.msra.mxu0 %v1821_v57  ;;  %1204 = vmatprep.subr.bf16.mxu1 %v1822_v58  ;;  %v1915_v57 = vld [vmem:[%s2499_s1 + $0x3c0] ss:$8 sps:$4 sm:$0xff]   ;;  %v1920_v58 = vld [vmem:[%s2499_s1 + $0x1d4] ss:$8 sps:$4 sm:$0xff]  }
  0x3e   : > { %1290 = vmatprep.subr.bf16.mxu0 %v1824_v59  ;;  %v1923_v59 = vld [vmem:[%s2499_s1 + $0x3d4] ss:$8 sps:$4 sm:$0xff]  }
  0x40   : > { %1205 = vmatpush1.bf16.msra.mxu1 %v1826_v60  ;;  %v1918_v60 = vld [vmem:[%s2499_s1 + $0x1d0] ss:$8 sps:$4 sm:$0xff]  }
  0x41   : > { %1291 = vmatpush1.bf16.msra.mxu0 %v1827_v61  ;;  %1206 = vmatprep.subr.bf16.mxu1 %v1828_v62  ;;  %v1921_v61 = vld [vmem:[%s2499_s1 + $0x3d0] ss:$8 sps:$4 sm:$0xff]   ;;  %v1926_v62 = vld [vmem:[%s2499_s1 + $0x1e4] ss:$8 sps:$4 sm:$0xff]  }
  0x42   : > { %1292 = vmatprep.subr.bf16.mxu0 %v1830_v63  ;;  %v1929_v63 = vld [vmem:[%s2499_s1 + $0x3e4] ss:$8 sps:$4 sm:$0xff]  }
  0x44   : > { %1207 = vmatpush1.bf16.msra.mxu1 %v1832_v0  ;;  %v1924_v0 = vld [vmem:[%s2499_s1 + $0x1e0] ss:$8 sps:$4 sm:$0xff]  }
  0x45   : > { %1293 = vmatpush1.bf16.msra.mxu0 %v1833_v1  ;;  %1219 = vmatprep.subr.bf16.mxu1 %v1839_v2  ;;  %v1927_v1 = vld [vmem:[%s2499_s1 + $0x3e0] ss:$8 sps:$4 sm:$0xff]   ;;  %v1932_v2 = vld [vmem:[%s2499_s1 + $0x1f4] ss:$8 sps:$4 sm:$0xff]  }
  0x46   : > { %1305 = vmatprep.subr.bf16.mxu0 %v1845_v3  ;;  %v1935_v3 = vld [vmem:[%s2499_s1 + $0x3f4] ss:$8 sps:$4 sm:$0xff]  }
  0x47   : > { %1209 = vmatmul.mubr.bf16.vlgmr.msra.gmra.mrb[0].mxu1 %v1834_v4  ;;  %v1930_v4 = vld [vmem:[%s2499_s1 + $0x1f0] ss:$8 sps:$4 sm:$0xff]  }
  0x48   : > { %1295 = vmatmul.mubr.bf16.vlgmr.msra.gmra.mrb[0].mxu0 %v1840_v6  ;;  %1220 = vmatpush1.bf16.msra.mxu1 %v1837_v5  ;;  %v1933_v5 = vld [vmem:[%s2499_s1 + $0x3f0] ss:$8 sps:$4 sm:$0xff]   ;;  %v1944_v6 = vld [vmem:[%s2499_s1 + $0x404] ss:$8 sps:$4 sm:$0xff]  }
  0x49   : > { %1306 = vmatpush1.bf16.msra.mxu0 %v1843_v7  ;;  %1221 = vmatprep.subr.bf16.mxu1 %v1848_v8  ;;  %v1936_v7 = vld [vmem:[%s2174_s17 + $0x8] ss:$36 sps:$4 sm:$0xff]   ;;  %v1939_v8 = vld [vmem:[%s2174_s17 + $0x18] ss:$36 sps:$4 sm:$0xff]  }
  0x4a   : > { %1307 = vmatprep.subr.bf16.mxu0 %v1851_v9  ;;  %1251 = vmatprep.mubr.bf16.mxu1 %v1938_v34  ;;  %v1942_v9 = vld [vmem:[%s2499_s1 + $0x400] ss:$8 sps:$4 sm:$0xff]  }
  0x4b   : > { %1337 = vmatprep.mubr.bf16.mxu0 %v1941_v35 }
  0x4c   : > { %1222 = vmatpush1.bf16.msra.mxu1 %v1846_v10  ;;  %v1947_v10 = vld [vmem:[%s2499_s1 + $0x414] ss:$8 sps:$4 sm:$0xff]  }
  0x4d   : > { %1308 = vmatpush1.bf16.msra.mxu0 %v1849_v11  ;;  %1223 = vmatprep.subr.bf16.mxu1 %v1854_v12  ;;  %v1945_v11 = vld [vmem:[%s2499_s1 + $0x410] ss:$8 sps:$4 sm:$0xff]   ;;  %v1991_v12 = vmov 0  }
  0x4e   : > { %1309 = vmatprep.subr.bf16.mxu0 %v1857_v13  ;;  %v1950_v13 = vld [vmem:[%s2499_s1 + $0x424] ss:$8 sps:$4 sm:$0xff]  }
  0x50   : > { %1224 = vmatpush1.bf16.msra.mxu1 %v1852_v14  ;;  %v1948_v14 = vld [vmem:[%s2499_s1 + $0x420] ss:$8 sps:$4 sm:$0xff]  }
  0x51   : > { %1310 = vmatpush1.bf16.msra.mxu0 %v1855_v15  ;;  %1225 = vmatprep.subr.bf16.mxu1 %v1860_v16  ;;  %v1953_v15 = vld [vmem:[%s2499_s1 + $0x434] ss:$8 sps:$4 sm:$0xff]   ;;  %v1951_v16 = vld [vmem:[%s2499_s1 + $0x430] ss:$8 sps:$4 sm:$0xff]  }
  0x52   : > { %1311 = vmatprep.subr.bf16.mxu0 %v1863_v17  ;;  %v1956_v17 = vld [vmem:[%s2499_s1 + $0x444] ss:$8 sps:$4 sm:$0xff]  }
  0x54   : > { %1226 = vmatpush1.bf16.msra.mxu1 %v1858_v18  ;;  %v1954_v18 = vld [vmem:[%s2499_s1 + $0x440] ss:$8 sps:$4 sm:$0xff]  }
  0x55   : > { %1312 = vmatpush1.bf16.msra.mxu0 %v1861_v19  ;;  %1227 = vmatprep.subr.bf16.mxu1 %v1866_v20  ;;  %v1959_v19 = vld [vmem:[%s2499_s1 + $0x454] ss:$8 sps:$4 sm:$0xff]   ;;  %v1957_v20 = vld [vmem:[%s2499_s1 + $0x450] ss:$8 sps:$4 sm:$0xff]  }
  0x56   : > { %1313 = vmatprep.subr.bf16.mxu0 %v1869_v21  ;;  %v1962_v21 = vld [vmem:[%s2499_s1 + $0x464] ss:$8 sps:$4 sm:$0xff]  }
  0x58   : > { %1228 = vmatpush1.bf16.msra.mxu1 %v1864_v22  ;;  %v1960_v22 = vld [vmem:[%s2499_s1 + $0x460] ss:$8 sps:$4 sm:$0xff]  }
  0x59   : > { %1314 = vmatpush1.bf16.msra.mxu0 %v1867_v23  ;;  %1229 = vmatprep.subr.bf16.mxu1 %v1872_v24  ;;  %v1965_v23 = vld [vmem:[%s2499_s1 + $0x474] ss:$8 sps:$4 sm:$0xff]   ;;  %v1963_v24 = vld [vmem:[%s2499_s1 + $0x470] ss:$8 sps:$4 sm:$0xff]  }
  0x5a   : > { %1315 = vmatprep.subr.bf16.mxu0 %v1875_v25  ;;  %v1966_v25 = vld [vmem:[%s2174_s17 + $0x20] ss:$36 sps:$4 sm:$0xff]   ;;  %s1689_s17 = sshll.u32 %s2507_s30, 3 }
  0x5b   : > { %s240_s22 = scalar_lea.vmem %s2501_s3, %s1689_s17 }
  0x5c   : > { %1230 = vmatpush1.bf16.msra.mxu1 %v1870_v26 }
  0x5d   : > { %1316 = vmatpush1.bf16.msra.mxu0 %v1873_v27  ;;  %1231 = vmatprep.subr.bf16.mxu1 %v1878_v28 }
  0x5e   : > { %1317 = vmatprep.subr.bf16.mxu0 %v1881_v29 }
  0x60   : > { %1232 = vmatpush1.bf16.msra.mxu1 %v1876_v30  ;;  %v400_v30 = vlaneseq }
  0x61   : > { %1318 = vmatpush1.bf16.msra.mxu0 %v1879_v31  ;;  %1233 = vmatprep.subr.bf16.mxu1 %v1884_v32 }
  0x62   : > { %1319 = vmatprep.subr.bf16.mxu0 %v1887_v33  ;;  %v401_v31 = vshrl.u32 %v400_v30, 7  ;;  %v398_v33 = vld [vmem:[%s2500_s2] sm:$0x3] }
  0x64   : > { %1234 = vmatpush1.bf16.msra.mxu1 %v1882_v36  ;;  %v402_v32 = vsub.s32 0, %v401_v31  ;;  %v406_v34 = vsub.s32 1, %v401_v31 }
  0x65   : > { %1320 = vmatpush1.bf16.msra.mxu0 %v1885_v37  ;;  %1235 = vmatprep.subr.bf16.mxu1 %v1890_v38 }
  0x66   : > { %1321 = vmatprep.subr.bf16.mxu0 %v1893_v39  ;;  %v403_v35 = vrot.slane %v398_v33, %v402_v32  ;;  %v407_v36 = vrot.slane %v398_v33, %v406_v34 }
  0x68   : > { %1236 = vmatpush1.bf16.msra.mxu1 %v1888_v40 }
  0x69   : > { %1322 = vmatpush1.bf16.msra.mxu0 %v1891_v41  ;;  %1237 = vmatprep.subr.bf16.mxu1 %v1896_v42 }
  0x6a   : > { %1323 = vmatprep.subr.bf16.mxu0 %v1899_v43 }
  0x6c   : > { %1238 = vmatpush1.bf16.msra.mxu1 %v1894_v44 }
  0x6d   : > { %1324 = vmatpush1.bf16.msra.mxu0 %v1897_v45  ;;  %1239 = vmatprep.subr.bf16.mxu1 %v1902_v46 }
  0x6e   : > { %1325 = vmatprep.subr.bf16.mxu0 %v1905_v47 }
  0x70   : > { %1240 = vmatpush1.bf16.msra.mxu1 %v1900_v48 }
  0x71   : > { %1326 = vmatpush1.bf16.msra.mxu0 %v1903_v49  ;;  %1241 = vmatprep.subr.bf16.mxu1 %v1908_v50 }
  0x72   : > { %1327 = vmatprep.subr.bf16.mxu0 %v1911_v51 }
  0x74   : > { %1242 = vmatpush1.bf16.msra.mxu1 %v1906_v52 }
  0x75   : > { %1328 = vmatpush1.bf16.msra.mxu0 %v1909_v53  ;;  %1243 = vmatprep.subr.bf16.mxu1 %v1914_v54 }
  0x76   : > { %1329 = vmatprep.subr.bf16.mxu0 %v1917_v55 }
  0x78   : > { %1244 = vmatpush1.bf16.msra.mxu1 %v1912_v56 }
  0x79   : > { %1330 = vmatpush1.bf16.msra.mxu0 %v1915_v57  ;;  %1245 = vmatprep.subr.bf16.mxu1 %v1920_v58 }
  0x7a   : > { %1331 = vmatprep.subr.bf16.mxu0 %v1923_v59 }
  0x7c   : > { %1246 = vmatpush1.bf16.msra.mxu1 %v1918_v60 }
  0x7d   : > { %1332 = vmatpush1.bf16.msra.mxu0 %v1921_v61  ;;  %1247 = vmatprep.subr.bf16.mxu1 %v1926_v62 }
  0x7e   : > { %1333 = vmatprep.subr.bf16.mxu0 %v1929_v63 }
  0x80   : > { %1248 = vmatpush1.bf16.msra.mxu1 %v1924_v0 }
  0x81   : > { %1334 = vmatpush1.bf16.msra.mxu0 %v1927_v1  ;;  %1249 = vmatprep.subr.bf16.mxu1 %v1932_v2 }
  0x82   : > { %1335 = vmatprep.subr.bf16.mxu0 %v1935_v3 }
  0x84   : > { %1250 = vmatpush1.bf16.msra.mxu1 %v1930_v4 }
  0x85   : > { %1336 = vmatpush1.bf16.msra.mxu0 %v1933_v5 }
  0x86   : > { %1348 = vmatprep.subr.bf16.mxu0 %v1944_v6 }
  0x87   : > { %1252 = vmatmul.mubr.bf16.vlgmr.msra.gmra.mrb[0].mxu1 %v1936_v7 }
  0x88   : > { %1338 = vmatmul.mubr.bf16.vlgmr.msra.gmra.mrb[0].mxu0 %v1939_v8 }
  0x89   : > { %1349 = vmatpush1.bf16.msra.mxu0 %v1942_v9  ;;  %1380 = vmatprep.mubr.bf16.mxu0 %v1991_v12 }
  0x8a   : > { %1350 = vmatprep.subr.bf16.mxu0 %v1947_v10 }
  0x8d   : > { %1351 = vmatpush1.bf16.msra.mxu0 %v1945_v11 }
  0x8e   : > { %1352 = vmatprep.subr.bf16.mxu0 %v1950_v13 }
  0x91   : > { %1353 = vmatpush1.bf16.msra.mxu0 %v1948_v14 }
  0x92   : > { %1354 = vmatprep.subr.bf16.mxu0 %v1953_v15 }
  0x95   : > { %1355 = vmatpush1.bf16.msra.mxu0 %v1951_v16 }
  0x96   : > { %1356 = vmatprep.subr.bf16.mxu0 %v1956_v17 }
  0x99   : > { %1357 = vmatpush1.bf16.msra.mxu0 %v1954_v18 }
  0x9a   : > { %1358 = vmatprep.subr.bf16.mxu0 %v1959_v19 }
  0x9d   : > { %1359 = vmatpush1.bf16.msra.mxu0 %v1957_v20 }
  0x9e   : > { %1360 = vmatprep.subr.bf16.mxu0 %v1962_v21 }
  0xa1   : > { %1361 = vmatpush1.bf16.msra.mxu0 %v1960_v22 }
  0xa2   : > { %1362 = vmatprep.subr.bf16.mxu0 %v1965_v23 }
  0xa5   : > { %1363 = vmatpush1.bf16.msra.mxu0 %v1963_v24 }
  0xa8   : > { %1381 = vmatmul.mubr.bf16.vlgmr.msra.gmra.mrb[0].mxu0 %v1966_v25 }
 0x15a   : > { %v1253_v26 = vpop.f32.mrb[0].mxu1 }
 0x15b   : > { %v1255_v27 = vpop.f32.mrb[1].mxu1  ;;  %v1692_v37 = vadd.f32 %v1253_v26, %v403_v35 }
 0x15c   : > { %v1257_v28 = vpop.f32.mrb[2].mxu1  ;;  %v1694_v38 = vadd.f32 %v1255_v27, %v407_v36 }
 0x15d   : > { %v1259_v29 = vpop.f32.mrb[3].mxu1  ;;  %v1696_v40 = vadd.f32 %v1257_v28, %v403_v35 }
 0x15e   : > { %v1698_v43 = vadd.f32 %v1259_v29, %v407_v36 }
 0x17b   : > { %v1382_v39 = vpop.f32.mrb[0].mxu0 }
 0x17c   : > { %v1693_v41 = vadd.f32 %v1692_v37, %v1382_v39  ;;  %v1384_v42 = vpop.f32.mrb[1].mxu0 }
 0x17d   : > { %v1695_v44 = vadd.f32 %v1694_v38, %v1384_v42  ;;  %v1386_v45 = vpop.f32.mrb[2].mxu0 }
 0x17e   : > { %v1391_v46 = vmax.f32 %v1693_v41, 0.0  ;;  %v1697_v47 = vadd.f32 %v1696_v40, %v1386_v45  ;;  %v1388_v48 = vpop.f32.mrb[3].mxu0 }
 0x17f   : > { %v1392_v49 = vmax.f32 %v1695_v44, 0.0  ;;  %v1699_v50 = vadd.f32 %v1698_v43, %v1388_v48 }
 0x180   : > { %v1393_v51 = vmax.f32 %v1697_v47, 0.0 }
 0x181   : > { %v1690_v52 = vpack.c.bf16 %v1392_v49, %v1391_v46  ;;  %v1394_v53 = vmax.f32 %v1699_v50, 0.0 }
 0x183   : > { %1407 = vst [vmem:[%s240_s22] sm:$0xff] %v1690_v52  ;;  %v1691_v54 = vpack.c.bf16 %v1394_v53, %v1393_v51 }
 0x185   : > { %1408 = vst [vmem:[%s240_s22 + $0x8] sm:$0xff] %v1691_v54 }
 0x186 PF: > { %s13_s14 = sadd.s32 1, %s1989_s14   ;;  %s2502_s12 = smov %s1985_s13 }
 0x187   : > { %p10_p5 = scmp.ge.s32.totalorder %s13_s14, 4   ;;  %s2503_s13 = smov %s2505_s15 }
 0x189   :  { %12 = sbr.rel (!%p10_p5) target bundleno = 2 (0x2), region = 68 }

// kernel: pixel_encoder_forward.26
= control target key start
LH: loop header
LB: loop body
LE: loop exit
PB: predicated region body
PF: predicated region fallthrough
CT: control target
= control target key end

     0   :  { %s656_s12 = smov 0   ;;  %s658_s13 = smov 0   ;;  %s744_s0 = inlined_call_operand.vmem [shape: bf16[32,128], index: 0, kind: input, shape index: {}]   ;;  %s745_s1 = inlined_call_operand.vmem [shape: bf16[128,256], index: 1, kind: input, shape index: {}]   ;;  %s746_s2 = inlined_call_operand.vmem [shape: f32[1,256], index: 2, kind: input, shape index: {}]   ;;  %s747_s3 = inlined_call_operand.vmem [shape: bf16[32,256], index: 3, kind: output, shape index: {}]  }
   0x1   :  { %s660_s14 = smov 0  }
   0x2 LB: > { %s25_s15 = sadd.s32 1, %s629_s13  ;;  %p531_p0 = scmp.ge.s32.totalorder %s633_s14, 1  ;;  %s633_s14 = sphi %s660_s14, %s13_s14   ;;  %s629_s13 = sphi %s658_s13, %s749_s13   ;;  %s625_s12 = sphi %s656_s12, %s748_s12  }
   0x3   : > { %p27_p1 = scmp.ge.s32.totalorder %s25_s15, 2  ;;  %p173_p2 = scmp.lt.s32.totalorder %s633_s14, 3 }
   0x5   : > { %s751_s15 = smov (%p27_p1, %s25_s15), 0  ;;  %p174_p3 = pnand %p531_p0, %p173_p2 }
   0x6   : > { %v586_v0 = vld [vmem:[%s745_s1 + $0x4] ss:$8 sps:$4 sm:$0xff] (!%p174_p3)   ;;  %s532_s18 = sshll.u32 (!%p174_p3), %s625_s12, 1  ;;  %v588_v1 = vld [vmem:[%s745_s1] ss:$8 sps:$4 sm:$0xff] (!%p174_p3)   ;;  %v635_v2 = vmov (!%p174_p3), 0   ;;  %v261_v18 = vlaneseq (!%p174_p3) }
   0x7   : > { %177 = sbr.rel (%p174_p3) target bundleno = 259 (0x103), region = 32  ;;  %389 = vmatprep.mubr.bf16.mxu0 (!%p174_p3), %v635_v2  ;;  %p212_p4 = scmp.lt.s32.totalorder (!%p174_p3), %s532_s18, 3  ;;  %357 = vmatprep.subr.bf16.mxu0 (!%p174_p3), %v586_v0  ;;  %v589_v3 = vld [vmem:[%s745_s1 + $0x14] ss:$8 sps:$4 sm:$0xff] (!%p174_p3)   ;;  %v591_v4 = vld [vmem:[%s745_s1 + $0x10] ss:$8 sps:$4 sm:$0xff] (!%p174_p3)  }
   0x8   : > { %358 = vmatpush1.bf16.msra.mxu0 (!%p174_p3), %v588_v1  ;;  %v592_v5 = vld [vmem:[%s745_s1 + $0x24] ss:$8 sps:$4 sm:$0xff] (!%p174_p3)   ;;  %v594_v6 = vld [vmem:[%s745_s1 + $0x20] ss:$8 sps:$4 sm:$0xff] (!%p174_p3)   ;;  %v595_v7 = vld [vmem:[%s745_s1 + $0x34] ss:$8 sps:$4 sm:$0xff] (!%p174_p3)  }
   0x9   : > { %359 = vmatprep.subr.bf16.mxu0 (!%p174_p3), %v589_v3  ;;  %v597_v8 = vld [vmem:[%s745_s1 + $0x30] ss:$8 sps:$4 sm:$0xff] (!%p174_p3)   ;;  %v598_v9 = vld [vmem:[%s745_s1 + $0x44] ss:$8 sps:$4 sm:$0xff] (!%p174_p3)   ;;  %v600_v10 = vld [vmem:[%s745_s1 + $0x40] ss:$8 sps:$4 sm:$0xff] (!%p174_p3)  }
   0xa   : > { %v601_v11 = vld [vmem:[%s745_s1 + $0x54] ss:$8 sps:$4 sm:$0xff] (!%p174_p3)   ;;  %v603_v12 = vld [vmem:[%s745_s1 + $0x50] ss:$8 sps:$4 sm:$0xff] (!%p174_p3)   ;;  %v604_v13 = vld [vmem:[%s745_s1 + $0x64] ss:$8 sps:$4 sm:$0xff] (!%p174_p3)  }
   0xb   : > { %v606_v14 = vld [vmem:[%s745_s1 + $0x60] ss:$8 sps:$4 sm:$0xff] (!%p174_p3)   ;;  %v607_v15 = vld [vmem:[%s745_s1 + $0x74] ss:$8 sps:$4 sm:$0xff] (!%p174_p3)   ;;  %v609_v16 = vld [vmem:[%s745_s1 + $0x70] ss:$8 sps:$4 sm:$0xff] (!%p174_p3)  }
   0xc   : > { %360 = vmatpush1.bf16.msra.mxu0 (!%p174_p3), %v591_v4  ;;  %v262_v19 = vshrl.u32 (!%p174_p3), %v261_v18, 7  ;;  %v259_v21 = vld [vmem:[%s746_s2] sm:$0x3] (!%p174_p3) }
   0xd   : > { %361 = vmatprep.subr.bf16.mxu0 (!%p174_p3), %v592_v5 }
   0xe   : > { %s753_s18 = smov (!%p212_p4, %s532_s18), 3  ;;  %v263_v20 = vsub.s32 0, %v262_v19  ;;  %v267_v22 = vsub.s32 1, %v262_v19 }
   0xf   : > { %s533_s27 = sshll.u32 %s753_s18, 2  ;;  %s558_s5 = sshll.u32 %s753_s18, 3 }
  0x10   : > { %s215_s7 = scalar_lea.vmem %s744_s0, %s533_s27  ;;  %362 = vmatpush1.bf16.msra.mxu0 %v594_v6  ;;  %v264_v23 = vrot.slane %v259_v21, %v263_v20  ;;  %v268_v24 = vrot.slane %v259_v21, %v267_v22  ;;  %s237_s8 = scalar_lea.vmem %s747_s3, %s558_s5 }
  0x11   : > { %363 = vmatprep.subr.bf16.mxu0 %v595_v7  ;;  %v610_v17 = vld [vmem:[%s215_s7] sm:$0xff]  }
  0x14   : > { %364 = vmatpush1.bf16.msra.mxu0 %v597_v8 }
  0x15   : > { %365 = vmatprep.subr.bf16.mxu0 %v598_v9 }
  0x18   : > { %366 = vmatpush1.bf16.msra.mxu0 %v600_v10 }
  0x19   : > { %367 = vmatprep.subr.bf16.mxu0 %v601_v11 }
  0x1c   : > { %368 = vmatpush1.bf16.msra.mxu0 %v603_v12 }
  0x1d   : > { %369 = vmatprep.subr.bf16.mxu0 %v604_v13 }
  0x20   : > { %370 = vmatpush1.bf16.msra.mxu0 %v606_v14 }
  0x21   : > { %371 = vmatprep.subr.bf16.mxu0 %v607_v15 }
  0x24   : > { %372 = vmatpush1.bf16.msra.mxu0 %v609_v16 }
  0x27   : > { %390 = vmatmul.mubr.bf16.vlgmr.msra.gmra.mrb[0].mxu0 %v610_v17 }
  0xfa   : > { %v391_v25 = vpop.f32.mrb[0].mxu0 }
  0xfb   : > { %v392_v26 = vadd.f32 %v391_v25, %v264_v23  ;;  %v393_v27 = vpop.f32.mrb[1].mxu0 }
  0xfc   : > { %v394_v28 = vadd.f32 %v393_v27, %v268_v24  ;;  %v395_v29 = vpop.f32.mrb[2].mxu0 }
  0xfd   : > { %v396_v30 = vadd.f32 %v395_v29, %v264_v23  ;;  %v397_v31 = vpop.f32.mrb[3].mxu0 }
  0xfe   : > { %v559_v32 = vpack.c.bf16 %v394_v28, %v392_v26  ;;  %v398_v33 = vadd.f32 %v397_v31, %v268_v24 }
 0x100   : > { %412 = vst [vmem:[%s237_s8] sm:$0xff] %v559_v32  ;;  %v560_v34 = vpack.c.bf16 %v398_v33, %v396_v30 }
 0x102   : > { %413 = vst [vmem:[%s237_s8 + $0x8] sm:$0xff] %v560_v34 }
 0x103 PF: > { %s13_s14 = sadd.s32 1, %s633_s14   ;;  %s748_s12 = smov %s629_s13 }
 0x104   : > { %p10_p5 = scmp.ge.s32.totalorder %s13_s14, 4   ;;  %s749_s13 = smov %s751_s15 }
 0x106   :  { %12 = sbr.rel (!%p10_p5) target bundleno = 2 (0x2), region = 68 }

// kernel: pixel_encoder_forward.27
= control target key start
LH: loop header
LB: loop body
LE: loop exit
PB: predicated region body
PF: predicated region fallthrough
CT: control target
= control target key end

     0   :  { %s3601_s15 = smov 0   ;;  %s3603_s16 = smov 0   ;;  %s4535_s0 = inlined_call_operand.vmem [shape: bf16[32,2304], index: 0, kind: input, shape index: {}]   ;;  %s4536_s1 = inlined_call_operand.vmem [shape: bf16[2304,256], index: 1, kind: input, shape index: {}]   ;;  %s4537_s2 = inlined_call_operand.vmem [shape: f32[1,256], index: 2, kind: input, shape index: {}]   ;;  %s4538_s3 = inlined_call_operand.vmem [shape: bf16[32,256], index: 3, kind: input, shape index: {}]   ;;  %s4539_s4 = inlined_call_operand.vmem [shape: bf16[32,256], index: 4, kind: output, shape index: {}]  }
   0x1   :  { %s3605_s17 = smov 0  }
   0x2 LB: > { %s26_s18 = sadd.s32 1, %s3570_s16  ;;  %p2709_p0 = scmp.ge.s32.totalorder %s3574_s17, 1  ;;  %s3574_s17 = sphi %s3605_s17, %s14_s17   ;;  %s3570_s16 = sphi %s3603_s16, %s4541_s16   ;;  %s3566_s15 = sphi %s3601_s15, %s4540_s15  }
   0x3   : > { %p28_p1 = scmp.ge.s32.totalorder %s26_s18, 2  ;;  %p218_p2 = scmp.lt.s32.totalorder %s3574_s17, 3 }
   0x5   : > { %s4543_s18 = smov (%p28_p1, %s26_s18), 0  ;;  %p219_p3 = pnand %p2709_p0, %p218_p2 }
   0x6   : > { %v3093_v0 = vld [vmem:[%s4536_s1 + $0x4] ss:$8 sps:$4 sm:$0xff] (!%p219_p3)   ;;  %v3097_v2 = vld [vmem:[%s4536_s1] ss:$8 sps:$4 sm:$0xff] (!%p219_p3)   ;;  %v3099_v4 = vld [vmem:[%s4536_s1 + $0x14] ss:$8 sps:$4 sm:$0xff] (!%p219_p3)  }
   0x7   : > { %222 = sbr.rel (%p219_p3) target bundleno = 552 (0x228), region = 36  ;;  %v3095_v1 = vld [vmem:[%s4536_s1 + $0x404] ss:$8 sps:$4 sm:$0xff] (!%p219_p3)   ;;  %2159 = vmatprep.subr.bf16.mxu1 (!%p219_p3), %v3093_v0  ;;  %v3098_v3 = vld [vmem:[%s4536_s1 + $0x400] ss:$8 sps:$4 sm:$0xff] (!%p219_p3)   ;;  %s2710_s9 = sshll.u32 (!%p219_p3), %s3566_s15, 1 }
   0x8   : > { %2331 = vmatprep.subr.bf16.mxu0 (!%p219_p3), %v3095_v1  ;;  %2160 = vmatpush1.bf16.msra.mxu1 (!%p219_p3), %v3097_v2  ;;  %v3101_v5 = vld [vmem:[%s4536_s1 + $0x414] ss:$8 sps:$4 sm:$0xff] (!%p219_p3)   ;;  %v3103_v6 = vld [vmem:[%s4536_s1 + $0x10] ss:$8 sps:$4 sm:$0xff] (!%p219_p3)   ;;  %v3105_v8 = vld [vmem:[%s4536_s1 + $0x24] ss:$8 sps:$4 sm:$0xff] (!%p219_p3)  }
   0x9   : > { %2332 = vmatpush1.bf16.msra.mxu0 (!%p219_p3), %v3098_v3  ;;  %2161 = vmatprep.subr.bf16.mxu1 (!%p219_p3), %v3099_v4  ;;  %v3104_v7 = vld [vmem:[%s4536_s1 + $0x410] ss:$8 sps:$4 sm:$0xff] (!%p219_p3)   ;;  %v3107_v9 = vld [vmem:[%s4536_s1 + $0x424] ss:$8 sps:$4 sm:$0xff] (!%p219_p3)   ;;  %v3109_v10 = vld [vmem:[%s4536_s1 + $0x20] ss:$8 sps:$4 sm:$0xff] (!%p219_p3)  }
   0xa   : > { %2333 = vmatprep.subr.bf16.mxu0 (!%p219_p3), %v3101_v5  ;;  %v3110_v11 = vld [vmem:[%s4536_s1 + $0x420] ss:$8 sps:$4 sm:$0xff] (!%p219_p3)   ;;  %v3111_v12 = vld [vmem:[%s4536_s1 + $0x34] ss:$8 sps:$4 sm:$0xff] (!%p219_p3)   ;;  %v3115_v14 = vld [vmem:[%s4536_s1 + $0x30] ss:$8 sps:$4 sm:$0xff] (!%p219_p3)  }
   0xb   : > { %v3113_v13 = vld [vmem:[%s4536_s1 + $0x434] ss:$8 sps:$4 sm:$0xff] (!%p219_p3)   ;;  %v3116_v15 = vld [vmem:[%s4536_s1 + $0x430] ss:$8 sps:$4 sm:$0xff] (!%p219_p3)   ;;  %v3117_v16 = vld [vmem:[%s4536_s1 + $0x44] ss:$8 sps:$4 sm:$0xff] (!%p219_p3)  }
   0xc   : > { %2162 = vmatpush1.bf16.msra.mxu1 (!%p219_p3), %v3103_v6  ;;  %v3119_v17 = vld [vmem:[%s4536_s1 + $0x444] ss:$8 sps:$4 sm:$0xff] (!%p219_p3)   ;;  %v3121_v18 = vld [vmem:[%s4536_s1 + $0x40] ss:$8 sps:$4 sm:$0xff] (!%p219_p3)   ;;  %v3123_v20 = vld [vmem:[%s4536_s1 + $0x54] ss:$8 sps:$4 sm:$0xff] (!%p219_p3)  }
   0xd   : > { %2334 = vmatpush1.bf16.msra.mxu0 (!%p219_p3), %v3104_v7  ;;  %2163 = vmatprep.subr.bf16.mxu1 (!%p219_p3), %v3105_v8  ;;  %v3122_v19 = vld [vmem:[%s4536_s1 + $0x440] ss:$8 sps:$4 sm:$0xff] (!%p219_p3)   ;;  %v3125_v21 = vld [vmem:[%s4536_s1 + $0x454] ss:$8 sps:$4 sm:$0xff] (!%p219_p3)   ;;  %v3127_v22 = vld [vmem:[%s4536_s1 + $0x50] ss:$8 sps:$4 sm:$0xff] (!%p219_p3)  }
   0xe   : > { %2335 = vmatprep.subr.bf16.mxu0 %v3107_v9  ;;  %v3128_v23 = vld [vmem:[%s4536_s1 + $0x450] ss:$8 sps:$4 sm:$0xff]   ;;  %v3129_v24 = vld [vmem:[%s4536_s1 + $0x64] ss:$8 sps:$4 sm:$0xff]   ;;  %v3133_v26 = vld [vmem:[%s4536_s1 + $0x60] ss:$8 sps:$4 sm:$0xff]  }
   0xf   : > { %v3131_v25 = vld [vmem:[%s4536_s1 + $0x464] ss:$8 sps:$4 sm:$0xff]   ;;  %v3134_v27 = vld [vmem:[%s4536_s1 + $0x460] ss:$8 sps:$4 sm:$0xff]   ;;  %v3135_v28 = vld [vmem:[%s4536_s1 + $0x74] ss:$8 sps:$4 sm:$0xff]  }
  0x10   : > { %2164 = vmatpush1.bf16.msra.mxu1 %v3109_v10  ;;  %v3137_v29 = vld [vmem:[%s4536_s1 + $0x474] ss:$8 sps:$4 sm:$0xff]   ;;  %v3139_v30 = vld [vmem:[%s4536_s1 + $0x70] ss:$8 sps:$4 sm:$0xff]   ;;  %v3141_v32 = vld [vmem:[%s4536_s1 + $0x84] ss:$8 sps:$4 sm:$0xff]  }
  0x11   : > { %2336 = vmatpush1.bf16.msra.mxu0 %v3110_v11  ;;  %2165 = vmatprep.subr.bf16.mxu1 %v3111_v12  ;;  %v3140_v31 = vld [vmem:[%s4536_s1 + $0x470] ss:$8 sps:$4 sm:$0xff]   ;;  %p270_p4 = scmp.lt.s32.totalorder %s2710_s9, 3  ;;  %v3143_v33 = vld [vmem:[%s4536_s1 + $0x484] ss:$8 sps:$4 sm:$0xff]  }
  0x12   : > { %2337 = vmatprep.subr.bf16.mxu0 %v3113_v13  ;;  %v3145_v34 = vld [vmem:[%s4536_s1 + $0x80] ss:$8 sps:$4 sm:$0xff]   ;;  %v3147_v36 = vld [vmem:[%s4536_s1 + $0x94] ss:$8 sps:$4 sm:$0xff]   ;;  %v3151_v38 = vld [vmem:[%s4536_s1 + $0x90] ss:$8 sps:$4 sm:$0xff]  }
  0x13   : > { %v3146_v35 = vld [vmem:[%s4536_s1 + $0x480] ss:$8 sps:$4 sm:$0xff]   ;;  %s4545_s9 = smov (!%p270_p4, %s2710_s9), 3  ;;  %v3149_v37 = vld [vmem:[%s4536_s1 + $0x494] ss:$8 sps:$4 sm:$0xff]  }
  0x14   : > { %2166 = vmatpush1.bf16.msra.mxu1 %v3115_v14  ;;  %v3152_v39 = vld [vmem:[%s4536_s1 + $0x490] ss:$8 sps:$4 sm:$0xff]   ;;  %v3153_v40 = vld [vmem:[%s4536_s1 + $0xa4] ss:$8 sps:$4 sm:$0xff]   ;;  %s3068_s10 = smul.u32 72, %s4545_s9  ;;  %s3028_s28 = sshll.u32 %s4545_s9, 3 }
  0x15   : > { %2338 = vmatpush1.bf16.msra.mxu0 %v3116_v15  ;;  %2167 = vmatprep.subr.bf16.mxu1 %v3117_v16  ;;  %v3155_v41 = vld [vmem:[%s4536_s1 + $0x4a4] ss:$8 sps:$4 sm:$0xff]   ;;  %v3157_v42 = vld [vmem:[%s4536_s1 + $0xa0] ss:$8 sps:$4 sm:$0xff]   ;;  %v3159_v44 = vld [vmem:[%s4536_s1 + $0xb4] ss:$8 sps:$4 sm:$0xff]  }
  0x16   : > { %2339 = vmatprep.subr.bf16.mxu0 %v3119_v17  ;;  %v3158_v43 = vld [vmem:[%s4536_s1 + $0x4a0] ss:$8 sps:$4 sm:$0xff]   ;;  %s3763_s24 = scalar_lea.vmem %s4535_s0, %s3068_s10  ;;  %v3161_v45 = vld [vmem:[%s4536_s1 + $0x4b4] ss:$8 sps:$4 sm:$0xff]   ;;  %v3163_v46 = vld [vmem:[%s4536_s1 + $0xb0] ss:$8 sps:$4 sm:$0xff]   ;;  %s308_s10 = scalar_lea.vmem %s4539_s4, %s3028_s28 }
  0x17   : > { %v3164_v47 = vld [vmem:[%s4536_s1 + $0x4b0] ss:$8 sps:$4 sm:$0xff]   ;;  %v3191_v48 = vld [vmem:[%s3763_s24 + $0x4] ss:$72 sps:$4 sm:$0xff]   ;;  %v3169_v52 = vld [vmem:[%s4536_s1 + $0xc0] ss:$8 sps:$4 sm:$0xff]  }
  0x18   : > { %2168 = vmatpush1.bf16.msra.mxu1 %v3121_v18  ;;  %v3165_v49 = vld [vmem:[%s4536_s1 + $0xc4] ss:$8 sps:$4 sm:$0xff]   ;;  %2191 = vmatprep.mubr.bf16.mxu1 %v3191_v48  ;;  %v3170_v53 = vld [vmem:[%s4536_s1 + $0x4c0] ss:$8 sps:$4 sm:$0xff]   ;;  %v3171_v54 = vld [vmem:[%s4536_s1 + $0xd4] ss:$8 sps:$4 sm:$0xff]  }
  0x19   : > { %2340 = vmatpush1.bf16.msra.mxu0 %v3122_v19  ;;  %2169 = vmatprep.subr.bf16.mxu1 %v3123_v20  ;;  %v3167_v50 = vld [vmem:[%s4536_s1 + $0x4c4] ss:$8 sps:$4 sm:$0xff]   ;;  %v3173_v55 = vld [vmem:[%s4536_s1 + $0x4d4] ss:$8 sps:$4 sm:$0xff]   ;;  %v3175_v56 = vld [vmem:[%s4536_s1 + $0xd0] ss:$8 sps:$4 sm:$0xff]  }
  0x1a   : > { %2341 = vmatprep.subr.bf16.mxu0 %v3125_v21  ;;  %v3197_v51 = vld [vmem:[%s3763_s24 + $0x24] ss:$72 sps:$4 sm:$0xff]   ;;  %v3176_v57 = vld [vmem:[%s4536_s1 + $0x4d0] ss:$8 sps:$4 sm:$0xff]   ;;  %v3181_v60 = vld [vmem:[%s4536_s1 + $0xe0] ss:$8 sps:$4 sm:$0xff]  }
  0x1b   : > { %2363 = vmatprep.mubr.bf16.mxu0 %v3197_v51  ;;  %v3177_v58 = vld [vmem:[%s4536_s1 + $0xe4] ss:$8 sps:$4 sm:$0xff]   ;;  %v3182_v61 = vld [vmem:[%s4536_s1 + $0x4e0] ss:$8 sps:$4 sm:$0xff]   ;;  %v3183_v62 = vld [vmem:[%s4536_s1 + $0xf4] ss:$8 sps:$4 sm:$0xff]  }
  0x1c   : > { %2170 = vmatpush1.bf16.msra.mxu1 %v3127_v22  ;;  %v3179_v59 = vld [vmem:[%s4536_s1 + $0x4e4] ss:$8 sps:$4 sm:$0xff]   ;;  %v3185_v63 = vld [vmem:[%s4536_s1 + $0x4f4] ss:$8 sps:$4 sm:$0xff]   ;;  %v3187_v0 = vld [vmem:[%s4536_s1 + $0xf0] ss:$8 sps:$4 sm:$0xff]  }
  0x1d   : > { %2342 = vmatpush1.bf16.msra.mxu0 %v3128_v23  ;;  %2171 = vmatprep.subr.bf16.mxu1 %v3129_v24  ;;  %v3188_v1 = vld [vmem:[%s4536_s1 + $0x4f0] ss:$8 sps:$4 sm:$0xff]   ;;  %v3194_v2 = vld [vmem:[%s4536_s1 + $0x104] ss:$8 sps:$4 sm:$0xff]   ;;  %v3189_v4 = vld [vmem:[%s3763_s24] ss:$72 sps:$4 sm:$0xff]  }
  0x1e   : > { %2343 = vmatprep.subr.bf16.mxu0 %v3131_v25  ;;  %v3200_v3 = vld [vmem:[%s4536_s1 + $0x504] ss:$8 sps:$4 sm:$0xff]   ;;  %v3192_v5 = vld [vmem:[%s4536_s1 + $0x100] ss:$8 sps:$4 sm:$0xff]   ;;  %v3203_v8 = vld [vmem:[%s4536_s1 + $0x114] ss:$8 sps:$4 sm:$0xff]  }
  0x1f   : > { %v3195_v6 = vld [vmem:[%s3763_s24 + $0x20] ss:$72 sps:$4 sm:$0xff]   ;;  %v3206_v9 = vld [vmem:[%s4536_s1 + $0x514] ss:$8 sps:$4 sm:$0xff]   ;;  %v3201_v10 = vld [vmem:[%s4536_s1 + $0x110] ss:$8 sps:$4 sm:$0xff]  }
  0x20   : > { %2172 = vmatpush1.bf16.msra.mxu1 %v3133_v26  ;;  %v3198_v7 = vld [vmem:[%s4536_s1 + $0x500] ss:$8 sps:$4 sm:$0xff]   ;;  %v3204_v11 = vld [vmem:[%s4536_s1 + $0x510] ss:$8 sps:$4 sm:$0xff]   ;;  %v3209_v12 = vld [vmem:[%s4536_s1 + $0x124] ss:$8 sps:$4 sm:$0xff]  }
  0x21   : > { %2344 = vmatpush1.bf16.msra.mxu0 %v3134_v27  ;;  %2173 = vmatprep.subr.bf16.mxu1 %v3135_v28  ;;  %v3212_v13 = vld [vmem:[%s4536_s1 + $0x524] ss:$8 sps:$4 sm:$0xff]   ;;  %v3207_v14 = vld [vmem:[%s4536_s1 + $0x120] ss:$8 sps:$4 sm:$0xff]   ;;  %v3215_v16 = vld [vmem:[%s4536_s1 + $0x134] ss:$8 sps:$4 sm:$0xff]  }
  0x22   : > { %2345 = vmatprep.subr.bf16.mxu0 %v3137_v29  ;;  %v3210_v15 = vld [vmem:[%s4536_s1 + $0x520] ss:$8 sps:$4 sm:$0xff]   ;;  %v3218_v17 = vld [vmem:[%s4536_s1 + $0x534] ss:$8 sps:$4 sm:$0xff]   ;;  %v3213_v18 = vld [vmem:[%s4536_s1 + $0x130] ss:$8 sps:$4 sm:$0xff]  }
  0x23   : > { %v3216_v19 = vld [vmem:[%s4536_s1 + $0x530] ss:$8 sps:$4 sm:$0xff]   ;;  %v3221_v20 = vld [vmem:[%s4536_s1 + $0x144] ss:$8 sps:$4 sm:$0xff]   ;;  %v3219_v22 = vld [vmem:[%s4536_s1 + $0x140] ss:$8 sps:$4 sm:$0xff]  }
  0x24   : > { %2174 = vmatpush1.bf16.msra.mxu1 %v3139_v30  ;;  %v3224_v21 = vld [vmem:[%s4536_s1 + $0x544] ss:$8 sps:$4 sm:$0xff]   ;;  %v3222_v23 = vld [vmem:[%s4536_s1 + $0x540] ss:$8 sps:$4 sm:$0xff]   ;;  %v3227_v24 = vld [vmem:[%s4536_s1 + $0x154] ss:$8 sps:$4 sm:$0xff]  }
  0x25   : > { %2346 = vmatpush1.bf16.msra.mxu0 %v3140_v31  ;;  %2175 = vmatprep.subr.bf16.mxu1 %v3141_v32  ;;  %v3230_v25 = vld [vmem:[%s4536_s1 + $0x554] ss:$8 sps:$4 sm:$0xff]   ;;  %v3225_v26 = vld [vmem:[%s4536_s1 + $0x150] ss:$8 sps:$4 sm:$0xff]   ;;  %v3233_v28 = vld [vmem:[%s4536_s1 + $0x164] ss:$8 sps:$4 sm:$0xff]  }
  0x26   : > { %2347 = vmatprep.subr.bf16.mxu0 %v3143_v33  ;;  %v3228_v27 = vld [vmem:[%s4536_s1 + $0x550] ss:$8 sps:$4 sm:$0xff]   ;;  %v3236_v29 = vld [vmem:[%s4536_s1 + $0x564] ss:$8 sps:$4 sm:$0xff]   ;;  %v3231_v30 = vld [vmem:[%s4536_s1 + $0x160] ss:$8 sps:$4 sm:$0xff]  }
  0x27   : > { %v3234_v31 = vld [vmem:[%s4536_s1 + $0x560] ss:$8 sps:$4 sm:$0xff]   ;;  %v3239_v32 = vld [vmem:[%s4536_s1 + $0x174] ss:$8 sps:$4 sm:$0xff]  }
  0x28   : > { %2176 = vmatpush1.bf16.msra.mxu1 %v3145_v34  ;;  %v3242_v33 = vld [vmem:[%s4536_s1 + $0x574] ss:$8 sps:$4 sm:$0xff]   ;;  %v3255_v48 = vld [vmem:[%s4536_s1 + $0x1a0] ss:$8 sps:$4 sm:$0xff]  }
  0x29   : > { %2348 = vmatpush1.bf16.msra.mxu0 %v3146_v35  ;;  %2177 = vmatprep.subr.bf16.mxu1 %v3147_v36  ;;  %v3293_v34 = vld [vmem:[%s3763_s24 + $0xc] ss:$72 sps:$4 sm:$0xff]   ;;  %v3237_v35 = vld [vmem:[%s4536_s1 + $0x170] ss:$8 sps:$4 sm:$0xff]  }
  0x2a   : > { %2349 = vmatprep.subr.bf16.mxu0 %v3149_v37  ;;  %v3240_v36 = vld [vmem:[%s4536_s1 + $0x570] ss:$8 sps:$4 sm:$0xff]   ;;  %v3299_v37 = vld [vmem:[%s3763_s24 + $0x2c] ss:$72 sps:$4 sm:$0xff]  }
  0x2b   : > { %v3266_v51 = vld [vmem:[%s4536_s1 + $0x5b4] ss:$8 sps:$4 sm:$0xff]  }
  0x2c   : > { %2178 = vmatpush1.bf16.msra.mxu1 %v3151_v38  ;;  %v3245_v38 = vld [vmem:[%s4536_s1 + $0x184] ss:$8 sps:$4 sm:$0xff]  }
  0x2d   : > { %2350 = vmatpush1.bf16.msra.mxu0 %v3152_v39  ;;  %2179 = vmatprep.subr.bf16.mxu1 %v3153_v40  ;;  %v3248_v39 = vld [vmem:[%s4536_s1 + $0x584] ss:$8 sps:$4 sm:$0xff]   ;;  %v3243_v40 = vld [vmem:[%s4536_s1 + $0x180] ss:$8 sps:$4 sm:$0xff]  }
  0x2e   : > { %2351 = vmatprep.subr.bf16.mxu0 %v3155_v41  ;;  %v3246_v41 = vld [vmem:[%s4536_s1 + $0x580] ss:$8 sps:$4 sm:$0xff]  }
  0x30   : > { %2180 = vmatpush1.bf16.msra.mxu1 %v3157_v42  ;;  %v3251_v42 = vld [vmem:[%s4536_s1 + $0x194] ss:$8 sps:$4 sm:$0xff]  }
  0x31   : > { %2352 = vmatpush1.bf16.msra.mxu0 %v3158_v43  ;;  %2181 = vmatprep.subr.bf16.mxu1 %v3159_v44  ;;  %v3254_v43 = vld [vmem:[%s4536_s1 + $0x594] ss:$8 sps:$4 sm:$0xff]   ;;  %v3249_v44 = vld [vmem:[%s4536_s1 + $0x190] ss:$8 sps:$4 sm:$0xff]  }
  0x32   : > { %2353 = vmatprep.subr.bf16.mxu0 %v3161_v45  ;;  %v3252_v45 = vld [vmem:[%s4536_s1 + $0x590] ss:$8 sps:$4 sm:$0xff]  }
  0x34   : > { %2182 = vmatpush1.bf16.msra.mxu1 %v3163_v46  ;;  %v3257_v46 = vld [vmem:[%s4536_s1 + $0x1a4] ss:$8 sps:$4 sm:$0xff]  }
  0x35   : > { %2354 = vmatpush1.bf16.msra.mxu0 %v3164_v47  ;;  %2183 = vmatprep.subr.bf16.mxu1 %v3165_v49  ;;  %v3260_v47 = vld [vmem:[%s4536_s1 + $0x5a4] ss:$8 sps:$4 sm:$0xff]   ;;  %v3258_v49 = vld [vmem:[%s4536_s1 + $0x5a0] ss:$8 sps:$4 sm:$0xff]  }
  0x36   : > { %2355 = vmatprep.subr.bf16.mxu0 %v3167_v50  ;;  %v3263_v50 = vld [vmem:[%s4536_s1 + $0x1b4] ss:$8 sps:$4 sm:$0xff]  }
  0x38   : > { %2184 = vmatpush1.bf16.msra.mxu1 %v3169_v52  ;;  %v3261_v52 = vld [vmem:[%s4536_s1 + $0x1b0] ss:$8 sps:$4 sm:$0xff]  }
  0x39   : > { %2356 = vmatpush1.bf16.msra.mxu0 %v3170_v53  ;;  %2185 = vmatprep.subr.bf16.mxu1 %v3171_v54  ;;  %v3264_v53 = vld [vmem:[%s4536_s1 + $0x5b0] ss:$8 sps:$4 sm:$0xff]   ;;  %v3269_v54 = vld [vmem:[%s4536_s1 + $0x1c4] ss:$8 sps:$4 sm:$0xff]  }
  0x3a   : > { %2357 = vmatprep.subr.bf16.mxu0 %v3173_v55  ;;  %v3272_v55 = vld [vmem:[%s4536_s1 + $0x5c4] ss:$8 sps:$4 sm:$0xff]  }
  0x3c   : > { %2186 = vmatpush1.bf16.msra.mxu1 %v3175_v56  ;;  %v3267_v56 = vld [vmem:[%s4536_s1 + $0x1c0] ss:$8 sps:$4 sm:$0xff]  }
  0x3d   : > { %2358 = vmatpush1.bf16.msra.mxu0 %v3176_v57  ;;  %2187 = vmatprep.subr.bf16.mxu1 %v3177_v58  ;;  %v3270_v57 = vld [vmem:[%s4536_s1 + $0x5c0] ss:$8 sps:$4 sm:$0xff]   ;;  %v3275_v58 = vld [vmem:[%s4536_s1 + $0x1d4] ss:$8 sps:$4 sm:$0xff]  }
  0x3e   : > { %2359 = vmatprep.subr.bf16.mxu0 %v3179_v59  ;;  %v3278_v59 = vld [vmem:[%s4536_s1 + $0x5d4] ss:$8 sps:$4 sm:$0xff]  }
  0x40   : > { %2188 = vmatpush1.bf16.msra.mxu1 %v3181_v60  ;;  %v3273_v60 = vld [vmem:[%s4536_s1 + $0x1d0] ss:$8 sps:$4 sm:$0xff]  }
  0x41   : > { %2360 = vmatpush1.bf16.msra.mxu0 %v3182_v61  ;;  %2189 = vmatprep.subr.bf16.mxu1 %v3183_v62  ;;  %v3276_v61 = vld [vmem:[%s4536_s1 + $0x5d0] ss:$8 sps:$4 sm:$0xff]   ;;  %v3281_v62 = vld [vmem:[%s4536_s1 + $0x1e4] ss:$8 sps:$4 sm:$0xff]  }
  0x42   : > { %2361 = vmatprep.subr.bf16.mxu0 %v3185_v63  ;;  %v3284_v63 = vld [vmem:[%s4536_s1 + $0x5e4] ss:$8 sps:$4 sm:$0xff]  }
  0x44   : > { %2190 = vmatpush1.bf16.msra.mxu1 %v3187_v0  ;;  %v3279_v0 = vld [vmem:[%s4536_s1 + $0x1e0] ss:$8 sps:$4 sm:$0xff]  }
  0x45   : > { %2362 = vmatpush1.bf16.msra.mxu0 %v3188_v1  ;;  %2202 = vmatprep.subr.bf16.mxu1 %v3194_v2  ;;  %v3282_v1 = vld [vmem:[%s4536_s1 + $0x5e0] ss:$8 sps:$4 sm:$0xff]   ;;  %v3287_v2 = vld [vmem:[%s4536_s1 + $0x1f4] ss:$8 sps:$4 sm:$0xff]  }
  0x46   : > { %2374 = vmatprep.subr.bf16.mxu0 %v3200_v3  ;;  %v3290_v3 = vld [vmem:[%s4536_s1 + $0x5f4] ss:$8 sps:$4 sm:$0xff]  }
  0x47   : > { %2192 = vmatmul.mubr.bf16.vlgmr.msra.gmra.mrb[0].mxu1 %v3189_v4  ;;  %v3285_v4 = vld [vmem:[%s4536_s1 + $0x1f0] ss:$8 sps:$4 sm:$0xff]  }
  0x48   : > { %2364 = vmatmul.mubr.bf16.vlgmr.msra.gmra.mrb[0].mxu0 %v3195_v6  ;;  %2203 = vmatpush1.bf16.msra.mxu1 %v3192_v5  ;;  %v3288_v5 = vld [vmem:[%s4536_s1 + $0x5f0] ss:$8 sps:$4 sm:$0xff]   ;;  %v3296_v6 = vld [vmem:[%s4536_s1 + $0x204] ss:$8 sps:$4 sm:$0xff]  }
  0x49   : > { %2375 = vmatpush1.bf16.msra.mxu0 %v3198_v7  ;;  %2204 = vmatprep.subr.bf16.mxu1 %v3203_v8  ;;  %v3302_v7 = vld [vmem:[%s4536_s1 + $0x604] ss:$8 sps:$4 sm:$0xff]   ;;  %v3291_v8 = vld [vmem:[%s3763_s24 + $0x8] ss:$72 sps:$4 sm:$0xff]  }
  0x4a   : > { %2376 = vmatprep.subr.bf16.mxu0 %v3206_v9  ;;  %2234 = vmatprep.mubr.bf16.mxu1 %v3293_v34  ;;  %v3294_v9 = vld [vmem:[%s4536_s1 + $0x200] ss:$8 sps:$4 sm:$0xff]   ;;  %v3335_v34 = vld [vmem:[%s4536_s1 + $0x264] ss:$8 sps:$4 sm:$0xff]  }
  0x4b   : > { %2406 = vmatprep.mubr.bf16.mxu0 %v3299_v37  ;;  %v3336_v37 = vld [vmem:[%s4536_s1 + $0x660] ss:$8 sps:$4 sm:$0xff]  }
  0x4c   : > { %2205 = vmatpush1.bf16.msra.mxu1 %v3201_v10  ;;  %v3297_v10 = vld [vmem:[%s3763_s24 + $0x28] ss:$72 sps:$4 sm:$0xff]  }
  0x4d   : > { %2377 = vmatpush1.bf16.msra.mxu0 %v3204_v11  ;;  %2206 = vmatprep.subr.bf16.mxu1 %v3209_v12  ;;  %v3300_v11 = vld [vmem:[%s4536_s1 + $0x600] ss:$8 sps:$4 sm:$0xff]   ;;  %v3305_v12 = vld [vmem:[%s4536_s1 + $0x214] ss:$8 sps:$4 sm:$0xff]  }
  0x4e   : > { %2378 = vmatprep.subr.bf16.mxu0 %v3212_v13  ;;  %v3308_v13 = vld [vmem:[%s4536_s1 + $0x614] ss:$8 sps:$4 sm:$0xff]  }
  0x50   : > { %2207 = vmatpush1.bf16.msra.mxu1 %v3207_v14  ;;  %v3303_v14 = vld [vmem:[%s4536_s1 + $0x210] ss:$8 sps:$4 sm:$0xff]  }
  0x51   : > { %2379 = vmatpush1.bf16.msra.mxu0 %v3210_v15  ;;  %2208 = vmatprep.subr.bf16.mxu1 %v3215_v16  ;;  %v3306_v15 = vld [vmem:[%s4536_s1 + $0x610] ss:$8 sps:$4 sm:$0xff]   ;;  %v3311_v16 = vld [vmem:[%s4536_s1 + $0x224] ss:$8 sps:$4 sm:$0xff]  }
  0x52   : > { %2380 = vmatprep.subr.bf16.mxu0 %v3218_v17  ;;  %v3314_v17 = vld [vmem:[%s4536_s1 + $0x624] ss:$8 sps:$4 sm:$0xff]  }
  0x54   : > { %2209 = vmatpush1.bf16.msra.mxu1 %v3213_v18  ;;  %v3309_v18 = vld [vmem:[%s4536_s1 + $0x220] ss:$8 sps:$4 sm:$0xff]  }
  0x55   : > { %2381 = vmatpush1.bf16.msra.mxu0 %v3216_v19  ;;  %2210 = vmatprep.subr.bf16.mxu1 %v3221_v20  ;;  %v3395_v19 = vld [vmem:[%s3763_s24 + $0x14] ss:$72 sps:$4 sm:$0xff]   ;;  %v3312_v20 = vld [vmem:[%s4536_s1 + $0x620] ss:$8 sps:$4 sm:$0xff]  }
  0x56   : > { %2382 = vmatprep.subr.bf16.mxu0 %v3224_v21  ;;  %v3317_v21 = vld [vmem:[%s4536_s1 + $0x234] ss:$8 sps:$4 sm:$0xff]  }
  0x58   : > { %2211 = vmatpush1.bf16.msra.mxu1 %v3219_v22  ;;  %v3320_v22 = vld [vmem:[%s4536_s1 + $0x634] ss:$8 sps:$4 sm:$0xff]  }
  0x59   : > { %2383 = vmatpush1.bf16.msra.mxu0 %v3222_v23  ;;  %2212 = vmatprep.subr.bf16.mxu1 %v3227_v24  ;;  %v3401_v23 = vld [vmem:[%s3763_s24 + $0x34] ss:$72 sps:$4 sm:$0xff]   ;;  %v3315_v24 = vld [vmem:[%s4536_s1 + $0x230] ss:$8 sps:$4 sm:$0xff]  }
  0x5a   : > { %2384 = vmatprep.subr.bf16.mxu0 %v3230_v25  ;;  %v3318_v25 = vld [vmem:[%s4536_s1 + $0x630] ss:$8 sps:$4 sm:$0xff]  }
  0x5c   : > { %2213 = vmatpush1.bf16.msra.mxu1 %v3225_v26  ;;  %v3323_v26 = vld [vmem:[%s4536_s1 + $0x244] ss:$8 sps:$4 sm:$0xff]  }
  0x5d   : > { %2385 = vmatpush1.bf16.msra.mxu0 %v3228_v27  ;;  %2214 = vmatprep.subr.bf16.mxu1 %v3233_v28  ;;  %v3326_v27 = vld [vmem:[%s4536_s1 + $0x644] ss:$8 sps:$4 sm:$0xff]   ;;  %v3321_v28 = vld [vmem:[%s4536_s1 + $0x240] ss:$8 sps:$4 sm:$0xff]  }
  0x5e   : > { %2386 = vmatprep.subr.bf16.mxu0 %v3236_v29  ;;  %v3324_v29 = vld [vmem:[%s4536_s1 + $0x640] ss:$8 sps:$4 sm:$0xff]  }
  0x60   : > { %2215 = vmatpush1.bf16.msra.mxu1 %v3231_v30  ;;  %v3329_v30 = vld [vmem:[%s4536_s1 + $0x254] ss:$8 sps:$4 sm:$0xff]  }
  0x61   : > { %2387 = vmatpush1.bf16.msra.mxu0 %v3234_v31  ;;  %2216 = vmatprep.subr.bf16.mxu1 %v3239_v32  ;;  %v3332_v31 = vld [vmem:[%s4536_s1 + $0x654] ss:$8 sps:$4 sm:$0xff]   ;;  %v3327_v32 = vld [vmem:[%s4536_s1 + $0x250] ss:$8 sps:$4 sm:$0xff]  }
  0x62   : > { %2388 = vmatprep.subr.bf16.mxu0 %v3242_v33  ;;  %v3330_v33 = vld [vmem:[%s4536_s1 + $0x650] ss:$8 sps:$4 sm:$0xff]  }
  0x64   : > { %2217 = vmatpush1.bf16.msra.mxu1 %v3237_v35  ;;  %v3338_v35 = vld [vmem:[%s4536_s1 + $0x664] ss:$8 sps:$4 sm:$0xff]  }
  0x65   : > { %2389 = vmatpush1.bf16.msra.mxu0 %v3240_v36  ;;  %2218 = vmatprep.subr.bf16.mxu1 %v3245_v38  ;;  %v3333_v36 = vld [vmem:[%s4536_s1 + $0x260] ss:$8 sps:$4 sm:$0xff]   ;;  %v3341_v38 = vld [vmem:[%s4536_s1 + $0x274] ss:$8 sps:$4 sm:$0xff]  }
  0x66   : > { %2390 = vmatprep.subr.bf16.mxu0 %v3248_v39  ;;  %v3344_v39 = vld [vmem:[%s4536_s1 + $0x674] ss:$8 sps:$4 sm:$0xff]  }
  0x68   : > { %2219 = vmatpush1.bf16.msra.mxu1 %v3243_v40  ;;  %v3339_v40 = vld [vmem:[%s4536_s1 + $0x270] ss:$8 sps:$4 sm:$0xff]  }
  0x69   : > { %2391 = vmatpush1.bf16.msra.mxu0 %v3246_v41  ;;  %2220 = vmatprep.subr.bf16.mxu1 %v3251_v42  ;;  %v3342_v41 = vld [vmem:[%s4536_s1 + $0x670] ss:$8 sps:$4 sm:$0xff]   ;;  %v3347_v42 = vld [vmem:[%s4536_s1 + $0x284] ss:$8 sps:$4 sm:$0xff]  }
  0x6a   : > { %2392 = vmatprep.subr.bf16.mxu0 %v3254_v43  ;;  %v3350_v43 = vld [vmem:[%s4536_s1 + $0x684] ss:$8 sps:$4 sm:$0xff]  }
  0x6c   : > { %2221 = vmatpush1.bf16.msra.mxu1 %v3249_v44  ;;  %v3345_v44 = vld [vmem:[%s4536_s1 + $0x280] ss:$8 sps:$4 sm:$0xff]  }
  0x6d   : > { %2393 = vmatpush1.bf16.msra.mxu0 %v3252_v45  ;;  %2222 = vmatprep.subr.bf16.mxu1 %v3257_v46  ;;  %v3348_v45 = vld [vmem:[%s4536_s1 + $0x680] ss:$8 sps:$4 sm:$0xff]   ;;  %v3353_v46 = vld [vmem:[%s4536_s1 + $0x294] ss:$8 sps:$4 sm:$0xff]  }
  0x6e   : > { %2394 = vmatprep.subr.bf16.mxu0 %v3260_v47  ;;  %v3356_v47 = vld [vmem:[%s4536_s1 + $0x694] ss:$8 sps:$4 sm:$0xff]  }
  0x70   : > { %2223 = vmatpush1.bf16.msra.mxu1 %v3255_v48  ;;  %v3351_v48 = vld [vmem:[%s4536_s1 + $0x290] ss:$8 sps:$4 sm:$0xff]  }
  0x71   : > { %2395 = vmatpush1.bf16.msra.mxu0 %v3258_v49  ;;  %2224 = vmatprep.subr.bf16.mxu1 %v3263_v50  ;;  %v3354_v49 = vld [vmem:[%s4536_s1 + $0x690] ss:$8 sps:$4 sm:$0xff]   ;;  %v3359_v50 = vld [vmem:[%s4536_s1 + $0x2a4] ss:$8 sps:$4 sm:$0xff]  }
  0x72   : > { %2396 = vmatprep.subr.bf16.mxu0 %v3266_v51  ;;  %v3362_v51 = vld [vmem:[%s4536_s1 + $0x6a4] ss:$8 sps:$4 sm:$0xff]  }
  0x74   : > { %2225 = vmatpush1.bf16.msra.mxu1 %v3261_v52  ;;  %v3357_v52 = vld [vmem:[%s4536_s1 + $0x2a0] ss:$8 sps:$4 sm:$0xff]  }
  0x75   : > { %2397 = vmatpush1.bf16.msra.mxu0 %v3264_v53  ;;  %2226 = vmatprep.subr.bf16.mxu1 %v3269_v54  ;;  %v3360_v53 = vld [vmem:[%s4536_s1 + $0x6a0] ss:$8 sps:$4 sm:$0xff]   ;;  %v3365_v54 = vld [vmem:[%s4536_s1 + $0x2b4] ss:$8 sps:$4 sm:$0xff]  }
  0x76   : > { %2398 = vmatprep.subr.bf16.mxu0 %v3272_v55  ;;  %v3368_v55 = vld [vmem:[%s4536_s1 + $0x6b4] ss:$8 sps:$4 sm:$0xff]  }
  0x78   : > { %2227 = vmatpush1.bf16.msra.mxu1 %v3267_v56  ;;  %v3363_v56 = vld [vmem:[%s4536_s1 + $0x2b0] ss:$8 sps:$4 sm:$0xff]  }
  0x79   : > { %2399 = vmatpush1.bf16.msra.mxu0 %v3270_v57  ;;  %2228 = vmatprep.subr.bf16.mxu1 %v3275_v58  ;;  %v3366_v57 = vld [vmem:[%s4536_s1 + $0x6b0] ss:$8 sps:$4 sm:$0xff]   ;;  %v3371_v58 = vld [vmem:[%s4536_s1 + $0x2c4] ss:$8 sps:$4 sm:$0xff]  }
  0x7a   : > { %2400 = vmatprep.subr.bf16.mxu0 %v3278_v59  ;;  %v3374_v59 = vld [vmem:[%s4536_s1 + $0x6c4] ss:$8 sps:$4 sm:$0xff]  }
  0x7c   : > { %2229 = vmatpush1.bf16.msra.mxu1 %v3273_v60  ;;  %v3369_v60 = vld [vmem:[%s4536_s1 + $0x2c0] ss:$8 sps:$4 sm:$0xff]  }
  0x7d   : > { %2401 = vmatpush1.bf16.msra.mxu0 %v3276_v61  ;;  %2230 = vmatprep.subr.bf16.mxu1 %v3281_v62  ;;  %v3372_v61 = vld [vmem:[%s4536_s1 + $0x6c0] ss:$8 sps:$4 sm:$0xff]   ;;  %v3377_v62 = vld [vmem:[%s4536_s1 + $0x2d4] ss:$8 sps:$4 sm:$0xff]  }
  0x7e   : > { %2402 = vmatprep.subr.bf16.mxu0 %v3284_v63  ;;  %v3380_v63 = vld [vmem:[%s4536_s1 + $0x6d4] ss:$8 sps:$4 sm:$0xff]  }
  0x80   : > { %2231 = vmatpush1.bf16.msra.mxu1 %v3279_v0  ;;  %v3375_v0 = vld [vmem:[%s4536_s1 + $0x2d0] ss:$8 sps:$4 sm:$0xff]  }
  0x81   : > { %2403 = vmatpush1.bf16.msra.mxu0 %v3282_v1  ;;  %2232 = vmatprep.subr.bf16.mxu1 %v3287_v2  ;;  %v3378_v1 = vld [vmem:[%s4536_s1 + $0x6d0] ss:$8 sps:$4 sm:$0xff]   ;;  %v3383_v2 = vld [vmem:[%s4536_s1 + $0x2e4] ss:$8 sps:$4 sm:$0xff]  }
  0x82   : > { %2404 = vmatprep.subr.bf16.mxu0 %v3290_v3  ;;  %v3386_v3 = vld [vmem:[%s4536_s1 + $0x6e4] ss:$8 sps:$4 sm:$0xff]  }
  0x84   : > { %2233 = vmatpush1.bf16.msra.mxu1 %v3285_v4  ;;  %v3381_v4 = vld [vmem:[%s4536_s1 + $0x2e0] ss:$8 sps:$4 sm:$0xff]  }
  0x85   : > { %2405 = vmatpush1.bf16.msra.mxu0 %v3288_v5  ;;  %2245 = vmatprep.subr.bf16.mxu1 %v3296_v6  ;;  %v3384_v5 = vld [vmem:[%s4536_s1 + $0x6e0] ss:$8 sps:$4 sm:$0xff]   ;;  %v3389_v6 = vld [vmem:[%s4536_s1 + $0x2f4] ss:$8 sps:$4 sm:$0xff]  }
  0x86   : > { %2417 = vmatprep.subr.bf16.mxu0 %v3302_v7  ;;  %v3392_v7 = vld [vmem:[%s4536_s1 + $0x6f4] ss:$8 sps:$4 sm:$0xff]  }
  0x87   : > { %2235 = vmatmul.mubr.bf16.vlgmr.msra.gmra.mrb[0].mxu1 %v3291_v8  ;;  %v3387_v8 = vld [vmem:[%s4536_s1 + $0x2f0] ss:$8 sps:$4 sm:$0xff]  }
  0x88   : > { %2407 = vmatmul.mubr.bf16.vlgmr.msra.gmra.mrb[0].mxu0 %v3297_v10  ;;  %2246 = vmatpush1.bf16.msra.mxu1 %v3294_v9  ;;  %v3390_v9 = vld [vmem:[%s4536_s1 + $0x6f0] ss:$8 sps:$4 sm:$0xff]   ;;  %v3398_v10 = vld [vmem:[%s4536_s1 + $0x304] ss:$8 sps:$4 sm:$0xff]  }
  0x89   : > { %2418 = vmatpush1.bf16.msra.mxu0 %v3300_v11  ;;  %2247 = vmatprep.subr.bf16.mxu1 %v3305_v12  ;;  %v3404_v11 = vld [vmem:[%s4536_s1 + $0x704] ss:$8 sps:$4 sm:$0xff]   ;;  %v3393_v12 = vld [vmem:[%s3763_s24 + $0x10] ss:$72 sps:$4 sm:$0xff]  }
  0x8a   : > { %2419 = vmatprep.subr.bf16.mxu0 %v3308_v13  ;;  %2277 = vmatprep.mubr.bf16.mxu1 %v3395_v19  ;;  %v3396_v13 = vld [vmem:[%s4536_s1 + $0x300] ss:$8 sps:$4 sm:$0xff]   ;;  %v3500_v19 = vld [vmem:[%s3763_s24 + $0x3c] ss:$72 sps:$4 sm:$0xff]  }
  0x8b   : > { %2449 = vmatprep.mubr.bf16.mxu0 %v3401_v23  ;;  %v3416_v23 = vld [vmem:[%s4536_s1 + $0x724] ss:$8 sps:$4 sm:$0xff]  }
  0x8c   : > { %2248 = vmatpush1.bf16.msra.mxu1 %v3303_v14  ;;  %v3399_v14 = vld [vmem:[%s3763_s24 + $0x30] ss:$72 sps:$4 sm:$0xff]  }
  0x8d   : > { %2420 = vmatpush1.bf16.msra.mxu0 %v3306_v15  ;;  %2249 = vmatprep.subr.bf16.mxu1 %v3311_v16  ;;  %v3402_v15 = vld [vmem:[%s4536_s1 + $0x700] ss:$8 sps:$4 sm:$0xff]   ;;  %v3407_v16 = vld [vmem:[%s4536_s1 + $0x314] ss:$8 sps:$4 sm:$0xff]  }
  0x8e   : > { %2421 = vmatprep.subr.bf16.mxu0 %v3314_v17  ;;  %v3410_v17 = vld [vmem:[%s4536_s1 + $0x714] ss:$8 sps:$4 sm:$0xff]  }
  0x90   : > { %2250 = vmatpush1.bf16.msra.mxu1 %v3309_v18  ;;  %v3497_v18 = vld [vmem:[%s3763_s24 + $0x1c] ss:$72 sps:$4 sm:$0xff]  }
  0x91   : > { %2422 = vmatpush1.bf16.msra.mxu0 %v3312_v20  ;;  %2251 = vmatprep.subr.bf16.mxu1 %v3317_v21  ;;  %v3405_v20 = vld [vmem:[%s4536_s1 + $0x310] ss:$8 sps:$4 sm:$0xff]  }
  0x92   : > { %2423 = vmatprep.subr.bf16.mxu0 %v3320_v22  ;;  %v3408_v21 = vld [vmem:[%s4536_s1 + $0x710] ss:$8 sps:$4 sm:$0xff]   ;;  %v3413_v22 = vld [vmem:[%s4536_s1 + $0x324] ss:$8 sps:$4 sm:$0xff]  }
  0x94   : > { %2252 = vmatpush1.bf16.msra.mxu1 %v3315_v24  ;;  %v3411_v24 = vld [vmem:[%s4536_s1 + $0x320] ss:$8 sps:$4 sm:$0xff]  }
  0x95   : > { %2424 = vmatpush1.bf16.msra.mxu0 %v3318_v25  ;;  %2253 = vmatprep.subr.bf16.mxu1 %v3323_v26  ;;  %v3414_v25 = vld [vmem:[%s4536_s1 + $0x720] ss:$8 sps:$4 sm:$0xff]   ;;  %v3419_v26 = vld [vmem:[%s4536_s1 + $0x334] ss:$8 sps:$4 sm:$0xff]  }
  0x96   : > { %2425 = vmatprep.subr.bf16.mxu0 %v3326_v27  ;;  %v3422_v27 = vld [vmem:[%s4536_s1 + $0x734] ss:$8 sps:$4 sm:$0xff]  }
  0x98   : > { %2254 = vmatpush1.bf16.msra.mxu1 %v3321_v28  ;;  %v3417_v28 = vld [vmem:[%s4536_s1 + $0x330] ss:$8 sps:$4 sm:$0xff]  }
  0x99   : > { %2426 = vmatpush1.bf16.msra.mxu0 %v3324_v29  ;;  %2255 = vmatprep.subr.bf16.mxu1 %v3329_v30  ;;  %v3420_v29 = vld [vmem:[%s4536_s1 + $0x730] ss:$8 sps:$4 sm:$0xff]   ;;  %v3425_v30 = vld [vmem:[%s4536_s1 + $0x344] ss:$8 sps:$4 sm:$0xff]  }
  0x9a   : > { %2427 = vmatprep.subr.bf16.mxu0 %v3332_v31  ;;  %v3428_v31 = vld [vmem:[%s4536_s1 + $0x744] ss:$8 sps:$4 sm:$0xff]  }
  0x9c   : > { %2256 = vmatpush1.bf16.msra.mxu1 %v3327_v32  ;;  %v3423_v32 = vld [vmem:[%s4536_s1 + $0x340] ss:$8 sps:$4 sm:$0xff]  }
  0x9d   : > { %2428 = vmatpush1.bf16.msra.mxu0 %v3330_v33  ;;  %2257 = vmatprep.subr.bf16.mxu1 %v3335_v34  ;;  %v3426_v33 = vld [vmem:[%s4536_s1 + $0x740] ss:$8 sps:$4 sm:$0xff]   ;;  %v3431_v34 = vld [vmem:[%s4536_s1 + $0x354] ss:$8 sps:$4 sm:$0xff]  }
  0x9e   : > { %2429 = vmatprep.subr.bf16.mxu0 %v3338_v35  ;;  %v3434_v35 = vld [vmem:[%s4536_s1 + $0x754] ss:$8 sps:$4 sm:$0xff]  }
  0xa0   : > { %2258 = vmatpush1.bf16.msra.mxu1 %v3333_v36  ;;  %v3429_v36 = vld [vmem:[%s4536_s1 + $0x350] ss:$8 sps:$4 sm:$0xff]  }
  0xa1   : > { %2430 = vmatpush1.bf16.msra.mxu0 %v3336_v37  ;;  %2259 = vmatprep.subr.bf16.mxu1 %v3341_v38  ;;  %v3432_v37 = vld [vmem:[%s4536_s1 + $0x750] ss:$8 sps:$4 sm:$0xff]   ;;  %v3437_v38 = vld [vmem:[%s4536_s1 + $0x364] ss:$8 sps:$4 sm:$0xff]  }
  0xa2   : > { %2431 = vmatprep.subr.bf16.mxu0 %v3344_v39  ;;  %v3440_v39 = vld [vmem:[%s4536_s1 + $0x764] ss:$8 sps:$4 sm:$0xff]  }
  0xa4   : > { %2260 = vmatpush1.bf16.msra.mxu1 %v3339_v40  ;;  %v3435_v40 = vld [vmem:[%s4536_s1 + $0x360] ss:$8 sps:$4 sm:$0xff]  }
  0xa5   : > { %2432 = vmatpush1.bf16.msra.mxu0 %v3342_v41  ;;  %2261 = vmatprep.subr.bf16.mxu1 %v3347_v42  ;;  %v3438_v41 = vld [vmem:[%s4536_s1 + $0x760] ss:$8 sps:$4 sm:$0xff]   ;;  %v3443_v42 = vld [vmem:[%s4536_s1 + $0x374] ss:$8 sps:$4 sm:$0xff]  }
  0xa6   : > { %2433 = vmatprep.subr.bf16.mxu0 %v3350_v43  ;;  %v3446_v43 = vld [vmem:[%s4536_s1 + $0x774] ss:$8 sps:$4 sm:$0xff]  }
  0xa8   : > { %2262 = vmatpush1.bf16.msra.mxu1 %v3345_v44  ;;  %v3441_v44 = vld [vmem:[%s4536_s1 + $0x370] ss:$8 sps:$4 sm:$0xff]  }
  0xa9   : > { %2434 = vmatpush1.bf16.msra.mxu0 %v3348_v45  ;;  %2263 = vmatprep.subr.bf16.mxu1 %v3353_v46  ;;  %v3444_v45 = vld [vmem:[%s4536_s1 + $0x770] ss:$8 sps:$4 sm:$0xff]   ;;  %v3449_v46 = vld [vmem:[%s4536_s1 + $0x384] ss:$8 sps:$4 sm:$0xff]  }
  0xaa   : > { %2435 = vmatprep.subr.bf16.mxu0 %v3356_v47  ;;  %v3452_v47 = vld [vmem:[%s4536_s1 + $0x784] ss:$8 sps:$4 sm:$0xff]  }
  0xac   : > { %2264 = vmatpush1.bf16.msra.mxu1 %v3351_v48  ;;  %v3447_v48 = vld [vmem:[%s4536_s1 + $0x380] ss:$8 sps:$4 sm:$0xff]  }
  0xad   : > { %2436 = vmatpush1.bf16.msra.mxu0 %v3354_v49  ;;  %2265 = vmatprep.subr.bf16.mxu1 %v3359_v50  ;;  %v3450_v49 = vld [vmem:[%s4536_s1 + $0x780] ss:$8 sps:$4 sm:$0xff]   ;;  %v3455_v50 = vld [vmem:[%s4536_s1 + $0x394] ss:$8 sps:$4 sm:$0xff]  }
  0xae   : > { %2437 = vmatprep.subr.bf16.mxu0 %v3362_v51  ;;  %v3458_v51 = vld [vmem:[%s4536_s1 + $0x794] ss:$8 sps:$4 sm:$0xff]  }
  0xb0   : > { %2266 = vmatpush1.bf16.msra.mxu1 %v3357_v52  ;;  %v3453_v52 = vld [vmem:[%s4536_s1 + $0x390] ss:$8 sps:$4 sm:$0xff]  }
  0xb1   : > { %2438 = vmatpush1.bf16.msra.mxu0 %v3360_v53  ;;  %2267 = vmatprep.subr.bf16.mxu1 %v3365_v54  ;;  %v3456_v53 = vld [vmem:[%s4536_s1 + $0x790] ss:$8 sps:$4 sm:$0xff]   ;;  %v3461_v54 = vld [vmem:[%s4536_s1 + $0x3a4] ss:$8 sps:$4 sm:$0xff]  }
  0xb2   : > { %2439 = vmatprep.subr.bf16.mxu0 %v3368_v55  ;;  %v3464_v55 = vld [vmem:[%s4536_s1 + $0x7a4] ss:$8 sps:$4 sm:$0xff]  }
  0xb4   : > { %2268 = vmatpush1.bf16.msra.mxu1 %v3363_v56  ;;  %v3459_v56 = vld [vmem:[%s4536_s1 + $0x3a0] ss:$8 sps:$4 sm:$0xff]  }
  0xb5   : > { %2440 = vmatpush1.bf16.msra.mxu0 %v3366_v57  ;;  %2269 = vmatprep.subr.bf16.mxu1 %v3371_v58  ;;  %v3462_v57 = vld [vmem:[%s4536_s1 + $0x7a0] ss:$8 sps:$4 sm:$0xff]   ;;  %v3467_v58 = vld [vmem:[%s4536_s1 + $0x3b4] ss:$8 sps:$4 sm:$0xff]  }
  0xb6   : > { %2441 = vmatprep.subr.bf16.mxu0 %v3374_v59  ;;  %v3470_v59 = vld [vmem:[%s4536_s1 + $0x7b4] ss:$8 sps:$4 sm:$0xff]  }
  0xb8   : > { %2270 = vmatpush1.bf16.msra.mxu1 %v3369_v60  ;;  %v3465_v60 = vld [vmem:[%s4536_s1 + $0x3b0] ss:$8 sps:$4 sm:$0xff]  }
  0xb9   : > { %2442 = vmatpush1.bf16.msra.mxu0 %v3372_v61  ;;  %2271 = vmatprep.subr.bf16.mxu1 %v3377_v62  ;;  %v3468_v61 = vld [vmem:[%s4536_s1 + $0x7b0] ss:$8 sps:$4 sm:$0xff]   ;;  %v3473_v62 = vld [vmem:[%s4536_s1 + $0x3c4] ss:$8 sps:$4 sm:$0xff]  }
  0xba   : > { %2443 = vmatprep.subr.bf16.mxu0 %v3380_v63  ;;  %v3476_v63 = vld [vmem:[%s4536_s1 + $0x7c4] ss:$8 sps:$4 sm:$0xff]  }
  0xbc   : > { %2272 = vmatpush1.bf16.msra.mxu1 %v3375_v0  ;;  %v3471_v0 = vld [vmem:[%s4536_s1 + $0x3c0] ss:$8 sps:$4 sm:$0xff]  }
  0xbd   : > { %2444 = vmatpush1.bf16.msra.mxu0 %v3378_v1  ;;  %2273 = vmatprep.subr.bf16.mxu1 %v3383_v2  ;;  %v3474_v1 = vld [vmem:[%s4536_s1 + $0x7c0] ss:$8 sps:$4 sm:$0xff]   ;;  %v3479_v2 = vld [vmem:[%s4536_s1 + $0x3d4] ss:$8 sps:$4 sm:$0xff]  }
  0xbe   : > { %2445 = vmatprep.subr.bf16.mxu0 %v3386_v3  ;;  %v3482_v3 = vld [vmem:[%s4536_s1 + $0x7d4] ss:$8 sps:$4 sm:$0xff]  }
  0xc0   : > { %2274 = vmatpush1.bf16.msra.mxu1 %v3381_v4  ;;  %v3477_v4 = vld [vmem:[%s4536_s1 + $0x3d0] ss:$8 sps:$4 sm:$0xff]  }
  0xc1   : > { %2446 = vmatpush1.bf16.msra.mxu0 %v3384_v5  ;;  %2275 = vmatprep.subr.bf16.mxu1 %v3389_v6  ;;  %v3480_v5 = vld [vmem:[%s4536_s1 + $0x7d0] ss:$8 sps:$4 sm:$0xff]   ;;  %v3485_v6 = vld [vmem:[%s4536_s1 + $0x3e4] ss:$8 sps:$4 sm:$0xff]  }
  0xc2   : > { %2447 = vmatprep.subr.bf16.mxu0 %v3392_v7  ;;  %v3488_v7 = vld [vmem:[%s4536_s1 + $0x7e4] ss:$8 sps:$4 sm:$0xff]  }
  0xc4   : > { %2276 = vmatpush1.bf16.msra.mxu1 %v3387_v8  ;;  %v3483_v8 = vld [vmem:[%s4536_s1 + $0x3e0] ss:$8 sps:$4 sm:$0xff]  }
  0xc5   : > { %2448 = vmatpush1.bf16.msra.mxu0 %v3390_v9  ;;  %2288 = vmatprep.subr.bf16.mxu1 %v3398_v10  ;;  %v3486_v9 = vld [vmem:[%s4536_s1 + $0x7e0] ss:$8 sps:$4 sm:$0xff]   ;;  %v3491_v10 = vld [vmem:[%s4536_s1 + $0x3f4] ss:$8 sps:$4 sm:$0xff]  }
  0xc6   : > { %2460 = vmatprep.subr.bf16.mxu0 %v3404_v11  ;;  %v3494_v11 = vld [vmem:[%s4536_s1 + $0x7f4] ss:$8 sps:$4 sm:$0xff]  }
  0xc7   : > { %2278 = vmatmul.mubr.bf16.vlgmr.msra.gmra.mrb[0].mxu1 %v3393_v12  ;;  %v3489_v12 = vld [vmem:[%s4536_s1 + $0x3f0] ss:$8 sps:$4 sm:$0xff]  }
  0xc8   : > { %2450 = vmatmul.mubr.bf16.vlgmr.msra.gmra.mrb[0].mxu0 %v3399_v14  ;;  %2289 = vmatpush1.bf16.msra.mxu1 %v3396_v13  ;;  %v3492_v13 = vld [vmem:[%s4536_s1 + $0x7f0] ss:$8 sps:$4 sm:$0xff]   ;;  %v3503_v14 = vld [vmem:[%s4536_s1 + $0x804] ss:$8 sps:$4 sm:$0xff]  }
  0xc9   : > { %2461 = vmatpush1.bf16.msra.mxu0 %v3402_v15  ;;  %2290 = vmatprep.subr.bf16.mxu1 %v3407_v16  ;;  %v3495_v15 = vld [vmem:[%s3763_s24 + $0x18] ss:$72 sps:$4 sm:$0xff]  }
  0xca   : > { %2462 = vmatprep.subr.bf16.mxu0 %v3410_v17  ;;  %2320 = vmatprep.mubr.bf16.mxu1 %v3497_v18  ;;  %v3498_v16 = vld [vmem:[%s3763_s24 + $0x38] ss:$72 sps:$4 sm:$0xff]   ;;  %v3551_v18 = vld [vmem:[%s3763_s24 + $0x44] ss:$72 sps:$4 sm:$0xff]  }
  0xcb   : > { %2492 = vmatprep.mubr.bf16.mxu0 %v3500_v19  ;;  %v3501_v17 = vld [vmem:[%s4536_s1 + $0x800] ss:$8 sps:$4 sm:$0xff]   ;;  %v3506_v19 = vld [vmem:[%s4536_s1 + $0x814] ss:$8 sps:$4 sm:$0xff]  }
  0xcc   : > { %2291 = vmatpush1.bf16.msra.mxu1 %v3405_v20  ;;  %v3504_v20 = vld [vmem:[%s4536_s1 + $0x810] ss:$8 sps:$4 sm:$0xff]  }
  0xcd   : > { %2463 = vmatpush1.bf16.msra.mxu0 %v3408_v21  ;;  %2292 = vmatprep.subr.bf16.mxu1 %v3413_v22  ;;  %v3509_v21 = vld [vmem:[%s4536_s1 + $0x824] ss:$8 sps:$4 sm:$0xff]   ;;  %v3507_v22 = vld [vmem:[%s4536_s1 + $0x820] ss:$8 sps:$4 sm:$0xff]  }
  0xce   : > { %2464 = vmatprep.subr.bf16.mxu0 %v3416_v23  ;;  %v3512_v23 = vld [vmem:[%s4536_s1 + $0x834] ss:$8 sps:$4 sm:$0xff]  }
  0xd0   : > { %2293 = vmatpush1.bf16.msra.mxu1 %v3411_v24  ;;  %v3510_v24 = vld [vmem:[%s4536_s1 + $0x830] ss:$8 sps:$4 sm:$0xff]  }
  0xd1   : > { %2465 = vmatpush1.bf16.msra.mxu0 %v3414_v25  ;;  %2294 = vmatprep.subr.bf16.mxu1 %v3419_v26  ;;  %v3515_v25 = vld [vmem:[%s4536_s1 + $0x844] ss:$8 sps:$4 sm:$0xff]   ;;  %v3513_v26 = vld [vmem:[%s4536_s1 + $0x840] ss:$8 sps:$4 sm:$0xff]  }
  0xd2   : > { %2466 = vmatprep.subr.bf16.mxu0 %v3422_v27  ;;  %v3518_v27 = vld [vmem:[%s4536_s1 + $0x854] ss:$8 sps:$4 sm:$0xff]  }
  0xd4   : > { %2295 = vmatpush1.bf16.msra.mxu1 %v3417_v28  ;;  %v3516_v28 = vld [vmem:[%s4536_s1 + $0x850] ss:$8 sps:$4 sm:$0xff]  }
  0xd5   : > { %2467 = vmatpush1.bf16.msra.mxu0 %v3420_v29  ;;  %2296 = vmatprep.subr.bf16.mxu1 %v3425_v30  ;;  %v3521_v29 = vld [vmem:[%s4536_s1 + $0x864] ss:$8 sps:$4 sm:$0xff]   ;;  %v3519_v30 = vld [vmem:[%s4536_s1 + $0x860] ss:$8 sps:$4 sm:$0xff]  }
  0xd6   : > { %2468 = vmatprep.subr.bf16.mxu0 %v3428_v31  ;;  %v3524_v31 = vld [vmem:[%s4536_s1 + $0x874] ss:$8 sps:$4 sm:$0xff]  }
  0xd8   : > { %2297 = vmatpush1.bf16.msra.mxu1 %v3423_v32  ;;  %v3522_v32 = vld [vmem:[%s4536_s1 + $0x870] ss:$8 sps:$4 sm:$0xff]  }
  0xd9   : > { %2469 = vmatpush1.bf16.msra.mxu0 %v3426_v33  ;;  %2298 = vmatprep.subr.bf16.mxu1 %v3431_v34  ;;  %v3527_v33 = vld [vmem:[%s4536_s1 + $0x884] ss:$8 sps:$4 sm:$0xff]   ;;  %v3525_v34 = vld [vmem:[%s4536_s1 + $0x880] ss:$8 sps:$4 sm:$0xff]  }
  0xda   : > { %2470 = vmatprep.subr.bf16.mxu0 %v3434_v35  ;;  %v3530_v35 = vld [vmem:[%s4536_s1 + $0x894] ss:$8 sps:$4 sm:$0xff]  }
  0xdc   : > { %2299 = vmatpush1.bf16.msra.mxu1 %v3429_v36  ;;  %v3528_v36 = vld [vmem:[%s4536_s1 + $0x890] ss:$8 sps:$4 sm:$0xff]  }
  0xdd   : > { %2471 = vmatpush1.bf16.msra.mxu0 %v3432_v37  ;;  %2300 = vmatprep.subr.bf16.mxu1 %v3437_v38  ;;  %v3533_v37 = vld [vmem:[%s4536_s1 + $0x8a4] ss:$8 sps:$4 sm:$0xff]   ;;  %v3531_v38 = vld [vmem:[%s4536_s1 + $0x8a0] ss:$8 sps:$4 sm:$0xff]  }
  0xde   : > { %2472 = vmatprep.subr.bf16.mxu0 %v3440_v39  ;;  %v3536_v39 = vld [vmem:[%s4536_s1 + $0x8b4] ss:$8 sps:$4 sm:$0xff]  }
  0xe0   : > { %2301 = vmatpush1.bf16.msra.mxu1 %v3435_v40  ;;  %v3534_v40 = vld [vmem:[%s4536_s1 + $0x8b0] ss:$8 sps:$4 sm:$0xff]  }
  0xe1   : > { %2473 = vmatpush1.bf16.msra.mxu0 %v3438_v41  ;;  %2302 = vmatprep.subr.bf16.mxu1 %v3443_v42  ;;  %v3539_v41 = vld [vmem:[%s4536_s1 + $0x8c4] ss:$8 sps:$4 sm:$0xff]   ;;  %v3537_v42 = vld [vmem:[%s4536_s1 + $0x8c0] ss:$8 sps:$4 sm:$0xff]  }
  0xe2   : > { %2474 = vmatprep.subr.bf16.mxu0 %v3446_v43  ;;  %v3542_v43 = vld [vmem:[%s4536_s1 + $0x8d4] ss:$8 sps:$4 sm:$0xff]  }
  0xe4   : > { %2303 = vmatpush1.bf16.msra.mxu1 %v3441_v44  ;;  %v3540_v44 = vld [vmem:[%s4536_s1 + $0x8d0] ss:$8 sps:$4 sm:$0xff]  }
  0xe5   : > { %2475 = vmatpush1.bf16.msra.mxu0 %v3444_v45  ;;  %2304 = vmatprep.subr.bf16.mxu1 %v3449_v46  ;;  %v3545_v45 = vld [vmem:[%s4536_s1 + $0x8e4] ss:$8 sps:$4 sm:$0xff]   ;;  %v3543_v46 = vld [vmem:[%s4536_s1 + $0x8e0] ss:$8 sps:$4 sm:$0xff]  }
  0xe6   : > { %2476 = vmatprep.subr.bf16.mxu0 %v3452_v47  ;;  %v3548_v47 = vld [vmem:[%s4536_s1 + $0x8f4] ss:$8 sps:$4 sm:$0xff]  }
  0xe8   : > { %2305 = vmatpush1.bf16.msra.mxu1 %v3447_v48  ;;  %v3546_v48 = vld [vmem:[%s4536_s1 + $0x8f0] ss:$8 sps:$4 sm:$0xff]  }
  0xe9   : > { %2477 = vmatpush1.bf16.msra.mxu0 %v3450_v49  ;;  %2306 = vmatprep.subr.bf16.mxu1 %v3455_v50  ;;  %v3549_v49 = vld [vmem:[%s3763_s24 + $0x40] ss:$72 sps:$4 sm:$0xff]   ;;  %s296_s24 = scalar_lea.vmem %s4538_s3, %s3028_s28 }
  0xea   : > { %2478 = vmatprep.subr.bf16.mxu0 %v3458_v51 }
  0xec   : > { %2307 = vmatpush1.bf16.msra.mxu1 %v3453_v52 }
  0xed   : > { %2479 = vmatpush1.bf16.msra.mxu0 %v3456_v53  ;;  %2308 = vmatprep.subr.bf16.mxu1 %v3461_v54  ;;  %v619_v54 = vlaneseq }
  0xee   : > { %2480 = vmatprep.subr.bf16.mxu0 %v3464_v55 }
  0xef   : > { %v620_v55 = vshrl.u32 %v619_v54, 7 }
  0xf0   : > { %2309 = vmatpush1.bf16.msra.mxu1 %v3459_v56 }
  0xf1   : > { %2481 = vmatpush1.bf16.msra.mxu0 %v3462_v57  ;;  %2310 = vmatprep.subr.bf16.mxu1 %v3467_v58  ;;  %v621_v56 = vsub.s32 0, %v620_v55  ;;  %v617_v57 = vld [vmem:[%s4537_s2] sm:$0x3]  ;;  %v625_v58 = vsub.s32 1, %v620_v55 }
  0xf2   : > { %2482 = vmatprep.subr.bf16.mxu0 %v3470_v59 }
  0xf3   : > { %v622_v59 = vrot.slane %v617_v57, %v621_v56 }
  0xf4   : > { %2311 = vmatpush1.bf16.msra.mxu1 %v3465_v60  ;;  %v626_v60 = vrot.slane %v617_v57, %v625_v58 }
  0xf5   : > { %2483 = vmatpush1.bf16.msra.mxu0 %v3468_v61  ;;  %2312 = vmatprep.subr.bf16.mxu1 %v3473_v62  ;;  %v2546_v61 = vld [vmem:[%s296_s24] sm:$0xff]  ;;  %v2547_v62 = vld [vmem:[%s296_s24 + $0x8] sm:$0xff] }
  0xf6   : > { %2484 = vmatprep.subr.bf16.mxu0 %v3476_v63 }
  0xf8   : > { %2313 = vmatpush1.bf16.msra.mxu1 %v3471_v0  ;;  %v2548_v0 = vunpack.c.l.bf16 %v2546_v61 }
  0xf9   : > { %2485 = vmatpush1.bf16.msra.mxu0 %v3474_v1  ;;  %2314 = vmatprep.subr.bf16.mxu1 %v3479_v2 }
  0xfa   : > { %2486 = vmatprep.subr.bf16.mxu0 %v3482_v3  ;;  %v2549_v3 = vunpack.c.h.bf16 %v2546_v61 }
  0xfc   : > { %2315 = vmatpush1.bf16.msra.mxu1 %v3477_v4 }
  0xfd   : > { %2487 = vmatpush1.bf16.msra.mxu0 %v3480_v5  ;;  %2316 = vmatprep.subr.bf16.mxu1 %v3485_v6 }
  0xfe   : > { %2488 = vmatprep.subr.bf16.mxu0 %v3488_v7  ;;  %v2550_v7 = vunpack.c.l.bf16 %v2547_v62 }
 0x100   : > { %2317 = vmatpush1.bf16.msra.mxu1 %v3483_v8 }
 0x101   : > { %2489 = vmatpush1.bf16.msra.mxu0 %v3486_v9  ;;  %2318 = vmatprep.subr.bf16.mxu1 %v3491_v10 }
 0x102   : > { %2490 = vmatprep.subr.bf16.mxu0 %v3494_v11  ;;  %v2551_v11 = vunpack.c.h.bf16 %v2547_v62 }
 0x104   : > { %2319 = vmatpush1.bf16.msra.mxu1 %v3489_v12 }
 0x105   : > { %2491 = vmatpush1.bf16.msra.mxu0 %v3492_v13 }
 0x106   : > { %2503 = vmatprep.subr.bf16.mxu0 %v3503_v14 }
 0x107   : > { %2321 = vmatmul.mubr.bf16.vlgmr.msra.gmra.mrb[0].mxu1 %v3495_v15 }
 0x108   : > { %2493 = vmatmul.mubr.bf16.vlgmr.msra.gmra.mrb[0].mxu0 %v3498_v16 }
 0x109   : > { %2504 = vmatpush1.bf16.msra.mxu0 %v3501_v17  ;;  %2535 = vmatprep.mubr.bf16.mxu0 %v3551_v18 }
 0x10a   : > { %2505 = vmatprep.subr.bf16.mxu0 %v3506_v19 }
 0x10d   : > { %2506 = vmatpush1.bf16.msra.mxu0 %v3504_v20 }
 0x10e   : > { %2507 = vmatprep.subr.bf16.mxu0 %v3509_v21 }
 0x111   : > { %2508 = vmatpush1.bf16.msra.mxu0 %v3507_v22 }
 0x112   : > { %2509 = vmatprep.subr.bf16.mxu0 %v3512_v23 }
 0x115   : > { %2510 = vmatpush1.bf16.msra.mxu0 %v3510_v24 }
 0x116   : > { %2511 = vmatprep.subr.bf16.mxu0 %v3515_v25 }
 0x119   : > { %2512 = vmatpush1.bf16.msra.mxu0 %v3513_v26 }
 0x11a   : > { %2513 = vmatprep.subr.bf16.mxu0 %v3518_v27 }
 0x11d   : > { %2514 = vmatpush1.bf16.msra.mxu0 %v3516_v28 }
 0x11e   : > { %2515 = vmatprep.subr.bf16.mxu0 %v3521_v29 }
 0x121   : > { %2516 = vmatpush1.bf16.msra.mxu0 %v3519_v30 }
 0x122   : > { %2517 = vmatprep.subr.bf16.mxu0 %v3524_v31 }
 0x125   : > { %2518 = vmatpush1.bf16.msra.mxu0 %v3522_v32 }
 0x126   : > { %2519 = vmatprep.subr.bf16.mxu0 %v3527_v33 }
 0x129   : > { %2520 = vmatpush1.bf16.msra.mxu0 %v3525_v34 }
 0x12a   : > { %2521 = vmatprep.subr.bf16.mxu0 %v3530_v35 }
 0x12d   : > { %2522 = vmatpush1.bf16.msra.mxu0 %v3528_v36 }
 0x12e   : > { %2523 = vmatprep.subr.bf16.mxu0 %v3533_v37 }
 0x131   : > { %2524 = vmatpush1.bf16.msra.mxu0 %v3531_v38 }
 0x132   : > { %2525 = vmatprep.subr.bf16.mxu0 %v3536_v39 }
 0x135   : > { %2526 = vmatpush1.bf16.msra.mxu0 %v3534_v40 }
 0x136   : > { %2527 = vmatprep.subr.bf16.mxu0 %v3539_v41 }
 0x139   : > { %2528 = vmatpush1.bf16.msra.mxu0 %v3537_v42 }
 0x13a   : > { %2529 = vmatprep.subr.bf16.mxu0 %v3542_v43 }
 0x13d   : > { %2530 = vmatpush1.bf16.msra.mxu0 %v3540_v44 }
 0x13e   : > { %2531 = vmatprep.subr.bf16.mxu0 %v3545_v45 }
 0x141   : > { %2532 = vmatpush1.bf16.msra.mxu0 %v3543_v46 }
 0x142   : > { %2533 = vmatprep.subr.bf16.mxu0 %v3548_v47 }
 0x145   : > { %2534 = vmatpush1.bf16.msra.mxu0 %v3546_v48 }
 0x148   : > { %2536 = vmatmul.mubr.bf16.vlgmr.msra.gmra.mrb[0].mxu0 %v3549_v49 }
 0x1da   : > { %v2322_v50 = vpop.f32.mrb[0].mxu1 }
 0x1db   : > { %v2324_v51 = vpop.f32.mrb[1].mxu1  ;;  %v3032_v63 = vadd.f32 %v2322_v50, %v622_v59 }
 0x1dc   : > { %v2326_v52 = vpop.f32.mrb[2].mxu1  ;;  %v3034_v1 = vadd.f32 %v2324_v51, %v626_v60 }
 0x1dd   : > { %v2328_v53 = vpop.f32.mrb[3].mxu1  ;;  %v3036_v4 = vadd.f32 %v2326_v52, %v622_v59 }
 0x1de   : > { %v3038_v8 = vadd.f32 %v2328_v53, %v626_v60 }
 0x21b   : > { %v2537_v2 = vpop.f32.mrb[0].mxu0 }
 0x21c   : > { %v3033_v5 = vadd.f32 %v3032_v63, %v2537_v2  ;;  %v2539_v6 = vpop.f32.mrb[1].mxu0 }
 0x21d   : > { %v3035_v9 = vadd.f32 %v3034_v1, %v2539_v6  ;;  %v2541_v10 = vpop.f32.mrb[2].mxu0 }
 0x21e   : > { %v2552_v12 = vadd.f32 %v3033_v5, %v2548_v0  ;;  %v3037_v13 = vadd.f32 %v3036_v4, %v2541_v10  ;;  %v2543_v14 = vpop.f32.mrb[3].mxu0 }
 0x21f   : > { %v2553_v15 = vadd.f32 %v3035_v9, %v2549_v3  ;;  %v3039_v16 = vadd.f32 %v3038_v8, %v2543_v14 }
 0x220   : > { %v2556_v17 = vmax.f32 %v2552_v12, 0.0  ;;  %v2554_v18 = vadd.f32 %v3037_v13, %v2550_v7 }
 0x221   : > { %v2557_v19 = vmax.f32 %v2553_v15, 0.0  ;;  %v2555_v20 = vadd.f32 %v3039_v16, %v2551_v11 }
 0x222   : > { %v2558_v21 = vmax.f32 %v2554_v18, 0.0 }
 0x223   : > { %v3030_v22 = vpack.c.bf16 %v2557_v19, %v2556_v17  ;;  %v2559_v23 = vmax.f32 %v2555_v20, 0.0 }
 0x225   : > { %2572 = vst [vmem:[%s308_s10] sm:$0xff] %v3030_v22  ;;  %v3031_v24 = vpack.c.bf16 %v2559_v23, %v2558_v21 }
 0x227   : > { %2573 = vst [vmem:[%s308_s10 + $0x8] sm:$0xff] %v3031_v24 }
 0x228 PF: > { %s14_s17 = sadd.s32 1, %s3574_s17   ;;  %s4540_s15 = smov %s3570_s16 }
 0x229   : > { %p11_p5 = scmp.ge.s32.totalorder %s14_s17, 4   ;;  %s4541_s16 = smov %s4543_s18 }
 0x22b   :  { %13 = sbr.rel (!%p11_p5) target bundleno = 2 (0x2), region = 75 }

// kernel: pixel_encoder_forward.28
= control target key start
LH: loop header
LB: loop body
LE: loop exit
PB: predicated region body
PF: predicated region fallthrough
CT: control target
= control target key end

     0   :  { %s3496_s12 = smov 0   ;;  %s3498_s13 = smov 0   ;;  %s4423_s0 = inlined_call_operand.vmem [shape: bf16[32,2304], index: 0, kind: input, shape index: {}]   ;;  %s4424_s1 = inlined_call_operand.vmem [shape: bf16[2304,256], index: 1, kind: input, shape index: {}]   ;;  %s4425_s2 = inlined_call_operand.vmem [shape: f32[1,256], index: 2, kind: input, shape index: {}]   ;;  %s4426_s3 = inlined_call_operand.vmem [shape: bf16[32,256], index: 3, kind: output, shape index: {}]  }
   0x1   :  { %s3500_s14 = smov 0  }
   0x2 LB: > { %s25_s15 = sadd.s32 1, %s3470_s13  ;;  %p2613_p0 = scmp.ge.s32.totalorder %s3474_s14, 1  ;;  %s3474_s14 = sphi %s3500_s14, %s13_s14   ;;  %s3470_s13 = sphi %s3498_s13, %s4428_s13   ;;  %s3466_s12 = sphi %s3496_s12, %s4427_s12  }
   0x3   : > { %p27_p1 = scmp.ge.s32.totalorder %s25_s15, 2  ;;  %p174_p2 = scmp.lt.s32.totalorder %s3474_s14, 3 }
   0x5   : > { %s4430_s15 = smov (%p27_p1, %s25_s15), 0  ;;  %p175_p3 = pnand %p2613_p0, %p174_p2 }
   0x6   : > { %v2993_v0 = vld [vmem:[%s4424_s1 + $0x4] ss:$8 sps:$4 sm:$0xff] (!%p175_p3)   ;;  %v2997_v2 = vld [vmem:[%s4424_s1] ss:$8 sps:$4 sm:$0xff] (!%p175_p3)   ;;  %v2999_v4 = vld [vmem:[%s4424_s1 + $0x14] ss:$8 sps:$4 sm:$0xff] (!%p175_p3)  }
   0x7   : > { %178 = sbr.rel (%p175_p3) target bundleno = 550 (0x226), region = 32  ;;  %v2995_v1 = vld [vmem:[%s4424_s1 + $0x404] ss:$8 sps:$4 sm:$0xff] (!%p175_p3)   ;;  %2091 = vmatprep.subr.bf16.mxu1 (!%p175_p3), %v2993_v0  ;;  %v2998_v3 = vld [vmem:[%s4424_s1 + $0x400] ss:$8 sps:$4 sm:$0xff] (!%p175_p3)   ;;  %s2614_s30 = sshll.u32 (!%p175_p3), %s3466_s12, 1 }
   0x8   : > { %2263 = vmatprep.subr.bf16.mxu0 (!%p175_p3), %v2995_v1  ;;  %2092 = vmatpush1.bf16.msra.mxu1 (!%p175_p3), %v2997_v2  ;;  %v3001_v5 = vld [vmem:[%s4424_s1 + $0x414] ss:$8 sps:$4 sm:$0xff] (!%p175_p3)   ;;  %v3003_v6 = vld [vmem:[%s4424_s1 + $0x10] ss:$8 sps:$4 sm:$0xff] (!%p175_p3)   ;;  %v3005_v8 = vld [vmem:[%s4424_s1 + $0x24] ss:$8 sps:$4 sm:$0xff] (!%p175_p3)  }
   0x9   : > { %2264 = vmatpush1.bf16.msra.mxu0 (!%p175_p3), %v2998_v3  ;;  %2093 = vmatprep.subr.bf16.mxu1 (!%p175_p3), %v2999_v4  ;;  %v3004_v7 = vld [vmem:[%s4424_s1 + $0x410] ss:$8 sps:$4 sm:$0xff] (!%p175_p3)   ;;  %v3007_v9 = vld [vmem:[%s4424_s1 + $0x424] ss:$8 sps:$4 sm:$0xff] (!%p175_p3)   ;;  %v3009_v10 = vld [vmem:[%s4424_s1 + $0x20] ss:$8 sps:$4 sm:$0xff] (!%p175_p3)  }
   0xa   : > { %2265 = vmatprep.subr.bf16.mxu0 (!%p175_p3), %v3001_v5  ;;  %v3010_v11 = vld [vmem:[%s4424_s1 + $0x420] ss:$8 sps:$4 sm:$0xff] (!%p175_p3)   ;;  %v3011_v12 = vld [vmem:[%s4424_s1 + $0x34] ss:$8 sps:$4 sm:$0xff] (!%p175_p3)   ;;  %v3015_v14 = vld [vmem:[%s4424_s1 + $0x30] ss:$8 sps:$4 sm:$0xff] (!%p175_p3)  }
   0xb   : > { %v3013_v13 = vld [vmem:[%s4424_s1 + $0x434] ss:$8 sps:$4 sm:$0xff] (!%p175_p3)   ;;  %v3016_v15 = vld [vmem:[%s4424_s1 + $0x430] ss:$8 sps:$4 sm:$0xff] (!%p175_p3)   ;;  %v3017_v16 = vld [vmem:[%s4424_s1 + $0x44] ss:$8 sps:$4 sm:$0xff] (!%p175_p3)  }
   0xc   : > { %2094 = vmatpush1.bf16.msra.mxu1 (!%p175_p3), %v3003_v6  ;;  %v3019_v17 = vld [vmem:[%s4424_s1 + $0x444] ss:$8 sps:$4 sm:$0xff] (!%p175_p3)   ;;  %v3021_v18 = vld [vmem:[%s4424_s1 + $0x40] ss:$8 sps:$4 sm:$0xff] (!%p175_p3)   ;;  %v3023_v20 = vld [vmem:[%s4424_s1 + $0x54] ss:$8 sps:$4 sm:$0xff] (!%p175_p3)  }
   0xd   : > { %2266 = vmatpush1.bf16.msra.mxu0 (!%p175_p3), %v3004_v7  ;;  %2095 = vmatprep.subr.bf16.mxu1 (!%p175_p3), %v3005_v8  ;;  %v3022_v19 = vld [vmem:[%s4424_s1 + $0x440] ss:$8 sps:$4 sm:$0xff] (!%p175_p3)   ;;  %v3025_v21 = vld [vmem:[%s4424_s1 + $0x454] ss:$8 sps:$4 sm:$0xff] (!%p175_p3)   ;;  %v3027_v22 = vld [vmem:[%s4424_s1 + $0x50] ss:$8 sps:$4 sm:$0xff] (!%p175_p3)  }
   0xe   : > { %2267 = vmatprep.subr.bf16.mxu0 %v3007_v9  ;;  %v3028_v23 = vld [vmem:[%s4424_s1 + $0x450] ss:$8 sps:$4 sm:$0xff]   ;;  %v3029_v24 = vld [vmem:[%s4424_s1 + $0x64] ss:$8 sps:$4 sm:$0xff]   ;;  %v3033_v26 = vld [vmem:[%s4424_s1 + $0x60] ss:$8 sps:$4 sm:$0xff]  }
   0xf   : > { %v3031_v25 = vld [vmem:[%s4424_s1 + $0x464] ss:$8 sps:$4 sm:$0xff]   ;;  %v3034_v27 = vld [vmem:[%s4424_s1 + $0x460] ss:$8 sps:$4 sm:$0xff]   ;;  %v3035_v28 = vld [vmem:[%s4424_s1 + $0x74] ss:$8 sps:$4 sm:$0xff]  }
  0x10   : > { %2096 = vmatpush1.bf16.msra.mxu1 %v3009_v10  ;;  %v3037_v29 = vld [vmem:[%s4424_s1 + $0x474] ss:$8 sps:$4 sm:$0xff]   ;;  %v3039_v30 = vld [vmem:[%s4424_s1 + $0x70] ss:$8 sps:$4 sm:$0xff]   ;;  %v3041_v32 = vld [vmem:[%s4424_s1 + $0x84] ss:$8 sps:$4 sm:$0xff]  }
  0x11   : > { %2268 = vmatpush1.bf16.msra.mxu0 %v3010_v11  ;;  %2097 = vmatprep.subr.bf16.mxu1 %v3011_v12  ;;  %v3040_v31 = vld [vmem:[%s4424_s1 + $0x470] ss:$8 sps:$4 sm:$0xff]   ;;  %p214_p4 = scmp.lt.s32.totalorder %s2614_s30, 3  ;;  %v3043_v33 = vld [vmem:[%s4424_s1 + $0x484] ss:$8 sps:$4 sm:$0xff]  }
  0x12   : > { %2269 = vmatprep.subr.bf16.mxu0 %v3013_v13  ;;  %v3045_v34 = vld [vmem:[%s4424_s1 + $0x80] ss:$8 sps:$4 sm:$0xff]   ;;  %v3047_v36 = vld [vmem:[%s4424_s1 + $0x94] ss:$8 sps:$4 sm:$0xff]   ;;  %v3051_v38 = vld [vmem:[%s4424_s1 + $0x90] ss:$8 sps:$4 sm:$0xff]  }
  0x13   : > { %v3046_v35 = vld [vmem:[%s4424_s1 + $0x480] ss:$8 sps:$4 sm:$0xff]   ;;  %s4432_s30 = smov (!%p214_p4, %s2614_s30), 3  ;;  %v3049_v37 = vld [vmem:[%s4424_s1 + $0x494] ss:$8 sps:$4 sm:$0xff]  }
  0x14   : > { %2098 = vmatpush1.bf16.msra.mxu1 %v3015_v14  ;;  %v3052_v39 = vld [vmem:[%s4424_s1 + $0x490] ss:$8 sps:$4 sm:$0xff]   ;;  %v3053_v40 = vld [vmem:[%s4424_s1 + $0xa4] ss:$8 sps:$4 sm:$0xff]   ;;  %s2968_s29 = smul.u32 72, %s4432_s30 }
  0x15   : > { %2270 = vmatpush1.bf16.msra.mxu0 %v3016_v15  ;;  %2099 = vmatprep.subr.bf16.mxu1 %v3017_v16  ;;  %v3055_v41 = vld [vmem:[%s4424_s1 + $0x4a4] ss:$8 sps:$4 sm:$0xff]   ;;  %v3057_v42 = vld [vmem:[%s4424_s1 + $0xa0] ss:$8 sps:$4 sm:$0xff]   ;;  %v3059_v44 = vld [vmem:[%s4424_s1 + $0xb4] ss:$8 sps:$4 sm:$0xff]  }
  0x16   : > { %2271 = vmatprep.subr.bf16.mxu0 %v3019_v17  ;;  %v3058_v43 = vld [vmem:[%s4424_s1 + $0x4a0] ss:$8 sps:$4 sm:$0xff]   ;;  %s3658_s17 = scalar_lea.vmem %s4423_s0, %s2968_s29  ;;  %v3061_v45 = vld [vmem:[%s4424_s1 + $0x4b4] ss:$8 sps:$4 sm:$0xff]   ;;  %v3063_v46 = vld [vmem:[%s4424_s1 + $0xb0] ss:$8 sps:$4 sm:$0xff]  }
  0x17   : > { %v3064_v47 = vld [vmem:[%s4424_s1 + $0x4b0] ss:$8 sps:$4 sm:$0xff]   ;;  %v3091_v48 = vld [vmem:[%s3658_s17 + $0x4] ss:$72 sps:$4 sm:$0xff]   ;;  %v3069_v52 = vld [vmem:[%s4424_s1 + $0xc0] ss:$8 sps:$4 sm:$0xff]  }
  0x18   : > { %2100 = vmatpush1.bf16.msra.mxu1 %v3021_v18  ;;  %v3065_v49 = vld [vmem:[%s4424_s1 + $0xc4] ss:$8 sps:$4 sm:$0xff]   ;;  %2123 = vmatprep.mubr.bf16.mxu1 %v3091_v48  ;;  %v3070_v53 = vld [vmem:[%s4424_s1 + $0x4c0] ss:$8 sps:$4 sm:$0xff]   ;;  %v3071_v54 = vld [vmem:[%s4424_s1 + $0xd4] ss:$8 sps:$4 sm:$0xff]  }
  0x19   : > { %2272 = vmatpush1.bf16.msra.mxu0 %v3022_v19  ;;  %2101 = vmatprep.subr.bf16.mxu1 %v3023_v20  ;;  %v3067_v50 = vld [vmem:[%s4424_s1 + $0x4c4] ss:$8 sps:$4 sm:$0xff]   ;;  %v3073_v55 = vld [vmem:[%s4424_s1 + $0x4d4] ss:$8 sps:$4 sm:$0xff]   ;;  %v3075_v56 = vld [vmem:[%s4424_s1 + $0xd0] ss:$8 sps:$4 sm:$0xff]  }
  0x1a   : > { %2273 = vmatprep.subr.bf16.mxu0 %v3025_v21  ;;  %v3097_v51 = vld [vmem:[%s3658_s17 + $0x24] ss:$72 sps:$4 sm:$0xff]   ;;  %v3076_v57 = vld [vmem:[%s4424_s1 + $0x4d0] ss:$8 sps:$4 sm:$0xff]   ;;  %v3081_v60 = vld [vmem:[%s4424_s1 + $0xe0] ss:$8 sps:$4 sm:$0xff]  }
  0x1b   : > { %2295 = vmatprep.mubr.bf16.mxu0 %v3097_v51  ;;  %v3077_v58 = vld [vmem:[%s4424_s1 + $0xe4] ss:$8 sps:$4 sm:$0xff]   ;;  %v3082_v61 = vld [vmem:[%s4424_s1 + $0x4e0] ss:$8 sps:$4 sm:$0xff]   ;;  %v3083_v62 = vld [vmem:[%s4424_s1 + $0xf4] ss:$8 sps:$4 sm:$0xff]  }
  0x1c   : > { %2102 = vmatpush1.bf16.msra.mxu1 %v3027_v22  ;;  %v3079_v59 = vld [vmem:[%s4424_s1 + $0x4e4] ss:$8 sps:$4 sm:$0xff]   ;;  %v3085_v63 = vld [vmem:[%s4424_s1 + $0x4f4] ss:$8 sps:$4 sm:$0xff]   ;;  %v3087_v0 = vld [vmem:[%s4424_s1 + $0xf0] ss:$8 sps:$4 sm:$0xff]  }
  0x1d   : > { %2274 = vmatpush1.bf16.msra.mxu0 %v3028_v23  ;;  %2103 = vmatprep.subr.bf16.mxu1 %v3029_v24  ;;  %v3088_v1 = vld [vmem:[%s4424_s1 + $0x4f0] ss:$8 sps:$4 sm:$0xff]   ;;  %v3094_v2 = vld [vmem:[%s4424_s1 + $0x104] ss:$8 sps:$4 sm:$0xff]   ;;  %v3089_v4 = vld [vmem:[%s3658_s17] ss:$72 sps:$4 sm:$0xff]  }
  0x1e   : > { %2275 = vmatprep.subr.bf16.mxu0 %v3031_v25  ;;  %v3100_v3 = vld [vmem:[%s4424_s1 + $0x504] ss:$8 sps:$4 sm:$0xff]   ;;  %v3092_v5 = vld [vmem:[%s4424_s1 + $0x100] ss:$8 sps:$4 sm:$0xff]   ;;  %v3103_v8 = vld [vmem:[%s4424_s1 + $0x114] ss:$8 sps:$4 sm:$0xff]  }
  0x1f   : > { %v3095_v6 = vld [vmem:[%s3658_s17 + $0x20] ss:$72 sps:$4 sm:$0xff]   ;;  %v3106_v9 = vld [vmem:[%s4424_s1 + $0x514] ss:$8 sps:$4 sm:$0xff]   ;;  %v3101_v10 = vld [vmem:[%s4424_s1 + $0x110] ss:$8 sps:$4 sm:$0xff]  }
  0x20   : > { %2104 = vmatpush1.bf16.msra.mxu1 %v3033_v26  ;;  %v3098_v7 = vld [vmem:[%s4424_s1 + $0x500] ss:$8 sps:$4 sm:$0xff]   ;;  %v3104_v11 = vld [vmem:[%s4424_s1 + $0x510] ss:$8 sps:$4 sm:$0xff]   ;;  %v3109_v12 = vld [vmem:[%s4424_s1 + $0x124] ss:$8 sps:$4 sm:$0xff]  }
  0x21   : > { %2276 = vmatpush1.bf16.msra.mxu0 %v3034_v27  ;;  %2105 = vmatprep.subr.bf16.mxu1 %v3035_v28  ;;  %v3112_v13 = vld [vmem:[%s4424_s1 + $0x524] ss:$8 sps:$4 sm:$0xff]   ;;  %v3107_v14 = vld [vmem:[%s4424_s1 + $0x120] ss:$8 sps:$4 sm:$0xff]   ;;  %v3115_v16 = vld [vmem:[%s4424_s1 + $0x134] ss:$8 sps:$4 sm:$0xff]  }
  0x22   : > { %2277 = vmatprep.subr.bf16.mxu0 %v3037_v29  ;;  %v3110_v15 = vld [vmem:[%s4424_s1 + $0x520] ss:$8 sps:$4 sm:$0xff]   ;;  %v3118_v17 = vld [vmem:[%s4424_s1 + $0x534] ss:$8 sps:$4 sm:$0xff]   ;;  %v3113_v18 = vld [vmem:[%s4424_s1 + $0x130] ss:$8 sps:$4 sm:$0xff]  }
  0x23   : > { %v3116_v19 = vld [vmem:[%s4424_s1 + $0x530] ss:$8 sps:$4 sm:$0xff]   ;;  %v3121_v20 = vld [vmem:[%s4424_s1 + $0x144] ss:$8 sps:$4 sm:$0xff]   ;;  %v3119_v22 = vld [vmem:[%s4424_s1 + $0x140] ss:$8 sps:$4 sm:$0xff]  }
  0x24   : > { %2106 = vmatpush1.bf16.msra.mxu1 %v3039_v30  ;;  %v3124_v21 = vld [vmem:[%s4424_s1 + $0x544] ss:$8 sps:$4 sm:$0xff]   ;;  %v3122_v23 = vld [vmem:[%s4424_s1 + $0x540] ss:$8 sps:$4 sm:$0xff]   ;;  %v3127_v24 = vld [vmem:[%s4424_s1 + $0x154] ss:$8 sps:$4 sm:$0xff]  }
  0x25   : > { %2278 = vmatpush1.bf16.msra.mxu0 %v3040_v31  ;;  %2107 = vmatprep.subr.bf16.mxu1 %v3041_v32  ;;  %v3130_v25 = vld [vmem:[%s4424_s1 + $0x554] ss:$8 sps:$4 sm:$0xff]   ;;  %v3125_v26 = vld [vmem:[%s4424_s1 + $0x150] ss:$8 sps:$4 sm:$0xff]   ;;  %v3133_v28 = vld [vmem:[%s4424_s1 + $0x164] ss:$8 sps:$4 sm:$0xff]  }
  0x26   : > { %2279 = vmatprep.subr.bf16.mxu0 %v3043_v33  ;;  %v3128_v27 = vld [vmem:[%s4424_s1 + $0x550] ss:$8 sps:$4 sm:$0xff]   ;;  %v3136_v29 = vld [vmem:[%s4424_s1 + $0x564] ss:$8 sps:$4 sm:$0xff]   ;;  %v3131_v30 = vld [vmem:[%s4424_s1 + $0x160] ss:$8 sps:$4 sm:$0xff]  }
  0x27   : > { %v3134_v31 = vld [vmem:[%s4424_s1 + $0x560] ss:$8 sps:$4 sm:$0xff]   ;;  %v3139_v32 = vld [vmem:[%s4424_s1 + $0x174] ss:$8 sps:$4 sm:$0xff]  }
  0x28   : > { %2108 = vmatpush1.bf16.msra.mxu1 %v3045_v34  ;;  %v3142_v33 = vld [vmem:[%s4424_s1 + $0x574] ss:$8 sps:$4 sm:$0xff]   ;;  %v3155_v48 = vld [vmem:[%s4424_s1 + $0x1a0] ss:$8 sps:$4 sm:$0xff]  }
  0x29   : > { %2280 = vmatpush1.bf16.msra.mxu0 %v3046_v35  ;;  %2109 = vmatprep.subr.bf16.mxu1 %v3047_v36  ;;  %v3193_v34 = vld [vmem:[%s3658_s17 + $0xc] ss:$72 sps:$4 sm:$0xff]   ;;  %v3137_v35 = vld [vmem:[%s4424_s1 + $0x170] ss:$8 sps:$4 sm:$0xff]  }
  0x2a   : > { %2281 = vmatprep.subr.bf16.mxu0 %v3049_v37  ;;  %v3140_v36 = vld [vmem:[%s4424_s1 + $0x570] ss:$8 sps:$4 sm:$0xff]   ;;  %v3199_v37 = vld [vmem:[%s3658_s17 + $0x2c] ss:$72 sps:$4 sm:$0xff]  }
  0x2b   : > { %v3166_v51 = vld [vmem:[%s4424_s1 + $0x5b4] ss:$8 sps:$4 sm:$0xff]  }
  0x2c   : > { %2110 = vmatpush1.bf16.msra.mxu1 %v3051_v38  ;;  %v3145_v38 = vld [vmem:[%s4424_s1 + $0x184] ss:$8 sps:$4 sm:$0xff]  }
  0x2d   : > { %2282 = vmatpush1.bf16.msra.mxu0 %v3052_v39  ;;  %2111 = vmatprep.subr.bf16.mxu1 %v3053_v40  ;;  %v3148_v39 = vld [vmem:[%s4424_s1 + $0x584] ss:$8 sps:$4 sm:$0xff]   ;;  %v3143_v40 = vld [vmem:[%s4424_s1 + $0x180] ss:$8 sps:$4 sm:$0xff]  }
  0x2e   : > { %2283 = vmatprep.subr.bf16.mxu0 %v3055_v41  ;;  %v3146_v41 = vld [vmem:[%s4424_s1 + $0x580] ss:$8 sps:$4 sm:$0xff]  }
  0x30   : > { %2112 = vmatpush1.bf16.msra.mxu1 %v3057_v42  ;;  %v3151_v42 = vld [vmem:[%s4424_s1 + $0x194] ss:$8 sps:$4 sm:$0xff]  }
  0x31   : > { %2284 = vmatpush1.bf16.msra.mxu0 %v3058_v43  ;;  %2113 = vmatprep.subr.bf16.mxu1 %v3059_v44  ;;  %v3154_v43 = vld [vmem:[%s4424_s1 + $0x594] ss:$8 sps:$4 sm:$0xff]   ;;  %v3149_v44 = vld [vmem:[%s4424_s1 + $0x190] ss:$8 sps:$4 sm:$0xff]  }
  0x32   : > { %2285 = vmatprep.subr.bf16.mxu0 %v3061_v45  ;;  %v3152_v45 = vld [vmem:[%s4424_s1 + $0x590] ss:$8 sps:$4 sm:$0xff]  }
  0x34   : > { %2114 = vmatpush1.bf16.msra.mxu1 %v3063_v46  ;;  %v3157_v46 = vld [vmem:[%s4424_s1 + $0x1a4] ss:$8 sps:$4 sm:$0xff]  }
  0x35   : > { %2286 = vmatpush1.bf16.msra.mxu0 %v3064_v47  ;;  %2115 = vmatprep.subr.bf16.mxu1 %v3065_v49  ;;  %v3160_v47 = vld [vmem:[%s4424_s1 + $0x5a4] ss:$8 sps:$4 sm:$0xff]   ;;  %v3158_v49 = vld [vmem:[%s4424_s1 + $0x5a0] ss:$8 sps:$4 sm:$0xff]  }
  0x36   : > { %2287 = vmatprep.subr.bf16.mxu0 %v3067_v50  ;;  %v3163_v50 = vld [vmem:[%s4424_s1 + $0x1b4] ss:$8 sps:$4 sm:$0xff]  }
  0x38   : > { %2116 = vmatpush1.bf16.msra.mxu1 %v3069_v52  ;;  %v3161_v52 = vld [vmem:[%s4424_s1 + $0x1b0] ss:$8 sps:$4 sm:$0xff]  }
  0x39   : > { %2288 = vmatpush1.bf16.msra.mxu0 %v3070_v53  ;;  %2117 = vmatprep.subr.bf16.mxu1 %v3071_v54  ;;  %v3164_v53 = vld [vmem:[%s4424_s1 + $0x5b0] ss:$8 sps:$4 sm:$0xff]   ;;  %v3169_v54 = vld [vmem:[%s4424_s1 + $0x1c4] ss:$8 sps:$4 sm:$0xff]  }
  0x3a   : > { %2289 = vmatprep.subr.bf16.mxu0 %v3073_v55  ;;  %v3172_v55 = vld [vmem:[%s4424_s1 + $0x5c4] ss:$8 sps:$4 sm:$0xff]  }
  0x3c   : > { %2118 = vmatpush1.bf16.msra.mxu1 %v3075_v56  ;;  %v3167_v56 = vld [vmem:[%s4424_s1 + $0x1c0] ss:$8 sps:$4 sm:$0xff]  }
  0x3d   : > { %2290 = vmatpush1.bf16.msra.mxu0 %v3076_v57  ;;  %2119 = vmatprep.subr.bf16.mxu1 %v3077_v58  ;;  %v3170_v57 = vld [vmem:[%s4424_s1 + $0x5c0] ss:$8 sps:$4 sm:$0xff]   ;;  %v3175_v58 = vld [vmem:[%s4424_s1 + $0x1d4] ss:$8 sps:$4 sm:$0xff]  }
  0x3e   : > { %2291 = vmatprep.subr.bf16.mxu0 %v3079_v59  ;;  %v3178_v59 = vld [vmem:[%s4424_s1 + $0x5d4] ss:$8 sps:$4 sm:$0xff]  }
  0x40   : > { %2120 = vmatpush1.bf16.msra.mxu1 %v3081_v60  ;;  %v3173_v60 = vld [vmem:[%s4424_s1 + $0x1d0] ss:$8 sps:$4 sm:$0xff]  }
  0x41   : > { %2292 = vmatpush1.bf16.msra.mxu0 %v3082_v61  ;;  %2121 = vmatprep.subr.bf16.mxu1 %v3083_v62  ;;  %v3176_v61 = vld [vmem:[%s4424_s1 + $0x5d0] ss:$8 sps:$4 sm:$0xff]   ;;  %v3181_v62 = vld [vmem:[%s4424_s1 + $0x1e4] ss:$8 sps:$4 sm:$0xff]  }
  0x42   : > { %2293 = vmatprep.subr.bf16.mxu0 %v3085_v63  ;;  %v3184_v63 = vld [vmem:[%s4424_s1 + $0x5e4] ss:$8 sps:$4 sm:$0xff]  }
  0x44   : > { %2122 = vmatpush1.bf16.msra.mxu1 %v3087_v0  ;;  %v3179_v0 = vld [vmem:[%s4424_s1 + $0x1e0] ss:$8 sps:$4 sm:$0xff]  }
  0x45   : > { %2294 = vmatpush1.bf16.msra.mxu0 %v3088_v1  ;;  %2134 = vmatprep.subr.bf16.mxu1 %v3094_v2  ;;  %v3182_v1 = vld [vmem:[%s4424_s1 + $0x5e0] ss:$8 sps:$4 sm:$0xff]   ;;  %v3187_v2 = vld [vmem:[%s4424_s1 + $0x1f4] ss:$8 sps:$4 sm:$0xff]  }
  0x46   : > { %2306 = vmatprep.subr.bf16.mxu0 %v3100_v3  ;;  %v3190_v3 = vld [vmem:[%s4424_s1 + $0x5f4] ss:$8 sps:$4 sm:$0xff]  }
  0x47   : > { %2124 = vmatmul.mubr.bf16.vlgmr.msra.gmra.mrb[0].mxu1 %v3089_v4  ;;  %v3185_v4 = vld [vmem:[%s4424_s1 + $0x1f0] ss:$8 sps:$4 sm:$0xff]  }
  0x48   : > { %2296 = vmatmul.mubr.bf16.vlgmr.msra.gmra.mrb[0].mxu0 %v3095_v6  ;;  %2135 = vmatpush1.bf16.msra.mxu1 %v3092_v5  ;;  %v3188_v5 = vld [vmem:[%s4424_s1 + $0x5f0] ss:$8 sps:$4 sm:$0xff]   ;;  %v3196_v6 = vld [vmem:[%s4424_s1 + $0x204] ss:$8 sps:$4 sm:$0xff]  }
  0x49   : > { %2307 = vmatpush1.bf16.msra.mxu0 %v3098_v7  ;;  %2136 = vmatprep.subr.bf16.mxu1 %v3103_v8  ;;  %v3202_v7 = vld [vmem:[%s4424_s1 + $0x604] ss:$8 sps:$4 sm:$0xff]   ;;  %v3191_v8 = vld [vmem:[%s3658_s17 + $0x8] ss:$72 sps:$4 sm:$0xff]  }
  0x4a   : > { %2308 = vmatprep.subr.bf16.mxu0 %v3106_v9  ;;  %2166 = vmatprep.mubr.bf16.mxu1 %v3193_v34  ;;  %v3194_v9 = vld [vmem:[%s4424_s1 + $0x200] ss:$8 sps:$4 sm:$0xff]   ;;  %v3235_v34 = vld [vmem:[%s4424_s1 + $0x264] ss:$8 sps:$4 sm:$0xff]  }
  0x4b   : > { %2338 = vmatprep.mubr.bf16.mxu0 %v3199_v37  ;;  %v3236_v37 = vld [vmem:[%s4424_s1 + $0x660] ss:$8 sps:$4 sm:$0xff]  }
  0x4c   : > { %2137 = vmatpush1.bf16.msra.mxu1 %v3101_v10  ;;  %v3197_v10 = vld [vmem:[%s3658_s17 + $0x28] ss:$72 sps:$4 sm:$0xff]  }
  0x4d   : > { %2309 = vmatpush1.bf16.msra.mxu0 %v3104_v11  ;;  %2138 = vmatprep.subr.bf16.mxu1 %v3109_v12  ;;  %v3200_v11 = vld [vmem:[%s4424_s1 + $0x600] ss:$8 sps:$4 sm:$0xff]   ;;  %v3205_v12 = vld [vmem:[%s4424_s1 + $0x214] ss:$8 sps:$4 sm:$0xff]  }
  0x4e   : > { %2310 = vmatprep.subr.bf16.mxu0 %v3112_v13  ;;  %v3208_v13 = vld [vmem:[%s4424_s1 + $0x614] ss:$8 sps:$4 sm:$0xff]  }
  0x50   : > { %2139 = vmatpush1.bf16.msra.mxu1 %v3107_v14  ;;  %v3203_v14 = vld [vmem:[%s4424_s1 + $0x210] ss:$8 sps:$4 sm:$0xff]  }
  0x51   : > { %2311 = vmatpush1.bf16.msra.mxu0 %v3110_v15  ;;  %2140 = vmatprep.subr.bf16.mxu1 %v3115_v16  ;;  %v3206_v15 = vld [vmem:[%s4424_s1 + $0x610] ss:$8 sps:$4 sm:$0xff]   ;;  %v3211_v16 = vld [vmem:[%s4424_s1 + $0x224] ss:$8 sps:$4 sm:$0xff]  }
  0x52   : > { %2312 = vmatprep.subr.bf16.mxu0 %v3118_v17  ;;  %v3214_v17 = vld [vmem:[%s4424_s1 + $0x624] ss:$8 sps:$4 sm:$0xff]  }
  0x54   : > { %2141 = vmatpush1.bf16.msra.mxu1 %v3113_v18  ;;  %v3209_v18 = vld [vmem:[%s4424_s1 + $0x220] ss:$8 sps:$4 sm:$0xff]  }
  0x55   : > { %2313 = vmatpush1.bf16.msra.mxu0 %v3116_v19  ;;  %2142 = vmatprep.subr.bf16.mxu1 %v3121_v20  ;;  %v3295_v19 = vld [vmem:[%s3658_s17 + $0x14] ss:$72 sps:$4 sm:$0xff]   ;;  %v3212_v20 = vld [vmem:[%s4424_s1 + $0x620] ss:$8 sps:$4 sm:$0xff]  }
  0x56   : > { %2314 = vmatprep.subr.bf16.mxu0 %v3124_v21  ;;  %v3217_v21 = vld [vmem:[%s4424_s1 + $0x234] ss:$8 sps:$4 sm:$0xff]  }
  0x58   : > { %2143 = vmatpush1.bf16.msra.mxu1 %v3119_v22  ;;  %v3220_v22 = vld [vmem:[%s4424_s1 + $0x634] ss:$8 sps:$4 sm:$0xff]  }
  0x59   : > { %2315 = vmatpush1.bf16.msra.mxu0 %v3122_v23  ;;  %2144 = vmatprep.subr.bf16.mxu1 %v3127_v24  ;;  %v3301_v23 = vld [vmem:[%s3658_s17 + $0x34] ss:$72 sps:$4 sm:$0xff]   ;;  %v3215_v24 = vld [vmem:[%s4424_s1 + $0x230] ss:$8 sps:$4 sm:$0xff]  }
  0x5a   : > { %2316 = vmatprep.subr.bf16.mxu0 %v3130_v25  ;;  %v3218_v25 = vld [vmem:[%s4424_s1 + $0x630] ss:$8 sps:$4 sm:$0xff]  }
  0x5c   : > { %2145 = vmatpush1.bf16.msra.mxu1 %v3125_v26  ;;  %v3223_v26 = vld [vmem:[%s4424_s1 + $0x244] ss:$8 sps:$4 sm:$0xff]  }
  0x5d   : > { %2317 = vmatpush1.bf16.msra.mxu0 %v3128_v27  ;;  %2146 = vmatprep.subr.bf16.mxu1 %v3133_v28  ;;  %v3226_v27 = vld [vmem:[%s4424_s1 + $0x644] ss:$8 sps:$4 sm:$0xff]   ;;  %v3221_v28 = vld [vmem:[%s4424_s1 + $0x240] ss:$8 sps:$4 sm:$0xff]  }
  0x5e   : > { %2318 = vmatprep.subr.bf16.mxu0 %v3136_v29  ;;  %v3224_v29 = vld [vmem:[%s4424_s1 + $0x640] ss:$8 sps:$4 sm:$0xff]  }
  0x60   : > { %2147 = vmatpush1.bf16.msra.mxu1 %v3131_v30  ;;  %v3229_v30 = vld [vmem:[%s4424_s1 + $0x254] ss:$8 sps:$4 sm:$0xff]  }
  0x61   : > { %2319 = vmatpush1.bf16.msra.mxu0 %v3134_v31  ;;  %2148 = vmatprep.subr.bf16.mxu1 %v3139_v32  ;;  %v3232_v31 = vld [vmem:[%s4424_s1 + $0x654] ss:$8 sps:$4 sm:$0xff]   ;;  %v3227_v32 = vld [vmem:[%s4424_s1 + $0x250] ss:$8 sps:$4 sm:$0xff]  }
  0x62   : > { %2320 = vmatprep.subr.bf16.mxu0 %v3142_v33  ;;  %v3230_v33 = vld [vmem:[%s4424_s1 + $0x650] ss:$8 sps:$4 sm:$0xff]  }
  0x64   : > { %2149 = vmatpush1.bf16.msra.mxu1 %v3137_v35  ;;  %v3238_v35 = vld [vmem:[%s4424_s1 + $0x664] ss:$8 sps:$4 sm:$0xff]  }
  0x65   : > { %2321 = vmatpush1.bf16.msra.mxu0 %v3140_v36  ;;  %2150 = vmatprep.subr.bf16.mxu1 %v3145_v38  ;;  %v3233_v36 = vld [vmem:[%s4424_s1 + $0x260] ss:$8 sps:$4 sm:$0xff]   ;;  %v3241_v38 = vld [vmem:[%s4424_s1 + $0x274] ss:$8 sps:$4 sm:$0xff]  }
  0x66   : > { %2322 = vmatprep.subr.bf16.mxu0 %v3148_v39  ;;  %v3244_v39 = vld [vmem:[%s4424_s1 + $0x674] ss:$8 sps:$4 sm:$0xff]  }
  0x68   : > { %2151 = vmatpush1.bf16.msra.mxu1 %v3143_v40  ;;  %v3239_v40 = vld [vmem:[%s4424_s1 + $0x270] ss:$8 sps:$4 sm:$0xff]  }
  0x69   : > { %2323 = vmatpush1.bf16.msra.mxu0 %v3146_v41  ;;  %2152 = vmatprep.subr.bf16.mxu1 %v3151_v42  ;;  %v3242_v41 = vld [vmem:[%s4424_s1 + $0x670] ss:$8 sps:$4 sm:$0xff]   ;;  %v3247_v42 = vld [vmem:[%s4424_s1 + $0x284] ss:$8 sps:$4 sm:$0xff]  }
  0x6a   : > { %2324 = vmatprep.subr.bf16.mxu0 %v3154_v43  ;;  %v3250_v43 = vld [vmem:[%s4424_s1 + $0x684] ss:$8 sps:$4 sm:$0xff]  }
  0x6c   : > { %2153 = vmatpush1.bf16.msra.mxu1 %v3149_v44  ;;  %v3245_v44 = vld [vmem:[%s4424_s1 + $0x280] ss:$8 sps:$4 sm:$0xff]  }
  0x6d   : > { %2325 = vmatpush1.bf16.msra.mxu0 %v3152_v45  ;;  %2154 = vmatprep.subr.bf16.mxu1 %v3157_v46  ;;  %v3248_v45 = vld [vmem:[%s4424_s1 + $0x680] ss:$8 sps:$4 sm:$0xff]   ;;  %v3253_v46 = vld [vmem:[%s4424_s1 + $0x294] ss:$8 sps:$4 sm:$0xff]  }
  0x6e   : > { %2326 = vmatprep.subr.bf16.mxu0 %v3160_v47  ;;  %v3256_v47 = vld [vmem:[%s4424_s1 + $0x694] ss:$8 sps:$4 sm:$0xff]  }
  0x70   : > { %2155 = vmatpush1.bf16.msra.mxu1 %v3155_v48  ;;  %v3251_v48 = vld [vmem:[%s4424_s1 + $0x290] ss:$8 sps:$4 sm:$0xff]  }
  0x71   : > { %2327 = vmatpush1.bf16.msra.mxu0 %v3158_v49  ;;  %2156 = vmatprep.subr.bf16.mxu1 %v3163_v50  ;;  %v3254_v49 = vld [vmem:[%s4424_s1 + $0x690] ss:$8 sps:$4 sm:$0xff]   ;;  %v3259_v50 = vld [vmem:[%s4424_s1 + $0x2a4] ss:$8 sps:$4 sm:$0xff]  }
  0x72   : > { %2328 = vmatprep.subr.bf16.mxu0 %v3166_v51  ;;  %v3262_v51 = vld [vmem:[%s4424_s1 + $0x6a4] ss:$8 sps:$4 sm:$0xff]  }
  0x74   : > { %2157 = vmatpush1.bf16.msra.mxu1 %v3161_v52  ;;  %v3257_v52 = vld [vmem:[%s4424_s1 + $0x2a0] ss:$8 sps:$4 sm:$0xff]  }
  0x75   : > { %2329 = vmatpush1.bf16.msra.mxu0 %v3164_v53  ;;  %2158 = vmatprep.subr.bf16.mxu1 %v3169_v54  ;;  %v3260_v53 = vld [vmem:[%s4424_s1 + $0x6a0] ss:$8 sps:$4 sm:$0xff]   ;;  %v3265_v54 = vld [vmem:[%s4424_s1 + $0x2b4] ss:$8 sps:$4 sm:$0xff]  }
  0x76   : > { %2330 = vmatprep.subr.bf16.mxu0 %v3172_v55  ;;  %v3268_v55 = vld [vmem:[%s4424_s1 + $0x6b4] ss:$8 sps:$4 sm:$0xff]  }
  0x78   : > { %2159 = vmatpush1.bf16.msra.mxu1 %v3167_v56  ;;  %v3263_v56 = vld [vmem:[%s4424_s1 + $0x2b0] ss:$8 sps:$4 sm:$0xff]  }
  0x79   : > { %2331 = vmatpush1.bf16.msra.mxu0 %v3170_v57  ;;  %2160 = vmatprep.subr.bf16.mxu1 %v3175_v58  ;;  %v3266_v57 = vld [vmem:[%s4424_s1 + $0x6b0] ss:$8 sps:$4 sm:$0xff]   ;;  %v3271_v58 = vld [vmem:[%s4424_s1 + $0x2c4] ss:$8 sps:$4 sm:$0xff]  }
  0x7a   : > { %2332 = vmatprep.subr.bf16.mxu0 %v3178_v59  ;;  %v3274_v59 = vld [vmem:[%s4424_s1 + $0x6c4] ss:$8 sps:$4 sm:$0xff]  }
  0x7c   : > { %2161 = vmatpush1.bf16.msra.mxu1 %v3173_v60  ;;  %v3269_v60 = vld [vmem:[%s4424_s1 + $0x2c0] ss:$8 sps:$4 sm:$0xff]  }
  0x7d   : > { %2333 = vmatpush1.bf16.msra.mxu0 %v3176_v61  ;;  %2162 = vmatprep.subr.bf16.mxu1 %v3181_v62  ;;  %v3272_v61 = vld [vmem:[%s4424_s1 + $0x6c0] ss:$8 sps:$4 sm:$0xff]   ;;  %v3277_v62 = vld [vmem:[%s4424_s1 + $0x2d4] ss:$8 sps:$4 sm:$0xff]  }
  0x7e   : > { %2334 = vmatprep.subr.bf16.mxu0 %v3184_v63  ;;  %v3280_v63 = vld [vmem:[%s4424_s1 + $0x6d4] ss:$8 sps:$4 sm:$0xff]  }
  0x80   : > { %2163 = vmatpush1.bf16.msra.mxu1 %v3179_v0  ;;  %v3275_v0 = vld [vmem:[%s4424_s1 + $0x2d0] ss:$8 sps:$4 sm:$0xff]  }
  0x81   : > { %2335 = vmatpush1.bf16.msra.mxu0 %v3182_v1  ;;  %2164 = vmatprep.subr.bf16.mxu1 %v3187_v2  ;;  %v3278_v1 = vld [vmem:[%s4424_s1 + $0x6d0] ss:$8 sps:$4 sm:$0xff]   ;;  %v3283_v2 = vld [vmem:[%s4424_s1 + $0x2e4] ss:$8 sps:$4 sm:$0xff]  }
  0x82   : > { %2336 = vmatprep.subr.bf16.mxu0 %v3190_v3  ;;  %v3286_v3 = vld [vmem:[%s4424_s1 + $0x6e4] ss:$8 sps:$4 sm:$0xff]  }
  0x84   : > { %2165 = vmatpush1.bf16.msra.mxu1 %v3185_v4  ;;  %v3281_v4 = vld [vmem:[%s4424_s1 + $0x2e0] ss:$8 sps:$4 sm:$0xff]  }
  0x85   : > { %2337 = vmatpush1.bf16.msra.mxu0 %v3188_v5  ;;  %2177 = vmatprep.subr.bf16.mxu1 %v3196_v6  ;;  %v3284_v5 = vld [vmem:[%s4424_s1 + $0x6e0] ss:$8 sps:$4 sm:$0xff]   ;;  %v3289_v6 = vld [vmem:[%s4424_s1 + $0x2f4] ss:$8 sps:$4 sm:$0xff]  }
  0x86   : > { %2349 = vmatprep.subr.bf16.mxu0 %v3202_v7  ;;  %v3292_v7 = vld [vmem:[%s4424_s1 + $0x6f4] ss:$8 sps:$4 sm:$0xff]  }
  0x87   : > { %2167 = vmatmul.mubr.bf16.vlgmr.msra.gmra.mrb[0].mxu1 %v3191_v8  ;;  %v3287_v8 = vld [vmem:[%s4424_s1 + $0x2f0] ss:$8 sps:$4 sm:$0xff]  }
  0x88   : > { %2339 = vmatmul.mubr.bf16.vlgmr.msra.gmra.mrb[0].mxu0 %v3197_v10  ;;  %2178 = vmatpush1.bf16.msra.mxu1 %v3194_v9  ;;  %v3290_v9 = vld [vmem:[%s4424_s1 + $0x6f0] ss:$8 sps:$4 sm:$0xff]   ;;  %v3298_v10 = vld [vmem:[%s4424_s1 + $0x304] ss:$8 sps:$4 sm:$0xff]  }
  0x89   : > { %2350 = vmatpush1.bf16.msra.mxu0 %v3200_v11  ;;  %2179 = vmatprep.subr.bf16.mxu1 %v3205_v12  ;;  %v3304_v11 = vld [vmem:[%s4424_s1 + $0x704] ss:$8 sps:$4 sm:$0xff]   ;;  %v3293_v12 = vld [vmem:[%s3658_s17 + $0x10] ss:$72 sps:$4 sm:$0xff]  }
  0x8a   : > { %2351 = vmatprep.subr.bf16.mxu0 %v3208_v13  ;;  %2209 = vmatprep.mubr.bf16.mxu1 %v3295_v19  ;;  %v3296_v13 = vld [vmem:[%s4424_s1 + $0x300] ss:$8 sps:$4 sm:$0xff]   ;;  %v3400_v19 = vld [vmem:[%s3658_s17 + $0x3c] ss:$72 sps:$4 sm:$0xff]  }
  0x8b   : > { %2381 = vmatprep.mubr.bf16.mxu0 %v3301_v23  ;;  %v3316_v23 = vld [vmem:[%s4424_s1 + $0x724] ss:$8 sps:$4 sm:$0xff]  }
  0x8c   : > { %2180 = vmatpush1.bf16.msra.mxu1 %v3203_v14  ;;  %v3299_v14 = vld [vmem:[%s3658_s17 + $0x30] ss:$72 sps:$4 sm:$0xff]  }
  0x8d   : > { %2352 = vmatpush1.bf16.msra.mxu0 %v3206_v15  ;;  %2181 = vmatprep.subr.bf16.mxu1 %v3211_v16  ;;  %v3302_v15 = vld [vmem:[%s4424_s1 + $0x700] ss:$8 sps:$4 sm:$0xff]   ;;  %v3307_v16 = vld [vmem:[%s4424_s1 + $0x314] ss:$8 sps:$4 sm:$0xff]  }
  0x8e   : > { %2353 = vmatprep.subr.bf16.mxu0 %v3214_v17  ;;  %v3310_v17 = vld [vmem:[%s4424_s1 + $0x714] ss:$8 sps:$4 sm:$0xff]  }
  0x90   : > { %2182 = vmatpush1.bf16.msra.mxu1 %v3209_v18  ;;  %v3397_v18 = vld [vmem:[%s3658_s17 + $0x1c] ss:$72 sps:$4 sm:$0xff]  }
  0x91   : > { %2354 = vmatpush1.bf16.msra.mxu0 %v3212_v20  ;;  %2183 = vmatprep.subr.bf16.mxu1 %v3217_v21  ;;  %v3305_v20 = vld [vmem:[%s4424_s1 + $0x310] ss:$8 sps:$4 sm:$0xff]  }
  0x92   : > { %2355 = vmatprep.subr.bf16.mxu0 %v3220_v22  ;;  %v3308_v21 = vld [vmem:[%s4424_s1 + $0x710] ss:$8 sps:$4 sm:$0xff]   ;;  %v3313_v22 = vld [vmem:[%s4424_s1 + $0x324] ss:$8 sps:$4 sm:$0xff]  }
  0x94   : > { %2184 = vmatpush1.bf16.msra.mxu1 %v3215_v24  ;;  %v3311_v24 = vld [vmem:[%s4424_s1 + $0x320] ss:$8 sps:$4 sm:$0xff]  }
  0x95   : > { %2356 = vmatpush1.bf16.msra.mxu0 %v3218_v25  ;;  %2185 = vmatprep.subr.bf16.mxu1 %v3223_v26  ;;  %v3314_v25 = vld [vmem:[%s4424_s1 + $0x720] ss:$8 sps:$4 sm:$0xff]   ;;  %v3319_v26 = vld [vmem:[%s4424_s1 + $0x334] ss:$8 sps:$4 sm:$0xff]  }
  0x96   : > { %2357 = vmatprep.subr.bf16.mxu0 %v3226_v27  ;;  %v3322_v27 = vld [vmem:[%s4424_s1 + $0x734] ss:$8 sps:$4 sm:$0xff]  }
  0x98   : > { %2186 = vmatpush1.bf16.msra.mxu1 %v3221_v28  ;;  %v3317_v28 = vld [vmem:[%s4424_s1 + $0x330] ss:$8 sps:$4 sm:$0xff]  }
  0x99   : > { %2358 = vmatpush1.bf16.msra.mxu0 %v3224_v29  ;;  %2187 = vmatprep.subr.bf16.mxu1 %v3229_v30  ;;  %v3320_v29 = vld [vmem:[%s4424_s1 + $0x730] ss:$8 sps:$4 sm:$0xff]   ;;  %v3325_v30 = vld [vmem:[%s4424_s1 + $0x344] ss:$8 sps:$4 sm:$0xff]  }
  0x9a   : > { %2359 = vmatprep.subr.bf16.mxu0 %v3232_v31  ;;  %v3328_v31 = vld [vmem:[%s4424_s1 + $0x744] ss:$8 sps:$4 sm:$0xff]  }
  0x9c   : > { %2188 = vmatpush1.bf16.msra.mxu1 %v3227_v32  ;;  %v3323_v32 = vld [vmem:[%s4424_s1 + $0x340] ss:$8 sps:$4 sm:$0xff]  }
  0x9d   : > { %2360 = vmatpush1.bf16.msra.mxu0 %v3230_v33  ;;  %2189 = vmatprep.subr.bf16.mxu1 %v3235_v34  ;;  %v3326_v33 = vld [vmem:[%s4424_s1 + $0x740] ss:$8 sps:$4 sm:$0xff]   ;;  %v3331_v34 = vld [vmem:[%s4424_s1 + $0x354] ss:$8 sps:$4 sm:$0xff]  }
  0x9e   : > { %2361 = vmatprep.subr.bf16.mxu0 %v3238_v35  ;;  %v3334_v35 = vld [vmem:[%s4424_s1 + $0x754] ss:$8 sps:$4 sm:$0xff]  }
  0xa0   : > { %2190 = vmatpush1.bf16.msra.mxu1 %v3233_v36  ;;  %v3329_v36 = vld [vmem:[%s4424_s1 + $0x350] ss:$8 sps:$4 sm:$0xff]  }
  0xa1   : > { %2362 = vmatpush1.bf16.msra.mxu0 %v3236_v37  ;;  %2191 = vmatprep.subr.bf16.mxu1 %v3241_v38  ;;  %v3332_v37 = vld [vmem:[%s4424_s1 + $0x750] ss:$8 sps:$4 sm:$0xff]   ;;  %v3337_v38 = vld [vmem:[%s4424_s1 + $0x364] ss:$8 sps:$4 sm:$0xff]  }
  0xa2   : > { %2363 = vmatprep.subr.bf16.mxu0 %v3244_v39  ;;  %v3340_v39 = vld [vmem:[%s4424_s1 + $0x764] ss:$8 sps:$4 sm:$0xff]  }
  0xa4   : > { %2192 = vmatpush1.bf16.msra.mxu1 %v3239_v40  ;;  %v3335_v40 = vld [vmem:[%s4424_s1 + $0x360] ss:$8 sps:$4 sm:$0xff]  }
  0xa5   : > { %2364 = vmatpush1.bf16.msra.mxu0 %v3242_v41  ;;  %2193 = vmatprep.subr.bf16.mxu1 %v3247_v42  ;;  %v3338_v41 = vld [vmem:[%s4424_s1 + $0x760] ss:$8 sps:$4 sm:$0xff]   ;;  %v3343_v42 = vld [vmem:[%s4424_s1 + $0x374] ss:$8 sps:$4 sm:$0xff]  }
  0xa6   : > { %2365 = vmatprep.subr.bf16.mxu0 %v3250_v43  ;;  %v3346_v43 = vld [vmem:[%s4424_s1 + $0x774] ss:$8 sps:$4 sm:$0xff]  }
  0xa8   : > { %2194 = vmatpush1.bf16.msra.mxu1 %v3245_v44  ;;  %v3341_v44 = vld [vmem:[%s4424_s1 + $0x370] ss:$8 sps:$4 sm:$0xff]  }
  0xa9   : > { %2366 = vmatpush1.bf16.msra.mxu0 %v3248_v45  ;;  %2195 = vmatprep.subr.bf16.mxu1 %v3253_v46  ;;  %v3344_v45 = vld [vmem:[%s4424_s1 + $0x770] ss:$8 sps:$4 sm:$0xff]   ;;  %v3349_v46 = vld [vmem:[%s4424_s1 + $0x384] ss:$8 sps:$4 sm:$0xff]  }
  0xaa   : > { %2367 = vmatprep.subr.bf16.mxu0 %v3256_v47  ;;  %v3352_v47 = vld [vmem:[%s4424_s1 + $0x784] ss:$8 sps:$4 sm:$0xff]  }
  0xac   : > { %2196 = vmatpush1.bf16.msra.mxu1 %v3251_v48  ;;  %v3347_v48 = vld [vmem:[%s4424_s1 + $0x380] ss:$8 sps:$4 sm:$0xff]  }
  0xad   : > { %2368 = vmatpush1.bf16.msra.mxu0 %v3254_v49  ;;  %2197 = vmatprep.subr.bf16.mxu1 %v3259_v50  ;;  %v3350_v49 = vld [vmem:[%s4424_s1 + $0x780] ss:$8 sps:$4 sm:$0xff]   ;;  %v3355_v50 = vld [vmem:[%s4424_s1 + $0x394] ss:$8 sps:$4 sm:$0xff]  }
  0xae   : > { %2369 = vmatprep.subr.bf16.mxu0 %v3262_v51  ;;  %v3358_v51 = vld [vmem:[%s4424_s1 + $0x794] ss:$8 sps:$4 sm:$0xff]  }
  0xb0   : > { %2198 = vmatpush1.bf16.msra.mxu1 %v3257_v52  ;;  %v3353_v52 = vld [vmem:[%s4424_s1 + $0x390] ss:$8 sps:$4 sm:$0xff]  }
  0xb1   : > { %2370 = vmatpush1.bf16.msra.mxu0 %v3260_v53  ;;  %2199 = vmatprep.subr.bf16.mxu1 %v3265_v54  ;;  %v3356_v53 = vld [vmem:[%s4424_s1 + $0x790] ss:$8 sps:$4 sm:$0xff]   ;;  %v3361_v54 = vld [vmem:[%s4424_s1 + $0x3a4] ss:$8 sps:$4 sm:$0xff]  }
  0xb2   : > { %2371 = vmatprep.subr.bf16.mxu0 %v3268_v55  ;;  %v3364_v55 = vld [vmem:[%s4424_s1 + $0x7a4] ss:$8 sps:$4 sm:$0xff]  }
  0xb4   : > { %2200 = vmatpush1.bf16.msra.mxu1 %v3263_v56  ;;  %v3359_v56 = vld [vmem:[%s4424_s1 + $0x3a0] ss:$8 sps:$4 sm:$0xff]  }
  0xb5   : > { %2372 = vmatpush1.bf16.msra.mxu0 %v3266_v57  ;;  %2201 = vmatprep.subr.bf16.mxu1 %v3271_v58  ;;  %v3362_v57 = vld [vmem:[%s4424_s1 + $0x7a0] ss:$8 sps:$4 sm:$0xff]   ;;  %v3367_v58 = vld [vmem:[%s4424_s1 + $0x3b4] ss:$8 sps:$4 sm:$0xff]  }
  0xb6   : > { %2373 = vmatprep.subr.bf16.mxu0 %v3274_v59  ;;  %v3370_v59 = vld [vmem:[%s4424_s1 + $0x7b4] ss:$8 sps:$4 sm:$0xff]  }
  0xb8   : > { %2202 = vmatpush1.bf16.msra.mxu1 %v3269_v60  ;;  %v3365_v60 = vld [vmem:[%s4424_s1 + $0x3b0] ss:$8 sps:$4 sm:$0xff]  }
  0xb9   : > { %2374 = vmatpush1.bf16.msra.mxu0 %v3272_v61  ;;  %2203 = vmatprep.subr.bf16.mxu1 %v3277_v62  ;;  %v3368_v61 = vld [vmem:[%s4424_s1 + $0x7b0] ss:$8 sps:$4 sm:$0xff]   ;;  %v3373_v62 = vld [vmem:[%s4424_s1 + $0x3c4] ss:$8 sps:$4 sm:$0xff]  }
  0xba   : > { %2375 = vmatprep.subr.bf16.mxu0 %v3280_v63  ;;  %v3376_v63 = vld [vmem:[%s4424_s1 + $0x7c4] ss:$8 sps:$4 sm:$0xff]  }
  0xbc   : > { %2204 = vmatpush1.bf16.msra.mxu1 %v3275_v0  ;;  %v3371_v0 = vld [vmem:[%s4424_s1 + $0x3c0] ss:$8 sps:$4 sm:$0xff]  }
  0xbd   : > { %2376 = vmatpush1.bf16.msra.mxu0 %v3278_v1  ;;  %2205 = vmatprep.subr.bf16.mxu1 %v3283_v2  ;;  %v3374_v1 = vld [vmem:[%s4424_s1 + $0x7c0] ss:$8 sps:$4 sm:$0xff]   ;;  %v3379_v2 = vld [vmem:[%s4424_s1 + $0x3d4] ss:$8 sps:$4 sm:$0xff]  }
  0xbe   : > { %2377 = vmatprep.subr.bf16.mxu0 %v3286_v3  ;;  %v3382_v3 = vld [vmem:[%s4424_s1 + $0x7d4] ss:$8 sps:$4 sm:$0xff]  }
  0xc0   : > { %2206 = vmatpush1.bf16.msra.mxu1 %v3281_v4  ;;  %v3377_v4 = vld [vmem:[%s4424_s1 + $0x3d0] ss:$8 sps:$4 sm:$0xff]  }
  0xc1   : > { %2378 = vmatpush1.bf16.msra.mxu0 %v3284_v5  ;;  %2207 = vmatprep.subr.bf16.mxu1 %v3289_v6  ;;  %v3380_v5 = vld [vmem:[%s4424_s1 + $0x7d0] ss:$8 sps:$4 sm:$0xff]   ;;  %v3385_v6 = vld [vmem:[%s4424_s1 + $0x3e4] ss:$8 sps:$4 sm:$0xff]  }
  0xc2   : > { %2379 = vmatprep.subr.bf16.mxu0 %v3292_v7  ;;  %v3388_v7 = vld [vmem:[%s4424_s1 + $0x7e4] ss:$8 sps:$4 sm:$0xff]  }
  0xc4   : > { %2208 = vmatpush1.bf16.msra.mxu1 %v3287_v8  ;;  %v3383_v8 = vld [vmem:[%s4424_s1 + $0x3e0] ss:$8 sps:$4 sm:$0xff]  }
  0xc5   : > { %2380 = vmatpush1.bf16.msra.mxu0 %v3290_v9  ;;  %2220 = vmatprep.subr.bf16.mxu1 %v3298_v10  ;;  %v3386_v9 = vld [vmem:[%s4424_s1 + $0x7e0] ss:$8 sps:$4 sm:$0xff]   ;;  %v3391_v10 = vld [vmem:[%s4424_s1 + $0x3f4] ss:$8 sps:$4 sm:$0xff]  }
  0xc6   : > { %2392 = vmatprep.subr.bf16.mxu0 %v3304_v11  ;;  %v3394_v11 = vld [vmem:[%s4424_s1 + $0x7f4] ss:$8 sps:$4 sm:$0xff]  }
  0xc7   : > { %2210 = vmatmul.mubr.bf16.vlgmr.msra.gmra.mrb[0].mxu1 %v3293_v12  ;;  %v3389_v12 = vld [vmem:[%s4424_s1 + $0x3f0] ss:$8 sps:$4 sm:$0xff]  }
  0xc8   : > { %2382 = vmatmul.mubr.bf16.vlgmr.msra.gmra.mrb[0].mxu0 %v3299_v14  ;;  %2221 = vmatpush1.bf16.msra.mxu1 %v3296_v13  ;;  %v3392_v13 = vld [vmem:[%s4424_s1 + $0x7f0] ss:$8 sps:$4 sm:$0xff]   ;;  %v3403_v14 = vld [vmem:[%s4424_s1 + $0x804] ss:$8 sps:$4 sm:$0xff]  }
  0xc9   : > { %2393 = vmatpush1.bf16.msra.mxu0 %v3302_v15  ;;  %2222 = vmatprep.subr.bf16.mxu1 %v3307_v16  ;;  %v3395_v15 = vld [vmem:[%s3658_s17 + $0x18] ss:$72 sps:$4 sm:$0xff]  }
  0xca   : > { %2394 = vmatprep.subr.bf16.mxu0 %v3310_v17  ;;  %2252 = vmatprep.mubr.bf16.mxu1 %v3397_v18  ;;  %v3398_v16 = vld [vmem:[%s3658_s17 + $0x38] ss:$72 sps:$4 sm:$0xff]   ;;  %v3451_v18 = vld [vmem:[%s3658_s17 + $0x44] ss:$72 sps:$4 sm:$0xff]  }
  0xcb   : > { %2424 = vmatprep.mubr.bf16.mxu0 %v3400_v19  ;;  %v3401_v17 = vld [vmem:[%s4424_s1 + $0x800] ss:$8 sps:$4 sm:$0xff]   ;;  %v3406_v19 = vld [vmem:[%s4424_s1 + $0x814] ss:$8 sps:$4 sm:$0xff]  }
  0xcc   : > { %2223 = vmatpush1.bf16.msra.mxu1 %v3305_v20  ;;  %v3404_v20 = vld [vmem:[%s4424_s1 + $0x810] ss:$8 sps:$4 sm:$0xff]  }
  0xcd   : > { %2395 = vmatpush1.bf16.msra.mxu0 %v3308_v21  ;;  %2224 = vmatprep.subr.bf16.mxu1 %v3313_v22  ;;  %v3409_v21 = vld [vmem:[%s4424_s1 + $0x824] ss:$8 sps:$4 sm:$0xff]   ;;  %v3407_v22 = vld [vmem:[%s4424_s1 + $0x820] ss:$8 sps:$4 sm:$0xff]  }
  0xce   : > { %2396 = vmatprep.subr.bf16.mxu0 %v3316_v23  ;;  %v3412_v23 = vld [vmem:[%s4424_s1 + $0x834] ss:$8 sps:$4 sm:$0xff]  }
  0xd0   : > { %2225 = vmatpush1.bf16.msra.mxu1 %v3311_v24  ;;  %v3410_v24 = vld [vmem:[%s4424_s1 + $0x830] ss:$8 sps:$4 sm:$0xff]  }
  0xd1   : > { %2397 = vmatpush1.bf16.msra.mxu0 %v3314_v25  ;;  %2226 = vmatprep.subr.bf16.mxu1 %v3319_v26  ;;  %v3415_v25 = vld [vmem:[%s4424_s1 + $0x844] ss:$8 sps:$4 sm:$0xff]   ;;  %v3413_v26 = vld [vmem:[%s4424_s1 + $0x840] ss:$8 sps:$4 sm:$0xff]  }
  0xd2   : > { %2398 = vmatprep.subr.bf16.mxu0 %v3322_v27  ;;  %v3418_v27 = vld [vmem:[%s4424_s1 + $0x854] ss:$8 sps:$4 sm:$0xff]  }
  0xd4   : > { %2227 = vmatpush1.bf16.msra.mxu1 %v3317_v28  ;;  %v3416_v28 = vld [vmem:[%s4424_s1 + $0x850] ss:$8 sps:$4 sm:$0xff]  }
  0xd5   : > { %2399 = vmatpush1.bf16.msra.mxu0 %v3320_v29  ;;  %2228 = vmatprep.subr.bf16.mxu1 %v3325_v30  ;;  %v3421_v29 = vld [vmem:[%s4424_s1 + $0x864] ss:$8 sps:$4 sm:$0xff]   ;;  %v3419_v30 = vld [vmem:[%s4424_s1 + $0x860] ss:$8 sps:$4 sm:$0xff]  }
  0xd6   : > { %2400 = vmatprep.subr.bf16.mxu0 %v3328_v31  ;;  %v3424_v31 = vld [vmem:[%s4424_s1 + $0x874] ss:$8 sps:$4 sm:$0xff]  }
  0xd8   : > { %2229 = vmatpush1.bf16.msra.mxu1 %v3323_v32  ;;  %v3422_v32 = vld [vmem:[%s4424_s1 + $0x870] ss:$8 sps:$4 sm:$0xff]  }
  0xd9   : > { %2401 = vmatpush1.bf16.msra.mxu0 %v3326_v33  ;;  %2230 = vmatprep.subr.bf16.mxu1 %v3331_v34  ;;  %v3427_v33 = vld [vmem:[%s4424_s1 + $0x884] ss:$8 sps:$4 sm:$0xff]   ;;  %v3425_v34 = vld [vmem:[%s4424_s1 + $0x880] ss:$8 sps:$4 sm:$0xff]  }
  0xda   : > { %2402 = vmatprep.subr.bf16.mxu0 %v3334_v35  ;;  %v3430_v35 = vld [vmem:[%s4424_s1 + $0x894] ss:$8 sps:$4 sm:$0xff]  }
  0xdc   : > { %2231 = vmatpush1.bf16.msra.mxu1 %v3329_v36  ;;  %v3428_v36 = vld [vmem:[%s4424_s1 + $0x890] ss:$8 sps:$4 sm:$0xff]  }
  0xdd   : > { %2403 = vmatpush1.bf16.msra.mxu0 %v3332_v37  ;;  %2232 = vmatprep.subr.bf16.mxu1 %v3337_v38  ;;  %v3433_v37 = vld [vmem:[%s4424_s1 + $0x8a4] ss:$8 sps:$4 sm:$0xff]   ;;  %v3431_v38 = vld [vmem:[%s4424_s1 + $0x8a0] ss:$8 sps:$4 sm:$0xff]  }
  0xde   : > { %2404 = vmatprep.subr.bf16.mxu0 %v3340_v39  ;;  %v3436_v39 = vld [vmem:[%s4424_s1 + $0x8b4] ss:$8 sps:$4 sm:$0xff]  }
  0xe0   : > { %2233 = vmatpush1.bf16.msra.mxu1 %v3335_v40  ;;  %v3434_v40 = vld [vmem:[%s4424_s1 + $0x8b0] ss:$8 sps:$4 sm:$0xff]  }
  0xe1   : > { %2405 = vmatpush1.bf16.msra.mxu0 %v3338_v41  ;;  %2234 = vmatprep.subr.bf16.mxu1 %v3343_v42  ;;  %v3439_v41 = vld [vmem:[%s4424_s1 + $0x8c4] ss:$8 sps:$4 sm:$0xff]   ;;  %v3437_v42 = vld [vmem:[%s4424_s1 + $0x8c0] ss:$8 sps:$4 sm:$0xff]  }
  0xe2   : > { %2406 = vmatprep.subr.bf16.mxu0 %v3346_v43  ;;  %v3442_v43 = vld [vmem:[%s4424_s1 + $0x8d4] ss:$8 sps:$4 sm:$0xff]  }
  0xe4   : > { %2235 = vmatpush1.bf16.msra.mxu1 %v3341_v44  ;;  %v3440_v44 = vld [vmem:[%s4424_s1 + $0x8d0] ss:$8 sps:$4 sm:$0xff]  }
  0xe5   : > { %2407 = vmatpush1.bf16.msra.mxu0 %v3344_v45  ;;  %2236 = vmatprep.subr.bf16.mxu1 %v3349_v46  ;;  %v3445_v45 = vld [vmem:[%s4424_s1 + $0x8e4] ss:$8 sps:$4 sm:$0xff]   ;;  %v3443_v46 = vld [vmem:[%s4424_s1 + $0x8e0] ss:$8 sps:$4 sm:$0xff]  }
  0xe6   : > { %2408 = vmatprep.subr.bf16.mxu0 %v3352_v47  ;;  %v3448_v47 = vld [vmem:[%s4424_s1 + $0x8f4] ss:$8 sps:$4 sm:$0xff]  }
  0xe8   : > { %2237 = vmatpush1.bf16.msra.mxu1 %v3347_v48  ;;  %v3446_v48 = vld [vmem:[%s4424_s1 + $0x8f0] ss:$8 sps:$4 sm:$0xff]  }
  0xe9   : > { %2409 = vmatpush1.bf16.msra.mxu0 %v3350_v49  ;;  %2238 = vmatprep.subr.bf16.mxu1 %v3355_v50  ;;  %v3449_v49 = vld [vmem:[%s3658_s17 + $0x40] ss:$72 sps:$4 sm:$0xff]   ;;  %s2929_s17 = sshll.u32 %s4432_s30, 3 }
  0xea   : > { %2410 = vmatprep.subr.bf16.mxu0 %v3358_v51  ;;  %s240_s24 = scalar_lea.vmem %s4426_s3, %s2929_s17 }
  0xec   : > { %2239 = vmatpush1.bf16.msra.mxu1 %v3353_v52 }
  0xed   : > { %2411 = vmatpush1.bf16.msra.mxu0 %v3356_v53  ;;  %2240 = vmatprep.subr.bf16.mxu1 %v3361_v54  ;;  %v551_v54 = vlaneseq }
  0xee   : > { %2412 = vmatprep.subr.bf16.mxu0 %v3364_v55 }
  0xef   : > { %v552_v55 = vshrl.u32 %v551_v54, 7 }
  0xf0   : > { %2241 = vmatpush1.bf16.msra.mxu1 %v3359_v56 }
  0xf1   : > { %2413 = vmatpush1.bf16.msra.mxu0 %v3362_v57  ;;  %2242 = vmatprep.subr.bf16.mxu1 %v3367_v58  ;;  %v553_v56 = vsub.s32 0, %v552_v55  ;;  %v549_v57 = vld [vmem:[%s4425_s2] sm:$0x3]  ;;  %v557_v58 = vsub.s32 1, %v552_v55 }
  0xf2   : > { %2414 = vmatprep.subr.bf16.mxu0 %v3370_v59 }
  0xf3   : > { %v554_v59 = vrot.slane %v549_v57, %v553_v56 }
  0xf4   : > { %2243 = vmatpush1.bf16.msra.mxu1 %v3365_v60  ;;  %v558_v60 = vrot.slane %v549_v57, %v557_v58 }
  0xf5   : > { %2415 = vmatpush1.bf16.msra.mxu0 %v3368_v61  ;;  %2244 = vmatprep.subr.bf16.mxu1 %v3373_v62 }
  0xf6   : > { %2416 = vmatprep.subr.bf16.mxu0 %v3376_v63 }
  0xf8   : > { %2245 = vmatpush1.bf16.msra.mxu1 %v3371_v0 }
  0xf9   : > { %2417 = vmatpush1.bf16.msra.mxu0 %v3374_v1  ;;  %2246 = vmatprep.subr.bf16.mxu1 %v3379_v2 }
  0xfa   : > { %2418 = vmatprep.subr.bf16.mxu0 %v3382_v3 }
  0xfc   : > { %2247 = vmatpush1.bf16.msra.mxu1 %v3377_v4 }
  0xfd   : > { %2419 = vmatpush1.bf16.msra.mxu0 %v3380_v5  ;;  %2248 = vmatprep.subr.bf16.mxu1 %v3385_v6 }
  0xfe   : > { %2420 = vmatprep.subr.bf16.mxu0 %v3388_v7 }
 0x100   : > { %2249 = vmatpush1.bf16.msra.mxu1 %v3383_v8 }
 0x101   : > { %2421 = vmatpush1.bf16.msra.mxu0 %v3386_v9  ;;  %2250 = vmatprep.subr.bf16.mxu1 %v3391_v10 }
 0x102   : > { %2422 = vmatprep.subr.bf16.mxu0 %v3394_v11 }
 0x104   : > { %2251 = vmatpush1.bf16.msra.mxu1 %v3389_v12 }
 0x105   : > { %2423 = vmatpush1.bf16.msra.mxu0 %v3392_v13 }
 0x106   : > { %2435 = vmatprep.subr.bf16.mxu0 %v3403_v14 }
 0x107   : > { %2253 = vmatmul.mubr.bf16.vlgmr.msra.gmra.mrb[0].mxu1 %v3395_v15 }
 0x108   : > { %2425 = vmatmul.mubr.bf16.vlgmr.msra.gmra.mrb[0].mxu0 %v3398_v16 }
 0x109   : > { %2436 = vmatpush1.bf16.msra.mxu0 %v3401_v17  ;;  %2467 = vmatprep.mubr.bf16.mxu0 %v3451_v18 }
 0x10a   : > { %2437 = vmatprep.subr.bf16.mxu0 %v3406_v19 }
 0x10d   : > { %2438 = vmatpush1.bf16.msra.mxu0 %v3404_v20 }
 0x10e   : > { %2439 = vmatprep.subr.bf16.mxu0 %v3409_v21 }
 0x111   : > { %2440 = vmatpush1.bf16.msra.mxu0 %v3407_v22 }
 0x112   : > { %2441 = vmatprep.subr.bf16.mxu0 %v3412_v23 }
 0x115   : > { %2442 = vmatpush1.bf16.msra.mxu0 %v3410_v24 }
 0x116   : > { %2443 = vmatprep.subr.bf16.mxu0 %v3415_v25 }
 0x119   : > { %2444 = vmatpush1.bf16.msra.mxu0 %v3413_v26 }
 0x11a   : > { %2445 = vmatprep.subr.bf16.mxu0 %v3418_v27 }
 0x11d   : > { %2446 = vmatpush1.bf16.msra.mxu0 %v3416_v28 }
 0x11e   : > { %2447 = vmatprep.subr.bf16.mxu0 %v3421_v29 }
 0x121   : > { %2448 = vmatpush1.bf16.msra.mxu0 %v3419_v30 }
 0x122   : > { %2449 = vmatprep.subr.bf16.mxu0 %v3424_v31 }
 0x125   : > { %2450 = vmatpush1.bf16.msra.mxu0 %v3422_v32 }
 0x126   : > { %2451 = vmatprep.subr.bf16.mxu0 %v3427_v33 }
 0x129   : > { %2452 = vmatpush1.bf16.msra.mxu0 %v3425_v34 }
 0x12a   : > { %2453 = vmatprep.subr.bf16.mxu0 %v3430_v35 }
 0x12d   : > { %2454 = vmatpush1.bf16.msra.mxu0 %v3428_v36 }
 0x12e   : > { %2455 = vmatprep.subr.bf16.mxu0 %v3433_v37 }
 0x131   : > { %2456 = vmatpush1.bf16.msra.mxu0 %v3431_v38 }
 0x132   : > { %2457 = vmatprep.subr.bf16.mxu0 %v3436_v39 }
 0x135   : > { %2458 = vmatpush1.bf16.msra.mxu0 %v3434_v40 }
 0x136   : > { %2459 = vmatprep.subr.bf16.mxu0 %v3439_v41 }
 0x139   : > { %2460 = vmatpush1.bf16.msra.mxu0 %v3437_v42 }
 0x13a   : > { %2461 = vmatprep.subr.bf16.mxu0 %v3442_v43 }
 0x13d   : > { %2462 = vmatpush1.bf16.msra.mxu0 %v3440_v44 }
 0x13e   : > { %2463 = vmatprep.subr.bf16.mxu0 %v3445_v45 }
 0x141   : > { %2464 = vmatpush1.bf16.msra.mxu0 %v3443_v46 }
 0x142   : > { %2465 = vmatprep.subr.bf16.mxu0 %v3448_v47 }
 0x145   : > { %2466 = vmatpush1.bf16.msra.mxu0 %v3446_v48 }
 0x148   : > { %2468 = vmatmul.mubr.bf16.vlgmr.msra.gmra.mrb[0].mxu0 %v3449_v49 }
 0x1da   : > { %v2254_v50 = vpop.f32.mrb[0].mxu1 }
 0x1db   : > { %v2256_v51 = vpop.f32.mrb[1].mxu1  ;;  %v2932_v61 = vadd.f32 %v2254_v50, %v554_v59 }
 0x1dc   : > { %v2258_v52 = vpop.f32.mrb[2].mxu1  ;;  %v2934_v62 = vadd.f32 %v2256_v51, %v558_v60 }
 0x1dd   : > { %v2260_v53 = vpop.f32.mrb[3].mxu1  ;;  %v2936_v0 = vadd.f32 %v2258_v52, %v554_v59 }
 0x1de   : > { %v2938_v3 = vadd.f32 %v2260_v53, %v558_v60 }
 0x21b   : > { %v2469_v63 = vpop.f32.mrb[0].mxu0 }
 0x21c   : > { %v2933_v1 = vadd.f32 %v2932_v61, %v2469_v63  ;;  %v2471_v2 = vpop.f32.mrb[1].mxu0 }
 0x21d   : > { %v2935_v4 = vadd.f32 %v2934_v62, %v2471_v2  ;;  %v2473_v5 = vpop.f32.mrb[2].mxu0 }
 0x21e   : > { %v2478_v6 = vmax.f32 %v2933_v1, 0.0  ;;  %v2937_v7 = vadd.f32 %v2936_v0, %v2473_v5  ;;  %v2475_v8 = vpop.f32.mrb[3].mxu0 }
 0x21f   : > { %v2479_v9 = vmax.f32 %v2935_v4, 0.0  ;;  %v2939_v10 = vadd.f32 %v2938_v3, %v2475_v8 }
 0x220   : > { %v2480_v11 = vmax.f32 %v2937_v7, 0.0 }
 0x221   : > { %v2930_v12 = vpack.c.bf16 %v2479_v9, %v2478_v6  ;;  %v2481_v13 = vmax.f32 %v2939_v10, 0.0 }
 0x223   : > { %2494 = vst [vmem:[%s240_s24] sm:$0xff] %v2930_v12  ;;  %v2931_v14 = vpack.c.bf16 %v2481_v13, %v2480_v11 }
 0x225   : > { %2495 = vst [vmem:[%s240_s24 + $0x8] sm:$0xff] %v2931_v14 }
 0x226 PF: > { %s13_s14 = sadd.s32 1, %s3474_s14   ;;  %s4427_s12 = smov %s3470_s13 }
 0x227   : > { %p10_p5 = scmp.ge.s32.totalorder %s13_s14, 4   ;;  %s4428_s13 = smov %s4430_s15 }
 0x229   :  { %12 = sbr.rel (!%p10_p5) target bundleno = 2 (0x2), region = 68 }

</bundles_post_ra>
